<compile_context>
chip_gen: v6e
topology: v6e:2x2x1
jax: 0.10.0
libtpu: 0.0.40
codegen_flags: <defaults>
</compile_context>

<pallas_src>
import functools

import jax
import jax.numpy as jnp
from jax import lax
from jax.experimental import pallas as pl
from jax.experimental.pallas import tpu as pltpu


def _node_kernel(dt_ref, x_ref, w1_ref, b1_ref, w2_ref, b2_ref, mask_ref,
                 out_ref, *, n_t, wp, marg):
    """Fused Euler integration of y' = conv3x3 -> ReLU -> conv3x3 (y).

    One grid step = one batch image, all n_t Euler steps.

    dt_ref  : SMEM (1, 1) f32      Euler step size
    x_ref   : (1, Cin, PP) f32     initial state, padded-flat (lane-padded)
    w1_ref  : (Ch, 9*Cin) f32      conv1 weights, column = tap*Cin + cin
    b1_ref  : (Ch, 1) f32
    w2_ref  : (9*Cout, Ch) f32     conv2 weights, row = tap*Cout + cout
    b2_ref  : (Cout, 1) f32
    mask_ref: (1, PP) f32          1.0 on interior pixels, 0.0 on halo / pad
    out_ref : (1, Cout, PP) f32    final state, padded-flat
    """
    cin, pp = x_ref.shape[1], x_ref.shape[2]
    ch = w1_ref.shape[0]
    cout = b2_ref.shape[0]

    # Hoisted loads: weights / biases / mask / dt*mask are read once and
    # reused by every Euler step (nothing re-DMAed or re-computed per step).
    dt = dt_ref[0, 0]
    w1 = w1_ref[...]
    b1 = b1_ref[...]
    w2 = w2_ref[...]
    b2 = b2_ref[...]
    mask = mask_ref[...]
    dt_mask = dt * mask

    # Lane shift of tap (dh, dw) relative to an output pixel in padded-flat
    # coordinates q = (h+1)*Wp + (w+1).
    shifts = [(dh - 1) * wp + (dw - 1) for dh in range(3) for dw in range(3)]

    zc = jnp.zeros((cin, marg), jnp.float32)         # lane margins for shifts
    zg = jnp.zeros((9 * cout, marg), jnp.float32)

    def euler_step(y):
        # y: (Cin, PP) padded-flat state; halo/pad lanes are identically zero.
        # ---- conv1: shift the narrow Cin side, ONE K = 9*Cin matmul ----
        y_ext = jnp.concatenate([zc, y, zc], axis=1)
        taps1 = jnp.concatenate(
            [y_ext[:, marg + s: marg + s + pp] for s in shifts], axis=0)
        h = jnp.maximum(
            jnp.dot(w1, taps1, preferred_element_type=jnp.float32) + b1, 0.0)
        h = h * mask                       # keep conv2's zero padding exact
        # ---- conv2: ONE (9*Cout, Ch) @ (Ch, PP) matmul producing all nine
        #      tap-partials, then shift the narrow Cout side on the OUTPUT ----
        g = jnp.dot(w2, h, preferred_element_type=jnp.float32)
        g_ext = jnp.concatenate([zg, g, zg], axis=1)
        f = g_ext[0:cout, marg + shifts[0]: marg + shifts[0] + pp]
        for t in range(1, 9):
            f = f + g_ext[t * cout:(t + 1) * cout,
                          marg + shifts[t]: marg + shifts[t] + pp]
        # In-register Euler update; dt_mask keeps the halo/pad at zero.
        return y + dt_mask * (f + b2)

    y = x_ref[0]
    # n_t is a static compile-time constant -> fully unrolled time loop.
    for _ in range(n_t):
        y = euler_step(y)
    out_ref[0] = y


@functools.partial(jax.jit, static_argnames=("n_t",))
def node_img_net_forward(noise_image_nchw, params, t_final, n_t):
    """NODEImgNet.forward: y(t) via n_t explicit-Euler steps of y' = F(y).

    noise_image_nchw: (N, C, H, W) float32 (PyTorch NCHW convention).
    Returns the final state, same shape/dtype.
    """
    w1, b1, w2, b2 = params          # (9,Cin,Ch), (1,Ch), (9,Ch,Cout), (1,Cout)
    n, c, h, w = noise_image_nchw.shape
    ch = w1.shape[2]
    cout = w2.shape[2]
    hp, wp = h + 2, w + 2
    p = hp * wp
    pp = ((p + 127) // 128) * 128    # lane-dense (multiple of 128) flat width
    marg = wp + 1                    # largest |tap shift|

    # One-time prep (outside the fused time loop).
    x_pf = jnp.pad(noise_image_nchw.astype(jnp.float32),
                   ((0, 0), (0, 0), (1, 1), (1, 1))).reshape(n, c, p)
    x_pf = jnp.pad(x_pf, ((0, 0), (0, 0), (0, pp - p)))
    w1_mat = jnp.transpose(w1, (2, 0, 1)).reshape(ch, 9 * c)      # (Ch, 9*Cin)
    w2_mat = jnp.transpose(w2, (0, 2, 1)).reshape(9 * cout, ch)   # (9*Cout, Ch)
    b1_col = jnp.transpose(b1)       # (Ch, 1)
    b2_col = jnp.transpose(b2)       # (Cout, 1)
    q = jnp.arange(pp, dtype=jnp.int32)
    row, col = q // wp, q % wp
    mask = (((q < p) & (row >= 1) & (row <= h) & (col >= 1) & (col <= w))
            .astype(jnp.float32)).reshape(1, pp)
    dt = (jnp.asarray(t_final, jnp.float32) / n_t).reshape(1, 1)

    kernel = functools.partial(_node_kernel, n_t=n_t, wp=wp, marg=marg)
    out_pf = pl.pallas_call(
        kernel,
        out_shape=jax.ShapeDtypeStruct((n, cout, pp), jnp.float32),
        grid=(n,),
        in_specs=[
            pl.BlockSpec(memory_space=pltpu.MemorySpace.SMEM),    # dt scalar
            pl.BlockSpec((1, c, pp), lambda i: (i, 0, 0)),        # state
            pl.BlockSpec((ch, 9 * c), lambda i: (0, 0)),          # w1
            pl.BlockSpec((ch, 1), lambda i: (0, 0)),              # b1
            pl.BlockSpec((9 * cout, ch), lambda i: (0, 0)),       # w2 (stacked)
            pl.BlockSpec((cout, 1), lambda i: (0, 0)),            # b2
            pl.BlockSpec((1, pp), lambda i: (0, 0)),              # interior mask
        ],
        out_specs=pl.BlockSpec((1, cout, pp), lambda i: (i, 0, 0)),
        compiler_params=pltpu.CompilerParams(
            dimension_semantics=("parallel",)),   # v7x: one image per TC
    )(dt, x_pf, w1_mat, b1_col, w2_mat, b2_col, mask)

    # Padded-flat -> NCHW interior (already in the PyTorch layout).
    return out_pf[:, :, :p].reshape(n, cout, hp, wp)[:, :, 1:-1, 1:-1]


def _reference_forward(noise_image_nchw, params, t_final, n_t):
    """Pure-JAX reference (lax conv) for correctness checking."""
    w1, b1, w2, b2 = params
    w1_hwio = w1.reshape(3, 3, w1.shape[1], w1.shape[2])
    w2_hwio = w2.reshape(3, 3, w2.shape[1], w2.shape[2])
    dn = ("NHWC", "HWIO", "NHWC")

    def field(y):
        hid = lax.conv_general_dilated(y, w1_hwio, (1, 1), "SAME",
                                       dimension_numbers=dn) + b1[0]
        hid = jnp.maximum(hid, 0.0)
        return lax.conv_general_dilated(hid, w2_hwio, (1, 1), "SAME",
                                        dimension_numbers=dn) + b2[0]

    dt = t_final / n_t
    y = jnp.transpose(noise_image_nchw, (0, 2, 3, 1))
    for _ in range(n_t):
        y = y + dt * field(y)
    return jnp.transpose(y, (0, 3, 1, 2))


if __name__ == "__main__":
    # Small shapes consistent with the module's image-denoising forward.
    N, C, H, W = 2, 4, 16, 16   # batch, channels, spatial
    CH = 32                     # hidden channels of the ODE vector field
    T_FINAL = 1.0               # args.t
    N_T = 8                     # args.N_t   (args.solver ~ 'euler')

    key = jax.random.PRNGKey(0)
    k_img, k_w1, k_b1, k_w2, k_b2 = jax.random.split(key, 5)

    # Deterministic parameter init (fan-in scaled normals).
    w1 = jax.random.normal(k_w1, (9, C, CH), jnp.float32) * (1.0 / (3 * 3 * C)) ** 0.5
    b1 = jax.random.normal(k_b1, (1, CH), jnp.float32) * 0.01
    w2 = jax.random.normal(k_w2, (9, CH, C), jnp.float32) * (1.0 / (3 * 3 * CH)) ** 0.5
    b2 = jax.random.normal(k_b2, (1, C), jnp.float32) * 0.01
    params = (w1, b1, w2, b2)

    noise_image = jax.random.normal(k_img, (N, C, H, W), jnp.float32)

    out = node_img_net_forward(noise_image, params, T_FINAL, N_T)
    out = jax.block_until_ready(out)
    assert out.shape == (N, C, H, W) and out.dtype == jnp.float32

    ref = _reference_forward(noise_image, params, T_FINAL, N_T)
    assert jnp.allclose(out, ref, atol=3e-4, rtol=3e-4), "mismatch vs reference"

    print("KERNEL_OK")
</pallas_src>

<mosaic_0001>
module attributes {stable_mosaic.version = 11 : i64} {
  func.func @_node_kernel(%arg0: i32, %arg1: memref<1x1xf32, #tpu.memory_space<smem>>, %arg2: memref<1x4x384xf32, #tpu.memory_space<vmem>>, %arg3: memref<32x36xf32, #tpu.memory_space<vmem>>, %arg4: memref<32x1xf32, #tpu.memory_space<vmem>>, %arg5: memref<36x32xf32, #tpu.memory_space<vmem>>, %arg6: memref<4x1xf32, #tpu.memory_space<vmem>>, %arg7: memref<1x384xf32, #tpu.memory_space<vmem>>, %arg8: memref<1x4x384xf32, #tpu.memory_space<vmem>>) attributes {dimension_semantics = [#tpu.dimension_semantics<parallel>], iteration_bounds = array<i64: 2>, scalar_prefetch = 0 : i64, scratch_operands = 0 : i64, tpu.core_type = #tpu.core_type<tc>, window_params = [{transform_indices = @transform_0, window_bounds = array<i64: 1, 1>}, {transform_indices = @transform_1, window_bounds = array<i64: 1, 4, 384>}, {pipeline_mode = #tpu.pipeline_mode<synchronous>, transform_indices = @transform_2, window_bounds = array<i64: 32, 36>}, {pipeline_mode = #tpu.pipeline_mode<synchronous>, transform_indices = @transform_3, window_bounds = array<i64: 32, 1>}, {pipeline_mode = #tpu.pipeline_mode<synchronous>, transform_indices = @transform_4, window_bounds = array<i64: 36, 32>}, {pipeline_mode = #tpu.pipeline_mode<synchronous>, transform_indices = @transform_5, window_bounds = array<i64: 4, 1>}, {pipeline_mode = #tpu.pipeline_mode<synchronous>, transform_indices = @transform_6, window_bounds = array<i64: 1, 384>}, {transform_indices = @transform_7, window_bounds = array<i64: 1, 4, 384>}]} {
    %c0 = arith.constant 0 : index
    %c0_0 = arith.constant 0 : index
    %0 = memref.load %arg1[%c0, %c0_0] : memref<1x1xf32, #tpu.memory_space<smem>>
    %c0_1 = arith.constant 0 : index
    %c0_2 = arith.constant 0 : index
    %1 = vector.load %arg3[%c0_1, %c0_2] : memref<32x36xf32, #tpu.memory_space<vmem>>, vector<32x36xf32>
    %c0_3 = arith.constant 0 : index
    %c0_4 = arith.constant 0 : index
    %2 = vector.load %arg4[%c0_3, %c0_4] : memref<32x1xf32, #tpu.memory_space<vmem>>, vector<32x1xf32>
    %c0_5 = arith.constant 0 : index
    %c0_6 = arith.constant 0 : index
    %3 = vector.load %arg5[%c0_5, %c0_6] : memref<36x32xf32, #tpu.memory_space<vmem>>, vector<36x32xf32>
    %c0_7 = arith.constant 0 : index
    %c0_8 = arith.constant 0 : index
    %4 = vector.load %arg6[%c0_7, %c0_8] : memref<4x1xf32, #tpu.memory_space<vmem>>, vector<4x1xf32>
    %c0_9 = arith.constant 0 : index
    %c0_10 = arith.constant 0 : index
    %5 = vector.load %arg7[%c0_9, %c0_10] : memref<1x384xf32, #tpu.memory_space<vmem>>, vector<1x384xf32>
    %6 = vector.broadcast %0 : f32 to vector<1x384xf32>
    %7 = arith.mulf %6, %5 : vector<1x384xf32>
    %cst = arith.constant 0.000000e+00 : f32
    %8 = vector.broadcast %cst : f32 to vector<4x19xf32>
    %cst_11 = arith.constant 0.000000e+00 : f32
    %9 = vector.broadcast %cst_11 : f32 to vector<36x19xf32>
    %c0_12 = arith.constant 0 : index
    %c0_13 = arith.constant 0 : index
    %c0_14 = arith.constant 0 : index
    %10 = vector.load %arg2[%c0_12, %c0_13, %c0_14] : memref<1x4x384xf32, #tpu.memory_space<vmem>>, vector<1x4x384xf32>
    %11 = vector.shape_cast %10 : vector<1x4x384xf32> to vector<4x384xf32>
    %12 = tpu.concatenate %8, %11, %8 in 1 : vector<4x19xf32>, vector<4x384xf32>, vector<4x19xf32> -> vector<4x422xf32>
    %13 = vector.extract_strided_slice %12 {offsets = [0, 0], sizes = [4, 384], strides = [1, 1]} : vector<4x422xf32> to vector<4x384xf32>
    %14 = vector.extract_strided_slice %12 {offsets = [0, 1], sizes = [4, 384], strides = [1, 1]} : vector<4x422xf32> to vector<4x384xf32>
    %15 = vector.extract_strided_slice %12 {offsets = [0, 2], sizes = [4, 384], strides = [1, 1]} : vector<4x422xf32> to vector<4x384xf32>
    %16 = vector.extract_strided_slice %12 {offsets = [0, 18], sizes = [4, 384], strides = [1, 1]} : vector<4x422xf32> to vector<4x384xf32>
    %17 = vector.extract_strided_slice %12 {offsets = [0, 19], sizes = [4, 384], strides = [1, 1]} : vector<4x422xf32> to vector<4x384xf32>
    %18 = vector.extract_strided_slice %12 {offsets = [0, 20], sizes = [4, 384], strides = [1, 1]} : vector<4x422xf32> to vector<4x384xf32>
    %19 = vector.extract_strided_slice %12 {offsets = [0, 36], sizes = [4, 384], strides = [1, 1]} : vector<4x422xf32> to vector<4x384xf32>
    %20 = vector.extract_strided_slice %12 {offsets = [0, 37], sizes = [4, 384], strides = [1, 1]} : vector<4x422xf32> to vector<4x384xf32>
    %21 = vector.extract_strided_slice %12 {offsets = [0, 38], sizes = [4, 384], strides = [1, 1]} : vector<4x422xf32> to vector<4x384xf32>
    %22 = tpu.concatenate %13, %14, %15, %16, %17, %18, %19, %20, %21 in 0 : vector<4x384xf32>, vector<4x384xf32>, vector<4x384xf32>, vector<4x384xf32>, vector<4x384xf32>, vector<4x384xf32>, vector<4x384xf32>, vector<4x384xf32>, vector<4x384xf32> -> vector<36x384xf32>
    %cst_15 = arith.constant dense<0.000000e+00> : vector<32x384xf32>
    %23 = tpu.matmul %1, %22, %cst_15 {dimension_numbers = #tpu.dot_dimension_numbers<[1], [0], [0], [1], [0, 0, 1, 1], [], []>} : vector<32x36xf32>, vector<36x384xf32>, vector<32x384xf32> -> vector<32x384xf32>
    %24 = vector.broadcast %2 : vector<32x1xf32> to vector<32x384xf32>
    %25 = arith.addf %23, %24 : vector<32x384xf32>
    %cst_16 = arith.constant 0.000000e+00 : f32
    %26 = vector.broadcast %cst_16 : f32 to vector<32x384xf32>
    %27 = arith.maximumf %25, %26 : vector<32x384xf32>
    %28 = vector.broadcast %5 : vector<1x384xf32> to vector<32x384xf32>
    %29 = arith.mulf %27, %28 : vector<32x384xf32>
    %cst_17 = arith.constant dense<0.000000e+00> : vector<36x384xf32>
    %30 = tpu.matmul %3, %29, %cst_17 {dimension_numbers = #tpu.dot_dimension_numbers<[1], [0], [0], [1], [0, 0, 1, 1], [], []>} : vector<36x32xf32>, vector<32x384xf32>, vector<36x384xf32> -> vector<36x384xf32>
    %31 = tpu.concatenate %9, %30, %9 in 1 : vector<36x19xf32>, vector<36x384xf32>, vector<36x19xf32> -> vector<36x422xf32>
    %32 = vector.extract_strided_slice %31 {offsets = [0, 0], sizes = [4, 384], strides = [1, 1]} : vector<36x422xf32> to vector<4x384xf32>
    %33 = vector.extract_strided_slice %31 {offsets = [4, 1], sizes = [4, 384], strides = [1, 1]} : vector<36x422xf32> to vector<4x384xf32>
    %34 = arith.addf %32, %33 : vector<4x384xf32>
    %35 = vector.extract_strided_slice %31 {offsets = [8, 2], sizes = [4, 384], strides = [1, 1]} : vector<36x422xf32> to vector<4x384xf32>
    %36 = arith.addf %34, %35 : vector<4x384xf32>
    %37 = vector.extract_strided_slice %31 {offsets = [12, 18], sizes = [4, 384], strides = [1, 1]} : vector<36x422xf32> to vector<4x384xf32>
    %38 = arith.addf %36, %37 : vector<4x384xf32>
    %39 = vector.extract_strided_slice %31 {offsets = [16, 19], sizes = [4, 384], strides = [1, 1]} : vector<36x422xf32> to vector<4x384xf32>
    %40 = arith.addf %38, %39 : vector<4x384xf32>
    %41 = vector.extract_strided_slice %31 {offsets = [20, 20], sizes = [4, 384], strides = [1, 1]} : vector<36x422xf32> to vector<4x384xf32>
    %42 = arith.addf %40, %41 : vector<4x384xf32>
    %43 = vector.extract_strided_slice %31 {offsets = [24, 36], sizes = [4, 384], strides = [1, 1]} : vector<36x422xf32> to vector<4x384xf32>
    %44 = arith.addf %42, %43 : vector<4x384xf32>
    %45 = vector.extract_strided_slice %31 {offsets = [28, 37], sizes = [4, 384], strides = [1, 1]} : vector<36x422xf32> to vector<4x384xf32>
    %46 = arith.addf %44, %45 : vector<4x384xf32>
    %47 = vector.extract_strided_slice %31 {offsets = [32, 38], sizes = [4, 384], strides = [1, 1]} : vector<36x422xf32> to vector<4x384xf32>
    %48 = arith.addf %46, %47 : vector<4x384xf32>
    %49 = vector.broadcast %4 : vector<4x1xf32> to vector<4x384xf32>
    %50 = arith.addf %48, %49 : vector<4x384xf32>
    %51 = vector.broadcast %7 : vector<1x384xf32> to vector<4x384xf32>
    %52 = arith.mulf %51, %50 : vector<4x384xf32>
    %53 = arith.addf %11, %52 : vector<4x384xf32>
    %54 = tpu.concatenate %8, %53, %8 in 1 : vector<4x19xf32>, vector<4x384xf32>, vector<4x19xf32> -> vector<4x422xf32>
    %55 = vector.extract_strided_slice %54 {offsets = [0, 0], sizes = [4, 384], strides = [1, 1]} : vector<4x422xf32> to vector<4x384xf32>
    %56 = vector.extract_strided_slice %54 {offsets = [0, 1], sizes = [4, 384], strides = [1, 1]} : vector<4x422xf32> to vector<4x384xf32>
    %57 = vector.extract_strided_slice %54 {offsets = [0, 2], sizes = [4, 384], strides = [1, 1]} : vector<4x422xf32> to vector<4x384xf32>
    %58 = vector.extract_strided_slice %54 {offsets = [0, 18], sizes = [4, 384], strides = [1, 1]} : vector<4x422xf32> to vector<4x384xf32>
    %59 = vector.extract_strided_slice %54 {offsets = [0, 19], sizes = [4, 384], strides = [1, 1]} : vector<4x422xf32> to vector<4x384xf32>
    %60 = vector.extract_strided_slice %54 {offsets = [0, 20], sizes = [4, 384], strides = [1, 1]} : vector<4x422xf32> to vector<4x384xf32>
    %61 = vector.extract_strided_slice %54 {offsets = [0, 36], sizes = [4, 384], strides = [1, 1]} : vector<4x422xf32> to vector<4x384xf32>
    %62 = vector.extract_strided_slice %54 {offsets = [0, 37], sizes = [4, 384], strides = [1, 1]} : vector<4x422xf32> to vector<4x384xf32>
    %63 = vector.extract_strided_slice %54 {offsets = [0, 38], sizes = [4, 384], strides = [1, 1]} : vector<4x422xf32> to vector<4x384xf32>
    %64 = tpu.concatenate %55, %56, %57, %58, %59, %60, %61, %62, %63 in 0 : vector<4x384xf32>, vector<4x384xf32>, vector<4x384xf32>, vector<4x384xf32>, vector<4x384xf32>, vector<4x384xf32>, vector<4x384xf32>, vector<4x384xf32>, vector<4x384xf32> -> vector<36x384xf32>
    %cst_18 = arith.constant dense<0.000000e+00> : vector<32x384xf32>
    %65 = tpu.matmul %1, %64, %cst_18 {dimension_numbers = #tpu.dot_dimension_numbers<[1], [0], [0], [1], [0, 0, 1, 1], [], []>} : vector<32x36xf32>, vector<36x384xf32>, vector<32x384xf32> -> vector<32x384xf32>
    %66 = vector.broadcast %2 : vector<32x1xf32> to vector<32x384xf32>
    %67 = arith.addf %65, %66 : vector<32x384xf32>
    %cst_19 = arith.constant 0.000000e+00 : f32
    %68 = vector.broadcast %cst_19 : f32 to vector<32x384xf32>
    %69 = arith.maximumf %67, %68 : vector<32x384xf32>
    %70 = vector.broadcast %5 : vector<1x384xf32> to vector<32x384xf32>
    %71 = arith.mulf %69, %70 : vector<32x384xf32>
    %cst_20 = arith.constant dense<0.000000e+00> : vector<36x384xf32>
    %72 = tpu.matmul %3, %71, %cst_20 {dimension_numbers = #tpu.dot_dimension_numbers<[1], [0], [0], [1], [0, 0, 1, 1], [], []>} : vector<36x32xf32>, vector<32x384xf32>, vector<36x384xf32> -> vector<36x384xf32>
    %73 = tpu.concatenate %9, %72, %9 in 1 : vector<36x19xf32>, vector<36x384xf32>, vector<36x19xf32> -> vector<36x422xf32>
    %74 = vector.extract_strided_slice %73 {offsets = [0, 0], sizes = [4, 384], strides = [1, 1]} : vector<36x422xf32> to vector<4x384xf32>
    %75 = vector.extract_strided_slice %73 {offsets = [4, 1], sizes = [4, 384], strides = [1, 1]} : vector<36x422xf32> to vector<4x384xf32>
    %76 = arith.addf %74, %75 : vector<4x384xf32>
    %77 = vector.extract_strided_slice %73 {offsets = [8, 2], sizes = [4, 384], strides = [1, 1]} : vector<36x422xf32> to vector<4x384xf32>
    %78 = arith.addf %76, %77 : vector<4x384xf32>
    %79 = vector.extract_strided_slice %73 {offsets = [12, 18], sizes = [4, 384], strides = [1, 1]} : vector<36x422xf32> to vector<4x384xf32>
    %80 = arith.addf %78, %79 : vector<4x384xf32>
    %81 = vector.extract_strided_slice %73 {offsets = [16, 19], sizes = [4, 384], strides = [1, 1]} : vector<36x422xf32> to vector<4x384xf32>
    %82 = arith.addf %80, %81 : vector<4x384xf32>
    %83 = vector.extract_strided_slice %73 {offsets = [20, 20], sizes = [4, 384], strides = [1, 1]} : vector<36x422xf32> to vector<4x384xf32>
    %84 = arith.addf %82, %83 : vector<4x384xf32>
    %85 = vector.extract_strided_slice %73 {offsets = [24, 36], sizes = [4, 384], strides = [1, 1]} : vector<36x422xf32> to vector<4x384xf32>
    %86 = arith.addf %84, %85 : vector<4x384xf32>
    %87 = vector.extract_strided_slice %73 {offsets = [28, 37], sizes = [4, 384], strides = [1, 1]} : vector<36x422xf32> to vector<4x384xf32>
    %88 = arith.addf %86, %87 : vector<4x384xf32>
    %89 = vector.extract_strided_slice %73 {offsets = [32, 38], sizes = [4, 384], strides = [1, 1]} : vector<36x422xf32> to vector<4x384xf32>
    %90 = arith.addf %88, %89 : vector<4x384xf32>
    %91 = vector.broadcast %4 : vector<4x1xf32> to vector<4x384xf32>
    %92 = arith.addf %90, %91 : vector<4x384xf32>
    %93 = vector.broadcast %7 : vector<1x384xf32> to vector<4x384xf32>
    %94 = arith.mulf %93, %92 : vector<4x384xf32>
    %95 = arith.addf %53, %94 : vector<4x384xf32>
    %96 = tpu.concatenate %8, %95, %8 in 1 : vector<4x19xf32>, vector<4x384xf32>, vector<4x19xf32> -> vector<4x422xf32>
    %97 = vector.extract_strided_slice %96 {offsets = [0, 0], sizes = [4, 384], strides = [1, 1]} : vector<4x422xf32> to vector<4x384xf32>
    %98 = vector.extract_strided_slice %96 {offsets = [0, 1], sizes = [4, 384], strides = [1, 1]} : vector<4x422xf32> to vector<4x384xf32>
    %99 = vector.extract_strided_slice %96 {offsets = [0, 2], sizes = [4, 384], strides = [1, 1]} : vector<4x422xf32> to vector<4x384xf32>
    %100 = vector.extract_strided_slice %96 {offsets = [0, 18], sizes = [4, 384], strides = [1, 1]} : vector<4x422xf32> to vector<4x384xf32>
    %101 = vector.extract_strided_slice %96 {offsets = [0, 19], sizes = [4, 384], strides = [1, 1]} : vector<4x422xf32> to vector<4x384xf32>
    %102 = vector.extract_strided_slice %96 {offsets = [0, 20], sizes = [4, 384], strides = [1, 1]} : vector<4x422xf32> to vector<4x384xf32>
    %103 = vector.extract_strided_slice %96 {offsets = [0, 36], sizes = [4, 384], strides = [1, 1]} : vector<4x422xf32> to vector<4x384xf32>
    %104 = vector.extract_strided_slice %96 {offsets = [0, 37], sizes = [4, 384], strides = [1, 1]} : vector<4x422xf32> to vector<4x384xf32>
    %105 = vector.extract_strided_slice %96 {offsets = [0, 38], sizes = [4, 384], strides = [1, 1]} : vector<4x422xf32> to vector<4x384xf32>
    %106 = tpu.concatenate %97, %98, %99, %100, %101, %102, %103, %104, %105 in 0 : vector<4x384xf32>, vector<4x384xf32>, vector<4x384xf32>, vector<4x384xf32>, vector<4x384xf32>, vector<4x384xf32>, vector<4x384xf32>, vector<4x384xf32>, vector<4x384xf32> -> vector<36x384xf32>
    %cst_21 = arith.constant dense<0.000000e+00> : vector<32x384xf32>
    %107 = tpu.matmul %1, %106, %cst_21 {dimension_numbers = #tpu.dot_dimension_numbers<[1], [0], [0], [1], [0, 0, 1, 1], [], []>} : vector<32x36xf32>, vector<36x384xf32>, vector<32x384xf32> -> vector<32x384xf32>
    %108 = vector.broadcast %2 : vector<32x1xf32> to vector<32x384xf32>
    %109 = arith.addf %107, %108 : vector<32x384xf32>
    %cst_22 = arith.constant 0.000000e+00 : f32
    %110 = vector.broadcast %cst_22 : f32 to vector<32x384xf32>
    %111 = arith.maximumf %109, %110 : vector<32x384xf32>
    %112 = vector.broadcast %5 : vector<1x384xf32> to vector<32x384xf32>
    %113 = arith.mulf %111, %112 : vector<32x384xf32>
    %cst_23 = arith.constant dense<0.000000e+00> : vector<36x384xf32>
    %114 = tpu.matmul %3, %113, %cst_23 {dimension_numbers = #tpu.dot_dimension_numbers<[1], [0], [0], [1], [0, 0, 1, 1], [], []>} : vector<36x32xf32>, vector<32x384xf32>, vector<36x384xf32> -> vector<36x384xf32>
    %115 = tpu.concatenate %9, %114, %9 in 1 : vector<36x19xf32>, vector<36x384xf32>, vector<36x19xf32> -> vector<36x422xf32>
    %116 = vector.extract_strided_slice %115 {offsets = [0, 0], sizes = [4, 384], strides = [1, 1]} : vector<36x422xf32> to vector<4x384xf32>
    %117 = vector.extract_strided_slice %115 {offsets = [4, 1], sizes = [4, 384], strides = [1, 1]} : vector<36x422xf32> to vector<4x384xf32>
    %118 = arith.addf %116, %117 : vector<4x384xf32>
    %119 = vector.extract_strided_slice %115 {offsets = [8, 2], sizes = [4, 384], strides = [1, 1]} : vector<36x422xf32> to vector<4x384xf32>
    %120 = arith.addf %118, %119 : vector<4x384xf32>
    %121 = vector.extract_strided_slice %115 {offsets = [12, 18], sizes = [4, 384], strides = [1, 1]} : vector<36x422xf32> to vector<4x384xf32>
    %122 = arith.addf %120, %121 : vector<4x384xf32>
    %123 = vector.extract_strided_slice %115 {offsets = [16, 19], sizes = [4, 384], strides = [1, 1]} : vector<36x422xf32> to vector<4x384xf32>
    %124 = arith.addf %122, %123 : vector<4x384xf32>
    %125 = vector.extract_strided_slice %115 {offsets = [20, 20], sizes = [4, 384], strides = [1, 1]} : vector<36x422xf32> to vector<4x384xf32>
    %126 = arith.addf %124, %125 : vector<4x384xf32>
    %127 = vector.extract_strided_slice %115 {offsets = [24, 36], sizes = [4, 384], strides = [1, 1]} : vector<36x422xf32> to vector<4x384xf32>
    %128 = arith.addf %126, %127 : vector<4x384xf32>
    %129 = vector.extract_strided_slice %115 {offsets = [28, 37], sizes = [4, 384], strides = [1, 1]} : vector<36x422xf32> to vector<4x384xf32>
    %130 = arith.addf %128, %129 : vector<4x384xf32>
    %131 = vector.extract_strided_slice %115 {offsets = [32, 38], sizes = [4, 384], strides = [1, 1]} : vector<36x422xf32> to vector<4x384xf32>
    %132 = arith.addf %130, %131 : vector<4x384xf32>
    %133 = vector.broadcast %4 : vector<4x1xf32> to vector<4x384xf32>
    %134 = arith.addf %132, %133 : vector<4x384xf32>
    %135 = vector.broadcast %7 : vector<1x384xf32> to vector<4x384xf32>
    %136 = arith.mulf %135, %134 : vector<4x384xf32>
    %137 = arith.addf %95, %136 : vector<4x384xf32>
    %138 = tpu.concatenate %8, %137, %8 in 1 : vector<4x19xf32>, vector<4x384xf32>, vector<4x19xf32> -> vector<4x422xf32>
    %139 = vector.extract_strided_slice %138 {offsets = [0, 0], sizes = [4, 384], strides = [1, 1]} : vector<4x422xf32> to vector<4x384xf32>
    %140 = vector.extract_strided_slice %138 {offsets = [0, 1], sizes = [4, 384], strides = [1, 1]} : vector<4x422xf32> to vector<4x384xf32>
    %141 = vector.extract_strided_slice %138 {offsets = [0, 2], sizes = [4, 384], strides = [1, 1]} : vector<4x422xf32> to vector<4x384xf32>
    %142 = vector.extract_strided_slice %138 {offsets = [0, 18], sizes = [4, 384], strides = [1, 1]} : vector<4x422xf32> to vector<4x384xf32>
    %143 = vector.extract_strided_slice %138 {offsets = [0, 19], sizes = [4, 384], strides = [1, 1]} : vector<4x422xf32> to vector<4x384xf32>
    %144 = vector.extract_strided_slice %138 {offsets = [0, 20], sizes = [4, 384], strides = [1, 1]} : vector<4x422xf32> to vector<4x384xf32>
    %145 = vector.extract_strided_slice %138 {offsets = [0, 36], sizes = [4, 384], strides = [1, 1]} : vector<4x422xf32> to vector<4x384xf32>
    %146 = vector.extract_strided_slice %138 {offsets = [0, 37], sizes = [4, 384], strides = [1, 1]} : vector<4x422xf32> to vector<4x384xf32>
    %147 = vector.extract_strided_slice %138 {offsets = [0, 38], sizes = [4, 384], strides = [1, 1]} : vector<4x422xf32> to vector<4x384xf32>
    %148 = tpu.concatenate %139, %140, %141, %142, %143, %144, %145, %146, %147 in 0 : vector<4x384xf32>, vector<4x384xf32>, vector<4x384xf32>, vector<4x384xf32>, vector<4x384xf32>, vector<4x384xf32>, vector<4x384xf32>, vector<4x384xf32>, vector<4x384xf32> -> vector<36x384xf32>
    %cst_24 = arith.constant dense<0.000000e+00> : vector<32x384xf32>
    %149 = tpu.matmul %1, %148, %cst_24 {dimension_numbers = #tpu.dot_dimension_numbers<[1], [0], [0], [1], [0, 0, 1, 1], [], []>} : vector<32x36xf32>, vector<36x384xf32>, vector<32x384xf32> -> vector<32x384xf32>
    %150 = vector.broadcast %2 : vector<32x1xf32> to vector<32x384xf32>
    %151 = arith.addf %149, %150 : vector<32x384xf32>
    %cst_25 = arith.constant 0.000000e+00 : f32
    %152 = vector.broadcast %cst_25 : f32 to vector<32x384xf32>
    %153 = arith.maximumf %151, %152 : vector<32x384xf32>
    %154 = vector.broadcast %5 : vector<1x384xf32> to vector<32x384xf32>
    %155 = arith.mulf %153, %154 : vector<32x384xf32>
    %cst_26 = arith.constant dense<0.000000e+00> : vector<36x384xf32>
    %156 = tpu.matmul %3, %155, %cst_26 {dimension_numbers = #tpu.dot_dimension_numbers<[1], [0], [0], [1], [0, 0, 1, 1], [], []>} : vector<36x32xf32>, vector<32x384xf32>, vector<36x384xf32> -> vector<36x384xf32>
    %157 = tpu.concatenate %9, %156, %9 in 1 : vector<36x19xf32>, vector<36x384xf32>, vector<36x19xf32> -> vector<36x422xf32>
    %158 = vector.extract_strided_slice %157 {offsets = [0, 0], sizes = [4, 384], strides = [1, 1]} : vector<36x422xf32> to vector<4x384xf32>
    %159 = vector.extract_strided_slice %157 {offsets = [4, 1], sizes = [4, 384], strides = [1, 1]} : vector<36x422xf32> to vector<4x384xf32>
    %160 = arith.addf %158, %159 : vector<4x384xf32>
    %161 = vector.extract_strided_slice %157 {offsets = [8, 2], sizes = [4, 384], strides = [1, 1]} : vector<36x422xf32> to vector<4x384xf32>
    %162 = arith.addf %160, %161 : vector<4x384xf32>
    %163 = vector.extract_strided_slice %157 {offsets = [12, 18], sizes = [4, 384], strides = [1, 1]} : vector<36x422xf32> to vector<4x384xf32>
    %164 = arith.addf %162, %163 : vector<4x384xf32>
    %165 = vector.extract_strided_slice %157 {offsets = [16, 19], sizes = [4, 384], strides = [1, 1]} : vector<36x422xf32> to vector<4x384xf32>
    %166 = arith.addf %164, %165 : vector<4x384xf32>
    %167 = vector.extract_strided_slice %157 {offsets = [20, 20], sizes = [4, 384], strides = [1, 1]} : vector<36x422xf32> to vector<4x384xf32>
    %168 = arith.addf %166, %167 : vector<4x384xf32>
    %169 = vector.extract_strided_slice %157 {offsets = [24, 36], sizes = [4, 384], strides = [1, 1]} : vector<36x422xf32> to vector<4x384xf32>
    %170 = arith.addf %168, %169 : vector<4x384xf32>
    %171 = vector.extract_strided_slice %157 {offsets = [28, 37], sizes = [4, 384], strides = [1, 1]} : vector<36x422xf32> to vector<4x384xf32>
    %172 = arith.addf %170, %171 : vector<4x384xf32>
    %173 = vector.extract_strided_slice %157 {offsets = [32, 38], sizes = [4, 384], strides = [1, 1]} : vector<36x422xf32> to vector<4x384xf32>
    %174 = arith.addf %172, %173 : vector<4x384xf32>
    %175 = vector.broadcast %4 : vector<4x1xf32> to vector<4x384xf32>
    %176 = arith.addf %174, %175 : vector<4x384xf32>
    %177 = vector.broadcast %7 : vector<1x384xf32> to vector<4x384xf32>
    %178 = arith.mulf %177, %176 : vector<4x384xf32>
    %179 = arith.addf %137, %178 : vector<4x384xf32>
    %180 = tpu.concatenate %8, %179, %8 in 1 : vector<4x19xf32>, vector<4x384xf32>, vector<4x19xf32> -> vector<4x422xf32>
    %181 = vector.extract_strided_slice %180 {offsets = [0, 0], sizes = [4, 384], strides = [1, 1]} : vector<4x422xf32> to vector<4x384xf32>
    %182 = vector.extract_strided_slice %180 {offsets = [0, 1], sizes = [4, 384], strides = [1, 1]} : vector<4x422xf32> to vector<4x384xf32>
    %183 = vector.extract_strided_slice %180 {offsets = [0, 2], sizes = [4, 384], strides = [1, 1]} : vector<4x422xf32> to vector<4x384xf32>
    %184 = vector.extract_strided_slice %180 {offsets = [0, 18], sizes = [4, 384], strides = [1, 1]} : vector<4x422xf32> to vector<4x384xf32>
    %185 = vector.extract_strided_slice %180 {offsets = [0, 19], sizes = [4, 384], strides = [1, 1]} : vector<4x422xf32> to vector<4x384xf32>
    %186 = vector.extract_strided_slice %180 {offsets = [0, 20], sizes = [4, 384], strides = [1, 1]} : vector<4x422xf32> to vector<4x384xf32>
    %187 = vector.extract_strided_slice %180 {offsets = [0, 36], sizes = [4, 384], strides = [1, 1]} : vector<4x422xf32> to vector<4x384xf32>
    %188 = vector.extract_strided_slice %180 {offsets = [0, 37], sizes = [4, 384], strides = [1, 1]} : vector<4x422xf32> to vector<4x384xf32>
    %189 = vector.extract_strided_slice %180 {offsets = [0, 38], sizes = [4, 384], strides = [1, 1]} : vector<4x422xf32> to vector<4x384xf32>
    %190 = tpu.concatenate %181, %182, %183, %184, %185, %186, %187, %188, %189 in 0 : vector<4x384xf32>, vector<4x384xf32>, vector<4x384xf32>, vector<4x384xf32>, vector<4x384xf32>, vector<4x384xf32>, vector<4x384xf32>, vector<4x384xf32>, vector<4x384xf32> -> vector<36x384xf32>
    %cst_27 = arith.constant dense<0.000000e+00> : vector<32x384xf32>
    %191 = tpu.matmul %1, %190, %cst_27 {dimension_numbers = #tpu.dot_dimension_numbers<[1], [0], [0], [1], [0, 0, 1, 1], [], []>} : vector<32x36xf32>, vector<36x384xf32>, vector<32x384xf32> -> vector<32x384xf32>
    %192 = vector.broadcast %2 : vector<32x1xf32> to vector<32x384xf32>
    %193 = arith.addf %191, %192 : vector<32x384xf32>
    %cst_28 = arith.constant 0.000000e+00 : f32
    %194 = vector.broadcast %cst_28 : f32 to vector<32x384xf32>
    %195 = arith.maximumf %193, %194 : vector<32x384xf32>
    %196 = vector.broadcast %5 : vector<1x384xf32> to vector<32x384xf32>
    %197 = arith.mulf %195, %196 : vector<32x384xf32>
    %cst_29 = arith.constant dense<0.000000e+00> : vector<36x384xf32>
    %198 = tpu.matmul %3, %197, %cst_29 {dimension_numbers = #tpu.dot_dimension_numbers<[1], [0], [0], [1], [0, 0, 1, 1], [], []>} : vector<36x32xf32>, vector<32x384xf32>, vector<36x384xf32> -> vector<36x384xf32>
    %199 = tpu.concatenate %9, %198, %9 in 1 : vector<36x19xf32>, vector<36x384xf32>, vector<36x19xf32> -> vector<36x422xf32>
    %200 = vector.extract_strided_slice %199 {offsets = [0, 0], sizes = [4, 384], strides = [1, 1]} : vector<36x422xf32> to vector<4x384xf32>
    %201 = vector.extract_strided_slice %199 {offsets = [4, 1], sizes = [4, 384], strides = [1, 1]} : vector<36x422xf32> to vector<4x384xf32>
    %202 = arith.addf %200, %201 : vector<4x384xf32>
    %203 = vector.extract_strided_slice %199 {offsets = [8, 2], sizes = [4, 384], strides = [1, 1]} : vector<36x422xf32> to vector<4x384xf32>
    %204 = arith.addf %202, %203 : vector<4x384xf32>
    %205 = vector.extract_strided_slice %199 {offsets = [12, 18], sizes = [4, 384], strides = [1, 1]} : vector<36x422xf32> to vector<4x384xf32>
    %206 = arith.addf %204, %205 : vector<4x384xf32>
    %207 = vector.extract_strided_slice %199 {offsets = [16, 19], sizes = [4, 384], strides = [1, 1]} : vector<36x422xf32> to vector<4x384xf32>
    %208 = arith.addf %206, %207 : vector<4x384xf32>
    %209 = vector.extract_strided_slice %199 {offsets = [20, 20], sizes = [4, 384], strides = [1, 1]} : vector<36x422xf32> to vector<4x384xf32>
    %210 = arith.addf %208, %209 : vector<4x384xf32>
    %211 = vector.extract_strided_slice %199 {offsets = [24, 36], sizes = [4, 384], strides = [1, 1]} : vector<36x422xf32> to vector<4x384xf32>
    %212 = arith.addf %210, %211 : vector<4x384xf32>
    %213 = vector.extract_strided_slice %199 {offsets = [28, 37], sizes = [4, 384], strides = [1, 1]} : vector<36x422xf32> to vector<4x384xf32>
    %214 = arith.addf %212, %213 : vector<4x384xf32>
    %215 = vector.extract_strided_slice %199 {offsets = [32, 38], sizes = [4, 384], strides = [1, 1]} : vector<36x422xf32> to vector<4x384xf32>
    %216 = arith.addf %214, %215 : vector<4x384xf32>
    %217 = vector.broadcast %4 : vector<4x1xf32> to vector<4x384xf32>
    %218 = arith.addf %216, %217 : vector<4x384xf32>
    %219 = vector.broadcast %7 : vector<1x384xf32> to vector<4x384xf32>
    %220 = arith.mulf %219, %218 : vector<4x384xf32>
    %221 = arith.addf %179, %220 : vector<4x384xf32>
    %222 = tpu.concatenate %8, %221, %8 in 1 : vector<4x19xf32>, vector<4x384xf32>, vector<4x19xf32> -> vector<4x422xf32>
    %223 = vector.extract_strided_slice %222 {offsets = [0, 0], sizes = [4, 384], strides = [1, 1]} : vector<4x422xf32> to vector<4x384xf32>
    %224 = vector.extract_strided_slice %222 {offsets = [0, 1], sizes = [4, 384], strides = [1, 1]} : vector<4x422xf32> to vector<4x384xf32>
    %225 = vector.extract_strided_slice %222 {offsets = [0, 2], sizes = [4, 384], strides = [1, 1]} : vector<4x422xf32> to vector<4x384xf32>
    %226 = vector.extract_strided_slice %222 {offsets = [0, 18], sizes = [4, 384], strides = [1, 1]} : vector<4x422xf32> to vector<4x384xf32>
    %227 = vector.extract_strided_slice %222 {offsets = [0, 19], sizes = [4, 384], strides = [1, 1]} : vector<4x422xf32> to vector<4x384xf32>
    %228 = vector.extract_strided_slice %222 {offsets = [0, 20], sizes = [4, 384], strides = [1, 1]} : vector<4x422xf32> to vector<4x384xf32>
    %229 = vector.extract_strided_slice %222 {offsets = [0, 36], sizes = [4, 384], strides = [1, 1]} : vector<4x422xf32> to vector<4x384xf32>
    %230 = vector.extract_strided_slice %222 {offsets = [0, 37], sizes = [4, 384], strides = [1, 1]} : vector<4x422xf32> to vector<4x384xf32>
    %231 = vector.extract_strided_slice %222 {offsets = [0, 38], sizes = [4, 384], strides = [1, 1]} : vector<4x422xf32> to vector<4x384xf32>
    %232 = tpu.concatenate %223, %224, %225, %226, %227, %228, %229, %230, %231 in 0 : vector<4x384xf32>, vector<4x384xf32>, vector<4x384xf32>, vector<4x384xf32>, vector<4x384xf32>, vector<4x384xf32>, vector<4x384xf32>, vector<4x384xf32>, vector<4x384xf32> -> vector<36x384xf32>
    %cst_30 = arith.constant dense<0.000000e+00> : vector<32x384xf32>
    %233 = tpu.matmul %1, %232, %cst_30 {dimension_numbers = #tpu.dot_dimension_numbers<[1], [0], [0], [1], [0, 0, 1, 1], [], []>} : vector<32x36xf32>, vector<36x384xf32>, vector<32x384xf32> -> vector<32x384xf32>
    %234 = vector.broadcast %2 : vector<32x1xf32> to vector<32x384xf32>
    %235 = arith.addf %233, %234 : vector<32x384xf32>
    %cst_31 = arith.constant 0.000000e+00 : f32
    %236 = vector.broadcast %cst_31 : f32 to vector<32x384xf32>
    %237 = arith.maximumf %235, %236 : vector<32x384xf32>
    %238 = vector.broadcast %5 : vector<1x384xf32> to vector<32x384xf32>
    %239 = arith.mulf %237, %238 : vector<32x384xf32>
    %cst_32 = arith.constant dense<0.000000e+00> : vector<36x384xf32>
    %240 = tpu.matmul %3, %239, %cst_32 {dimension_numbers = #tpu.dot_dimension_numbers<[1], [0], [0], [1], [0, 0, 1, 1], [], []>} : vector<36x32xf32>, vector<32x384xf32>, vector<36x384xf32> -> vector<36x384xf32>
    %241 = tpu.concatenate %9, %240, %9 in 1 : vector<36x19xf32>, vector<36x384xf32>, vector<36x19xf32> -> vector<36x422xf32>
    %242 = vector.extract_strided_slice %241 {offsets = [0, 0], sizes = [4, 384], strides = [1, 1]} : vector<36x422xf32> to vector<4x384xf32>
    %243 = vector.extract_strided_slice %241 {offsets = [4, 1], sizes = [4, 384], strides = [1, 1]} : vector<36x422xf32> to vector<4x384xf32>
    %244 = arith.addf %242, %243 : vector<4x384xf32>
    %245 = vector.extract_strided_slice %241 {offsets = [8, 2], sizes = [4, 384], strides = [1, 1]} : vector<36x422xf32> to vector<4x384xf32>
    %246 = arith.addf %244, %245 : vector<4x384xf32>
    %247 = vector.extract_strided_slice %241 {offsets = [12, 18], sizes = [4, 384], strides = [1, 1]} : vector<36x422xf32> to vector<4x384xf32>
    %248 = arith.addf %246, %247 : vector<4x384xf32>
    %249 = vector.extract_strided_slice %241 {offsets = [16, 19], sizes = [4, 384], strides = [1, 1]} : vector<36x422xf32> to vector<4x384xf32>
    %250 = arith.addf %248, %249 : vector<4x384xf32>
    %251 = vector.extract_strided_slice %241 {offsets = [20, 20], sizes = [4, 384], strides = [1, 1]} : vector<36x422xf32> to vector<4x384xf32>
    %252 = arith.addf %250, %251 : vector<4x384xf32>
    %253 = vector.extract_strided_slice %241 {offsets = [24, 36], sizes = [4, 384], strides = [1, 1]} : vector<36x422xf32> to vector<4x384xf32>
    %254 = arith.addf %252, %253 : vector<4x384xf32>
    %255 = vector.extract_strided_slice %241 {offsets = [28, 37], sizes = [4, 384], strides = [1, 1]} : vector<36x422xf32> to vector<4x384xf32>
    %256 = arith.addf %254, %255 : vector<4x384xf32>
    %257 = vector.extract_strided_slice %241 {offsets = [32, 38], sizes = [4, 384], strides = [1, 1]} : vector<36x422xf32> to vector<4x384xf32>
    %258 = arith.addf %256, %257 : vector<4x384xf32>
    %259 = vector.broadcast %4 : vector<4x1xf32> to vector<4x384xf32>
    %260 = arith.addf %258, %259 : vector<4x384xf32>
    %261 = vector.broadcast %7 : vector<1x384xf32> to vector<4x384xf32>
    %262 = arith.mulf %261, %260 : vector<4x384xf32>
    %263 = arith.addf %221, %262 : vector<4x384xf32>
    %264 = tpu.concatenate %8, %263, %8 in 1 : vector<4x19xf32>, vector<4x384xf32>, vector<4x19xf32> -> vector<4x422xf32>
    %265 = vector.extract_strided_slice %264 {offsets = [0, 0], sizes = [4, 384], strides = [1, 1]} : vector<4x422xf32> to vector<4x384xf32>
    %266 = vector.extract_strided_slice %264 {offsets = [0, 1], sizes = [4, 384], strides = [1, 1]} : vector<4x422xf32> to vector<4x384xf32>
    %267 = vector.extract_strided_slice %264 {offsets = [0, 2], sizes = [4, 384], strides = [1, 1]} : vector<4x422xf32> to vector<4x384xf32>
    %268 = vector.extract_strided_slice %264 {offsets = [0, 18], sizes = [4, 384], strides = [1, 1]} : vector<4x422xf32> to vector<4x384xf32>
    %269 = vector.extract_strided_slice %264 {offsets = [0, 19], sizes = [4, 384], strides = [1, 1]} : vector<4x422xf32> to vector<4x384xf32>
    %270 = vector.extract_strided_slice %264 {offsets = [0, 20], sizes = [4, 384], strides = [1, 1]} : vector<4x422xf32> to vector<4x384xf32>
    %271 = vector.extract_strided_slice %264 {offsets = [0, 36], sizes = [4, 384], strides = [1, 1]} : vector<4x422xf32> to vector<4x384xf32>
    %272 = vector.extract_strided_slice %264 {offsets = [0, 37], sizes = [4, 384], strides = [1, 1]} : vector<4x422xf32> to vector<4x384xf32>
    %273 = vector.extract_strided_slice %264 {offsets = [0, 38], sizes = [4, 384], strides = [1, 1]} : vector<4x422xf32> to vector<4x384xf32>
    %274 = tpu.concatenate %265, %266, %267, %268, %269, %270, %271, %272, %273 in 0 : vector<4x384xf32>, vector<4x384xf32>, vector<4x384xf32>, vector<4x384xf32>, vector<4x384xf32>, vector<4x384xf32>, vector<4x384xf32>, vector<4x384xf32>, vector<4x384xf32> -> vector<36x384xf32>
    %cst_33 = arith.constant dense<0.000000e+00> : vector<32x384xf32>
    %275 = tpu.matmul %1, %274, %cst_33 {dimension_numbers = #tpu.dot_dimension_numbers<[1], [0], [0], [1], [0, 0, 1, 1], [], []>} : vector<32x36xf32>, vector<36x384xf32>, vector<32x384xf32> -> vector<32x384xf32>
    %276 = vector.broadcast %2 : vector<32x1xf32> to vector<32x384xf32>
    %277 = arith.addf %275, %276 : vector<32x384xf32>
    %cst_34 = arith.constant 0.000000e+00 : f32
    %278 = vector.broadcast %cst_34 : f32 to vector<32x384xf32>
    %279 = arith.maximumf %277, %278 : vector<32x384xf32>
    %280 = vector.broadcast %5 : vector<1x384xf32> to vector<32x384xf32>
    %281 = arith.mulf %279, %280 : vector<32x384xf32>
    %cst_35 = arith.constant dense<0.000000e+00> : vector<36x384xf32>
    %282 = tpu.matmul %3, %281, %cst_35 {dimension_numbers = #tpu.dot_dimension_numbers<[1], [0], [0], [1], [0, 0, 1, 1], [], []>} : vector<36x32xf32>, vector<32x384xf32>, vector<36x384xf32> -> vector<36x384xf32>
    %283 = tpu.concatenate %9, %282, %9 in 1 : vector<36x19xf32>, vector<36x384xf32>, vector<36x19xf32> -> vector<36x422xf32>
    %284 = vector.extract_strided_slice %283 {offsets = [0, 0], sizes = [4, 384], strides = [1, 1]} : vector<36x422xf32> to vector<4x384xf32>
    %285 = vector.extract_strided_slice %283 {offsets = [4, 1], sizes = [4, 384], strides = [1, 1]} : vector<36x422xf32> to vector<4x384xf32>
    %286 = arith.addf %284, %285 : vector<4x384xf32>
    %287 = vector.extract_strided_slice %283 {offsets = [8, 2], sizes = [4, 384], strides = [1, 1]} : vector<36x422xf32> to vector<4x384xf32>
    %288 = arith.addf %286, %287 : vector<4x384xf32>
    %289 = vector.extract_strided_slice %283 {offsets = [12, 18], sizes = [4, 384], strides = [1, 1]} : vector<36x422xf32> to vector<4x384xf32>
    %290 = arith.addf %288, %289 : vector<4x384xf32>
    %291 = vector.extract_strided_slice %283 {offsets = [16, 19], sizes = [4, 384], strides = [1, 1]} : vector<36x422xf32> to vector<4x384xf32>
    %292 = arith.addf %290, %291 : vector<4x384xf32>
    %293 = vector.extract_strided_slice %283 {offsets = [20, 20], sizes = [4, 384], strides = [1, 1]} : vector<36x422xf32> to vector<4x384xf32>
    %294 = arith.addf %292, %293 : vector<4x384xf32>
    %295 = vector.extract_strided_slice %283 {offsets = [24, 36], sizes = [4, 384], strides = [1, 1]} : vector<36x422xf32> to vector<4x384xf32>
    %296 = arith.addf %294, %295 : vector<4x384xf32>
    %297 = vector.extract_strided_slice %283 {offsets = [28, 37], sizes = [4, 384], strides = [1, 1]} : vector<36x422xf32> to vector<4x384xf32>
    %298 = arith.addf %296, %297 : vector<4x384xf32>
    %299 = vector.extract_strided_slice %283 {offsets = [32, 38], sizes = [4, 384], strides = [1, 1]} : vector<36x422xf32> to vector<4x384xf32>
    %300 = arith.addf %298, %299 : vector<4x384xf32>
    %301 = vector.broadcast %4 : vector<4x1xf32> to vector<4x384xf32>
    %302 = arith.addf %300, %301 : vector<4x384xf32>
    %303 = vector.broadcast %7 : vector<1x384xf32> to vector<4x384xf32>
    %304 = arith.mulf %303, %302 : vector<4x384xf32>
    %305 = arith.addf %263, %304 : vector<4x384xf32>
    %306 = tpu.concatenate %8, %305, %8 in 1 : vector<4x19xf32>, vector<4x384xf32>, vector<4x19xf32> -> vector<4x422xf32>
    %307 = vector.extract_strided_slice %306 {offsets = [0, 0], sizes = [4, 384], strides = [1, 1]} : vector<4x422xf32> to vector<4x384xf32>
    %308 = vector.extract_strided_slice %306 {offsets = [0, 1], sizes = [4, 384], strides = [1, 1]} : vector<4x422xf32> to vector<4x384xf32>
    %309 = vector.extract_strided_slice %306 {offsets = [0, 2], sizes = [4, 384], strides = [1, 1]} : vector<4x422xf32> to vector<4x384xf32>
    %310 = vector.extract_strided_slice %306 {offsets = [0, 18], sizes = [4, 384], strides = [1, 1]} : vector<4x422xf32> to vector<4x384xf32>
    %311 = vector.extract_strided_slice %306 {offsets = [0, 19], sizes = [4, 384], strides = [1, 1]} : vector<4x422xf32> to vector<4x384xf32>
    %312 = vector.extract_strided_slice %306 {offsets = [0, 20], sizes = [4, 384], strides = [1, 1]} : vector<4x422xf32> to vector<4x384xf32>
    %313 = vector.extract_strided_slice %306 {offsets = [0, 36], sizes = [4, 384], strides = [1, 1]} : vector<4x422xf32> to vector<4x384xf32>
    %314 = vector.extract_strided_slice %306 {offsets = [0, 37], sizes = [4, 384], strides = [1, 1]} : vector<4x422xf32> to vector<4x384xf32>
    %315 = vector.extract_strided_slice %306 {offsets = [0, 38], sizes = [4, 384], strides = [1, 1]} : vector<4x422xf32> to vector<4x384xf32>
    %316 = tpu.concatenate %307, %308, %309, %310, %311, %312, %313, %314, %315 in 0 : vector<4x384xf32>, vector<4x384xf32>, vector<4x384xf32>, vector<4x384xf32>, vector<4x384xf32>, vector<4x384xf32>, vector<4x384xf32>, vector<4x384xf32>, vector<4x384xf32> -> vector<36x384xf32>
    %cst_36 = arith.constant dense<0.000000e+00> : vector<32x384xf32>
    %317 = tpu.matmul %1, %316, %cst_36 {dimension_numbers = #tpu.dot_dimension_numbers<[1], [0], [0], [1], [0, 0, 1, 1], [], []>} : vector<32x36xf32>, vector<36x384xf32>, vector<32x384xf32> -> vector<32x384xf32>
    %318 = vector.broadcast %2 : vector<32x1xf32> to vector<32x384xf32>
    %319 = arith.addf %317, %318 : vector<32x384xf32>
    %cst_37 = arith.constant 0.000000e+00 : f32
    %320 = vector.broadcast %cst_37 : f32 to vector<32x384xf32>
    %321 = arith.maximumf %319, %320 : vector<32x384xf32>
    %322 = vector.broadcast %5 : vector<1x384xf32> to vector<32x384xf32>
    %323 = arith.mulf %321, %322 : vector<32x384xf32>
    %cst_38 = arith.constant dense<0.000000e+00> : vector<36x384xf32>
    %324 = tpu.matmul %3, %323, %cst_38 {dimension_numbers = #tpu.dot_dimension_numbers<[1], [0], [0], [1], [0, 0, 1, 1], [], []>} : vector<36x32xf32>, vector<32x384xf32>, vector<36x384xf32> -> vector<36x384xf32>
    %325 = tpu.concatenate %9, %324, %9 in 1 : vector<36x19xf32>, vector<36x384xf32>, vector<36x19xf32> -> vector<36x422xf32>
    %326 = vector.extract_strided_slice %325 {offsets = [0, 0], sizes = [4, 384], strides = [1, 1]} : vector<36x422xf32> to vector<4x384xf32>
    %327 = vector.extract_strided_slice %325 {offsets = [4, 1], sizes = [4, 384], strides = [1, 1]} : vector<36x422xf32> to vector<4x384xf32>
    %328 = arith.addf %326, %327 : vector<4x384xf32>
    %329 = vector.extract_strided_slice %325 {offsets = [8, 2], sizes = [4, 384], strides = [1, 1]} : vector<36x422xf32> to vector<4x384xf32>
    %330 = arith.addf %328, %329 : vector<4x384xf32>
    %331 = vector.extract_strided_slice %325 {offsets = [12, 18], sizes = [4, 384], strides = [1, 1]} : vector<36x422xf32> to vector<4x384xf32>
    %332 = arith.addf %330, %331 : vector<4x384xf32>
    %333 = vector.extract_strided_slice %325 {offsets = [16, 19], sizes = [4, 384], strides = [1, 1]} : vector<36x422xf32> to vector<4x384xf32>
    %334 = arith.addf %332, %333 : vector<4x384xf32>
    %335 = vector.extract_strided_slice %325 {offsets = [20, 20], sizes = [4, 384], strides = [1, 1]} : vector<36x422xf32> to vector<4x384xf32>
    %336 = arith.addf %334, %335 : vector<4x384xf32>
    %337 = vector.extract_strided_slice %325 {offsets = [24, 36], sizes = [4, 384], strides = [1, 1]} : vector<36x422xf32> to vector<4x384xf32>
    %338 = arith.addf %336, %337 : vector<4x384xf32>
    %339 = vector.extract_strided_slice %325 {offsets = [28, 37], sizes = [4, 384], strides = [1, 1]} : vector<36x422xf32> to vector<4x384xf32>
    %340 = arith.addf %338, %339 : vector<4x384xf32>
    %341 = vector.extract_strided_slice %325 {offsets = [32, 38], sizes = [4, 384], strides = [1, 1]} : vector<36x422xf32> to vector<4x384xf32>
    %342 = arith.addf %340, %341 : vector<4x384xf32>
    %343 = vector.broadcast %4 : vector<4x1xf32> to vector<4x384xf32>
    %344 = arith.addf %342, %343 : vector<4x384xf32>
    %345 = vector.broadcast %7 : vector<1x384xf32> to vector<4x384xf32>
    %346 = arith.mulf %345, %344 : vector<4x384xf32>
    %347 = arith.addf %305, %346 : vector<4x384xf32>
    %c0_39 = arith.constant 0 : index
    %c0_40 = arith.constant 0 : index
    %c0_41 = arith.constant 0 : index
    %348 = vector.load %arg8[%c0_39, %c0_40, %c0_41] : memref<1x4x384xf32, #tpu.memory_space<vmem>>, vector<1x4x384xf32>
    %349 = vector.shape_cast %348 : vector<1x4x384xf32> to vector<4x384xf32>
    %350 = vector.shape_cast %347 : vector<4x384xf32> to vector<1x4x384xf32>
    tpu.vector_store %arg8[%c0_39, %c0_40, %c0_41], %350 {strides = array<i32>} : memref<1x4x384xf32, #tpu.memory_space<vmem>>, vector<1x4x384xf32>,
    return
  }
  func.func @transform_0(%arg0: i32) -> (i32, i32) {
    %c0_i32 = arith.constant 0 : i32
    %c0_i32_0 = arith.constant 0 : i32
    %c0_i32_1 = arith.constant 0 : i32
    return %c0_i32, %c0_i32_0 : i32, i32
  }
  func.func @transform_1(%arg0: i32) -> (i32, i32, i32) {
    %c0_i32 = arith.constant 0 : i32
    %c0_i32_0 = arith.constant 0 : i32
    %c0_i32_1 = arith.constant 0 : i32
    return %arg0, %c0_i32, %c0_i32_0 : i32, i32, i32
  }
  func.func @transform_2(%arg0: i32) -> (i32, i32) {
    %c0_i32 = arith.constant 0 : i32
    %c0_i32_0 = arith.constant 0 : i32
    %c0_i32_1 = arith.constant 0 : i32
    return %c0_i32, %c0_i32_0 : i32, i32
  }
  func.func @transform_3(%arg0: i32) -> (i32, i32) {
    %c0_i32 = arith.constant 0 : i32
    %c0_i32_0 = arith.constant 0 : i32
    %c0_i32_1 = arith.constant 0 : i32
    return %c0_i32, %c0_i32_0 : i32, i32
  }
  func.func @transform_4(%arg0: i32) -> (i32, i32) {
    %c0_i32 = arith.constant 0 : i32
    %c0_i32_0 = arith.constant 0 : i32
    %c0_i32_1 = arith.constant 0 : i32
    return %c0_i32, %c0_i32_0 : i32, i32
  }
  func.func @transform_5(%arg0: i32) -> (i32, i32) {
    %c0_i32 = arith.constant 0 : i32
    %c0_i32_0 = arith.constant 0 : i32
    %c0_i32_1 = arith.constant 0 : i32
    return %c0_i32, %c0_i32_0 : i32, i32
  }
  func.func @transform_6(%arg0: i32) -> (i32, i32) {
    %c0_i32 = arith.constant 0 : i32
    %c0_i32_0 = arith.constant 0 : i32
    %c0_i32_1 = arith.constant 0 : i32
    return %c0_i32, %c0_i32_0 : i32, i32
  }
  func.func @transform_7(%arg0: i32) -> (i32, i32, i32) {
    %c0_i32 = arith.constant 0 : i32
    %c0_i32_0 = arith.constant 0 : i32
    %c0_i32_1 = arith.constant 0 : i32
    return %arg0, %c0_i32, %c0_i32_0 : i32, i32, i32
  }
}

</mosaic_0001>

<bundles_post_ra>
// kernel: node_img_net_forward.1
= control target key start
LH: loop header
LB: loop body
LE: loop exit
PB: predicated region body
PF: predicated region fallthrough
CT: control target
= control target key end

     0   :  { %s7474_s26 = smov 0   ;;  %s10250_s0 = inlined_call_operand.<no memory space> [shape: f32[1,1], index: 0, kind: input, shape index: {}]   ;;  %s10251_s1 = inlined_call_operand.vmem [shape: f32[2,4,384], index: 1, kind: input, shape index: {}]   ;;  %s10252_s2 = inlined_call_operand.vmem [shape: f32[32,36], index: 2, kind: input, shape index: {}]   ;;  %s10253_s3 = inlined_call_operand.vmem [shape: f32[32,1], index: 3, kind: input, shape index: {}]   ;;  %s10254_s4 = inlined_call_operand.vmem [shape: f32[36,32], index: 4, kind: input, shape index: {}]   ;;  %s10255_s5 = inlined_call_operand.vmem [shape: f32[4,1], index: 5, kind: input, shape index: {}]   ;;  %s10256_s6 = inlined_call_operand.vmem [shape: f32[1,384], index: 6, kind: input, shape index: {}]   ;;  %s10257_s7 = inlined_call_operand.vmem [shape: f32[2,4,384], index: 7, kind: output, shape index: {}]  }
   0x1   :  { %12 = sst [smem:[#allocation2]] %s10250_s0 }
   0x2 LB: > { %s6725_s27 = sadd.s32 4294967295, %s7417_s26   ;;  %p6729_p0 = scmp.ge.s32.totalorder %s7417_s26, 1  ;;  %s7417_s26 = sphi %s7474_s26, %s18_s26  }
   0x3   : > { %p238_p1 = scmp.lt.s32.totalorder %s7417_s26, 3 }
   0x5   : > { %p239_p2 = pnand %p6729_p0, %p238_p1 }
   0x6   : > { %p270_p3 = scmp.lt.s32.totalorder (!%p239_p2), %s6725_s27, 1  ;;  %s7419_s8 = smov (!%p239_p2), 19  }
   0x7   : > { %242 = sbr.rel (%p239_p2) target bundleno = 8170 (0x1fea), region = 48  ;;  %s7420_s9 = smov (!%p239_p2), 90  }
   0x8   : > { %s7421_s10 = smov (!%p239_p2), 92   ;;  %s7422_s11 = smov (!%p239_p2), 109  }
   0x9   : > { %s7423_s12 = smov (!%p239_p2), 126   ;;  %s7424_s13 = smov (!%p239_p2), 91  }
   0xa   : > { %s7425_s14 = smov (!%p239_p2), 108   ;;  %s7426_s15 = smov (!%p239_p2), 127  }
   0xb   : > { %s7427_s16 = smov (!%p239_p2), 110   ;;  %s7874_s23 = sld [smem:[#allocation2]] (!%p239_p2) }
   0xc   : > { %s10259_s27 = smov (!%p270_p3, %s6725_s27), 1  ;;  %vm309_vm0 = vcmask 154624   ;;  %v7428_v13 = vmov 0.0   ;;  %v7550_v14 = vld [vmem:[%s10252_s2] sm:$0xff]  ;;  %vm474_vm1 = vcmask 293888   ;;  %v7429_v16 = vmov 0  }
   0xd   : > { %s7358_s0 = smul.u32 12, %s10259_s27  ;;  %557 = vmatprep.mubr.f32.mxu0 %v7428_v13  ;;  %7056 = vmatprep.mubr.msk.f32.mxu1 %vm474_vm1, %v7550_v14  ;;  %v288_v17 = vld [vmem:[%s10253_s3 + $0x18] sm:$0xff]  ;;  %v287_v18 = vld [vmem:[%s10253_s3 + $0x10] sm:$0xff]  ;;  %v286_v19 = vld [vmem:[%s10253_s3 + $0x8] sm:$0xff]  ;;  %vm437_vm2 = vcmask 736256   ;;  %vm441_vm3 = vcmask 1043456  }
   0xe   : > { %7379 = vset.pattern.permute.xlu1 %v7429_v16  ;;  %7380 = vset.pattern.permute.xlu0 %v7429_v16  ;;  %v285_v20 = vld [vmem:[%s10253_s3] sm:$0xff]  ;;  %vm407_vm4 = vcmask 752640   ;;  %vm422_vm5 = vcmask 744448   ;;  %vm392_vm6 = vcmask 883712   ;;  %vm377_vm7 = vcmask 891904  }
   0xf   : > { %s274_s30 = scalar_lea.vmem %s10251_s1, %s7358_s0  ;;  %v294_v21 = vld [vmem:[%s10255_s5] sm:$0xf]  ;;  %vm362_vm8 = vcmask 900096   ;;  %vm347_vm9 = vcmask 1031168   ;;  %vm332_vm10 = vcmask 1039360   ;;  %vm7430_vm11 = vmmov 0  }
  0x10   : > { %v7490_v0 = vld [vmem:[%s274_s30] sm:$0xff]  ;;  %v7492_v1 = vld [vmem:[%s274_s30 + $0x8] sm:$0xf]  ;;  %vm707_vm12 = vcmask 261120  }
  0x11   : > { %303 = vrot.lane.b32.xlu0 %v7490_v0, %s7419_s8  ;;  %307 = vrot.lane.b32.xlu1 %v7492_v1, %s7419_s8  ;;  %v302_v2 = vcombine.high %v7490_v0, %v7490_v0 }
  0x15   : > { %305 = vrot.lane.b32.xlu0 %v302_v2, %s7419_s8 }
  0x83   : > { %v304_v3 = vpop.permute.xlu0 %303  ;;  %v308_v4 = vpop.permute.xlu1 %307 }
  0x84   : > { %v7502_v5 = vsel %vm309_vm0, 0.0, %v304_v3  ;;  %v317_v6 = vsel %vm309_vm0, %v308_v4, 0.0 }
  0x85   : > { %429 = vrot.lane.b32.xlu1 %v7502_v5, %s7420_s9  ;;  %399 = vrot.lane.b32.xlu0 %v7502_v5, %s7421_s10  ;;  %v320_v10 = vrot.slane %v7502_v5, 4  ;;  %v323_v15 = vrot.slane %v317_v6, 4 }
  0x87   : > { %v306_v7 = vpop.permute.xlu0 %305 }
  0x88   : > { %v7513_v8 = vsel %vm309_vm0, %v304_v3, %v306_v7  ;;  %v7520_v9 = vsel %vm309_vm0, %v306_v7, %v308_v4 }
  0x89   : > { %435 = vrot.lane.b32.xlu1 %v317_v6, %s7420_s9  ;;  %369 = vrot.lane.b32.xlu0 %v7502_v5, %s7422_s11  ;;  %v322_v11 = vrot.slane %v7520_v9, 4  ;;  %v321_v12 = vrot.slane %v7513_v8, 4 }
  0x8d   : > { %339 = vrot.lane.b32.xlu0 %v7502_v5, %s7423_s12  ;;  %431 = vrot.lane.b32.xlu1 %v7513_v8, %s7420_s9 }
  0x91   : > { %433 = vrot.lane.b32.xlu0 %v7520_v9, %s7420_s9  ;;  %401 = vrot.lane.b32.xlu1 %v7513_v8, %s7421_s10 }
  0x95   : > { %403 = vrot.lane.b32.xlu0 %v7520_v9, %s7421_s10  ;;  %414 = vrot.lane.b32.xlu1 %v320_v10, %s7424_s13 }
  0x99   : > { %371 = vrot.lane.b32.xlu0 %v7513_v8, %s7422_s11  ;;  %373 = vrot.lane.b32.xlu1 %v7520_v9, %s7422_s11 }
  0x9d   : > { %341 = vrot.lane.b32.xlu0 %v7513_v8, %s7423_s12  ;;  %384 = vrot.lane.b32.xlu1 %v320_v10, %s7425_s14 }
  0xa1   : > { %324 = vrot.lane.b32.xlu0 %v320_v10, %s7426_s15  ;;  %343 = vrot.lane.b32.xlu1 %v7520_v9, %s7423_s12 }
  0xa5   : > { %418 = vrot.lane.b32.xlu0 %v322_v11, %s7424_s13  ;;  %354 = vrot.lane.b32.xlu1 %v320_v10, %s7427_s16 }
  0xa9   : > { %386 = vrot.lane.b32.xlu0 %v321_v12, %s7425_s14  ;;  %416 = vrot.lane.b32.xlu1 %v321_v12, %s7424_s13 }
  0xad   : > { %356 = vrot.lane.b32.xlu0 %v321_v12, %s7427_s16  ;;  %388 = vrot.lane.b32.xlu1 %v322_v11, %s7425_s14 }
  0xb1   : > { %326 = vrot.lane.b32.xlu0 %v321_v12, %s7426_s15  ;;  %358 = vrot.lane.b32.xlu1 %v322_v11, %s7427_s16 }
  0xb5   : > { %405 = vrot.lane.b32.xlu0 %v317_v6, %s7421_s10  ;;  %328 = vrot.lane.b32.xlu1 %v322_v11, %s7426_s15 }
  0xb9   : > { %375 = vrot.lane.b32.xlu0 %v317_v6, %s7422_s11  ;;  %420 = vrot.lane.b32.xlu1 %v323_v15, %s7424_s13 }
  0xbd   : > { %345 = vrot.lane.b32.xlu0 %v317_v6, %s7423_s12  ;;  %390 = vrot.lane.b32.xlu1 %v323_v15, %s7425_s14 }
  0xc1   : > { %330 = vrot.lane.b32.xlu0 %v323_v15, %s7426_s15  ;;  %360 = vrot.lane.b32.xlu1 %v323_v15, %s7427_s16 }
  0xc5   : > { %471 = vperm.xlu1 %7379, %v288_v17   ;;  %466 = vperm.xlu0 %7380, %v287_v18  }
  0xc9   : > { %461 = vperm.xlu1 %7379, %v286_v19  }
  0xcd   : > { %456 = vperm.xlu1 %7379, %v285_v20  }
  0xd1   : > { %1149 = vperm.xlu1 %7379, %v294_v21  }
  0xf7   : > { %v430_v22 = vpop.permute.xlu1 %429  ;;  %v400_v23 = vpop.permute.xlu0 %399 }
  0xfb   : > { %v436_v24 = vpop.permute.xlu1 %435  ;;  %v370_v25 = vpop.permute.xlu0 %369 }
  0xff   : > { %v432_v26 = vpop.permute.xlu1 %431  ;;  %v340_v27 = vpop.permute.xlu0 %339 }
 0x100   : > { %v438_v32 = vsel %vm437_vm2, %v430_v22, %v432_v26 }
 0x103   : > { %v402_v28 = vpop.permute.xlu1 %401  ;;  %v434_v29 = vpop.permute.xlu0 %433 }
 0x104   : > { %v439_v30 = vsel %vm437_vm2, %v432_v26, %v434_v29  ;;  %v440_v31 = vsel %vm437_vm2, %v434_v29, %v436_v24  ;;  %v408_v45 = vsel %vm407_vm4, %v400_v23, %v402_v28 }
 0x105   : > { %6732 = vmatprep.subr.msk.mxu0 %vm441_vm3, %v439_v30  ;;  %7046 = vmatprep.subr.msk.mxu1 %vm441_vm3, %v440_v31 }
 0x106   : > { %6733 = vmatpush1.msk.msra.mxu0 %vm441_vm3, %v438_v32  ;;  %7047 = vmatpush3.msk.msra.mxu1 %vm441_vm3, %v440_v31  ;;  %v7653_v32 = vld [vmem:[%s10252_s2 + $0x18] sm:$0xff] }
 0x107   : > { %v415_v33 = vpop.permute.xlu1 %414  ;;  %v404_v34 = vpop.permute.xlu0 %403 }
 0x108   : > { %v409_v46 = vsel %vm407_vm4, %v402_v28, %v404_v34 }
 0x10b   : > { %v7588_v35 = vpop.permute.xlu1 %373  ;;  %v372_v36 = vpop.permute.xlu0 %371 }
 0x10c   : > { %v379_v54 = vsel %vm377_vm7, %v372_v36, %v7588_v35  ;;  %v378_v56 = vsel %vm377_vm7, %v370_v25, %v372_v36  ;;  %v7640_v25 = vld [vmem:[%s10252_s2 + $0x10] sm:$0xff] }
 0x10f   : > { %v385_v37 = vpop.permute.xlu1 %384  ;;  %v342_v38 = vpop.permute.xlu0 %341 }
 0x110   : > { %v348_v2 = vsel %vm347_vm9, %v340_v27, %v342_v38 }
 0x113   : > { %v7590_v39 = vpop.permute.xlu1 %343  ;;  %v325_v40 = vpop.permute.xlu0 %324 }
 0x114   : > { %v349_v62 = vsel %vm347_vm9, %v342_v38, %v7590_v39 }
 0x117   : > { %v355_v41 = vpop.permute.xlu1 %354  ;;  %v419_v42 = vpop.permute.xlu0 %418 }
 0x11b   : > { %v417_v43 = vpop.permute.xlu1 %416  ;;  %v387_v44 = vpop.permute.xlu0 %386 }
 0x11c   : > { %v423_v47 = vsel %vm422_vm5, %v415_v33, %v417_v43  ;;  %v424_v48 = vsel %vm422_vm5, %v417_v43, %v419_v42  ;;  %v393_v51 = vsel %vm392_vm6, %v385_v37, %v387_v44 }
 0x11d   : > { %v452_v49 = vsel %vm441_vm3, %v409_v46, %v424_v48  ;;  %v451_v50 = vsel %vm441_vm3, %v408_v45, %v423_v47  ;;  %v448_v58 = vsel %vm441_vm3, %v378_v56, %v393_v51  ;;  %v7680_v45 = vld [vmem:[%s10256_s6] sm:$0x7] }
 0x11e   : > { %517 = vmatprep.subr.mxu0 %v452_v49 }
 0x11f   : > { %v389_v52 = vpop.permute.xlu1 %388  ;;  %518 = vmatpush1.msra.mxu0 %v451_v50  ;;  %v357_v53 = vpop.permute.xlu0 %356 }
 0x120   : > { %v394_v55 = vsel %vm392_vm6, %v387_v44, %v389_v52  ;;  %v363_v59 = vsel %vm362_vm8, %v355_v41, %v357_v53 }
 0x121   : > { %v449_v57 = vsel %vm441_vm3, %v379_v54, %v394_v55  ;;  %v445_v4 = vsel %vm441_vm3, %v348_v2, %v363_v59 }
 0x122   : > { %519 = vmatprep.subr.mxu0 %v449_v57 }
 0x123   : > { %v359_v60 = vpop.permute.xlu1 %358  ;;  %520 = vmatpush1.msra.mxu0 %v448_v58  ;;  %v327_v61 = vpop.permute.xlu0 %326 }
 0x124   : > { %v364_v63 = vsel %vm362_vm8, %v357_v53, %v359_v60  ;;  %v333_v6 = vsel %vm332_vm10, %v325_v40, %v327_v61 }
 0x125   : > { %v446_v3 = vsel %vm441_vm3, %v349_v62, %v364_v63  ;;  %v442_v15 = vsel %vm441_vm3, %v7502_v5, %v333_v6  ;;  %v7628_v5 = vld [vmem:[%s10252_s2 + $0x8] sm:$0xff] }
 0x126   : > { %521 = vmatprep.subr.mxu0 %v446_v3 }
 0x127   : > { %v329_v7 = vpop.permute.xlu1 %328  ;;  %522 = vmatpush1.msra.mxu0 %v445_v4  ;;  %v406_v10 = vpop.permute.xlu0 %405 }
 0x128   : > { %v334_v11 = vsel %vm332_vm10, %v327_v61, %v329_v7  ;;  %v410_v18 = vsel %vm407_vm4, %v404_v34, %v406_v10 }
 0x129   : > { %v443_v12 = vsel %vm441_vm3, %v7513_v8, %v334_v11 }
 0x12a   : > { %523 = vmatprep.subr.mxu0 %v443_v12 }
 0x12b   : > { %v421_v16 = vpop.permute.xlu1 %420  ;;  %524 = vmatpush1.msra.mxu0 %v442_v15  ;;  %v376_v17 = vpop.permute.xlu0 %375 }
 0x12c   : > { %v425_v19 = vsel %vm422_vm5, %v419_v42, %v421_v16  ;;  %6734 = vmatmul.mubr.msk.f32.vlgmr.msra.gmra.mxu0 %vm474_vm1, %v7550_v14  ;;  %7062 = vmatprep.subr.mxu0 %v7428_v13  ;;  %v380_v22 = vsel %vm377_vm7, %v7588_v35, %v376_v17  ;;  %v680_v35 = vlaneseq }
 0x12d   : > { %v453_v20 = vsel %vm441_vm3, %v410_v18, %v425_v19  ;;  %563 = vmatprep.mubr.f32.mxu0 %v7428_v13 }
 0x12e   : > { %7048 = vmatprep.subr.mxu1 %v453_v20 }
 0x12f   : > { %v391_v8 = vpop.permute.xlu1 %390  ;;  %7049 = vmatpush3.msra.mxu1 %v453_v20  ;;  %v346_v21 = vpop.permute.xlu0 %345 }
 0x130   : > { %v395_v23 = vsel %vm392_vm6, %v389_v52, %v391_v8  ;;  %6735 = vmatmul.mubr.msk.f32.gmra.mxu0 %vm474_vm1, %v7628_v5  ;;  %v350_v28 = vsel %vm347_vm9, %v7590_v39, %v346_v21  ;;  %v7670_v39 = vshrl.u32 %v680_v35, 7 }
 0x131   : > { %v450_v24 = vsel %vm441_vm3, %v380_v22, %v395_v23  ;;  %569 = vmatprep.mubr.f32.mxu0 %v7428_v13 }
 0x132   : > { %7050 = vmatprep.subr.mxu1 %v450_v24  ;;  %v682_v44 = vsub.s32 0, %v7670_v39  ;;  %v686_v46 = vsub.s32 1, %v7670_v39 }
 0x133   : > { %v361_v26 = vpop.permute.xlu1 %360  ;;  %7051 = vmatpush3.msra.mxu1 %v450_v24  ;;  %v331_v27 = vpop.permute.xlu0 %330 }
 0x134   : > { %v365_v29 = vsel %vm362_vm8, %v359_v60, %v361_v26  ;;  %v335_v30 = vsel %vm332_vm10, %v329_v7, %v331_v27  ;;  %6736 = vmatmul.mubr.msk.f32.gmra.mxu0 %vm474_vm1, %v7640_v25  ;;  %v7689_v51 = vrot.slane %v7680_v45, %v682_v44  ;;  %v7696_v57 = vrot.slane %v7680_v45, %v686_v46 }
 0x135   : > { %v447_v31 = vsel %vm441_vm3, %v350_v28, %v365_v29  ;;  %575 = vmatprep.mubr.f32.mxu0 %v7428_v13  ;;  %v444_v33 = vsel %vm441_vm3, %v7520_v9, %v335_v30  ;;  %v690_v60 = vsub.s32 2, %v7670_v39 }
 0x136   : > { %7052 = vmatprep.subr.mxu1 %v447_v31 }
 0x137   : > { %7053 = vmatpush3.msra.mxu1 %v447_v31  ;;  %v7712_v17 = vrot.slane %v7680_v45, %v690_v60 }
 0x138   : > { %6737 = vmatmul.mubr.msk.f32.gmra.mxu0 %vm474_vm1, %v7653_v32  ;;  %7054 = vmatprep.subr.mxu1 %v444_v33 }
 0x139   : > { %7055 = vmatpush3.msra.mxu1 %v444_v33  ;;  %7070 = vmatprep.mubr.msk.f32.mxu0 %vm7430_vm11, %v7428_v13 }
 0x13a   : > { %7057 = vmatmul.mubr.msk.f32.vlgmr.msra.gmra.mxu1 %vm474_vm1, %v7628_v5 }
 0x13b   : > { %7059 = vmatprep.mubr.msk.f32.mxu1 %vm474_vm1, %v7640_v25 }
 0x13e   : > { %7060 = vmatmul.mubr.msk.f32.gmra.mxu1 %vm474_vm1, %v7653_v32 }
 0x13f   : > { %787 = vmatprep.mubr.f32.mxu1 %v7428_v13 }
 0x140   : > { %v7668_v36 = vpop.permute.xlu1 %471  ;;  %v7672_v41 = vpop.permute.xlu0 %466 }
 0x144   : > { %v7674_v42 = vpop.permute.xlu1 %461 }
 0x148   : > { %v7698_v59 = vpop.permute.xlu1 %456 }
 0x1ec   : > { %v559_v9 = vpop.f32.mrf.mxu0 }
 0x1ed   : > { %v560_v10 = vadd.f32 %v559_v9, %v7698_v59 }
 0x1ee   : > { %v561_v34 = vpop.f32.mrf.mxu0 }
 0x1ef   : > { %v562_v3 = vadd.f32 %v561_v34, %v7698_v59  ;;  %v667_v24 = vmax.f32 %v560_v10, 0.0 }
 0x1f0   : > { %v565_v37 = vpop.f32.mrf.mxu0 }
 0x1f1   : > { %v566_v63 = vadd.f32 %v565_v37, %v7674_v42  ;;  %v668_v23 = vmax.f32 %v562_v3, 0.0  ;;  %v695_v34 = vmul.f32 %v7689_v51, %v667_v24  ;;  %v7729_v37 = vld [vmem:[%s10254_s4] sm:$0xff] }
 0x1f2   : > { %v567_v38 = vpop.f32.mrf.mxu0 }
 0x1f3   : > { %v568_v54 = vadd.f32 %v567_v38, %v7674_v42  ;;  %v670_v20 = vmax.f32 %v566_v63, 0.0  ;;  %v696_v9 = vmul.f32 %v7696_v57, %v668_v23 }
 0x1f4   : > { %v571_v40 = vpop.f32.mrf.mxu0 }
 0x1f5   : > { %v572_v49 = vadd.f32 %v571_v40, %v7672_v41  ;;  %v671_v7 = vmax.f32 %v568_v54, 0.0  ;;  %v698_v30 = vmul.f32 %v7689_v51, %v670_v20  ;;  %v7741_v40 = vld [vmem:[%s10254_s4 + $0x8] sm:$0xff] }
 0x1f6   : > { %v573_v43 = vpop.f32.mrf.mxu0 }
 0x1f7   : > { %v574_v47 = vadd.f32 %v573_v43, %v7672_v41  ;;  %v673_v62 = vmax.f32 %v572_v49, 0.0  ;;  %v699_v29 = vmul.f32 %v7696_v57, %v671_v7  ;;  %v7753_v43 = vld [vmem:[%s10254_s4 + $0x10] sm:$0xff] }
 0x1f8   : > { %v577_v48 = vpop.f32.mrf.mxu0 }
 0x1f9   : > { %v578_v50 = vadd.f32 %v577_v48, %v7668_v36  ;;  %v674_v58 = vmax.f32 %v574_v47, 0.0  ;;  %v701_v19 = vmul.f32 %v7689_v51, %v673_v62  ;;  %v7765_v47 = vld [vmem:[%s10254_s4 + $0x18] sm:$0xff]  ;;  %v7777_v48 = vld [vmem:[%s10254_s4 + $0x20] sm:$0xf] }
 0x1fa   : > { %v579_v52 = vpop.f32.mrf.mxu0  ;;  %v7058_v53 = vpop.f32.mrf.mxu1 }
 0x1fb   : > { %v676_v55 = vmax.f32 %v578_v50, 0.0  ;;  %v580_v56 = vadd.f32 %v579_v52, %v7668_v36  ;;  %v654_v11 = vadd.f32 %v7058_v53, %v7674_v42  ;;  %v702_v16 = vmul.f32 %v7696_v57, %v674_v58 }
 0x1fc   : > { %v648_v61 = vpop.f32.mrf.mxu1 }
 0x1fd   : > { %v677_v2 = vmax.f32 %v580_v56, 0.0  ;;  %v704_v4 = vmul.f32 %v7689_v51, %v676_v55  ;;  %v649_v8 = vadd.f32 %v648_v61, %v7698_v59  ;;  %v672_v26 = vmax.f32 %v654_v11, 0.0 }
 0x1fe   : > { %v7061_v6 = vpop.f32.mrf.mxu1 }
 0x1ff   : > { %v664_v12 = vadd.f32 %v7061_v6, %v7668_v36  ;;  %v705_v15 = vmul.f32 %v7696_v57, %v677_v2  ;;  %v669_v31 = vmax.f32 %v649_v8, 0.0  ;;  %v700_v35 = vmul.f32 %v7712_v17, %v672_v26 }
 0x200   : > { %v658_v18 = vpop.f32.mrf.mxu1 }
 0x201   : > { %v678_v21 = vmax.f32 %v664_v12, 0.0  ;;  %v659_v22 = vadd.f32 %v658_v18, %v7672_v41  ;;  %747 = vmatprep.subr.mxu1 %v705_v15  ;;  %v697_v38 = vmul.f32 %v7712_v17, %v669_v31  ;;  %v7803_v15 = vpop.permute.xlu1 %1149 }
 0x202   : > { %748 = vmatpush1.msra.mxu1 %v704_v4 }
 0x203   : > { %v706_v27 = vmul.f32 %v7712_v17, %v678_v21  ;;  %v675_v28 = vmax.f32 %v659_v22, 0.0  ;;  %749 = vmatprep.subr.mxu1 %v702_v16 }
 0x204   : > { %750 = vmatpush1.msra.mxu1 %v701_v19 }
 0x205   : > { %v703_v33 = vmul.f32 %v7712_v17, %v675_v28  ;;  %751 = vmatprep.subr.mxu1 %v699_v29  ;;  %7063 = vmatpush3.msra.mxu0 %v706_v27 }
 0x206   : > { %752 = vmatpush1.msra.mxu1 %v698_v30  ;;  %7064 = vmatprep.subr.mxu0 %v7428_v13 }
 0x207   : > { %753 = vmatprep.subr.mxu1 %v696_v9  ;;  %7065 = vmatpush3.msra.mxu0 %v703_v33 }
 0x208   : > { %754 = vmatpush1.msra.mxu1 %v695_v34  ;;  %7066 = vmatprep.subr.mxu0 %v7428_v13 }
 0x209   : > { %7067 = vmatpush3.msra.mxu0 %v700_v35  ;;  %6743 = vmatmul.mubr.msk.f32.vlgmr.msra.gmra.mxu1 %vm707_vm12, %v7729_v37 }
 0x20a   : > { %7068 = vmatprep.subr.mxu0 %v7428_v13  ;;  %793 = vmatprep.mubr.f32.mxu1 %v7428_v13 }
 0x20b   : > { %7069 = vmatpush3.msra.mxu0 %v697_v38 }
 0x20c   : > { %7071 = vmatmul.mubr.msk.f32.vlgmr.msra.gmra.mxu0 %vm707_vm12, %v7729_v37 }
 0x20d   : > { %7073 = vmatprep.mubr.msk.f32.mxu0 %vm7430_vm11, %v7428_v13  ;;  %6744 = vmatmul.mubr.msk.f32.gmra.mxu1 %vm707_vm12, %v7741_v40 }
 0x20e   : > { %799 = vmatprep.mubr.f32.mxu1 %v7428_v13 }
 0x210   : > { %7074 = vmatmul.mubr.msk.f32.gmra.mxu0 %vm707_vm12, %v7741_v40 }
 0x211   : > { %7076 = vmatprep.mubr.msk.f32.mxu0 %vm7430_vm11, %v7428_v13  ;;  %6745 = vmatmul.mubr.msk.f32.gmra.mxu1 %vm707_vm12, %v7753_v43 }
 0x212   : > { %805 = vmatprep.mubr.f32.mxu1 %v7428_v13 }
 0x214   : > { %7077 = vmatmul.mubr.msk.f32.gmra.mxu0 %vm707_vm12, %v7753_v43 }
 0x215   : > { %7079 = vmatprep.mubr.msk.f32.mxu0 %vm7430_vm11, %v7428_v13  ;;  %6746 = vmatmul.mubr.msk.f32.gmra.mxu1 %vm707_vm12, %v7765_v47 }
 0x216   : > { %811 = vmatprep.mubr.f32.mxu1 %v7428_v13 }
 0x218   : > { %7080 = vmatmul.mubr.msk.f32.gmra.mxu0 %vm707_vm12, %v7765_v47 }
 0x219   : > { %7082 = vmatprep.mubr.msk.f32.mxu0 %vm7430_vm11, %v7428_v13  ;;  %6747 = vmatmul.mubr.msk.f32.gmra.mxu1 %vm707_vm12, %v7777_v48 }
 0x21a   : > { %1394 = vmatprep.mubr.f32.mxu1 %v7428_v13 }
 0x21c   : > { %7083 = vmatmul.mubr.msk.f32.gmra.mxu0 %vm707_vm12, %v7777_v48 }
 0x21d   : > { %7095 = vmatprep.mubr.msk.f32.mxu0 %vm474_vm1, %v7550_v14 }
 0x2c9   : > { %v789_v49 = vpop.f32.mrf.mxu1 }
 0x2cb   : > { %v791_v52 = vpop.f32.mrf.mxu1 }
 0x2cc   : > { %v884_v50 = vpop.f32.mrf.mxu0 }
 0x2cd   : > { %927 = vrot.lane.b32.xlu0 %v884_v50, %s7419_s8  ;;  %v795_v54 = vpop.f32.mrf.mxu1 }
 0x2ce   : > { %v7072_v53 = vpop.f32.mrf.mxu0 }
 0x2cf   : > { %v797_v58 = vpop.f32.mrf.mxu1 }
 0x2d0   : > { %v889_v55 = vpop.f32.mrf.mxu0 }
 0x2d1   : > { %933 = vrot.lane.b32.xlu1 %v889_v55, %s7419_s8  ;;  %v801_v63 = vpop.f32.mrf.mxu1 }
 0x2d2   : > { %v7075_v56 = vpop.f32.mrf.mxu0 }
 0x2d3   : > { %v803_v3 = vpop.f32.mrf.mxu1 }
 0x2d4   : > { %v894_v61 = vpop.f32.mrf.mxu0 }
 0x2d5   : > { %939 = vrot.lane.b32.xlu0 %v894_v61, %s7419_s8  ;;  %v807_v7 = vpop.f32.mrf.mxu1 }
 0x2d6   : > { %v7078_v62 = vpop.f32.mrf.mxu0 }
 0x2d7   : > { %v809_v10 = vpop.f32.mrf.mxu1 }
 0x2d8   : > { %v899_v2 = vpop.f32.mrf.mxu0 }
 0x2d9   : > { %945 = vrot.lane.b32.xlu1 %v899_v2, %s7419_s8  ;;  %923 = vrot.lane.b32.xlu0 %v789_v49, %s7419_s8  ;;  %v813_v11 = vpop.f32.mrf.mxu1 }
 0x2da   : > { %v7081_v14 = vpop.f32.mrf.mxu0 }
 0x2db   : > { %v815_v12 = vpop.f32.mrf.mxu1 }
 0x2dc   : > { %v904_v4 = vpop.f32.mrf.mxu0 }
 0x2dd   : > { %951 = vrot.lane.b32.xlu0 %v904_v4, %s7419_s8  ;;  %925 = vrot.lane.b32.xlu1 %v791_v52, %s7419_s8 }
 0x2de   : > { %v7084_v6 = vpop.f32.mrf.mxu0 }
 0x2e1   : > { %929 = vrot.lane.b32.xlu1 %v795_v54, %s7419_s8  ;;  %931 = vrot.lane.b32.xlu0 %v797_v58, %s7419_s8 }
 0x2e5   : > { %935 = vrot.lane.b32.xlu0 %v801_v63, %s7419_s8  ;;  %937 = vrot.lane.b32.xlu1 %v803_v3, %s7419_s8 }
 0x2e9   : > { %941 = vrot.lane.b32.xlu1 %v807_v7, %s7419_s8  ;;  %943 = vrot.lane.b32.xlu0 %v809_v10, %s7419_s8 }
 0x2ed   : > { %949 = vrot.lane.b32.xlu1 %v815_v12, %s7419_s8  ;;  %947 = vrot.lane.b32.xlu0 %v813_v11, %s7419_s8 }
 0x33f   : > { %v928_v16 = vpop.permute.xlu0 %927 }
 0x340   : > { %v980_v18 = vsel %vm309_vm0, %v928_v16, 0.0 }
 0x341   : > { %v990_v19 = vrot.slane %v980_v18, 4 }
 0x343   : > { %v934_v20 = vpop.permute.xlu1 %933  ;;  %997 = vrot.lane.b32.xlu1 %v990_v19, %s7426_s15 }
 0x344   : > { %v981_v8 = vsel %vm309_vm0, %v934_v20, 0.0 }
 0x345   : > { %v1030_v22 = vrot.slane %v981_v8, 4 }
 0x347   : > { %v940_v21 = vpop.permute.xlu0 %939  ;;  %1016 = vrot.lane.b32.xlu1 %v981_v8, %s7423_s12 }
 0x348   : > { %v982_v27 = vsel %vm309_vm0, %v940_v21, 0.0 }
 0x349   : > { %v1070_v31 = vrot.slane %v982_v27, 4 }
 0x34b   : > { %v946_v23 = vpop.permute.xlu1 %945  ;;  %v924_v24 = vpop.permute.xlu0 %923  ;;  %1037 = vrot.lane.b32.xlu1 %v1030_v22, %s7427_s16 }
 0x34c   : > { %v7811_v26 = vsel %vm309_vm0, %v946_v23, 0.0  ;;  %v7822_v9 = vsel %vm309_vm0, 0.0, %v924_v24 }
 0x34d   : > { %1096 = vrot.lane.b32.xlu0 %v7811_v26, %s7421_s10  ;;  %v987_v38 = vrot.slane %v7822_v9, 4 }
 0x34f   : > { %v926_v28 = vpop.permute.xlu1 %925  ;;  %1056 = vrot.lane.b32.xlu1 %v982_v27, %s7422_s11  ;;  %v952_v30 = vpop.permute.xlu0 %951 }
 0x350   : > { %v7818_v29 = vsel %vm309_vm0, %v924_v24, %v926_v28  ;;  %v7829_v49 = vsel %vm309_vm0, %v926_v28, %v928_v16  ;;  %v984_v24 = vsel %vm309_vm0, %v952_v30, 0.0 }
 0x351   : > { %v988_v33 = vrot.slane %v7818_v29, 4  ;;  %v989_v52 = vrot.slane %v7829_v49, 4 }
 0x353   : > { %v930_v34 = vpop.permute.xlu1 %929  ;;  %993 = vrot.lane.b32.xlu0 %v988_v33, %s7426_s15  ;;  %1077 = vrot.lane.b32.xlu1 %v1070_v31, %s7425_s14  ;;  %v932_v50 = vpop.permute.xlu0 %931 }
 0x354   : > { %v976_v35 = vsel %vm309_vm0, 0.0, %v930_v34  ;;  %v956_v53 = vsel %vm309_vm0, %v932_v50, %v934_v20  ;;  %v955_v55 = vsel %vm309_vm0, %v930_v34, %v932_v50 }
 0x355   : > { %v1027_v54 = vrot.slane %v976_v35, 4  ;;  %v1029_v56 = vrot.slane %v956_v53, 4  ;;  %v1028_v58 = vrot.slane %v955_v55, 4 }
 0x357   : > { %1010 = vrot.lane.b32.xlu0 %v976_v35, %s7423_s12  ;;  %991 = vrot.lane.b32.xlu1 %v987_v38, %s7426_s15  ;;  %v936_v61 = vpop.permute.xlu0 %935  ;;  %v938_v62 = vpop.permute.xlu1 %937 }
 0x358   : > { %v977_v63 = vsel %vm309_vm0, 0.0, %v936_v61  ;;  %v957_v2 = vsel %vm309_vm0, %v936_v61, %v938_v62  ;;  %v958_v3 = vsel %vm309_vm0, %v938_v62, %v940_v21 }
 0x359   : > { %v1068_v14 = vrot.slane %v957_v2, 4  ;;  %v1067_v10 = vrot.slane %v977_v63, 4  ;;  %v1069_v12 = vrot.slane %v958_v3, 4 }
 0x35b   : > { %1014 = vrot.lane.b32.xlu0 %v956_v53, %s7423_s12  ;;  %995 = vrot.lane.b32.xlu1 %v989_v52, %s7426_s15  ;;  %v942_v4 = vpop.permute.xlu1 %941  ;;  %v944_v6 = vpop.permute.xlu0 %943 }
 0x35c   : > { %v959_v7 = vsel %vm309_vm0, %v942_v4, %v944_v6  ;;  %v978_v18 = vsel %vm309_vm0, 0.0, %v942_v4  ;;  %v960_v8 = vsel %vm309_vm0, %v944_v6, %v946_v23  ;;  %v1110_v23 = vrot.slane %v7811_v26, 4 }
 0x35d   : > { %v1108_v11 = vrot.slane %v959_v7, 4  ;;  %v1107_v22 = vrot.slane %v978_v18, 4  ;;  %v1109_v27 = vrot.slane %v960_v8, 4 }
 0x35f   : > { %1031 = vrot.lane.b32.xlu0 %v1027_v54, %s7427_s16  ;;  %1012 = vrot.lane.b32.xlu1 %v955_v55, %s7423_s12  ;;  %v948_v16 = vpop.permute.xlu0 %947  ;;  %v950_v20 = vpop.permute.xlu1 %949 }
 0x360   : > { %v979_v19 = vsel %vm309_vm0, 0.0, %v948_v16  ;;  %v962_v21 = vsel %vm309_vm0, %v950_v20, %v952_v30  ;;  %v961_v28 = vsel %vm309_vm0, %v948_v16, %v950_v20 }
 0x363   : > { %1035 = vrot.lane.b32.xlu0 %v1029_v56, %s7427_s16  ;;  %1033 = vrot.lane.b32.xlu1 %v1028_v58, %s7427_s16 }
 0x367   : > { %1050 = vrot.lane.b32.xlu0 %v977_v63, %s7422_s11  ;;  %1052 = vrot.lane.b32.xlu1 %v957_v2, %s7422_s11 }
 0x36b   : > { %1054 = vrot.lane.b32.xlu0 %v958_v3, %s7422_s11  ;;  %1073 = vrot.lane.b32.xlu1 %v1068_v14, %s7425_s14 }
 0x36f   : > { %1071 = vrot.lane.b32.xlu0 %v1067_v10, %s7425_s14  ;;  %1092 = vrot.lane.b32.xlu1 %v959_v7, %s7421_s10 }
 0x373   : > { %1075 = vrot.lane.b32.xlu0 %v1069_v12, %s7425_s14  ;;  %1113 = vrot.lane.b32.xlu1 %v1108_v11, %s7424_s13 }
 0x377   : > { %1090 = vrot.lane.b32.xlu0 %v978_v18, %s7421_s10  ;;  %1130 = vrot.lane.b32.xlu1 %v979_v19, %s7420_s9 }
 0x37b   : > { %1094 = vrot.lane.b32.xlu0 %v960_v8, %s7421_s10  ;;  %1134 = vrot.lane.b32.xlu1 %v962_v21, %s7420_s9 }
 0x37f   : > { %1111 = vrot.lane.b32.xlu0 %v1107_v22, %s7424_s13  ;;  %1136 = vrot.lane.b32.xlu1 %v984_v24, %s7420_s9 }
 0x383   : > { %1115 = vrot.lane.b32.xlu0 %v1109_v27, %s7424_s13 }
 0x387   : > { %1132 = vrot.lane.b32.xlu0 %v961_v28, %s7420_s9 }
 0x38b   : > { %1117 = vrot.lane.b32.xlu0 %v1110_v23, %s7424_s13 }
 0x3b5   : > { %v998_v31 = vpop.permute.xlu1 %997 }
 0x3b9   : > { %v1017_v33 = vpop.permute.xlu1 %1016 }
 0x3bd   : > { %v1038_v34 = vpop.permute.xlu1 %1037 }
 0x3bf   : > { %v7870_v35 = vpop.permute.xlu0 %1096 }
 0x3c1   : > { %v1057_v30 = vpop.permute.xlu1 %1056 }
 0x3c5   : > { %v994_v38 = vpop.permute.xlu0 %993  ;;  %v1078_v50 = vpop.permute.xlu1 %1077 }
 0x3c9   : > { %v1011_v52 = vpop.permute.xlu0 %1010  ;;  %v992_v53 = vpop.permute.xlu1 %991 }
 0x3ca   : > { %v999_v10 = vsel %vm332_vm10, %v992_v53, %v994_v38 }
 0x3cb   : > { %v1005_v19 = vadd.f32 %v999_v10, %v7822_v9 }
 0x3cd   : > { %v1015_v54 = vpop.permute.xlu0 %1014  ;;  %v996_v55 = vpop.permute.xlu1 %995 }
 0x3ce   : > { %v1000_v11 = vsel %vm332_vm10, %v994_v38, %v996_v55  ;;  %v1001_v21 = vsel %vm332_vm10, %v996_v55, %v998_v31 }
 0x3cf   : > { %v1006_v20 = vadd.f32 %v1000_v11, %v7818_v29  ;;  %v296_v11 = vstv %s7874_s23 }
 0x3d1   : > { %v1032_v56 = vpop.permute.xlu0 %1031  ;;  %v1013_v58 = vpop.permute.xlu1 %1012 }
 0x3d2   : > { %v1018_v16 = vsel %vm347_vm9, %v1011_v52, %v1013_v58  ;;  %v1019_v18 = vsel %vm347_vm9, %v1013_v58, %v1015_v54  ;;  %v1007_v52 = vadd.f32 %v1001_v21, %v7829_v49 }
 0x3d3   : > { %v1024_v27 = vadd.f32 %v1018_v16, %v1005_v19  ;;  %v1025_v28 = vadd.f32 %v1019_v18, %v1006_v20 }
 0x3d5   : > { %v1036_v61 = vpop.permute.xlu0 %1035  ;;  %v1034_v62 = vpop.permute.xlu1 %1033 }
 0x3d6   : > { %v1039_v22 = vsel %vm362_vm8, %v1032_v56, %v1034_v62  ;;  %v1040_v24 = vsel %vm362_vm8, %v1034_v62, %v1036_v61  ;;  %v1020_v62 = vsel %vm347_vm9, %v1015_v54, %v1017_v33  ;;  %v1041_v16 = vsel %vm362_vm8, %v1036_v61, %v1038_v34 }
 0x3d7   : > { %v1045_v53 = vadd.f32 %v1039_v22, %v1024_v27  ;;  %v1046_v9 = vadd.f32 %v1040_v24, %v1025_v28  ;;  %v1026_v49 = vadd.f32 %v1020_v62, %v1007_v52  ;;  %v297_v22 = vmul.f32 %v296_v11, %v7680_v45 }
 0x3d9   : > { %v1051_v63 = vpop.permute.xlu0 %1050  ;;  %v1053_v26 = vpop.permute.xlu1 %1052  ;;  %v1047_v24 = vadd.f32 %v1041_v16, %v1026_v49  ;;  %v7904_v45 = vrot.slane %v297_v22, %v682_v44 }
 0x3da   : > { %v1058_v23 = vsel %vm377_vm7, %v1051_v63, %v1053_v26 }
 0x3db   : > { %v1064_v55 = vadd.f32 %v1058_v23, %v1045_v53 }
 0x3dd   : > { %v1055_v2 = vpop.permute.xlu0 %1054  ;;  %v1074_v14 = vpop.permute.xlu1 %1073 }
 0x3de   : > { %v1059_v38 = vsel %vm377_vm7, %v1053_v26, %v1055_v2  ;;  %v1060_v21 = vsel %vm377_vm7, %v1055_v2, %v1057_v30 }
 0x3df   : > { %v1065_v56 = vadd.f32 %v1059_v38, %v1046_v9 }
 0x3e1   : > { %v1072_v3 = vpop.permute.xlu0 %1071  ;;  %v1093_v4 = vpop.permute.xlu1 %1092 }
 0x3e2   : > { %v1079_v10 = vsel %vm392_vm6, %v1072_v3, %v1074_v14 }
 0x3e3   : > { %v1085_v18 = vadd.f32 %v1079_v10, %v1064_v55 }
 0x3e5   : > { %v1076_v6 = vpop.permute.xlu0 %1075  ;;  %v1114_v12 = vpop.permute.xlu1 %1113 }
 0x3e6   : > { %v1080_v31 = vsel %vm392_vm6, %v1074_v14, %v1076_v6  ;;  %v1081_v61 = vsel %vm392_vm6, %v1076_v6, %v1078_v50  ;;  %v7908_v50 = vrot.slane %v297_v22, %v686_v46  ;;  %v7918_v46 = vrot.slane %v297_v22, %v690_v60 }
 0x3e7   : > { %v1086_v19 = vadd.f32 %v1080_v31, %v1065_v56 }
 0x3e9   : > { %v1091_v7 = vpop.permute.xlu0 %1090  ;;  %v1131_v58 = vpop.permute.xlu1 %1130 }
 0x3ea   : > { %v1098_v63 = vsel %vm407_vm4, %v1091_v7, %v1093_v4  ;;  %v1066_v7 = vadd.f32 %v1060_v21, %v1047_v24 }
 0x3eb   : > { %v1104_v33 = vadd.f32 %v1098_v63, %v1085_v18 }
 0x3ed   : > { %v1095_v8 = vpop.permute.xlu0 %1094  ;;  %v1135_v34 = vpop.permute.xlu1 %1134 }
 0x3ee   : > { %v1099_v26 = vsel %vm407_vm4, %v1093_v4, %v1095_v8  ;;  %v1100_v23 = vsel %vm407_vm4, %v1095_v8, %v7870_v35 }
 0x3ef   : > { %v1105_v54 = vadd.f32 %v1099_v26, %v1086_v19 }
 0x3f1   : > { %v1112_v29 = vpop.permute.xlu0 %1111  ;;  %v1137_v53 = vpop.permute.xlu1 %1136 }
 0x3f2   : > { %v1119_v3 = vsel %vm422_vm5, %v1112_v29, %v1114_v12  ;;  %v1140_v31 = vsel %vm437_vm2, %v1135_v34, %v1137_v53 }
 0x3f3   : > { %v1125_v4 = vadd.f32 %v1119_v3, %v1104_v33 }
 0x3f5   : > { %v1116_v20 = vpop.permute.xlu0 %1115 }
 0x3f6   : > { %v1120_v14 = vsel %vm422_vm5, %v1114_v12, %v1116_v20  ;;  %v1087_v12 = vadd.f32 %v1081_v61, %v1066_v7 }
 0x3f7   : > { %v1126_v27 = vadd.f32 %v1120_v14, %v1105_v54 }
 0x3f8   : > { %v1106_v6 = vadd.f32 %v1100_v23, %v1087_v12 }
 0x3f9   : > { %v1133_v28 = vpop.permute.xlu0 %1132 }
 0x3fa   : > { %v1138_v30 = vsel %vm437_vm2, %v1131_v58, %v1133_v28  ;;  %v1139_v2 = vsel %vm437_vm2, %v1133_v28, %v1135_v34 }
 0x3fb   : > { %v1144_v38 = vadd.f32 %v1138_v30, %v1125_v4  ;;  %v1145_v52 = vadd.f32 %v1139_v2, %v1126_v27 }
 0x3fd   : > { %v1152_v9 = vadd.f32 %v7803_v15, %v1144_v38  ;;  %v1153_v35 = vadd.f32 %v7803_v15, %v1145_v52  ;;  %v1118_v8 = vpop.permute.xlu0 %1117 }
 0x3fe   : > { %v1121_v58 = vsel %vm422_vm5, %v1116_v20, %v1118_v8 }
 0x3ff   : > { %v1127_v29 = vadd.f32 %v1121_v58, %v1106_v6  ;;  %v1171_v44 = vmul.f32 %v7904_v45, %v1152_v9  ;;  %v1172_v10 = vmul.f32 %v7908_v50, %v1153_v35 }
 0x401   : > { %v1146_v55 = vadd.f32 %v1140_v31, %v1127_v29  ;;  %v1176_v56 = vcombine.low %v1171_v44, %v1172_v10 }
 0x403   : > { %v1154_v11 = vadd.f32 %v7803_v15, %v1146_v55  ;;  %v7922_v62 = vadd.f32 %v1176_v56, %v7490_v0 }
 0x405   : > { %1183 = vrot.lane.b32.xlu0 %v7922_v62, %s7419_s8  ;;  %v1182_v16 = vcombine.high %v7922_v62, %v7922_v62  ;;  %v1173_v63 = vmul.f32 %v7918_v46, %v1154_v11 }
 0x407   : > { %1185 = vrot.lane.b32.xlu1 %v1182_v16, %s7419_s8  ;;  %v7931_v26 = vadd.f32 %v1173_v63, %v7492_v1 }
 0x409   : > { %1187 = vrot.lane.b32.xlu0 %v7931_v26, %s7419_s8 }
 0x477   : > { %v1184_v39 = vpop.permute.xlu0 %1183 }
 0x478   : > { %v7936_v0 = vsel %vm309_vm0, 0.0, %v1184_v39 }
 0x479   : > { %1273 = vrot.lane.b32.xlu0 %v7936_v0, %s7421_s10  ;;  %v1186_v1 = vpop.permute.xlu1 %1185  ;;  %v1199_v20 = vrot.slane %v7936_v0, 4 }
 0x47a   : > { %v7949_v18 = vsel %vm309_vm0, %v1184_v39, %v1186_v1 }
 0x47b   : > { %v1188_v60 = vpop.permute.xlu0 %1187  ;;  %v1200_v3 = vrot.slane %v7949_v18, 4 }
 0x47c   : > { %v1196_v49 = vsel %vm309_vm0, %v1188_v60, 0.0  ;;  %v7952_v19 = vsel %vm309_vm0, %v1186_v1, %v1188_v60 }
 0x47d   : > { %1245 = vrot.lane.b32.xlu0 %v7936_v0, %s7422_s11  ;;  %1307 = vrot.lane.b32.xlu1 %v1196_v49, %s7420_s9  ;;  %v1201_v21 = vrot.slane %v7952_v19, 4  ;;  %v1202_v14 = vrot.slane %v1196_v49, 4 }
 0x481   : > { %1217 = vrot.lane.b32.xlu0 %v7936_v0, %s7423_s12  ;;  %1301 = vrot.lane.b32.xlu1 %v7936_v0, %s7420_s9 }
 0x485   : > { %1305 = vrot.lane.b32.xlu0 %v7952_v19, %s7420_s9  ;;  %1303 = vrot.lane.b32.xlu1 %v7949_v18, %s7420_s9 }
 0x489   : > { %1277 = vrot.lane.b32.xlu0 %v7952_v19, %s7421_s10  ;;  %1275 = vrot.lane.b32.xlu1 %v7949_v18, %s7421_s10 }
 0x48d   : > { %1247 = vrot.lane.b32.xlu0 %v7949_v18, %s7422_s11  ;;  %1287 = vrot.lane.b32.xlu1 %v1199_v20, %s7424_s13 }
 0x491   : > { %1219 = vrot.lane.b32.xlu0 %v7949_v18, %s7423_s12  ;;  %1249 = vrot.lane.b32.xlu1 %v7952_v19, %s7422_s11 }
 0x495   : > { %1203 = vrot.lane.b32.xlu0 %v1199_v20, %s7426_s15  ;;  %1259 = vrot.lane.b32.xlu1 %v1199_v20, %s7425_s14 }
 0x499   : > { %1291 = vrot.lane.b32.xlu0 %v1201_v21, %s7424_s13  ;;  %1221 = vrot.lane.b32.xlu1 %v7952_v19, %s7423_s12 }
 0x49d   : > { %1231 = vrot.lane.b32.xlu1 %v1199_v20, %s7427_s16  ;;  %1261 = vrot.lane.b32.xlu0 %v1200_v3, %s7425_s14 }
 0x4a1   : > { %1233 = vrot.lane.b32.xlu0 %v1200_v3, %s7427_s16  ;;  %1289 = vrot.lane.b32.xlu1 %v1200_v3, %s7424_s13 }
 0x4a5   : > { %1205 = vrot.lane.b32.xlu0 %v1200_v3, %s7426_s15  ;;  %1263 = vrot.lane.b32.xlu1 %v1201_v21, %s7425_s14 }
 0x4a9   : > { %1279 = vrot.lane.b32.xlu0 %v1196_v49, %s7421_s10  ;;  %1235 = vrot.lane.b32.xlu1 %v1201_v21, %s7427_s16 }
 0x4ad   : > { %1251 = vrot.lane.b32.xlu0 %v1196_v49, %s7422_s11  ;;  %1207 = vrot.lane.b32.xlu1 %v1201_v21, %s7426_s15 }
 0x4b1   : > { %1223 = vrot.lane.b32.xlu0 %v1196_v49, %s7423_s12  ;;  %1293 = vrot.lane.b32.xlu1 %v1202_v14, %s7424_s13 }
 0x4b5   : > { %1209 = vrot.lane.b32.xlu0 %v1202_v14, %s7426_s15  ;;  %1265 = vrot.lane.b32.xlu1 %v1202_v14, %s7425_s14 }
 0x4b9   : > { %1237 = vrot.lane.b32.xlu1 %v1202_v14, %s7427_s16 }
 0x4eb   : > { %v1274_v22 = vpop.permute.xlu0 %1273 }
 0x4ef   : > { %v1246_v24 = vpop.permute.xlu0 %1245  ;;  %v1308_v33 = vpop.permute.xlu1 %1307 }
 0x4f3   : > { %v1218_v54 = vpop.permute.xlu0 %1217  ;;  %v1302_v34 = vpop.permute.xlu1 %1301 }
 0x4f7   : > { %v1306_v61 = vpop.permute.xlu0 %1305  ;;  %v1304_v7 = vpop.permute.xlu1 %1303 }
 0x4f8   : > { %v1309_v4 = vsel %vm437_vm2, %v1302_v34, %v1304_v7  ;;  %v1310_v27 = vsel %vm437_vm2, %v1304_v7, %v1306_v61  ;;  %v1311_v28 = vsel %vm437_vm2, %v1306_v61, %v1308_v33 }
 0x4f9   : > { %6753 = vmatprep.subr.msk.mxu1 %vm441_vm3, %v1310_v27  ;;  %7085 = vmatprep.subr.msk.mxu0 %vm441_vm3, %v1311_v28 }
 0x4fa   : > { %6754 = vmatpush1.msk.msra.mxu1 %vm441_vm3, %v1309_v4  ;;  %7086 = vmatpush3.msk.msra.mxu0 %vm441_vm3, %v1311_v28 }
 0x4fb   : > { %v1278_v23 = vpop.permute.xlu0 %1277  ;;  %v1276_v30 = vpop.permute.xlu1 %1275 }
 0x4fc   : > { %v1281_v10 = vsel %vm407_vm4, %v1274_v22, %v1276_v30  ;;  %v1282_v31 = vsel %vm407_vm4, %v1276_v30, %v1278_v23 }
 0x4ff   : > { %v1248_v2 = vpop.permute.xlu0 %1247  ;;  %v1288_v12 = vpop.permute.xlu1 %1287 }
 0x500   : > { %v1253_v20 = vsel %vm377_vm7, %v1246_v24, %v1248_v2 }
 0x503   : > { %v1220_v38 = vpop.permute.xlu0 %1219  ;;  %v1250_v52 = vpop.permute.xlu1 %1249 }
 0x504   : > { %v1254_v49 = vsel %vm377_vm7, %v1248_v2, %v1250_v52  ;;  %v1225_v7 = vsel %vm347_vm9, %v1218_v54, %v1220_v38 }
 0x507   : > { %v1204_v6 = vpop.permute.xlu0 %1203  ;;  %v1260_v53 = vpop.permute.xlu1 %1259 }
 0x50b   : > { %v1292_v9 = vpop.permute.xlu0 %1291  ;;  %v7999_v35 = vpop.permute.xlu1 %1221 }
 0x50c   : > { %v1226_v34 = vsel %vm347_vm9, %v1220_v38, %v7999_v35 }
 0x50f   : > { %v1262_v8 = vpop.permute.xlu0 %1261  ;;  %v1232_v58 = vpop.permute.xlu1 %1231 }
 0x510   : > { %v1267_v63 = vsel %vm392_vm6, %v1260_v53, %v1262_v8 }
 0x511   : > { %v1318_v3 = vsel %vm441_vm3, %v1253_v20, %v1267_v63 }
 0x513   : > { %v1234_v29 = vpop.permute.xlu0 %1233  ;;  %v1290_v44 = vpop.permute.xlu1 %1289 }
 0x514   : > { %v1295_v55 = vsel %vm422_vm5, %v1288_v12, %v1290_v44  ;;  %v1296_v56 = vsel %vm422_vm5, %v1290_v44, %v1292_v9  ;;  %v1239_v14 = vsel %vm362_vm8, %v1232_v58, %v1234_v29 }
 0x515   : > { %v1322_v11 = vsel %vm441_vm3, %v1282_v31, %v1296_v56  ;;  %v1321_v16 = vsel %vm441_vm3, %v1281_v10, %v1295_v55  ;;  %v1315_v24 = vsel %vm441_vm3, %v1225_v7, %v1239_v14 }
 0x516   : > { %1354 = vmatprep.subr.mxu1 %v1322_v11 }
 0x517   : > { %v1206_v39 = vpop.permute.xlu0 %1205  ;;  %1355 = vmatpush1.msra.mxu1 %v1321_v16  ;;  %v1264_v60 = vpop.permute.xlu1 %1263 }
 0x518   : > { %v1268_v1 = vsel %vm392_vm6, %v1262_v8, %v1264_v60  ;;  %v1211_v27 = vsel %vm332_vm10, %v1204_v6, %v1206_v39  ;;  %v8031_v6 = vld [vmem:[%s10252_s2] sm:$0xff] }
 0x519   : > { %v1319_v21 = vsel %vm441_vm3, %v1254_v49, %v1268_v1  ;;  %v1312_v53 = vsel %vm441_vm3, %v7936_v0, %v1211_v27 }
 0x51a   : > { %1356 = vmatprep.subr.mxu1 %v1319_v21 }
 0x51b   : > { %v1280_v22 = vpop.permute.xlu0 %1279  ;;  %1357 = vmatpush1.msra.mxu1 %v1318_v3  ;;  %v1236_v33 = vpop.permute.xlu1 %1235 }
 0x51c   : > { %v1240_v61 = vsel %vm362_vm8, %v1234_v29, %v1236_v33  ;;  %v1283_v8 = vsel %vm407_vm4, %v1278_v23, %v1280_v22 }
 0x51d   : > { %v1316_v4 = vsel %vm441_vm3, %v1226_v34, %v1240_v61 }
 0x51e   : > { %1358 = vmatprep.subr.mxu1 %v1316_v4 }
 0x51f   : > { %v1252_v28 = vpop.permute.xlu0 %1251  ;;  %1359 = vmatpush1.msra.mxu1 %v1315_v24  ;;  %v1208_v30 = vpop.permute.xlu1 %1207 }
 0x520   : > { %v1212_v2 = vsel %vm332_vm10, %v1206_v39, %v1208_v30  ;;  %v1255_v23 = vsel %vm377_vm7, %v1250_v52, %v1252_v28 }
 0x521   : > { %v1313_v12 = vsel %vm441_vm3, %v7949_v18, %v1212_v2 }
 0x522   : > { %1360 = vmatprep.subr.mxu1 %v1313_v12 }
 0x523   : > { %v1224_v54 = vpop.permute.xlu0 %1223  ;;  %1361 = vmatpush1.msra.mxu1 %v1312_v53  ;;  %v1294_v38 = vpop.permute.xlu1 %1293 }
 0x524   : > { %v1297_v58 = vsel %vm422_vm5, %v1292_v9, %v1294_v38  ;;  %6755 = vmatmul.mubr.msk.f32.vlgmr.msra.gmra.mxu1 %vm474_vm1, %v8031_v6  ;;  %7101 = vmatprep.subr.mxu1 %v7428_v13  ;;  %v1227_v31 = vsel %vm347_vm9, %v7999_v35, %v1224_v54 }
 0x525   : > { %v1323_v18 = vsel %vm441_vm3, %v1283_v8, %v1297_v58  ;;  %1400 = vmatprep.mubr.f32.mxu1 %v7428_v13 }
 0x526   : > { %7087 = vmatprep.subr.mxu0 %v1323_v18 }
 0x527   : > { %7088 = vmatpush3.msra.mxu0 %v1323_v18  ;;  %v1266_v0 = vpop.permute.xlu1 %1265  ;;  %v1210_v29 = vpop.permute.xlu0 %1209 }
 0x528   : > { %v1269_v9 = vsel %vm392_vm6, %v1264_v60, %v1266_v0  ;;  %6756 = vmatmul.mubr.msk.f32.gmra.mxu1 %vm474_vm1, %v7628_v5  ;;  %v1213_v55 = vsel %vm332_vm10, %v1208_v30, %v1210_v29 }
 0x529   : > { %v1320_v44 = vsel %vm441_vm3, %v1255_v23, %v1269_v9  ;;  %1406 = vmatprep.mubr.f32.mxu1 %v7428_v13  ;;  %v1314_v11 = vsel %vm441_vm3, %v7952_v19, %v1213_v55 }
 0x52a   : > { %7089 = vmatprep.subr.mxu0 %v1320_v44 }
 0x52b   : > { %7090 = vmatpush3.msra.mxu0 %v1320_v44  ;;  %v1238_v10 = vpop.permute.xlu1 %1237 }
 0x52c   : > { %v1241_v52 = vsel %vm362_vm8, %v1236_v33, %v1238_v10  ;;  %6757 = vmatmul.mubr.msk.f32.gmra.mxu1 %vm474_vm1, %v7640_v25 }
 0x52d   : > { %v1317_v56 = vsel %vm441_vm3, %v1227_v31, %v1241_v52  ;;  %1412 = vmatprep.mubr.f32.mxu1 %v7428_v13 }
 0x52e   : > { %7091 = vmatprep.subr.mxu0 %v1317_v56 }
 0x52f   : > { %7092 = vmatpush3.msra.mxu0 %v1317_v56 }
 0x530   : > { %6758 = vmatmul.mubr.msk.f32.gmra.mxu1 %vm474_vm1, %v7653_v32  ;;  %7093 = vmatprep.subr.mxu0 %v1314_v11 }
 0x531   : > { %7094 = vmatpush3.msra.mxu0 %v1314_v11  ;;  %7109 = vmatprep.mubr.msk.f32.mxu1 %vm7430_vm11, %v7428_v13 }
 0x532   : > { %7096 = vmatmul.mubr.msk.f32.vlgmr.msra.gmra.mxu0 %vm474_vm1, %v7628_v5 }
 0x533   : > { %7098 = vmatprep.mubr.msk.f32.mxu0 %vm474_vm1, %v7640_v25 }
 0x536   : > { %7099 = vmatmul.mubr.msk.f32.gmra.mxu0 %vm474_vm1, %v7653_v32 }
 0x537   : > { %1592 = vmatprep.mubr.f32.mxu0 %v7428_v13 }
 0x5e4   : > { %v1396_v19 = vpop.f32.mrf.mxu1 }
 0x5e5   : > { %v1397_v4 = vadd.f32 %v1396_v19, %v7698_v59 }
 0x5e6   : > { %v1398_v35 = vpop.f32.mrf.mxu1 }
 0x5e7   : > { %v1399_v14 = vadd.f32 %v1398_v35, %v7698_v59  ;;  %v1504_v9 = vmax.f32 %v1397_v4, 0.0 }
 0x5e8   : > { %v1402_v16 = vpop.f32.mrf.mxu1 }
 0x5e9   : > { %v1403_v22 = vadd.f32 %v1402_v16, %v7674_v42  ;;  %v1505_v53 = vmax.f32 %v1399_v14, 0.0  ;;  %v1516_v35 = vmul.f32 %v1504_v9, %v7689_v51 }
 0x5ea   : > { %v1404_v63 = vpop.f32.mrf.mxu1 }
 0x5eb   : > { %v1405_v3 = vadd.f32 %v1404_v63, %v7674_v42  ;;  %v1507_v54 = vmax.f32 %v1403_v22, 0.0  ;;  %v1517_v19 = vmul.f32 %v1505_v53, %v7696_v57 }
 0x5ec   : > { %v1408_v39 = vpop.f32.mrf.mxu1 }
 0x5ed   : > { %v1409_v5 = vadd.f32 %v1408_v39, %v7672_v41  ;;  %v1508_v28 = vmax.f32 %v1405_v3, 0.0  ;;  %v1519_v52 = vmul.f32 %v1507_v54, %v7689_v51 }
 0x5ee   : > { %v1410_v60 = vpop.f32.mrf.mxu1 }
 0x5ef   : > { %v1411_v1 = vadd.f32 %v1410_v60, %v7672_v41  ;;  %v1510_v24 = vmax.f32 %v1409_v5, 0.0  ;;  %v1520_v44 = vmul.f32 %v1508_v28, %v7696_v57 }
 0x5f0   : > { %v1414_v49 = vpop.f32.mrf.mxu1 }
 0x5f1   : > { %v1415_v20 = vadd.f32 %v1414_v49, %v7668_v36  ;;  %v1511_v61 = vmax.f32 %v1411_v1, 0.0  ;;  %v1522_v29 = vmul.f32 %v1510_v24, %v7689_v51 }
 0x5f2   : > { %v1416_v21 = vpop.f32.mrf.mxu1  ;;  %v7097_v25 = vpop.f32.mrf.mxu0 }
 0x5f3   : > { %v1417_v32 = vadd.f32 %v1416_v21, %v7668_v36  ;;  %v1513_v33 = vmax.f32 %v1415_v20, 0.0  ;;  %v1491_v2 = vadd.f32 %v7097_v25, %v7674_v42  ;;  %v1523_v58 = vmul.f32 %v1511_v61, %v7696_v57 }
 0x5f4   : > { %v1485_v34 = vpop.f32.mrf.mxu0 }
 0x5f5   : > { %v1514_v7 = vmax.f32 %v1417_v32, 0.0  ;;  %v1525_v38 = vmul.f32 %v1513_v33, %v7689_v51  ;;  %v1486_v18 = vadd.f32 %v1485_v34, %v7698_v59  ;;  %v1509_v10 = vmax.f32 %v1491_v2, 0.0 }
 0x5f6   : > { %v7100_v27 = vpop.f32.mrf.mxu0 }
 0x5f7   : > { %v1526_v30 = vmul.f32 %v1514_v7, %v7696_v57  ;;  %v1501_v12 = vadd.f32 %v7100_v27, %v7668_v36  ;;  %v1506_v56 = vmax.f32 %v1486_v18, 0.0  ;;  %v1521_v16 = vmul.f32 %v1509_v10, %v7712_v17 }
 0x5f8   : > { %v1495_v8 = vpop.f32.mrf.mxu0 }
 0x5f9   : > { %v1515_v0 = vmax.f32 %v1501_v12, 0.0  ;;  %v1496_v23 = vadd.f32 %v1495_v8, %v7672_v41  ;;  %1552 = vmatprep.subr.mxu0 %v1526_v30  ;;  %v1518_v63 = vmul.f32 %v1506_v56, %v7712_v17 }
 0x5fa   : > { %1553 = vmatpush1.msra.mxu0 %v1525_v38 }
 0x5fb   : > { %v1527_v31 = vmul.f32 %v1515_v0, %v7712_v17  ;;  %v1512_v55 = vmax.f32 %v1496_v23, 0.0  ;;  %1554 = vmatprep.subr.mxu0 %v1523_v58 }
 0x5fc   : > { %1555 = vmatpush1.msra.mxu0 %v1522_v29 }
 0x5fd   : > { %v1524_v11 = vmul.f32 %v1512_v55, %v7712_v17  ;;  %1556 = vmatprep.subr.mxu0 %v1520_v44  ;;  %7102 = vmatpush3.msra.mxu1 %v1527_v31 }
 0x5fe   : > { %1557 = vmatpush1.msra.mxu0 %v1519_v52  ;;  %7103 = vmatprep.subr.mxu1 %v7428_v13 }
 0x5ff   : > { %1558 = vmatprep.subr.mxu0 %v1517_v19  ;;  %7104 = vmatpush3.msra.mxu1 %v1524_v11 }
 0x600   : > { %1559 = vmatpush1.msra.mxu0 %v1516_v35  ;;  %7105 = vmatprep.subr.mxu1 %v7428_v13 }
 0x601   : > { %7106 = vmatpush3.msra.mxu1 %v1521_v16  ;;  %6764 = vmatmul.mubr.msk.f32.vlgmr.msra.gmra.mxu0 %vm707_vm12, %v7729_v37 }
 0x602   : > { %7107 = vmatprep.subr.mxu1 %v7428_v13  ;;  %1598 = vmatprep.mubr.f32.mxu0 %v7428_v13 }
 0x603   : > { %7108 = vmatpush3.msra.mxu1 %v1518_v63 }
 0x604   : > { %7110 = vmatmul.mubr.msk.f32.vlgmr.msra.gmra.mxu1 %vm707_vm12, %v7729_v37 }
 0x605   : > { %7112 = vmatprep.mubr.msk.f32.mxu1 %vm7430_vm11, %v7428_v13  ;;  %6765 = vmatmul.mubr.msk.f32.gmra.mxu0 %vm707_vm12, %v7741_v40 }
 0x606   : > { %1604 = vmatprep.mubr.f32.mxu0 %v7428_v13 }
 0x608   : > { %7113 = vmatmul.mubr.msk.f32.gmra.mxu1 %vm707_vm12, %v7741_v40 }
 0x609   : > { %7115 = vmatprep.mubr.msk.f32.mxu1 %vm7430_vm11, %v7428_v13  ;;  %6766 = vmatmul.mubr.msk.f32.gmra.mxu0 %vm707_vm12, %v7753_v43 }
 0x60a   : > { %1610 = vmatprep.mubr.f32.mxu0 %v7428_v13 }
 0x60c   : > { %7116 = vmatmul.mubr.msk.f32.gmra.mxu1 %vm707_vm12, %v7753_v43 }
 0x60d   : > { %7118 = vmatprep.mubr.msk.f32.mxu1 %vm7430_vm11, %v7428_v13  ;;  %6767 = vmatmul.mubr.msk.f32.gmra.mxu0 %vm707_vm12, %v7765_v47 }
 0x60e   : > { %1616 = vmatprep.mubr.f32.mxu0 %v7428_v13 }
 0x610   : > { %7119 = vmatmul.mubr.msk.f32.gmra.mxu1 %vm707_vm12, %v7765_v47 }
 0x611   : > { %7121 = vmatprep.mubr.msk.f32.mxu1 %vm7430_vm11, %v7428_v13  ;;  %6768 = vmatmul.mubr.msk.f32.gmra.mxu0 %vm707_vm12, %v7777_v48 }
 0x612   : > { %2178 = vmatprep.mubr.f32.mxu0 %v7428_v13 }
 0x614   : > { %7122 = vmatmul.mubr.msk.f32.gmra.mxu1 %vm707_vm12, %v7777_v48 }
 0x615   : > { %7134 = vmatprep.mubr.msk.f32.mxu1 %vm474_vm1, %v8031_v6 }
 0x6c1   : > { %v1594_v37 = vpop.f32.mrf.mxu0 }
 0x6c3   : > { %v1596_v43 = vpop.f32.mrf.mxu0 }
 0x6c4   : > { %v1689_v40 = vpop.f32.mrf.mxu1 }
 0x6c5   : > { %1732 = vrot.lane.b32.xlu1 %v1689_v40, %s7419_s8  ;;  %v1600_v39 = vpop.f32.mrf.mxu0 }
 0x6c6   : > { %v7111_v47 = vpop.f32.mrf.mxu1 }
 0x6c7   : > { %v1602_v1 = vpop.f32.mrf.mxu0 }
 0x6c8   : > { %v1694_v60 = vpop.f32.mrf.mxu1 }
 0x6c9   : > { %1738 = vrot.lane.b32.xlu0 %v1694_v60, %s7419_s8  ;;  %v1606_v48 = vpop.f32.mrf.mxu0 }
 0x6ca   : > { %v7114_v49 = vpop.f32.mrf.mxu1 }
 0x6cb   : > { %v1608_v3 = vpop.f32.mrf.mxu0 }
 0x6cc   : > { %v1699_v20 = vpop.f32.mrf.mxu1 }
 0x6cd   : > { %1744 = vrot.lane.b32.xlu1 %v1699_v20, %s7419_s8  ;;  %v1612_v22 = vpop.f32.mrf.mxu0 }
 0x6ce   : > { %v7117_v5 = vpop.f32.mrf.mxu1 }
 0x6cf   : > { %v1614_v33 = vpop.f32.mrf.mxu0 }
 0x6d0   : > { %v1704_v21 = vpop.f32.mrf.mxu1 }
 0x6d1   : > { %1728 = vrot.lane.b32.xlu1 %v1594_v37, %s7419_s8  ;;  %1750 = vrot.lane.b32.xlu0 %v1704_v21, %s7419_s8  ;;  %v1618_v34 = vpop.f32.mrf.mxu0 }
 0x6d2   : > { %v7120_v25 = vpop.f32.mrf.mxu1 }
 0x6d3   : > { %v1620_v61 = vpop.f32.mrf.mxu0 }
 0x6d4   : > { %v1709_v32 = vpop.f32.mrf.mxu1 }
 0x6d5   : > { %1730 = vrot.lane.b32.xlu0 %v1596_v43, %s7419_s8  ;;  %1756 = vrot.lane.b32.xlu1 %v1709_v32, %s7419_s8 }
 0x6d6   : > { %v7123_v14 = vpop.f32.mrf.mxu1 }
 0x6d9   : > { %1734 = vrot.lane.b32.xlu0 %v1600_v39, %s7419_s8  ;;  %1736 = vrot.lane.b32.xlu1 %v1602_v1, %s7419_s8 }
 0x6dd   : > { %1742 = vrot.lane.b32.xlu0 %v1608_v3, %s7419_s8  ;;  %1740 = vrot.lane.b32.xlu1 %v1606_v48, %s7419_s8 }
 0x6e1   : > { %1746 = vrot.lane.b32.xlu0 %v1612_v22, %s7419_s8  ;;  %1748 = vrot.lane.b32.xlu1 %v1614_v33, %s7419_s8 }
 0x6e5   : > { %1754 = vrot.lane.b32.xlu0 %v1620_v61, %s7419_s8  ;;  %1752 = vrot.lane.b32.xlu1 %v1618_v34, %s7419_s8 }
 0x737   : > { %v1733_v7 = vpop.permute.xlu1 %1732 }
 0x738   : > { %v1785_v4 = vsel %vm309_vm0, %v1733_v7, 0.0 }
 0x739   : > { %v1795_v24 = vrot.slane %v1785_v4, 4 }
 0x73b   : > { %v1739_v27 = vpop.permute.xlu0 %1738  ;;  %1802 = vrot.lane.b32.xlu0 %v1795_v24, %s7426_s15 }
 0x73c   : > { %v1786_v28 = vsel %vm309_vm0, %v1739_v27, 0.0 }
 0x73d   : > { %v1835_v2 = vrot.slane %v1786_v28, 4 }
 0x73f   : > { %v1745_v30 = vpop.permute.xlu1 %1744  ;;  %1821 = vrot.lane.b32.xlu0 %v1786_v28, %s7423_s12 }
 0x740   : > { %v1787_v54 = vsel %vm309_vm0, %v1745_v30, 0.0 }
 0x741   : > { %v1875_v58 = vrot.slane %v1787_v54, 4 }
 0x743   : > { %v1729_v12 = vpop.permute.xlu1 %1728  ;;  %1842 = vrot.lane.b32.xlu0 %v1835_v2, %s7427_s16  ;;  %v1751_v53 = vpop.permute.xlu0 %1750 }
 0x744   : > { %v8159_v29 = vsel %vm309_vm0, 0.0, %v1729_v12  ;;  %v1788_v44 = vsel %vm309_vm0, %v1751_v53, 0.0 }
 0x745   : > { %v1792_v31 = vrot.slane %v8159_v29, 4  ;;  %v1915_v22 = vrot.slane %v1788_v44, 4 }
 0x747   : > { %1861 = vrot.lane.b32.xlu0 %v1787_v54, %s7422_s11  ;;  %v1731_v38 = vpop.permute.xlu0 %1730  ;;  %v8153_v0 = vpop.permute.xlu1 %1756 }
 0x748   : > { %v8150_v8 = vsel %vm309_vm0, %v1729_v12, %v1731_v38  ;;  %v8166_v55 = vsel %vm309_vm0, %v1731_v38, %v1733_v7  ;;  %v1789_v4 = vsel %vm309_vm0, %v8153_v0, 0.0 }
 0x749   : > { %v1793_v18 = vrot.slane %v8150_v8, 4  ;;  %v1794_v56 = vrot.slane %v8166_v55, 4 }
 0x74b   : > { %1882 = vrot.lane.b32.xlu0 %v1875_v58, %s7425_s14  ;;  %v1735_v23 = vpop.permute.xlu0 %1734  ;;  %1798 = vrot.lane.b32.xlu1 %v1793_v18, %s7426_s15  ;;  %v1737_v10 = vpop.permute.xlu1 %1736 }
 0x74c   : > { %v1781_v9 = vsel %vm309_vm0, 0.0, %v1735_v23  ;;  %v1761_v52 = vsel %vm309_vm0, %v1737_v10, %v1739_v27  ;;  %v1760_v35 = vsel %vm309_vm0, %v1735_v23, %v1737_v10 }
 0x74d   : > { %v1832_v11 = vrot.slane %v1781_v9, 4  ;;  %v1834_v19 = vrot.slane %v1761_v52, 4  ;;  %v1833_v37 = vrot.slane %v1760_v35, 4 }
 0x74f   : > { %1901 = vrot.lane.b32.xlu0 %v1788_v44, %s7421_s10  ;;  %1815 = vrot.lane.b32.xlu1 %v1781_v9, %s7423_s12  ;;  %v1741_v16 = vpop.permute.xlu1 %1740  ;;  %v1743_v40 = vpop.permute.xlu0 %1742 }
 0x750   : > { %v1782_v63 = vsel %vm309_vm0, 0.0, %v1741_v16  ;;  %v1763_v43 = vsel %vm309_vm0, %v1743_v40, %v1745_v30  ;;  %v1762_v47 = vsel %vm309_vm0, %v1741_v16, %v1743_v40 }
 0x751   : > { %v1872_v39 = vrot.slane %v1782_v63, 4  ;;  %v1873_v60 = vrot.slane %v1762_v47, 4  ;;  %v1874_v5 = vrot.slane %v1763_v43, 4 }
 0x753   : > { %1796 = vrot.lane.b32.xlu0 %v1792_v31, %s7426_s15  ;;  %1819 = vrot.lane.b32.xlu1 %v1761_v52, %s7423_s12  ;;  %v1747_v49 = vpop.permute.xlu0 %1746  ;;  %v1749_v1 = vpop.permute.xlu1 %1748 }
 0x754   : > { %v1764_v20 = vsel %vm309_vm0, %v1747_v49, %v1749_v1  ;;  %v1783_v21 = vsel %vm309_vm0, 0.0, %v1747_v49  ;;  %v1765_v14 = vsel %vm309_vm0, %v1749_v1, %v1751_v53 }
 0x755   : > { %v1913_v48 = vrot.slane %v1764_v20, 4  ;;  %v1912_v33 = vrot.slane %v1783_v21, 4  ;;  %v1914_v34 = vrot.slane %v1765_v14, 4 }
 0x757   : > { %1800 = vrot.lane.b32.xlu0 %v1794_v56, %s7426_s15  ;;  %1836 = vrot.lane.b32.xlu1 %v1832_v11, %s7427_s16  ;;  %v1753_v25 = vpop.permute.xlu1 %1752  ;;  %v1755_v3 = vpop.permute.xlu0 %1754 }
 0x758   : > { %v1766_v32 = vsel %vm309_vm0, %v1753_v25, %v1755_v3  ;;  %v1784_v61 = vsel %vm309_vm0, 0.0, %v1753_v25  ;;  %v1767_v7 = vsel %vm309_vm0, %v1755_v3, %v8153_v0 }
 0x75b   : > { %1840 = vrot.lane.b32.xlu1 %v1834_v19, %s7427_s16  ;;  %1817 = vrot.lane.b32.xlu0 %v1760_v35, %s7423_s12 }
 0x75f   : > { %1838 = vrot.lane.b32.xlu0 %v1833_v37, %s7427_s16  ;;  %1855 = vrot.lane.b32.xlu1 %v1782_v63, %s7422_s11 }
 0x763   : > { %1859 = vrot.lane.b32.xlu1 %v1763_v43, %s7422_s11  ;;  %1857 = vrot.lane.b32.xlu0 %v1762_v47, %s7422_s11 }
 0x767   : > { %1876 = vrot.lane.b32.xlu1 %v1872_v39, %s7425_s14  ;;  %1878 = vrot.lane.b32.xlu0 %v1873_v60, %s7425_s14 }
 0x76b   : > { %1880 = vrot.lane.b32.xlu1 %v1874_v5, %s7425_s14  ;;  %1897 = vrot.lane.b32.xlu0 %v1764_v20, %s7421_s10 }
 0x76f   : > { %1895 = vrot.lane.b32.xlu1 %v1783_v21, %s7421_s10  ;;  %1918 = vrot.lane.b32.xlu0 %v1913_v48, %s7424_s13 }
 0x773   : > { %1899 = vrot.lane.b32.xlu1 %v1765_v14, %s7421_s10  ;;  %1937 = vrot.lane.b32.xlu0 %v1766_v32, %s7420_s9 }
 0x777   : > { %1916 = vrot.lane.b32.xlu1 %v1912_v33, %s7424_s13  ;;  %1922 = vrot.lane.b32.xlu0 %v1915_v22, %s7424_s13 }
 0x77b   : > { %1920 = vrot.lane.b32.xlu1 %v1914_v34, %s7424_s13 }
 0x77f   : > { %1935 = vrot.lane.b32.xlu1 %v1784_v61, %s7420_s9 }
 0x783   : > { %1939 = vrot.lane.b32.xlu1 %v1767_v7, %s7420_s9 }
 0x787   : > { %1941 = vrot.lane.b32.xlu1 %v1789_v4, %s7420_s9 }
 0x7ad   : > { %v1803_v24 = vpop.permute.xlu0 %1802 }
 0x7b1   : > { %v1822_v27 = vpop.permute.xlu0 %1821 }
 0x7b5   : > { %v1843_v28 = vpop.permute.xlu0 %1842 }
 0x7b9   : > { %v1862_v30 = vpop.permute.xlu0 %1861 }
 0x7bd   : > { %v1883_v2 = vpop.permute.xlu0 %1882  ;;  %v1799_v12 = vpop.permute.xlu1 %1798 }
 0x7c1   : > { %v1902_v53 = vpop.permute.xlu0 %1901  ;;  %v1816_v54 = vpop.permute.xlu1 %1815 }
 0x7c5   : > { %v1797_v38 = vpop.permute.xlu0 %1796  ;;  %v1820_v58 = vpop.permute.xlu1 %1819 }
 0x7c6   : > { %v1804_v16 = vsel %vm332_vm10, %v1797_v38, %v1799_v12  ;;  %v1825_v33 = vsel %vm347_vm9, %v1820_v58, %v1822_v27 }
 0x7c7   : > { %v1810_v40 = vadd.f32 %v1804_v16, %v8159_v29 }
 0x7c9   : > { %v1801_v18 = vpop.permute.xlu0 %1800  ;;  %v1837_v23 = vpop.permute.xlu1 %1836 }
 0x7ca   : > { %v1805_v47 = vsel %vm332_vm10, %v1799_v12, %v1801_v18  ;;  %v1806_v39 = vsel %vm332_vm10, %v1801_v18, %v1803_v24 }
 0x7cb   : > { %v1811_v5 = vadd.f32 %v1805_v47, %v8150_v8  ;;  %v1812_v48 = vadd.f32 %v1806_v39, %v8166_v55 }
 0x7cd   : > { %v1818_v9 = vpop.permute.xlu0 %1817  ;;  %v1841_v44 = vpop.permute.xlu1 %1840  ;;  %v1831_v7 = vadd.f32 %v1825_v33, %v1812_v48 }
 0x7ce   : > { %v1823_v37 = vsel %vm347_vm9, %v1816_v54, %v1818_v9  ;;  %v1824_v1 = vsel %vm347_vm9, %v1818_v9, %v1820_v58  ;;  %v1846_v55 = vsel %vm362_vm8, %v1841_v44, %v1843_v28 }
 0x7cf   : > { %v1829_v49 = vadd.f32 %v1823_v37, %v1810_v40  ;;  %v1830_v14 = vadd.f32 %v1824_v1, %v1811_v5  ;;  %v1852_v58 = vadd.f32 %v1846_v55, %v1831_v7 }
 0x7d1   : > { %v1839_v10 = vpop.permute.xlu0 %1838  ;;  %v1856_v31 = vpop.permute.xlu1 %1855 }
 0x7d2   : > { %v1844_v60 = vsel %vm362_vm8, %v1837_v23, %v1839_v10  ;;  %v1845_v29 = vsel %vm362_vm8, %v1839_v10, %v1841_v44 }
 0x7d3   : > { %v1850_v21 = vadd.f32 %v1844_v60, %v1829_v49  ;;  %v1851_v4 = vadd.f32 %v1845_v29, %v1830_v14 }
 0x7d5   : > { %v1860_v52 = vpop.permute.xlu1 %1859  ;;  %v1858_v0 = vpop.permute.xlu0 %1857 }
 0x7d6   : > { %v1863_v20 = vsel %vm377_vm7, %v1856_v31, %v1858_v0  ;;  %v1864_v34 = vsel %vm377_vm7, %v1858_v0, %v1860_v52  ;;  %v1865_v9 = vsel %vm377_vm7, %v1860_v52, %v1862_v30 }
 0x7d7   : > { %v1869_v22 = vadd.f32 %v1863_v20, %v1850_v21  ;;  %v1870_v38 = vadd.f32 %v1864_v34, %v1851_v4  ;;  %v1871_v44 = vadd.f32 %v1865_v9, %v1852_v58 }
 0x7d9   : > { %v1877_v56 = vpop.permute.xlu1 %1876  ;;  %v1879_v11 = vpop.permute.xlu0 %1878 }
 0x7da   : > { %v1884_v32 = vsel %vm392_vm6, %v1877_v56, %v1879_v11 }
 0x7db   : > { %v1890_v8 = vadd.f32 %v1884_v32, %v1869_v22 }
 0x7dd   : > { %v1881_v19 = vpop.permute.xlu1 %1880  ;;  %v1898_v63 = vpop.permute.xlu0 %1897 }
 0x7de   : > { %v1885_v12 = vsel %vm392_vm6, %v1879_v11, %v1881_v19  ;;  %v1886_v56 = vsel %vm392_vm6, %v1881_v19, %v1883_v2 }
 0x7df   : > { %v1891_v10 = vadd.f32 %v1885_v12, %v1870_v38  ;;  %v1892_v40 = vadd.f32 %v1886_v56, %v1871_v44 }
 0x7e1   : > { %v1896_v35 = vpop.permute.xlu1 %1895  ;;  %v1919_v25 = vpop.permute.xlu0 %1918 }
 0x7e2   : > { %v1903_v61 = vsel %vm407_vm4, %v1896_v35, %v1898_v63 }
 0x7e3   : > { %v1909_v18 = vadd.f32 %v1903_v61, %v1890_v8 }
 0x7e5   : > { %v1900_v43 = vpop.permute.xlu1 %1899  ;;  %v1938_v23 = vpop.permute.xlu0 %1937 }
 0x7e6   : > { %v1904_v27 = vsel %vm407_vm4, %v1898_v63, %v1900_v43  ;;  %v1905_v37 = vsel %vm407_vm4, %v1900_v43, %v1902_v53 }
 0x7e7   : > { %v1910_v11 = vadd.f32 %v1904_v27, %v1891_v10  ;;  %v1911_v60 = vadd.f32 %v1905_v37, %v1892_v40 }
 0x7e9   : > { %v1917_v3 = vpop.permute.xlu1 %1916  ;;  %v1923_v47 = vpop.permute.xlu0 %1922 }
 0x7ea   : > { %v1924_v54 = vsel %vm422_vm5, %v1917_v3, %v1919_v25 }
 0x7eb   : > { %v1930_v31 = vadd.f32 %v1924_v54, %v1909_v18 }
 0x7ed   : > { %v1921_v24 = vpop.permute.xlu1 %1920 }
 0x7ee   : > { %v1925_v35 = vsel %vm422_vm5, %v1919_v25, %v1921_v24  ;;  %v1926_v63 = vsel %vm422_vm5, %v1921_v24, %v1923_v47 }
 0x7ef   : > { %v1931_v30 = vadd.f32 %v1925_v35, %v1910_v11  ;;  %v1932_v49 = vadd.f32 %v1926_v63, %v1911_v60 }
 0x7f1   : > { %v1936_v0 = vpop.permute.xlu1 %1935 }
 0x7f2   : > { %v1943_v28 = vsel %vm437_vm2, %v1936_v0, %v1938_v23 }
 0x7f3   : > { %v1949_v16 = vadd.f32 %v1943_v28, %v1930_v31 }
 0x7f5   : > { %v1940_v52 = vpop.permute.xlu1 %1939  ;;  %v1952_v2 = vadd.f32 %v1949_v16, %v7803_v15 }
 0x7f6   : > { %v1944_v39 = vsel %vm437_vm2, %v1938_v23, %v1940_v52 }
 0x7f7   : > { %v1950_v19 = vadd.f32 %v1944_v39, %v1931_v30  ;;  %v1955_v53 = vmul.f32 %v1952_v2, %v7904_v45 }
 0x7f9   : > { %v1953_v1 = vadd.f32 %v1950_v19, %v7803_v15  ;;  %v1942_v20 = vpop.permute.xlu1 %1941 }
 0x7fa   : > { %v1945_v5 = vsel %vm437_vm2, %v1940_v52, %v1942_v20 }
 0x7fb   : > { %v1956_v43 = vmul.f32 %v1953_v1, %v7908_v50  ;;  %v1951_v48 = vadd.f32 %v1945_v5, %v1932_v49 }
 0x7fd   : > { %v1954_v21 = vadd.f32 %v1951_v48, %v7803_v15  ;;  %v1960_v25 = vcombine.low %v1955_v53, %v1956_v43 }
 0x7ff   : > { %v1957_v3 = vmul.f32 %v1954_v21, %v7918_v46  ;;  %v8241_v29 = vadd.f32 %v1960_v25, %v7922_v62 }
 0x801   : > { %1967 = vrot.lane.b32.xlu0 %v8241_v29, %s7419_s8  ;;  %v1966_v32 = vcombine.high %v8241_v29, %v8241_v29  ;;  %v8249_v14 = vadd.f32 %v1957_v3, %v7931_v26 }
 0x803   : > { %1969 = vrot.lane.b32.xlu1 %v1966_v32, %s7419_s8 }
 0x805   : > { %1971 = vrot.lane.b32.xlu0 %v8249_v14, %s7419_s8 }
 0x873   : > { %v1968_v22 = vpop.permute.xlu0 %1967 }
 0x874   : > { %v8254_v33 = vsel %vm309_vm0, 0.0, %v1968_v22 }
 0x875   : > { %2057 = vrot.lane.b32.xlu0 %v8254_v33, %s7421_s10  ;;  %v1970_v26 = vpop.permute.xlu1 %1969  ;;  %v1983_v4 = vrot.slane %v8254_v33, 4 }
 0x876   : > { %v8267_v61 = vsel %vm309_vm0, %v1968_v22, %v1970_v26 }
 0x877   : > { %v1972_v62 = vpop.permute.xlu0 %1971  ;;  %v1984_v24 = vrot.slane %v8267_v61, 4 }
 0x878   : > { %v1980_v34 = vsel %vm309_vm0, %v1972_v62, 0.0  ;;  %v8270_v7 = vsel %vm309_vm0, %v1970_v26, %v1972_v62 }
 0x879   : > { %2029 = vrot.lane.b32.xlu0 %v8254_v33, %s7422_s11  ;;  %2091 = vrot.lane.b32.xlu1 %v1980_v34, %s7420_s9  ;;  %v1985_v8 = vrot.slane %v8270_v7, 4  ;;  %v1986_v55 = vrot.slane %v1980_v34, 4 }
 0x87d   : > { %2001 = vrot.lane.b32.xlu0 %v8254_v33, %s7423_s12  ;;  %2085 = vrot.lane.b32.xlu1 %v8254_v33, %s7420_s9 }
 0x881   : > { %2089 = vrot.lane.b32.xlu0 %v8270_v7, %s7420_s9  ;;  %2087 = vrot.lane.b32.xlu1 %v8267_v61, %s7420_s9 }
 0x885   : > { %2061 = vrot.lane.b32.xlu0 %v8270_v7, %s7421_s10  ;;  %2059 = vrot.lane.b32.xlu1 %v8267_v61, %s7421_s10 }
 0x889   : > { %2031 = vrot.lane.b32.xlu0 %v8267_v61, %s7422_s11  ;;  %2071 = vrot.lane.b32.xlu1 %v1983_v4, %s7424_s13 }
 0x88d   : > { %2003 = vrot.lane.b32.xlu0 %v8267_v61, %s7423_s12  ;;  %2033 = vrot.lane.b32.xlu1 %v8270_v7, %s7422_s11 }
 0x891   : > { %1987 = vrot.lane.b32.xlu0 %v1983_v4, %s7426_s15  ;;  %2043 = vrot.lane.b32.xlu1 %v1983_v4, %s7425_s14 }
 0x895   : > { %2075 = vrot.lane.b32.xlu0 %v1985_v8, %s7424_s13  ;;  %2005 = vrot.lane.b32.xlu1 %v8270_v7, %s7423_s12 }
 0x899   : > { %2015 = vrot.lane.b32.xlu1 %v1983_v4, %s7427_s16  ;;  %2045 = vrot.lane.b32.xlu0 %v1984_v24, %s7425_s14 }
 0x89d   : > { %2017 = vrot.lane.b32.xlu0 %v1984_v24, %s7427_s16  ;;  %2073 = vrot.lane.b32.xlu1 %v1984_v24, %s7424_s13 }
 0x8a1   : > { %1989 = vrot.lane.b32.xlu0 %v1984_v24, %s7426_s15  ;;  %2047 = vrot.lane.b32.xlu1 %v1985_v8, %s7425_s14 }
 0x8a5   : > { %2063 = vrot.lane.b32.xlu0 %v1980_v34, %s7421_s10  ;;  %2019 = vrot.lane.b32.xlu1 %v1985_v8, %s7427_s16 }
 0x8a9   : > { %2035 = vrot.lane.b32.xlu0 %v1980_v34, %s7422_s11  ;;  %1991 = vrot.lane.b32.xlu1 %v1985_v8, %s7426_s15 }
 0x8ad   : > { %2007 = vrot.lane.b32.xlu0 %v1980_v34, %s7423_s12  ;;  %2077 = vrot.lane.b32.xlu1 %v1986_v55, %s7424_s13 }
 0x8b1   : > { %1993 = vrot.lane.b32.xlu0 %v1986_v55, %s7426_s15  ;;  %2049 = vrot.lane.b32.xlu1 %v1986_v55, %s7425_s14 }
 0x8b5   : > { %2021 = vrot.lane.b32.xlu1 %v1986_v55, %s7427_s16 }
 0x8e7   : > { %v2058_v12 = vpop.permute.xlu0 %2057 }
 0x8eb   : > { %v2030_v54 = vpop.permute.xlu0 %2029  ;;  %v2092_v38 = vpop.permute.xlu1 %2091 }
 0x8ef   : > { %v2002_v18 = vpop.permute.xlu0 %2001  ;;  %v2086_v23 = vpop.permute.xlu1 %2085 }
 0x8f3   : > { %v2090_v9 = vpop.permute.xlu0 %2089  ;;  %v2088_v27 = vpop.permute.xlu1 %2087 }
 0x8f4   : > { %v2093_v58 = vsel %vm437_vm2, %v2086_v23, %v2088_v27  ;;  %v2094_v10 = vsel %vm437_vm2, %v2088_v27, %v2090_v9  ;;  %v2095_v31 = vsel %vm437_vm2, %v2090_v9, %v2092_v38 }
 0x8f5   : > { %6774 = vmatprep.subr.msk.mxu0 %vm441_vm3, %v2094_v10  ;;  %7124 = vmatprep.subr.msk.mxu1 %vm441_vm3, %v2095_v31 }
 0x8f6   : > { %6775 = vmatpush1.msk.msra.mxu0 %vm441_vm3, %v2093_v58  ;;  %7125 = vmatpush3.msk.msra.mxu1 %vm441_vm3, %v2095_v31 }
 0x8f7   : > { %v2062_v0 = vpop.permute.xlu0 %2061  ;;  %v2060_v56 = vpop.permute.xlu1 %2059 }
 0x8f8   : > { %v2065_v60 = vsel %vm407_vm4, %v2058_v12, %v2060_v56  ;;  %v2066_v2 = vsel %vm407_vm4, %v2060_v56, %v2062_v0 }
 0x8fb   : > { %v2032_v35 = vpop.permute.xlu0 %2031  ;;  %v2072_v28 = vpop.permute.xlu1 %2071 }
 0x8fc   : > { %v2037_v25 = vsel %vm377_vm7, %v2030_v54, %v2032_v35 }
 0x8ff   : > { %v2004_v44 = vpop.permute.xlu0 %2003  ;;  %v2034_v11 = vpop.permute.xlu1 %2033 }
 0x900   : > { %v2038_v48 = vsel %vm377_vm7, %v2032_v35, %v2034_v11  ;;  %v2009_v8 = vsel %vm347_vm9, %v2002_v18, %v2004_v44 }
 0x903   : > { %v1988_v16 = vpop.permute.xlu0 %1987  ;;  %v2044_v37 = vpop.permute.xlu1 %2043 }
 0x907   : > { %v2076_v40 = vpop.permute.xlu0 %2075  ;;  %v8317_v47 = vpop.permute.xlu1 %2005 }
 0x908   : > { %v2010_v26 = vsel %vm347_vm9, %v2004_v44, %v8317_v47 }
 0x90b   : > { %v2046_v30 = vpop.permute.xlu0 %2045  ;;  %v2016_v52 = vpop.permute.xlu1 %2015 }
 0x90c   : > { %v2051_v5 = vsel %vm392_vm6, %v2044_v37, %v2046_v30 }
 0x90d   : > { %v2102_v32 = vsel %vm441_vm3, %v2037_v25, %v2051_v5 }
 0x90f   : > { %v2018_v63 = vpop.permute.xlu0 %2017  ;;  %v2074_v39 = vpop.permute.xlu1 %2073 }
 0x910   : > { %v2079_v19 = vsel %vm422_vm5, %v2072_v28, %v2074_v39  ;;  %v2080_v49 = vsel %vm422_vm5, %v2074_v39, %v2076_v40  ;;  %v2023_v22 = vsel %vm362_vm8, %v2016_v52, %v2018_v63  ;;  %v8380_v52 = vld [vmem:[%s10252_s2 + $0x18] sm:$0xff] }
 0x911   : > { %v2106_v1 = vsel %vm441_vm3, %v2066_v2, %v2080_v49  ;;  %v2105_v20 = vsel %vm441_vm3, %v2065_v60, %v2079_v19  ;;  %v2099_v55 = vsel %vm441_vm3, %v2009_v8, %v2023_v22 }
 0x912   : > { %2138 = vmatprep.subr.mxu0 %v2106_v1 }
 0x913   : > { %v1990_v53 = vpop.permute.xlu0 %1989  ;;  %2139 = vmatpush1.msra.mxu0 %v2105_v20  ;;  %v2048_v43 = vpop.permute.xlu1 %2047 }
 0x914   : > { %v2052_v21 = vsel %vm392_vm6, %v2046_v30, %v2048_v43  ;;  %v1995_v12 = vsel %vm332_vm10, %v1988_v16, %v1990_v53 }
 0x915   : > { %v2103_v3 = vsel %vm441_vm3, %v2038_v48, %v2052_v21  ;;  %v2096_v27 = vsel %vm441_vm3, %v8254_v33, %v1995_v12 }
 0x916   : > { %2140 = vmatprep.subr.mxu0 %v2103_v3 }
 0x917   : > { %v2064_v62 = vpop.permute.xlu0 %2063  ;;  %2141 = vmatpush1.msra.mxu0 %v2102_v32  ;;  %v2020_v34 = vpop.permute.xlu1 %2019 }
 0x918   : > { %v2024_v4 = vsel %vm362_vm8, %v2018_v63, %v2020_v34  ;;  %v2067_v10 = vsel %vm407_vm4, %v2062_v0, %v2064_v62  ;;  %v8356_v0 = vld [vmem:[%s10252_s2 + $0x8] sm:$0xff] }
 0x919   : > { %v2100_v24 = vsel %vm441_vm3, %v2010_v26, %v2024_v4 }
 0x91a   : > { %2142 = vmatprep.subr.mxu0 %v2100_v24 }
 0x91b   : > { %v2036_v54 = vpop.permute.xlu0 %2035  ;;  %2143 = vmatpush1.msra.mxu0 %v2099_v55  ;;  %v1992_v38 = vpop.permute.xlu1 %1991 }
 0x91c   : > { %v1996_v23 = vsel %vm332_vm10, %v1990_v53, %v1992_v38  ;;  %v2039_v33 = vsel %vm377_vm7, %v2034_v11, %v2036_v54 }
 0x91d   : > { %v2097_v9 = vsel %vm441_vm3, %v8267_v61, %v1996_v23 }
 0x91e   : > { %2144 = vmatprep.subr.mxu0 %v2097_v9 }
 0x91f   : > { %v2008_v18 = vpop.permute.xlu0 %2007  ;;  %2145 = vmatpush1.msra.mxu0 %v2096_v27  ;;  %v2078_v58 = vpop.permute.xlu1 %2077 }
 0x920   : > { %v2081_v31 = vsel %vm422_vm5, %v2076_v40, %v2078_v58  ;;  %6776 = vmatmul.mubr.msk.f32.vlgmr.msra.gmra.mxu0 %vm474_vm1, %v8031_v6  ;;  %7140 = vmatprep.subr.mxu0 %v7428_v13  ;;  %v2011_v11 = vsel %vm347_vm9, %v8317_v47, %v2008_v18  ;;  %v8369_v40 = vld [vmem:[%s10252_s2 + $0x10] sm:$0xff] }
 0x921   : > { %v2107_v56 = vsel %vm441_vm3, %v2067_v10, %v2081_v31  ;;  %2184 = vmatprep.mubr.f32.mxu0 %v7428_v13 }
 0x922   : > { %7126 = vmatprep.subr.mxu1 %v2107_v56 }
 0x923   : > { %7127 = vmatpush3.msra.mxu1 %v2107_v56  ;;  %v2050_v61 = vpop.permute.xlu1 %2049  ;;  %v1994_v6 = vpop.permute.xlu0 %1993 }
 0x924   : > { %v2053_v35 = vsel %vm392_vm6, %v2048_v43, %v2050_v61  ;;  %6777 = vmatmul.mubr.msk.f32.gmra.mxu0 %vm474_vm1, %v8356_v0  ;;  %v1997_v16 = vsel %vm332_vm10, %v1992_v38, %v1994_v6 }
 0x925   : > { %v2104_v28 = vsel %vm441_vm3, %v2039_v33, %v2053_v35  ;;  %2190 = vmatprep.mubr.f32.mxu0 %v7428_v13  ;;  %v2098_v47 = vsel %vm441_vm3, %v8270_v7, %v1997_v16 }
 0x926   : > { %7128 = vmatprep.subr.mxu1 %v2104_v28 }
 0x927   : > { %7129 = vmatpush3.msra.mxu1 %v2104_v28  ;;  %v2022_v44 = vpop.permute.xlu1 %2021 }
 0x928   : > { %v2025_v37 = vsel %vm362_vm8, %v2020_v34, %v2022_v44  ;;  %6778 = vmatmul.mubr.msk.f32.gmra.mxu0 %vm474_vm1, %v8369_v40 }
 0x929   : > { %v2101_v30 = vsel %vm441_vm3, %v2011_v11, %v2025_v37  ;;  %2196 = vmatprep.mubr.f32.mxu0 %v7428_v13 }
 0x92a   : > { %7130 = vmatprep.subr.mxu1 %v2101_v30 }
 0x92b   : > { %7131 = vmatpush3.msra.mxu1 %v2101_v30 }
 0x92c   : > { %6779 = vmatmul.mubr.msk.f32.gmra.mxu0 %vm474_vm1, %v8380_v52  ;;  %7132 = vmatprep.subr.mxu1 %v2098_v47 }
 0x92d   : > { %7133 = vmatpush3.msra.mxu1 %v2098_v47  ;;  %7148 = vmatprep.mubr.msk.f32.mxu0 %vm7430_vm11, %v7428_v13 }
 0x92e   : > { %7135 = vmatmul.mubr.msk.f32.vlgmr.msra.gmra.mxu1 %vm474_vm1, %v8356_v0 }
 0x92f   : > { %7137 = vmatprep.mubr.msk.f32.mxu1 %vm474_vm1, %v8369_v40 }
 0x932   : > { %7138 = vmatmul.mubr.msk.f32.gmra.mxu1 %vm474_vm1, %v8380_v52 }
 0x933   : > { %2376 = vmatprep.mubr.f32.mxu1 %v7428_v13 }
 0x9e0   : > { %v2180_v7 = vpop.f32.mrf.mxu0 }
 0x9e1   : > { %v2181_v26 = vadd.f32 %v2180_v7, %v7698_v59 }
 0x9e2   : > { %v2182_v63 = vpop.f32.mrf.mxu0 }
 0x9e3   : > { %v2183_v25 = vadd.f32 %v2182_v63, %v7698_v59  ;;  %v2288_v56 = vmax.f32 %v2181_v26, 0.0  ;;  %v8422_v63 = vld [vmem:[%s10254_s4] sm:$0xff] }
 0x9e4   : > { %v2186_v39 = vpop.f32.mrf.mxu0 }
 0x9e5   : > { %v2187_v3 = vadd.f32 %v2186_v39, %v7674_v42  ;;  %v2289_v38 = vmax.f32 %v2183_v25, 0.0  ;;  %v2300_v30 = vmul.f32 %v2288_v56, %v7689_v51  ;;  %v8435_v39 = vld [vmem:[%s10254_s4 + $0x8] sm:$0xff] }
 0x9e6   : > { %v2188_v60 = vpop.f32.mrf.mxu0 }
 0x9e7   : > { %v2189_v48 = vadd.f32 %v2188_v60, %v7674_v42  ;;  %v2291_v23 = vmax.f32 %v2187_v3, 0.0  ;;  %v2301_v11 = vmul.f32 %v2289_v38, %v7696_v57  ;;  %v8447_v60 = vld [vmem:[%s10254_s4 + $0x10] sm:$0xff] }
 0x9e8   : > { %v2192_v2 = vpop.f32.mrf.mxu0 }
 0x9e9   : > { %v2193_v5 = vadd.f32 %v2192_v2, %v7672_v41  ;;  %v2292_v24 = vmax.f32 %v2189_v48, 0.0  ;;  %v2303_v44 = vmul.f32 %v2291_v23, %v7689_v51  ;;  %v8459_v2 = vld [vmem:[%s10254_s4 + $0x18] sm:$0xff] }
 0x9ea   : > { %v2194_v19 = vpop.f32.mrf.mxu0 }
 0x9eb   : > { %v2195_v1 = vadd.f32 %v2194_v19, %v7672_v41  ;;  %v2294_v4 = vmax.f32 %v2193_v5, 0.0  ;;  %v2304_v33 = vmul.f32 %v2292_v24, %v7696_v57  ;;  %v8471_v19 = vld [vmem:[%s10254_s4 + $0x20] sm:$0xf] }
 0x9ec   : > { %v2198_v49 = vpop.f32.mrf.mxu0 }
 0x9ed   : > { %v2199_v20 = vadd.f32 %v2198_v49, %v7668_v36  ;;  %v2295_v62 = vmax.f32 %v2195_v1, 0.0  ;;  %v2306_v61 = vmul.f32 %v2294_v4, %v7689_v51  ;;  %v8481_v49 = vld [vmem:[%s10252_s2] sm:$0xff] }
 0x9ee   : > { %v2200_v53 = vpop.f32.mrf.mxu0  ;;  %v7136_v43 = vpop.f32.mrf.mxu1 }
 0x9ef   : > { %v2201_v21 = vadd.f32 %v2200_v53, %v7668_v36  ;;  %v2297_v32 = vmax.f32 %v2199_v20, 0.0  ;;  %v2275_v12 = vadd.f32 %v7136_v43, %v7674_v42  ;;  %v2307_v18 = vmul.f32 %v2295_v62, %v7696_v57 }
 0x9f0   : > { %v2269_v22 = vpop.f32.mrf.mxu1 }
 0x9f1   : > { %v2298_v34 = vmax.f32 %v2201_v21, 0.0  ;;  %v2309_v9 = vmul.f32 %v2297_v32, %v7689_v51  ;;  %v2270_v58 = vadd.f32 %v2269_v22, %v7698_v59  ;;  %v2293_v35 = vmax.f32 %v2275_v12, 0.0 }
 0x9f2   : > { %v7139_v8 = vpop.f32.mrf.mxu1 }
 0x9f3   : > { %v2310_v55 = vmul.f32 %v2298_v34, %v7696_v57  ;;  %v2285_v54 = vadd.f32 %v7139_v8, %v7668_v36  ;;  %v2290_v16 = vmax.f32 %v2270_v58, 0.0  ;;  %v2305_v47 = vmul.f32 %v2293_v35, %v7712_v17 }
 0x9f4   : > { %v2279_v27 = vpop.f32.mrf.mxu1 }
 0x9f5   : > { %v2299_v10 = vmax.f32 %v2285_v54, 0.0  ;;  %v2280_v31 = vadd.f32 %v2279_v27, %v7672_v41  ;;  %2336 = vmatprep.subr.mxu1 %v2310_v55  ;;  %v2302_v7 = vmul.f32 %v2290_v16, %v7712_v17 }
 0x9f6   : > { %2337 = vmatpush1.msra.mxu1 %v2309_v9 }
 0x9f7   : > { %v2311_v6 = vmul.f32 %v2299_v10, %v7712_v17  ;;  %v2296_v28 = vmax.f32 %v2280_v31, 0.0  ;;  %2338 = vmatprep.subr.mxu1 %v2307_v18 }
 0x9f8   : > { %2339 = vmatpush1.msra.mxu1 %v2306_v61 }
 0x9f9   : > { %v2308_v37 = vmul.f32 %v2296_v28, %v7712_v17  ;;  %2340 = vmatprep.subr.mxu1 %v2304_v33  ;;  %7141 = vmatpush3.msra.mxu0 %v2311_v6 }
 0x9fa   : > { %2341 = vmatpush1.msra.mxu1 %v2303_v44  ;;  %7142 = vmatprep.subr.mxu0 %v7428_v13 }
 0x9fb   : > { %2342 = vmatprep.subr.mxu1 %v2301_v11  ;;  %7143 = vmatpush3.msra.mxu0 %v2308_v37 }
 0x9fc   : > { %2343 = vmatpush1.msra.mxu1 %v2300_v30  ;;  %7144 = vmatprep.subr.mxu0 %v7428_v13 }
 0x9fd   : > { %7145 = vmatpush3.msra.mxu0 %v2305_v47  ;;  %6785 = vmatmul.mubr.msk.f32.vlgmr.msra.gmra.mxu1 %vm707_vm12, %v8422_v63 }
 0x9fe   : > { %7146 = vmatprep.subr.mxu0 %v7428_v13  ;;  %2382 = vmatprep.mubr.f32.mxu1 %v7428_v13 }
 0x9ff   : > { %7147 = vmatpush3.msra.mxu0 %v2302_v7 }
 0xa00   : > { %7149 = vmatmul.mubr.msk.f32.vlgmr.msra.gmra.mxu0 %vm707_vm12, %v8422_v63 }
 0xa01   : > { %7151 = vmatprep.mubr.msk.f32.mxu0 %vm7430_vm11, %v7428_v13  ;;  %6786 = vmatmul.mubr.msk.f32.gmra.mxu1 %vm707_vm12, %v8435_v39 }
 0xa02   : > { %2388 = vmatprep.mubr.f32.mxu1 %v7428_v13 }
 0xa04   : > { %7152 = vmatmul.mubr.msk.f32.gmra.mxu0 %vm707_vm12, %v8435_v39 }
 0xa05   : > { %7154 = vmatprep.mubr.msk.f32.mxu0 %vm7430_vm11, %v7428_v13  ;;  %6787 = vmatmul.mubr.msk.f32.gmra.mxu1 %vm707_vm12, %v8447_v60 }
 0xa06   : > { %2394 = vmatprep.mubr.f32.mxu1 %v7428_v13 }
 0xa08   : > { %7155 = vmatmul.mubr.msk.f32.gmra.mxu0 %vm707_vm12, %v8447_v60 }
 0xa09   : > { %7157 = vmatprep.mubr.msk.f32.mxu0 %vm7430_vm11, %v7428_v13  ;;  %6788 = vmatmul.mubr.msk.f32.gmra.mxu1 %vm707_vm12, %v8459_v2 }
 0xa0a   : > { %2400 = vmatprep.mubr.f32.mxu1 %v7428_v13 }
 0xa0c   : > { %7158 = vmatmul.mubr.msk.f32.gmra.mxu0 %vm707_vm12, %v8459_v2 }
 0xa0d   : > { %7160 = vmatprep.mubr.msk.f32.mxu0 %vm7430_vm11, %v7428_v13  ;;  %6789 = vmatmul.mubr.msk.f32.gmra.mxu1 %vm707_vm12, %v8471_v19 }
 0xa0e   : > { %2962 = vmatprep.mubr.f32.mxu1 %v7428_v13 }
 0xa10   : > { %7161 = vmatmul.mubr.msk.f32.gmra.mxu0 %vm707_vm12, %v8471_v19 }
 0xa11   : > { %7173 = vmatprep.mubr.msk.f32.mxu0 %vm474_vm1, %v8481_v49 }
 0xabd   : > { %v2378_v1 = vpop.f32.mrf.mxu1 }
 0xabf   : > { %v2380_v5 = vpop.f32.mrf.mxu1 }
 0xac0   : > { %v2473_v20 = vpop.f32.mrf.mxu0 }
 0xac1   : > { %2516 = vrot.lane.b32.xlu1 %v2473_v20, %s7419_s8  ;;  %v2384_v43 = vpop.f32.mrf.mxu1 }
 0xac2   : > { %v7150_v53 = vpop.f32.mrf.mxu0 }
 0xac3   : > { %v2386_v25 = vpop.f32.mrf.mxu1 }
 0xac4   : > { %v2478_v48 = vpop.f32.mrf.mxu0 }
 0xac5   : > { %2522 = vrot.lane.b32.xlu0 %v2478_v48, %s7419_s8  ;;  %v2390_v22 = vpop.f32.mrf.mxu1 }
 0xac6   : > { %v7153_v21 = vpop.f32.mrf.mxu0 }
 0xac7   : > { %v2392_v26 = vpop.f32.mrf.mxu1 }
 0xac8   : > { %v2483_v3 = vpop.f32.mrf.mxu0 }
 0xac9   : > { %2528 = vrot.lane.b32.xlu1 %v2483_v3, %s7419_s8  ;;  %v2396_v24 = vpop.f32.mrf.mxu1 }
 0xaca   : > { %v7156_v32 = vpop.f32.mrf.mxu0 }
 0xacb   : > { %v2398_v55 = vpop.f32.mrf.mxu1 }
 0xacc   : > { %v2488_v62 = vpop.f32.mrf.mxu0 }
 0xacd   : > { %2512 = vrot.lane.b32.xlu1 %v2378_v1, %s7419_s8  ;;  %2534 = vrot.lane.b32.xlu0 %v2488_v62, %s7419_s8  ;;  %v2402_v12 = vpop.f32.mrf.mxu1 }
 0xace   : > { %v7159_v34 = vpop.f32.mrf.mxu0 }
 0xacf   : > { %v2404_v54 = vpop.f32.mrf.mxu1 }
 0xad0   : > { %v2493_v4 = vpop.f32.mrf.mxu0 }
 0xad1   : > { %2514 = vrot.lane.b32.xlu0 %v2380_v5, %s7419_s8  ;;  %2540 = vrot.lane.b32.xlu1 %v2493_v4, %s7419_s8 }
 0xad2   : > { %v7162_v8 = vpop.f32.mrf.mxu0 }
 0xad5   : > { %2518 = vrot.lane.b32.xlu0 %v2384_v43, %s7419_s8  ;;  %2520 = vrot.lane.b32.xlu1 %v2386_v25, %s7419_s8 }
 0xad9   : > { %2526 = vrot.lane.b32.xlu0 %v2392_v26, %s7419_s8  ;;  %2524 = vrot.lane.b32.xlu1 %v2390_v22, %s7419_s8 }
 0xadd   : > { %2530 = vrot.lane.b32.xlu0 %v2396_v24, %s7419_s8  ;;  %2532 = vrot.lane.b32.xlu1 %v2398_v55, %s7419_s8 }
 0xae1   : > { %2538 = vrot.lane.b32.xlu0 %v2404_v54, %s7419_s8  ;;  %2536 = vrot.lane.b32.xlu1 %v2402_v12, %s7419_s8 }
 0xb33   : > { %v2517_v38 = vpop.permute.xlu1 %2516 }
 0xb34   : > { %v2569_v23 = vsel %vm309_vm0, %v2517_v38, 0.0 }
 0xb35   : > { %v2579_v9 = vrot.slane %v2569_v23, 4 }
 0xb37   : > { %v2523_v27 = vpop.permute.xlu0 %2522  ;;  %2586 = vrot.lane.b32.xlu0 %v2579_v9, %s7426_s15 }
 0xb38   : > { %v2570_v18 = vsel %vm309_vm0, %v2523_v27, 0.0 }
 0xb39   : > { %v2619_v10 = vrot.slane %v2570_v18, 4 }
 0xb3b   : > { %v2529_v58 = vpop.permute.xlu1 %2528  ;;  %2605 = vrot.lane.b32.xlu0 %v2570_v18, %s7423_s12 }
 0xb3c   : > { %v2571_v61 = vsel %vm309_vm0, %v2529_v58, 0.0 }
 0xb3d   : > { %v2659_v6 = vrot.slane %v2571_v61, 4 }
 0xb3f   : > { %v2513_v31 = vpop.permute.xlu1 %2512  ;;  %2626 = vrot.lane.b32.xlu0 %v2619_v10, %s7427_s16  ;;  %v2535_v56 = vpop.permute.xlu0 %2534 }
 0xb40   : > { %v8517_v37 = vsel %vm309_vm0, 0.0, %v2513_v31  ;;  %v2572_v30 = vsel %vm309_vm0, %v2535_v56, 0.0 }
 0xb41   : > { %v2576_v7 = vrot.slane %v8517_v37, 4  ;;  %v2699_v18 = vrot.slane %v2572_v30, 4 }
 0xb43   : > { %2645 = vrot.lane.b32.xlu0 %v2571_v61, %s7422_s11  ;;  %v2515_v33 = vpop.permute.xlu0 %2514  ;;  %v8511_v44 = vpop.permute.xlu1 %2540 }
 0xb44   : > { %v8508_v35 = vsel %vm309_vm0, %v2513_v31, %v2515_v33  ;;  %v8524_v1 = vsel %vm309_vm0, %v2515_v33, %v2517_v38  ;;  %v2573_v61 = vsel %vm309_vm0, %v8511_v44, 0.0 }
 0xb45   : > { %v2577_v28 = vrot.slane %v8508_v35, 4  ;;  %v2578_v5 = vrot.slane %v8524_v1, 4 }
 0xb47   : > { %2666 = vrot.lane.b32.xlu0 %v2659_v6, %s7425_s14  ;;  %v2519_v11 = vpop.permute.xlu0 %2518  ;;  %2582 = vrot.lane.b32.xlu1 %v2577_v28, %s7426_s15  ;;  %v2521_v47 = vpop.permute.xlu1 %2520 }
 0xb48   : > { %v2565_v16 = vsel %vm309_vm0, 0.0, %v2519_v11  ;;  %v2545_v20 = vsel %vm309_vm0, %v2521_v47, %v2523_v27  ;;  %v2544_v48 = vsel %vm309_vm0, %v2519_v11, %v2521_v47 }
 0xb49   : > { %v2616_v53 = vrot.slane %v2565_v16, 4  ;;  %v2618_v43 = vrot.slane %v2545_v20, 4  ;;  %v2617_v3 = vrot.slane %v2544_v48, 4 }
 0xb4b   : > { %2685 = vrot.lane.b32.xlu0 %v2572_v30, %s7421_s10  ;;  %2599 = vrot.lane.b32.xlu1 %v2565_v16, %s7423_s12  ;;  %v2525_v21 = vpop.permute.xlu1 %2524  ;;  %v2527_v32 = vpop.permute.xlu0 %2526 }
 0xb4c   : > { %v2566_v25 = vsel %vm309_vm0, 0.0, %v2525_v21  ;;  %v2547_v22 = vsel %vm309_vm0, %v2527_v32, %v2529_v58  ;;  %v2546_v62 = vsel %vm309_vm0, %v2525_v21, %v2527_v32 }
 0xb4d   : > { %v2656_v34 = vrot.slane %v2566_v25, 4  ;;  %v2657_v26 = vrot.slane %v2546_v62, 4  ;;  %v2658_v55 = vrot.slane %v2547_v22, 4 }
 0xb4f   : > { %2580 = vrot.lane.b32.xlu0 %v2576_v7, %s7426_s15  ;;  %2603 = vrot.lane.b32.xlu1 %v2545_v20, %s7423_s12  ;;  %v2531_v4 = vpop.permute.xlu0 %2530  ;;  %v2533_v8 = vpop.permute.xlu1 %2532 }
 0xb50   : > { %v2548_v24 = vsel %vm309_vm0, %v2531_v4, %v2533_v8  ;;  %v2567_v54 = vsel %vm309_vm0, 0.0, %v2531_v4  ;;  %v2549_v27 = vsel %vm309_vm0, %v2533_v8, %v2535_v56 }
 0xb51   : > { %v2697_v12 = vrot.slane %v2548_v24, 4  ;;  %v2696_v58 = vrot.slane %v2567_v54, 4  ;;  %v2698_v10 = vrot.slane %v2549_v27, 4 }
 0xb53   : > { %2584 = vrot.lane.b32.xlu0 %v2578_v5, %s7426_s15  ;;  %2620 = vrot.lane.b32.xlu1 %v2616_v53, %s7427_s16  ;;  %v2537_v38 = vpop.permute.xlu1 %2536  ;;  %v2539_v23 = vpop.permute.xlu0 %2538 }
 0xb54   : > { %v2550_v9 = vsel %vm309_vm0, %v2537_v38, %v2539_v23  ;;  %v2568_v31 = vsel %vm309_vm0, 0.0, %v2537_v38  ;;  %v2551_v56 = vsel %vm309_vm0, %v2539_v23, %v8511_v44 }
 0xb57   : > { %2624 = vrot.lane.b32.xlu1 %v2618_v43, %s7427_s16  ;;  %2601 = vrot.lane.b32.xlu0 %v2544_v48, %s7423_s12 }
 0xb5b   : > { %2622 = vrot.lane.b32.xlu0 %v2617_v3, %s7427_s16  ;;  %2639 = vrot.lane.b32.xlu1 %v2566_v25, %s7422_s11 }
 0xb5f   : > { %2643 = vrot.lane.b32.xlu1 %v2547_v22, %s7422_s11  ;;  %2641 = vrot.lane.b32.xlu0 %v2546_v62, %s7422_s11 }
 0xb63   : > { %2660 = vrot.lane.b32.xlu1 %v2656_v34, %s7425_s14  ;;  %2662 = vrot.lane.b32.xlu0 %v2657_v26, %s7425_s14 }
 0xb67   : > { %2664 = vrot.lane.b32.xlu1 %v2658_v55, %s7425_s14  ;;  %2681 = vrot.lane.b32.xlu0 %v2548_v24, %s7421_s10 }
 0xb6b   : > { %2679 = vrot.lane.b32.xlu1 %v2567_v54, %s7421_s10  ;;  %2702 = vrot.lane.b32.xlu0 %v2697_v12, %s7424_s13 }
 0xb6f   : > { %2683 = vrot.lane.b32.xlu1 %v2549_v27, %s7421_s10  ;;  %2721 = vrot.lane.b32.xlu0 %v2550_v9, %s7420_s9 }
 0xb73   : > { %2700 = vrot.lane.b32.xlu1 %v2696_v58, %s7424_s13  ;;  %2706 = vrot.lane.b32.xlu0 %v2699_v18, %s7424_s13 }
 0xb77   : > { %2704 = vrot.lane.b32.xlu1 %v2698_v10, %s7424_s13 }
 0xb7b   : > { %2719 = vrot.lane.b32.xlu1 %v2568_v31, %s7420_s9 }
 0xb7f   : > { %2723 = vrot.lane.b32.xlu1 %v2551_v56, %s7420_s9 }
 0xb83   : > { %2725 = vrot.lane.b32.xlu1 %v2573_v61, %s7420_s9 }
 0xba9   : > { %v2587_v33 = vpop.permute.xlu0 %2586 }
 0xbad   : > { %v2606_v6 = vpop.permute.xlu0 %2605 }
 0xbb1   : > { %v2627_v28 = vpop.permute.xlu0 %2626 }
 0xbb5   : > { %v2646_v11 = vpop.permute.xlu0 %2645 }
 0xbb9   : > { %v2667_v16 = vpop.permute.xlu0 %2666  ;;  %v2583_v30 = vpop.permute.xlu1 %2582 }
 0xbbd   : > { %v2686_v47 = vpop.permute.xlu0 %2685  ;;  %v2600_v7 = vpop.permute.xlu1 %2599 }
 0xbc1   : > { %v2581_v20 = vpop.permute.xlu0 %2580  ;;  %v2604_v5 = vpop.permute.xlu1 %2603 }
 0xbc2   : > { %v2588_v4 = vsel %vm332_vm10, %v2581_v20, %v2583_v30  ;;  %v2609_v20 = vsel %vm347_vm9, %v2604_v5, %v2606_v6 }
 0xbc3   : > { %v2594_v55 = vadd.f32 %v2588_v4, %v8517_v37 }
 0xbc5   : > { %v2585_v53 = vpop.permute.xlu0 %2584  ;;  %v2621_v43 = vpop.permute.xlu1 %2620 }
 0xbc6   : > { %v2589_v54 = vsel %vm332_vm10, %v2583_v30, %v2585_v53  ;;  %v2590_v38 = vsel %vm332_vm10, %v2585_v53, %v2587_v33 }
 0xbc7   : > { %v2595_v58 = vadd.f32 %v2589_v54, %v8508_v35  ;;  %v2596_v10 = vadd.f32 %v2590_v38, %v8524_v1 }
 0xbc9   : > { %v2602_v48 = vpop.permute.xlu0 %2601  ;;  %v2625_v21 = vpop.permute.xlu1 %2624 }
 0xbca   : > { %v2607_v24 = vsel %vm347_vm9, %v2600_v7, %v2602_v48  ;;  %v2608_v27 = vsel %vm347_vm9, %v2602_v48, %v2604_v5  ;;  %v2615_v48 = vadd.f32 %v2609_v20, %v2596_v10  ;;  %v2630_v1 = vsel %vm362_vm8, %v2625_v21, %v2627_v28 }
 0xbcb   : > { %v2613_v9 = vadd.f32 %v2607_v24, %v2594_v55  ;;  %v2614_v7 = vadd.f32 %v2608_v27, %v2595_v58 }
 0xbcc   : > { %v2636_v5 = vadd.f32 %v2630_v1, %v2615_v48 }
 0xbcd   : > { %v2623_v25 = vpop.permute.xlu0 %2622  ;;  %v2640_v3 = vpop.permute.xlu1 %2639 }
 0xbce   : > { %v2628_v23 = vsel %vm362_vm8, %v2621_v43, %v2623_v25  ;;  %v2629_v37 = vsel %vm362_vm8, %v2623_v25, %v2625_v21 }
 0xbcf   : > { %v2634_v31 = vadd.f32 %v2628_v23, %v2613_v9 }
 0xbd1   : > { %v2644_v32 = vpop.permute.xlu1 %2643  ;;  %v2642_v44 = vpop.permute.xlu0 %2641 }
 0xbd2   : > { %v2647_v18 = vsel %vm377_vm7, %v2640_v3, %v2642_v44  ;;  %v2648_v53 = vsel %vm377_vm7, %v2642_v44, %v2644_v32  ;;  %v2635_v3 = vadd.f32 %v2629_v37, %v2614_v7  ;;  %v2649_v38 = vsel %vm377_vm7, %v2644_v32, %v2646_v11 }
 0xbd3   : > { %v2653_v33 = vadd.f32 %v2647_v18, %v2634_v31  ;;  %v2655_v21 = vadd.f32 %v2649_v38, %v2636_v5 }
 0xbd4   : > { %v2654_v55 = vadd.f32 %v2648_v53, %v2635_v3 }
 0xbd5   : > { %v2661_v22 = vpop.permute.xlu1 %2660  ;;  %v2663_v62 = vpop.permute.xlu0 %2662 }
 0xbd6   : > { %v2668_v30 = vsel %vm392_vm6, %v2661_v22, %v2663_v62 }
 0xbd7   : > { %v2674_v35 = vadd.f32 %v2668_v30, %v2653_v33 }
 0xbd9   : > { %v2665_v34 = vpop.permute.xlu1 %2664  ;;  %v2682_v8 = vpop.permute.xlu0 %2681 }
 0xbda   : > { %v2669_v24 = vsel %vm392_vm6, %v2663_v62, %v2665_v34  ;;  %v2670_v9 = vsel %vm392_vm6, %v2665_v34, %v2667_v16 }
 0xbdb   : > { %v2675_v44 = vadd.f32 %v2669_v24, %v2654_v55  ;;  %v2676_v10 = vadd.f32 %v2670_v9, %v2655_v21 }
 0xbdd   : > { %v2680_v26 = vpop.permute.xlu1 %2679  ;;  %v2703_v56 = vpop.permute.xlu0 %2702 }
 0xbde   : > { %v2687_v43 = vsel %vm407_vm4, %v2680_v26, %v2682_v8 }
 0xbdf   : > { %v2693_v22 = vadd.f32 %v2687_v43, %v2674_v35 }
 0xbe1   : > { %v2684_v12 = vpop.permute.xlu1 %2683  ;;  %v2722_v54 = vpop.permute.xlu0 %2721 }
 0xbe2   : > { %v2688_v6 = vsel %vm407_vm4, %v2682_v8, %v2684_v12  ;;  %v2689_v58 = vsel %vm407_vm4, %v2684_v12, %v2686_v47 }
 0xbe3   : > { %v2694_v62 = vadd.f32 %v2688_v6, %v2675_v44  ;;  %v2695_v37 = vadd.f32 %v2689_v58, %v2676_v10 }
 0xbe5   : > { %v2701_v61 = vpop.permute.xlu1 %2700  ;;  %v2707_v31 = vpop.permute.xlu0 %2706 }
 0xbe6   : > { %v2708_v25 = vsel %vm422_vm5, %v2701_v61, %v2703_v56 }
 0xbe7   : > { %v2714_v26 = vadd.f32 %v2708_v25, %v2693_v22 }
 0xbe9   : > { %v2705_v4 = vpop.permute.xlu1 %2704 }
 0xbea   : > { %v2709_v27 = vsel %vm422_vm5, %v2703_v56, %v2705_v4  ;;  %v2710_v8 = vsel %vm422_vm5, %v2705_v4, %v2707_v31 }
 0xbeb   : > { %v2715_v11 = vadd.f32 %v2709_v27, %v2694_v62  ;;  %v2716_v56 = vadd.f32 %v2710_v8, %v2695_v37 }
 0xbed   : > { %v2720_v23 = vpop.permute.xlu1 %2719 }
 0xbee   : > { %v2727_v28 = vsel %vm437_vm2, %v2720_v23, %v2722_v54 }
 0xbef   : > { %v2733_v18 = vadd.f32 %v2727_v28, %v2714_v26 }
 0xbf1   : > { %v2724_v32 = vpop.permute.xlu1 %2723  ;;  %v2736_v16 = vadd.f32 %v2733_v18, %v7803_v15 }
 0xbf2   : > { %v2728_v61 = vsel %vm437_vm2, %v2722_v54, %v2724_v32 }
 0xbf3   : > { %v2734_v34 = vadd.f32 %v2728_v61, %v2715_v11  ;;  %v2739_v47 = vmul.f32 %v2736_v16, %v7904_v45 }
 0xbf5   : > { %v2737_v30 = vadd.f32 %v2734_v34, %v7803_v15  ;;  %v2726_v7 = vpop.permute.xlu1 %2725 }
 0xbf6   : > { %v2729_v33 = vsel %vm437_vm2, %v2724_v32, %v2726_v7 }
 0xbf7   : > { %v2740_v12 = vmul.f32 %v2737_v30, %v7908_v50  ;;  %v2735_v20 = vadd.f32 %v2729_v33, %v2716_v56 }
 0xbf9   : > { %v2738_v53 = vadd.f32 %v2735_v20, %v7803_v15  ;;  %v2744_v43 = vcombine.low %v2739_v47, %v2740_v12 }
 0xbfb   : > { %v2741_v48 = vmul.f32 %v2738_v53, %v7918_v46  ;;  %v8599_v3 = vadd.f32 %v2744_v43, %v8241_v29 }
 0xbfd   : > { %2751 = vrot.lane.b32.xlu0 %v8599_v3, %s7419_s8  ;;  %v2750_v35 = vcombine.high %v8599_v3, %v8599_v3  ;;  %v8607_v4 = vadd.f32 %v2741_v48, %v8249_v14 }
 0xbff   : > { %2753 = vrot.lane.b32.xlu1 %v2750_v35, %s7419_s8 }
 0xc01   : > { %2755 = vrot.lane.b32.xlu0 %v8607_v4, %s7419_s8 }
 0xc6f   : > { %v2752_v1 = vpop.permute.xlu0 %2751 }
 0xc70   : > { %v8612_v24 = vsel %vm309_vm0, 0.0, %v2752_v1 }
 0xc71   : > { %2841 = vrot.lane.b32.xlu0 %v8612_v24, %s7421_s10  ;;  %v2754_v14 = vpop.permute.xlu1 %2753  ;;  %v2767_v54 = vrot.slane %v8612_v24, 4 }
 0xc72   : > { %v8625_v55 = vsel %vm309_vm0, %v2752_v1, %v2754_v14 }
 0xc73   : > { %v2756_v29 = vpop.permute.xlu0 %2755  ;;  %v2768_v6 = vrot.slane %v8625_v55, 4 }
 0xc74   : > { %v2764_v25 = vsel %vm309_vm0, %v2756_v29, 0.0  ;;  %v8628_v22 = vsel %vm309_vm0, %v2754_v14, %v2756_v29 }
 0xc75   : > { %2813 = vrot.lane.b32.xlu0 %v8612_v24, %s7422_s11  ;;  %2875 = vrot.lane.b32.xlu1 %v2764_v25, %s7420_s9  ;;  %v2769_v38 = vrot.slane %v8628_v22, 4  ;;  %v2770_v5 = vrot.slane %v2764_v25, 4 }
 0xc79   : > { %2785 = vrot.lane.b32.xlu0 %v8612_v24, %s7423_s12  ;;  %2869 = vrot.lane.b32.xlu1 %v8612_v24, %s7420_s9 }
 0xc7d   : > { %2873 = vrot.lane.b32.xlu0 %v8628_v22, %s7420_s9  ;;  %2871 = vrot.lane.b32.xlu1 %v8625_v55, %s7420_s9 }
 0xc81   : > { %2845 = vrot.lane.b32.xlu0 %v8628_v22, %s7421_s10  ;;  %2843 = vrot.lane.b32.xlu1 %v8625_v55, %s7421_s10 }
 0xc85   : > { %2815 = vrot.lane.b32.xlu0 %v8625_v55, %s7422_s11  ;;  %2855 = vrot.lane.b32.xlu1 %v2767_v54, %s7424_s13 }
 0xc89   : > { %2787 = vrot.lane.b32.xlu0 %v8625_v55, %s7423_s12  ;;  %2817 = vrot.lane.b32.xlu1 %v8628_v22, %s7422_s11 }
 0xc8d   : > { %2771 = vrot.lane.b32.xlu0 %v2767_v54, %s7426_s15  ;;  %2827 = vrot.lane.b32.xlu1 %v2767_v54, %s7425_s14 }
 0xc91   : > { %2859 = vrot.lane.b32.xlu0 %v2769_v38, %s7424_s13  ;;  %2789 = vrot.lane.b32.xlu1 %v8628_v22, %s7423_s12 }
 0xc95   : > { %2799 = vrot.lane.b32.xlu1 %v2767_v54, %s7427_s16  ;;  %2829 = vrot.lane.b32.xlu0 %v2768_v6, %s7425_s14 }
 0xc99   : > { %2801 = vrot.lane.b32.xlu0 %v2768_v6, %s7427_s16  ;;  %2857 = vrot.lane.b32.xlu1 %v2768_v6, %s7424_s13 }
 0xc9d   : > { %2773 = vrot.lane.b32.xlu0 %v2768_v6, %s7426_s15  ;;  %2831 = vrot.lane.b32.xlu1 %v2769_v38, %s7425_s14 }
 0xca1   : > { %2847 = vrot.lane.b32.xlu0 %v2764_v25, %s7421_s10  ;;  %2803 = vrot.lane.b32.xlu1 %v2769_v38, %s7427_s16 }
 0xca5   : > { %2819 = vrot.lane.b32.xlu0 %v2764_v25, %s7422_s11  ;;  %2775 = vrot.lane.b32.xlu1 %v2769_v38, %s7426_s15 }
 0xca9   : > { %2791 = vrot.lane.b32.xlu0 %v2764_v25, %s7423_s12  ;;  %2861 = vrot.lane.b32.xlu1 %v2770_v5, %s7424_s13 }
 0xcad   : > { %2777 = vrot.lane.b32.xlu0 %v2770_v5, %s7426_s15  ;;  %2833 = vrot.lane.b32.xlu1 %v2770_v5, %s7425_s14 }
 0xcb1   : > { %2805 = vrot.lane.b32.xlu1 %v2770_v5, %s7427_s16 }
 0xce3   : > { %v2842_v44 = vpop.permute.xlu0 %2841 }
 0xce7   : > { %v2814_v26 = vpop.permute.xlu0 %2813  ;;  %v2876_v23 = vpop.permute.xlu1 %2875 }
 0xceb   : > { %v2786_v9 = vpop.permute.xlu0 %2785  ;;  %v2870_v27 = vpop.permute.xlu1 %2869 }
 0xcef   : > { %v2874_v28 = vpop.permute.xlu0 %2873  ;;  %v2872_v21 = vpop.permute.xlu1 %2871 }
 0xcf0   : > { %v2877_v62 = vsel %vm437_vm2, %v2870_v27, %v2872_v21  ;;  %v2878_v18 = vsel %vm437_vm2, %v2872_v21, %v2874_v28  ;;  %v2879_v58 = vsel %vm437_vm2, %v2874_v28, %v2876_v23 }
 0xcf1   : > { %6795 = vmatprep.subr.msk.mxu1 %vm441_vm3, %v2878_v18  ;;  %7163 = vmatprep.subr.msk.mxu0 %vm441_vm3, %v2879_v58 }
 0xcf2   : > { %6796 = vmatpush1.msk.msra.mxu1 %vm441_vm3, %v2877_v62  ;;  %7164 = vmatpush3.msk.msra.mxu0 %vm441_vm3, %v2879_v58 }
 0xcf3   : > { %v2846_v10 = vpop.permute.xlu0 %2845  ;;  %v2844_v31 = vpop.permute.xlu1 %2843 }
 0xcf4   : > { %v2849_v12 = vsel %vm407_vm4, %v2842_v44, %v2844_v31  ;;  %v2850_v20 = vsel %vm407_vm4, %v2844_v31, %v2846_v10 }
 0xcf7   : > { %v2816_v11 = vpop.permute.xlu0 %2815  ;;  %v2856_v32 = vpop.permute.xlu1 %2855 }
 0xcf8   : > { %v2821_v38 = vsel %vm377_vm7, %v2814_v26, %v2816_v11 }
 0xcfb   : > { %v2788_v8 = vpop.permute.xlu0 %2787  ;;  %v2818_v61 = vpop.permute.xlu1 %2817 }
 0xcfc   : > { %v2822_v14 = vsel %vm377_vm7, %v2816_v11, %v2818_v61  ;;  %v2793_v62 = vsel %vm347_vm9, %v2786_v9, %v2788_v8 }
 0xcff   : > { %v2772_v37 = vpop.permute.xlu0 %2771  ;;  %v2828_v16 = vpop.permute.xlu1 %2827 }
 0xd03   : > { %v2860_v34 = vpop.permute.xlu0 %2859  ;;  %v2790_v56 = vpop.permute.xlu1 %2789 }
 0xd04   : > { %v2794_v28 = vsel %vm347_vm9, %v2788_v8, %v2790_v56 }
 0xd07   : > { %v2830_v30 = vpop.permute.xlu0 %2829  ;;  %v2800_v7 = vpop.permute.xlu1 %2799 }
 0xd08   : > { %v2835_v1 = vsel %vm392_vm6, %v2828_v16, %v2830_v30 }
 0xd09   : > { %v2886_v5 = vsel %vm441_vm3, %v2821_v38, %v2835_v1 }
 0xd0b   : > { %v2802_v33 = vpop.permute.xlu0 %2801  ;;  %v2858_v47 = vpop.permute.xlu1 %2857 }
 0xd0c   : > { %v2863_v53 = vsel %vm422_vm5, %v2856_v32, %v2858_v47  ;;  %v2864_v43 = vsel %vm422_vm5, %v2858_v47, %v2860_v34  ;;  %v2807_v44 = vsel %vm362_vm8, %v2800_v7, %v2802_v33 }
 0xd0d   : > { %v2890_v48 = vsel %vm441_vm3, %v2850_v20, %v2864_v43  ;;  %v2889_v35 = vsel %vm441_vm3, %v2849_v12, %v2863_v53  ;;  %v2883_v26 = vsel %vm441_vm3, %v2793_v62, %v2807_v44 }
 0xd0e   : > { %2922 = vmatprep.subr.mxu1 %v2890_v48 }
 0xd0f   : > { %v2774_v29 = vpop.permute.xlu0 %2773  ;;  %2923 = vmatpush1.msra.mxu1 %v2889_v35  ;;  %v2832_v25 = vpop.permute.xlu1 %2831 }
 0xd10   : > { %v2836_v54 = vsel %vm392_vm6, %v2830_v30, %v2832_v25  ;;  %v2779_v58 = vsel %vm332_vm10, %v2772_v37, %v2774_v29 }
 0xd11   : > { %v2887_v6 = vsel %vm441_vm3, %v2822_v14, %v2836_v54  ;;  %v2880_v30 = vsel %vm441_vm3, %v8612_v24, %v2779_v58 }
 0xd12   : > { %2924 = vmatprep.subr.mxu1 %v2887_v6 }
 0xd13   : > { %v2848_v23 = vpop.permute.xlu0 %2847  ;;  %2925 = vmatpush1.msra.mxu1 %v2886_v5  ;;  %v2804_v27 = vpop.permute.xlu1 %2803 }
 0xd14   : > { %v2808_v21 = vsel %vm362_vm8, %v2802_v33, %v2804_v27  ;;  %v2851_v7 = vsel %vm407_vm4, %v2846_v10, %v2848_v23 }
 0xd15   : > { %v2884_v18 = vsel %vm441_vm3, %v2794_v28, %v2808_v21 }
 0xd16   : > { %2926 = vmatprep.subr.mxu1 %v2884_v18 }
 0xd17   : > { %v2820_v31 = vpop.permute.xlu0 %2819  ;;  %2927 = vmatpush1.msra.mxu1 %v2883_v26  ;;  %v2776_v11 = vpop.permute.xlu1 %2775 }
 0xd18   : > { %v2780_v32 = vsel %vm332_vm10, %v2774_v29, %v2776_v11  ;;  %v2823_v24 = vsel %vm377_vm7, %v2818_v61, %v2820_v31 }
 0xd19   : > { %v2881_v16 = vsel %vm441_vm3, %v8625_v55, %v2780_v32 }
 0xd1a   : > { %2928 = vmatprep.subr.mxu1 %v2881_v16 }
 0xd1b   : > { %v2792_v9 = vpop.permute.xlu0 %2791  ;;  %2929 = vmatpush1.msra.mxu1 %v2880_v30  ;;  %v2862_v8 = vpop.permute.xlu1 %2861 }
 0xd1c   : > { %v2865_v33 = vsel %vm422_vm5, %v2860_v34, %v2862_v8  ;;  %6797 = vmatmul.mubr.msk.f32.vlgmr.msra.gmra.mxu1 %vm474_vm1, %v8481_v49  ;;  %7179 = vmatprep.subr.mxu1 %v7428_v13  ;;  %v2795_v20 = vsel %vm347_vm9, %v2790_v56, %v2792_v9 }
 0xd1d   : > { %v2891_v37 = vsel %vm441_vm3, %v2851_v7, %v2865_v33  ;;  %2968 = vmatprep.mubr.f32.mxu1 %v7428_v13 }
 0xd1e   : > { %7165 = vmatprep.subr.mxu0 %v2891_v37 }
 0xd1f   : > { %7166 = vmatpush3.msra.mxu0 %v2891_v37  ;;  %v2834_v55 = vpop.permute.xlu1 %2833  ;;  %v2778_v10 = vpop.permute.xlu0 %2777 }
 0xd20   : > { %v2837_v47 = vsel %vm392_vm6, %v2832_v25, %v2834_v55  ;;  %6798 = vmatmul.mubr.msk.f32.gmra.mxu1 %vm474_vm1, %v8356_v0  ;;  %v2781_v53 = vsel %vm332_vm10, %v2776_v11, %v2778_v10 }
 0xd21   : > { %v2888_v34 = vsel %vm441_vm3, %v2823_v24, %v2837_v47  ;;  %2974 = vmatprep.mubr.f32.mxu1 %v7428_v13  ;;  %v2882_v48 = vsel %vm441_vm3, %v8628_v22, %v2781_v53 }
 0xd22   : > { %7167 = vmatprep.subr.mxu0 %v2888_v34 }
 0xd23   : > { %7168 = vmatpush3.msra.mxu0 %v2888_v34  ;;  %v2806_v12 = vpop.permute.xlu1 %2805 }
 0xd24   : > { %v2809_v43 = vsel %vm362_vm8, %v2804_v27, %v2806_v12  ;;  %6799 = vmatmul.mubr.msk.f32.gmra.mxu1 %vm474_vm1, %v8369_v40 }
 0xd25   : > { %v2885_v61 = vsel %vm441_vm3, %v2795_v20, %v2809_v43  ;;  %2980 = vmatprep.mubr.f32.mxu1 %v7428_v13 }
 0xd26   : > { %7169 = vmatprep.subr.mxu0 %v2885_v61 }
 0xd27   : > { %7170 = vmatpush3.msra.mxu0 %v2885_v61 }
 0xd28   : > { %6800 = vmatmul.mubr.msk.f32.gmra.mxu1 %vm474_vm1, %v8380_v52  ;;  %7171 = vmatprep.subr.mxu0 %v2882_v48 }
 0xd29   : > { %7172 = vmatpush3.msra.mxu0 %v2882_v48  ;;  %7187 = vmatprep.mubr.msk.f32.mxu1 %vm7430_vm11, %v7428_v13 }
 0xd2a   : > { %7174 = vmatmul.mubr.msk.f32.vlgmr.msra.gmra.mxu0 %vm474_vm1, %v8356_v0 }
 0xd2b   : > { %7176 = vmatprep.mubr.msk.f32.mxu0 %vm474_vm1, %v8369_v40 }
 0xd2e   : > { %7177 = vmatmul.mubr.msk.f32.gmra.mxu0 %vm474_vm1, %v8380_v52 }
 0xd2f   : > { %3160 = vmatprep.mubr.f32.mxu0 %v7428_v13 }
 0xddc   : > { %v2964_v22 = vpop.f32.mrf.mxu1 }
 0xddd   : > { %v2965_v18 = vadd.f32 %v2964_v22, %v7698_v59 }
 0xdde   : > { %v2966_v56 = vpop.f32.mrf.mxu1 }
 0xddf   : > { %v2967_v44 = vadd.f32 %v2966_v56, %v7698_v59  ;;  %v3072_v47 = vmax.f32 %v2965_v18, 0.0 }
 0xde0   : > { %v2970_v35 = vpop.f32.mrf.mxu1 }
 0xde1   : > { %v2971_v23 = vadd.f32 %v2970_v35, %v7674_v42  ;;  %v3073_v30 = vmax.f32 %v2967_v44, 0.0  ;;  %v3084_v56 = vmul.f32 %v3072_v47, %v7689_v51 }
 0xde2   : > { %v2972_v1 = vpop.f32.mrf.mxu1 }
 0xde3   : > { %v2973_v5 = vadd.f32 %v2972_v1, %v7674_v42  ;;  %v3075_v9 = vmax.f32 %v2971_v23, 0.0  ;;  %v3085_v61 = vmul.f32 %v3073_v30, %v7696_v57 }
 0xde4   : > { %v2976_v29 = vpop.f32.mrf.mxu1 }
 0xde5   : > { %v2977_v0 = vadd.f32 %v2976_v29, %v7672_v41  ;;  %v3076_v31 = vmax.f32 %v2973_v5, 0.0  ;;  %v3087_v43 = vmul.f32 %v3075_v9, %v7689_v51 }
 0xde6   : > { %v2978_v25 = vpop.f32.mrf.mxu1 }
 0xde7   : > { %v2979_v54 = vadd.f32 %v2978_v25, %v7672_v41  ;;  %v3078_v26 = vmax.f32 %v2977_v0, 0.0  ;;  %v3088_v34 = vmul.f32 %v3076_v31, %v7696_v57 }
 0xde8   : > { %v2982_v14 = vpop.f32.mrf.mxu1 }
 0xde9   : > { %v2983_v38 = vadd.f32 %v2982_v14, %v7668_v36  ;;  %v3079_v21 = vmax.f32 %v2979_v54, 0.0  ;;  %v3090_v10 = vmul.f32 %v3078_v26, %v7689_v51 }
 0xdea   : > { %v2984_v6 = vpop.f32.mrf.mxu1  ;;  %v7175_v40 = vpop.f32.mrf.mxu0 }
 0xdeb   : > { %v2985_v52 = vadd.f32 %v2984_v6, %v7668_v36  ;;  %v3081_v27 = vmax.f32 %v2983_v38, 0.0  ;;  %v3059_v32 = vadd.f32 %v7175_v40, %v7674_v42  ;;  %v3091_v33 = vmul.f32 %v3079_v21, %v7696_v57 }
 0xdec   : > { %v3053_v28 = vpop.f32.mrf.mxu0 }
 0xded   : > { %v3082_v62 = vmax.f32 %v2985_v52, 0.0  ;;  %v3093_v8 = vmul.f32 %v3081_v27, %v7689_v51  ;;  %v3054_v37 = vadd.f32 %v3053_v28, %v7698_v59  ;;  %v3077_v12 = vmax.f32 %v3059_v32, 0.0 }
 0xdee   : > { %v7178_v58 = vpop.f32.mrf.mxu0 }
 0xdef   : > { %v3094_v11 = vmul.f32 %v3082_v62, %v7696_v57  ;;  %v3069_v16 = vadd.f32 %v7178_v58, %v7668_v36  ;;  %v3074_v48 = vmax.f32 %v3054_v37, 0.0  ;;  %v3089_v35 = vmul.f32 %v3077_v12, %v7712_v17 }
 0xdf0   : > { %v3063_v7 = vpop.f32.mrf.mxu0 }
 0xdf1   : > { %v3083_v55 = vmax.f32 %v3069_v16, 0.0  ;;  %v3064_v24 = vadd.f32 %v3063_v7, %v7672_v41  ;;  %3120 = vmatprep.subr.mxu0 %v3094_v11  ;;  %v3086_v1 = vmul.f32 %v3074_v48, %v7712_v17 }
 0xdf2   : > { %3121 = vmatpush1.msra.mxu0 %v3093_v8 }
 0xdf3   : > { %v3095_v20 = vmul.f32 %v3083_v55, %v7712_v17  ;;  %v3080_v53 = vmax.f32 %v3064_v24, 0.0  ;;  %3122 = vmatprep.subr.mxu0 %v3091_v33 }
 0xdf4   : > { %3123 = vmatpush1.msra.mxu0 %v3090_v10 }
 0xdf5   : > { %v3092_v22 = vmul.f32 %v3080_v53, %v7712_v17  ;;  %3124 = vmatprep.subr.mxu0 %v3088_v34  ;;  %7180 = vmatpush3.msra.mxu1 %v3095_v20 }
 0xdf6   : > { %3125 = vmatpush1.msra.mxu0 %v3087_v43  ;;  %7181 = vmatprep.subr.mxu1 %v7428_v13 }
 0xdf7   : > { %3126 = vmatprep.subr.mxu0 %v3085_v61  ;;  %7182 = vmatpush3.msra.mxu1 %v3092_v22 }
 0xdf8   : > { %3127 = vmatpush1.msra.mxu0 %v3084_v56  ;;  %7183 = vmatprep.subr.mxu1 %v7428_v13 }
 0xdf9   : > { %7184 = vmatpush3.msra.mxu1 %v3089_v35  ;;  %6806 = vmatmul.mubr.msk.f32.vlgmr.msra.gmra.mxu0 %vm707_vm12, %v8422_v63 }
 0xdfa   : > { %7185 = vmatprep.subr.mxu1 %v7428_v13  ;;  %3166 = vmatprep.mubr.f32.mxu0 %v7428_v13 }
 0xdfb   : > { %7186 = vmatpush3.msra.mxu1 %v3086_v1 }
 0xdfc   : > { %7188 = vmatmul.mubr.msk.f32.vlgmr.msra.gmra.mxu1 %vm707_vm12, %v8422_v63 }
 0xdfd   : > { %7190 = vmatprep.mubr.msk.f32.mxu1 %vm7430_vm11, %v7428_v13  ;;  %6807 = vmatmul.mubr.msk.f32.gmra.mxu0 %vm707_vm12, %v8435_v39 }
 0xdfe   : > { %3172 = vmatprep.mubr.f32.mxu0 %v7428_v13 }
 0xe00   : > { %7191 = vmatmul.mubr.msk.f32.gmra.mxu1 %vm707_vm12, %v8435_v39 }
 0xe01   : > { %7193 = vmatprep.mubr.msk.f32.mxu1 %vm7430_vm11, %v7428_v13  ;;  %6808 = vmatmul.mubr.msk.f32.gmra.mxu0 %vm707_vm12, %v8447_v60 }
 0xe02   : > { %3178 = vmatprep.mubr.f32.mxu0 %v7428_v13 }
 0xe04   : > { %7194 = vmatmul.mubr.msk.f32.gmra.mxu1 %vm707_vm12, %v8447_v60 }
 0xe05   : > { %7196 = vmatprep.mubr.msk.f32.mxu1 %vm7430_vm11, %v7428_v13  ;;  %6809 = vmatmul.mubr.msk.f32.gmra.mxu0 %vm707_vm12, %v8459_v2 }
 0xe06   : > { %3184 = vmatprep.mubr.f32.mxu0 %v7428_v13 }
 0xe08   : > { %7197 = vmatmul.mubr.msk.f32.gmra.mxu1 %vm707_vm12, %v8459_v2 }
 0xe09   : > { %7199 = vmatprep.mubr.msk.f32.mxu1 %vm7430_vm11, %v7428_v13  ;;  %6810 = vmatmul.mubr.msk.f32.gmra.mxu0 %vm707_vm12, %v8471_v19 }
 0xe0a   : > { %3746 = vmatprep.mubr.f32.mxu0 %v7428_v13 }
 0xe0c   : > { %7200 = vmatmul.mubr.msk.f32.gmra.mxu1 %vm707_vm12, %v8471_v19 }
 0xe0d   : > { %7212 = vmatprep.mubr.msk.f32.mxu1 %vm474_vm1, %v8481_v49 }
 0xeb9   : > { %v3162_v63 = vpop.f32.mrf.mxu0 }
 0xebb   : > { %v3164_v60 = vpop.f32.mrf.mxu0 }
 0xebc   : > { %v3257_v39 = vpop.f32.mrf.mxu1 }
 0xebd   : > { %3300 = vrot.lane.b32.xlu1 %v3257_v39, %s7419_s8  ;;  %v3168_v29 = vpop.f32.mrf.mxu0 }
 0xebe   : > { %v7189_v2 = vpop.f32.mrf.mxu1 }
 0xebf   : > { %v3170_v54 = vpop.f32.mrf.mxu0 }
 0xec0   : > { %v3262_v25 = vpop.f32.mrf.mxu1 }
 0xec1   : > { %3306 = vrot.lane.b32.xlu0 %v3262_v25, %s7419_s8  ;;  %v3174_v19 = vpop.f32.mrf.mxu0 }
 0xec2   : > { %v7192_v14 = vpop.f32.mrf.mxu1 }
 0xec3   : > { %v3176_v40 = vpop.f32.mrf.mxu0 }
 0xec4   : > { %v3267_v38 = vpop.f32.mrf.mxu1 }
 0xec5   : > { %3312 = vrot.lane.b32.xlu1 %v3267_v38, %s7419_s8  ;;  %v3180_v44 = vpop.f32.mrf.mxu0 }
 0xec6   : > { %v7195_v0 = vpop.f32.mrf.mxu1 }
 0xec7   : > { %v3182_v23 = vpop.f32.mrf.mxu0 }
 0xec8   : > { %v3272_v6 = vpop.f32.mrf.mxu1 }
 0xec9   : > { %3296 = vrot.lane.b32.xlu1 %v3162_v63, %s7419_s8  ;;  %3318 = vrot.lane.b32.xlu0 %v3272_v6, %s7419_s8  ;;  %v3186_v27 = vpop.f32.mrf.mxu0 }
 0xeca   : > { %v7198_v49 = vpop.f32.mrf.mxu1 }
 0xecb   : > { %v3188_v28 = vpop.f32.mrf.mxu0 }
 0xecc   : > { %v3277_v5 = vpop.f32.mrf.mxu1 }
 0xecd   : > { %3298 = vrot.lane.b32.xlu0 %v3164_v60, %s7419_s8  ;;  %3324 = vrot.lane.b32.xlu1 %v3277_v5, %s7419_s8 }
 0xece   : > { %v7201_v52 = vpop.f32.mrf.mxu1 }
 0xed1   : > { %3302 = vrot.lane.b32.xlu0 %v3168_v29, %s7419_s8  ;;  %3304 = vrot.lane.b32.xlu1 %v3170_v54, %s7419_s8 }
 0xed5   : > { %3310 = vrot.lane.b32.xlu0 %v3176_v40, %s7419_s8  ;;  %3308 = vrot.lane.b32.xlu1 %v3174_v19, %s7419_s8 }
 0xed9   : > { %3314 = vrot.lane.b32.xlu0 %v3180_v44, %s7419_s8  ;;  %3316 = vrot.lane.b32.xlu1 %v3182_v23, %s7419_s8 }
 0xedd   : > { %3322 = vrot.lane.b32.xlu0 %v3188_v28, %s7419_s8  ;;  %3320 = vrot.lane.b32.xlu1 %v3186_v27, %s7419_s8 }
 0xf2f   : > { %v3301_v21 = vpop.permute.xlu1 %3300 }
 0xf30   : > { %v3353_v62 = vsel %vm309_vm0, %v3301_v21, 0.0 }
 0xf31   : > { %v3363_v18 = vrot.slane %v3353_v62, 4 }
 0xf33   : > { %v3307_v26 = vpop.permute.xlu0 %3306  ;;  %3370 = vrot.lane.b32.xlu0 %v3363_v18, %s7426_s15 }
 0xf34   : > { %v3354_v58 = vsel %vm309_vm0, %v3307_v26, 0.0 }
 0xf35   : > { %v3403_v11 = vrot.slane %v3354_v58, 4 }
 0xf37   : > { %v3313_v31 = vpop.permute.xlu1 %3312  ;;  %3389 = vrot.lane.b32.xlu0 %v3354_v58, %s7423_s12 }
 0xf38   : > { %v3355_v30 = vsel %vm309_vm0, %v3313_v31, 0.0 }
 0xf39   : > { %v3443_v7 = vrot.slane %v3355_v30, 4 }
 0xf3b   : > { %v3297_v32 = vpop.permute.xlu1 %3296  ;;  %3410 = vrot.lane.b32.xlu0 %v3403_v11, %s7427_s16  ;;  %v3319_v16 = vpop.permute.xlu0 %3318 }
 0xf3c   : > { %v8826_v47 = vsel %vm309_vm0, 0.0, %v3297_v32  ;;  %v3356_v10 = vsel %vm309_vm0, %v3319_v16, 0.0 }
 0xf3d   : > { %v3360_v12 = vrot.slane %v8826_v47, 4  ;;  %v3483_v52 = vrot.slane %v3356_v10, 4 }
 0xf3f   : > { %3429 = vrot.lane.b32.xlu0 %v3355_v30, %s7422_s11  ;;  %v3299_v9 = vpop.permute.xlu0 %3298  ;;  %v8820_v37 = vpop.permute.xlu1 %3324 }
 0xf40   : > { %v8817_v8 = vsel %vm309_vm0, %v3297_v32, %v3299_v9  ;;  %v8833_v20 = vsel %vm309_vm0, %v3299_v9, %v3301_v21  ;;  %v3357_v21 = vsel %vm309_vm0, %v8820_v37, 0.0 }
 0xf41   : > { %v3361_v33 = vrot.slane %v8817_v8, 4  ;;  %v3362_v43 = vrot.slane %v8833_v20, 4 }
 0xf43   : > { %3450 = vrot.lane.b32.xlu0 %v3443_v7, %s7425_s14  ;;  %v3303_v55 = vpop.permute.xlu0 %3302  ;;  %3366 = vrot.lane.b32.xlu1 %v3361_v33, %s7426_s15  ;;  %v3305_v34 = vpop.permute.xlu1 %3304 }
 0xf44   : > { %v3349_v24 = vsel %vm309_vm0, 0.0, %v3303_v55  ;;  %v3329_v53 = vsel %vm309_vm0, %v3305_v34, %v3307_v26  ;;  %v3328_v22 = vsel %vm309_vm0, %v3303_v55, %v3305_v34 }
 0xf45   : > { %v3400_v61 = vrot.slane %v3349_v24, 4  ;;  %v3402_v48 = vrot.slane %v3329_v53, 4  ;;  %v3401_v1 = vrot.slane %v3328_v22, 4 }
 0xf47   : > { %3469 = vrot.lane.b32.xlu0 %v3356_v10, %s7421_s10  ;;  %3383 = vrot.lane.b32.xlu1 %v3349_v24, %s7423_s12  ;;  %v3309_v56 = vpop.permute.xlu1 %3308  ;;  %v3311_v63 = vpop.permute.xlu0 %3310 }
 0xf48   : > { %v3350_v35 = vsel %vm309_vm0, 0.0, %v3309_v56  ;;  %v3331_v39 = vsel %vm309_vm0, %v3311_v63, %v3313_v31  ;;  %v3330_v60 = vsel %vm309_vm0, %v3309_v56, %v3311_v63 }
 0xf49   : > { %v3440_v2 = vrot.slane %v3350_v35, 4  ;;  %v3441_v29 = vrot.slane %v3330_v60, 4  ;;  %v3442_v38 = vrot.slane %v3331_v39, 4 }
 0xf4b   : > { %3364 = vrot.lane.b32.xlu0 %v3360_v12, %s7426_s15  ;;  %3387 = vrot.lane.b32.xlu1 %v3329_v53, %s7423_s12  ;;  %v3315_v25 = vpop.permute.xlu0 %3314  ;;  %v3317_v14 = vpop.permute.xlu1 %3316 }
 0xf4c   : > { %v3332_v54 = vsel %vm309_vm0, %v3315_v25, %v3317_v14  ;;  %v3351_v19 = vsel %vm309_vm0, 0.0, %v3315_v25  ;;  %v3333_v5 = vsel %vm309_vm0, %v3317_v14, %v3319_v16 }
 0xf4d   : > { %v3481_v0 = vrot.slane %v3332_v54, 4  ;;  %v3480_v44 = vrot.slane %v3351_v19, 4  ;;  %v3482_v23 = vrot.slane %v3333_v5, 4 }
 0xf4f   : > { %3368 = vrot.lane.b32.xlu0 %v3362_v43, %s7426_s15  ;;  %3404 = vrot.lane.b32.xlu1 %v3400_v61, %s7427_s16  ;;  %v3321_v6 = vpop.permute.xlu1 %3320  ;;  %v3323_v49 = vpop.permute.xlu0 %3322 }
 0xf50   : > { %v3334_v40 = vsel %vm309_vm0, %v3321_v6, %v3323_v49  ;;  %v3352_v27 = vsel %vm309_vm0, 0.0, %v3321_v6  ;;  %v3335_v28 = vsel %vm309_vm0, %v3323_v49, %v8820_v37 }
 0xf53   : > { %3408 = vrot.lane.b32.xlu1 %v3402_v48, %s7427_s16  ;;  %3385 = vrot.lane.b32.xlu0 %v3328_v22, %s7423_s12 }
 0xf57   : > { %3406 = vrot.lane.b32.xlu0 %v3401_v1, %s7427_s16  ;;  %3423 = vrot.lane.b32.xlu1 %v3350_v35, %s7422_s11 }
 0xf5b   : > { %3427 = vrot.lane.b32.xlu1 %v3331_v39, %s7422_s11  ;;  %3425 = vrot.lane.b32.xlu0 %v3330_v60, %s7422_s11 }
 0xf5f   : > { %3444 = vrot.lane.b32.xlu1 %v3440_v2, %s7425_s14  ;;  %3446 = vrot.lane.b32.xlu0 %v3441_v29, %s7425_s14 }
 0xf63   : > { %3448 = vrot.lane.b32.xlu1 %v3442_v38, %s7425_s14  ;;  %3465 = vrot.lane.b32.xlu0 %v3332_v54, %s7421_s10 }
 0xf67   : > { %3463 = vrot.lane.b32.xlu1 %v3351_v19, %s7421_s10  ;;  %3486 = vrot.lane.b32.xlu0 %v3481_v0, %s7424_s13 }
 0xf6b   : > { %3467 = vrot.lane.b32.xlu1 %v3333_v5, %s7421_s10  ;;  %3505 = vrot.lane.b32.xlu0 %v3334_v40, %s7420_s9 }
 0xf6f   : > { %3484 = vrot.lane.b32.xlu1 %v3480_v44, %s7424_s13  ;;  %3490 = vrot.lane.b32.xlu0 %v3483_v52, %s7424_s13 }
 0xf73   : > { %3488 = vrot.lane.b32.xlu1 %v3482_v23, %s7424_s13 }
 0xf77   : > { %3503 = vrot.lane.b32.xlu1 %v3352_v27, %s7420_s9 }
 0xf7b   : > { %3507 = vrot.lane.b32.xlu1 %v3335_v28, %s7420_s9 }
 0xf7f   : > { %3509 = vrot.lane.b32.xlu1 %v3357_v21, %s7420_s9 }
 0xfa5   : > { %v3371_v62 = vpop.permute.xlu0 %3370 }
 0xfa9   : > { %v3390_v18 = vpop.permute.xlu0 %3389 }
 0xfad   : > { %v3411_v26 = vpop.permute.xlu0 %3410 }
 0xfb1   : > { %v3430_v58 = vpop.permute.xlu0 %3429 }
 0xfb5   : > { %v3451_v31 = vpop.permute.xlu0 %3450  ;;  %v3367_v11 = vpop.permute.xlu1 %3366 }
 0xfb9   : > { %v3470_v32 = vpop.permute.xlu0 %3469  ;;  %v3384_v16 = vpop.permute.xlu1 %3383 }
 0xfbd   : > { %v3365_v30 = vpop.permute.xlu0 %3364  ;;  %v3388_v9 = vpop.permute.xlu1 %3387 }
 0xfbe   : > { %v3372_v22 = vsel %vm332_vm10, %v3365_v30, %v3367_v11  ;;  %v3393_v52 = vsel %vm347_vm9, %v3388_v9, %v3390_v18 }
 0xfbf   : > { %v3378_v1 = vadd.f32 %v3372_v22, %v8826_v47 }
 0xfc1   : > { %v3369_v7 = vpop.permute.xlu0 %3368  ;;  %v3405_v33 = vpop.permute.xlu1 %3404 }
 0xfc2   : > { %v3373_v39 = vsel %vm332_vm10, %v3367_v11, %v3369_v7  ;;  %v3374_v60 = vsel %vm332_vm10, %v3369_v7, %v3371_v62 }
 0xfc3   : > { %v3379_v54 = vadd.f32 %v3373_v39, %v8817_v8  ;;  %v3380_v38 = vadd.f32 %v3374_v60, %v8833_v20 }
 0xfc5   : > { %v3386_v55 = vpop.permute.xlu0 %3385  ;;  %v3409_v24 = vpop.permute.xlu1 %3408  ;;  %v3399_v27 = vadd.f32 %v3393_v52, %v3380_v38 }
 0xfc6   : > { %v3391_v35 = vsel %vm347_vm9, %v3384_v16, %v3386_v55  ;;  %v3392_v25 = vsel %vm347_vm9, %v3386_v55, %v3388_v9  ;;  %v3414_v20 = vsel %vm362_vm8, %v3409_v24, %v3411_v26 }
 0xfc7   : > { %v3397_v29 = vadd.f32 %v3391_v35, %v3378_v1  ;;  %v3398_v40 = vadd.f32 %v3392_v25, %v3379_v54  ;;  %v3420_v9 = vadd.f32 %v3414_v20, %v3399_v27 }
 0xfc9   : > { %v3407_v10 = vpop.permute.xlu0 %3406  ;;  %v3424_v34 = vpop.permute.xlu1 %3423 }
 0xfca   : > { %v3412_v2 = vsel %vm362_vm8, %v3405_v33, %v3407_v10  ;;  %v3413_v47 = vsel %vm362_vm8, %v3407_v10, %v3409_v24 }
 0xfcb   : > { %v3418_v0 = vadd.f32 %v3412_v2, %v3397_v29  ;;  %v3419_v28 = vadd.f32 %v3413_v47, %v3398_v40 }
 0xfcd   : > { %v3428_v12 = vpop.permute.xlu1 %3427  ;;  %v3426_v37 = vpop.permute.xlu0 %3425 }
 0xfce   : > { %v3431_v14 = vsel %vm377_vm7, %v3424_v34, %v3426_v37  ;;  %v3432_v44 = vsel %vm377_vm7, %v3426_v37, %v3428_v12  ;;  %v3433_v33 = vsel %vm377_vm7, %v3428_v12, %v3430_v58 }
 0xfcf   : > { %v3437_v5 = vadd.f32 %v3431_v14, %v3418_v0  ;;  %v3438_v16 = vadd.f32 %v3432_v44, %v3419_v28  ;;  %v3439_v24 = vadd.f32 %v3433_v33, %v3420_v9 }
 0xfd1   : > { %v3445_v53 = vpop.permute.xlu1 %3444  ;;  %v3447_v43 = vpop.permute.xlu0 %3446 }
 0xfd2   : > { %v3452_v49 = vsel %vm392_vm6, %v3445_v53, %v3447_v43 }
 0xfd3   : > { %v3458_v8 = vadd.f32 %v3452_v49, %v3437_v5 }
 0xfd5   : > { %v3449_v61 = vpop.permute.xlu1 %3448  ;;  %v3466_v56 = vpop.permute.xlu0 %3465 }
 0xfd6   : > { %v3453_v62 = vsel %vm392_vm6, %v3447_v43, %v3449_v61  ;;  %v3454_v37 = vsel %vm392_vm6, %v3449_v61, %v3451_v31 }
 0xfd7   : > { %v3459_v55 = vadd.f32 %v3453_v62, %v3438_v16  ;;  %v3460_v35 = vadd.f32 %v3454_v37, %v3439_v24 }
 0xfd9   : > { %v3464_v48 = vpop.permute.xlu1 %3463  ;;  %v3487_v19 = vpop.permute.xlu0 %3486 }
 0xfda   : > { %v3471_v23 = vsel %vm407_vm4, %v3464_v48, %v3466_v56 }
 0xfdb   : > { %v3477_v30 = vadd.f32 %v3471_v23, %v3458_v8 }
 0xfdd   : > { %v3468_v63 = vpop.permute.xlu1 %3467  ;;  %v3506_v7 = vpop.permute.xlu0 %3505 }
 0xfde   : > { %v3472_v18 = vsel %vm407_vm4, %v3466_v56, %v3468_v63  ;;  %v3473_v22 = vsel %vm407_vm4, %v3468_v63, %v3470_v32 }
 0xfdf   : > { %v3478_v43 = vadd.f32 %v3472_v18, %v3459_v55  ;;  %v3479_v60 = vadd.f32 %v3473_v22, %v3460_v35 }
 0xfe1   : > { %v3485_v6 = vpop.permute.xlu1 %3484  ;;  %v3491_v1 = vpop.permute.xlu0 %3490 }
 0xfe2   : > { %v3492_v11 = vsel %vm422_vm5, %v3485_v6, %v3487_v19 }
 0xfe3   : > { %v3498_v10 = vadd.f32 %v3492_v11, %v3477_v30 }
 0xfe5   : > { %v3489_v21 = vpop.permute.xlu1 %3488 }
 0xfe6   : > { %v3493_v53 = vsel %vm422_vm5, %v3487_v19, %v3489_v21  ;;  %v3494_v56 = vsel %vm422_vm5, %v3489_v21, %v3491_v1 }
 0xfe7   : > { %v3499_v58 = vadd.f32 %v3493_v53, %v3478_v43  ;;  %v3500_v2 = vadd.f32 %v3494_v56, %v3479_v60 }
 0xfe9   : > { %v3504_v34 = vpop.permute.xlu1 %3503 }
 0xfea   : > { %v3511_v26 = vsel %vm437_vm2, %v3504_v34, %v3506_v7 }
 0xfeb   : > { %v3517_v48 = vadd.f32 %v3511_v26, %v3498_v10 }
 0xfed   : > { %v3508_v12 = vpop.permute.xlu1 %3507  ;;  %v3520_v31 = vadd.f32 %v3517_v48, %v7803_v15 }
 0xfee   : > { %v3512_v39 = vsel %vm437_vm2, %v3506_v7, %v3508_v12 }
 0xfef   : > { %v3518_v61 = vadd.f32 %v3512_v39, %v3499_v58  ;;  %v3523_v32 = vmul.f32 %v3520_v31, %v7904_v45 }
 0xff1   : > { %v3521_v29 = vadd.f32 %v3518_v61, %v7803_v15  ;;  %v3510_v25 = vpop.permute.xlu1 %3509 }
 0xff2   : > { %v3513_v14 = vsel %vm437_vm2, %v3508_v12, %v3510_v25 }
 0xff3   : > { %v3524_v63 = vmul.f32 %v3521_v29, %v7908_v50  ;;  %v3519_v54 = vadd.f32 %v3513_v14, %v3500_v2 }
 0xff5   : > { %v3522_v38 = vadd.f32 %v3519_v54, %v7803_v15  ;;  %v3528_v0 = vcombine.low %v3523_v32, %v3524_v63 }
 0xff7   : > { %v3525_v19 = vmul.f32 %v3522_v38, %v7918_v46  ;;  %v8908_v6 = vadd.f32 %v3528_v0, %v8599_v3 }
 0xff9   : > { %3535 = vrot.lane.b32.xlu0 %v8908_v6, %s7419_s8  ;;  %v3534_v47 = vcombine.high %v8908_v6, %v8908_v6  ;;  %v8916_v49 = vadd.f32 %v3525_v19, %v8607_v4 }
 0xffb   : > { %3537 = vrot.lane.b32.xlu1 %v3534_v47, %s7419_s8 }
 0xffd   : > { %3539 = vrot.lane.b32.xlu0 %v8916_v49, %s7419_s8 }
0x106b   : > { %v3536_v40 = vpop.permute.xlu0 %3535 }
0x106c   : > { %v8921_v5 = vsel %vm309_vm0, 0.0, %v3536_v40 }
0x106d   : > { %3625 = vrot.lane.b32.xlu0 %v8921_v5, %s7421_s10  ;;  %v3538_v4 = vpop.permute.xlu1 %3537  ;;  %v3551_v27 = vrot.slane %v8921_v5, 4 }
0x106e   : > { %v8934_v44 = vsel %vm309_vm0, %v3536_v40, %v3538_v4 }
0x106f   : > { %v3540_v3 = vpop.permute.xlu0 %3539  ;;  %v3552_v8 = vrot.slane %v8934_v44, 4 }
0x1070   : > { %v3548_v52 = vsel %vm309_vm0, %v3540_v3, 0.0  ;;  %v8937_v23 = vsel %vm309_vm0, %v3538_v4, %v3540_v3 }
0x1071   : > { %3597 = vrot.lane.b32.xlu0 %v8921_v5, %s7422_s11  ;;  %3659 = vrot.lane.b32.xlu1 %v3548_v52, %s7420_s9  ;;  %v3553_v28 = vrot.slane %v8937_v23, 4  ;;  %v3554_v21 = vrot.slane %v3548_v52, 4 }
0x1075   : > { %3569 = vrot.lane.b32.xlu0 %v8921_v5, %s7423_s12  ;;  %3653 = vrot.lane.b32.xlu1 %v8921_v5, %s7420_s9 }
0x1079   : > { %3657 = vrot.lane.b32.xlu0 %v8937_v23, %s7420_s9  ;;  %3655 = vrot.lane.b32.xlu1 %v8934_v44, %s7420_s9 }
0x107d   : > { %3629 = vrot.lane.b32.xlu0 %v8937_v23, %s7421_s10  ;;  %3627 = vrot.lane.b32.xlu1 %v8934_v44, %s7421_s10 }
0x1081   : > { %3599 = vrot.lane.b32.xlu0 %v8934_v44, %s7422_s11  ;;  %3639 = vrot.lane.b32.xlu1 %v3551_v27, %s7424_s13 }
0x1085   : > { %3571 = vrot.lane.b32.xlu0 %v8934_v44, %s7423_s12  ;;  %3601 = vrot.lane.b32.xlu1 %v8937_v23, %s7422_s11 }
0x1089   : > { %3555 = vrot.lane.b32.xlu0 %v3551_v27, %s7426_s15  ;;  %3611 = vrot.lane.b32.xlu1 %v3551_v27, %s7425_s14 }
0x108d   : > { %3643 = vrot.lane.b32.xlu0 %v3553_v28, %s7424_s13  ;;  %3573 = vrot.lane.b32.xlu1 %v8937_v23, %s7423_s12 }
0x1091   : > { %3583 = vrot.lane.b32.xlu1 %v3551_v27, %s7427_s16  ;;  %3613 = vrot.lane.b32.xlu0 %v3552_v8, %s7425_s14 }
0x1095   : > { %3585 = vrot.lane.b32.xlu0 %v3552_v8, %s7427_s16  ;;  %3641 = vrot.lane.b32.xlu1 %v3552_v8, %s7424_s13 }
0x1099   : > { %3557 = vrot.lane.b32.xlu0 %v3552_v8, %s7426_s15  ;;  %3615 = vrot.lane.b32.xlu1 %v3553_v28, %s7425_s14 }
0x109d   : > { %3631 = vrot.lane.b32.xlu0 %v3548_v52, %s7421_s10  ;;  %3587 = vrot.lane.b32.xlu1 %v3553_v28, %s7427_s16 }
0x10a1   : > { %3603 = vrot.lane.b32.xlu0 %v3548_v52, %s7422_s11  ;;  %3559 = vrot.lane.b32.xlu1 %v3553_v28, %s7426_s15 }
0x10a5   : > { %3575 = vrot.lane.b32.xlu0 %v3548_v52, %s7423_s12  ;;  %3645 = vrot.lane.b32.xlu1 %v3554_v21, %s7424_s13 }
0x10a9   : > { %3561 = vrot.lane.b32.xlu0 %v3554_v21, %s7426_s15  ;;  %3617 = vrot.lane.b32.xlu1 %v3554_v21, %s7425_s14 }
0x10ad   : > { %3589 = vrot.lane.b32.xlu1 %v3554_v21, %s7427_s16 }
0x10df   : > { %v3626_v20 = vpop.permute.xlu0 %3625 }
0x10e3   : > { %v3598_v62 = vpop.permute.xlu0 %3597  ;;  %v3660_v11 = vpop.permute.xlu1 %3659 }
0x10e7   : > { %v3570_v16 = vpop.permute.xlu0 %3569  ;;  %v3654_v30 = vpop.permute.xlu1 %3653 }
0x10eb   : > { %v3658_v7 = vpop.permute.xlu0 %3657  ;;  %v3656_v33 = vpop.permute.xlu1 %3655 }
0x10ec   : > { %v3661_v18 = vsel %vm437_vm2, %v3654_v30, %v3656_v33  ;;  %v3662_v9 = vsel %vm437_vm2, %v3656_v33, %v3658_v7  ;;  %v3663_v55 = vsel %vm437_vm2, %v3658_v7, %v3660_v11 }
0x10ed   : > { %6816 = vmatprep.subr.msk.mxu0 %vm441_vm3, %v3662_v9  ;;  %7202 = vmatprep.subr.msk.mxu1 %vm441_vm3, %v3663_v55 }
0x10ee   : > { %6817 = vmatpush1.msk.msra.mxu0 %vm441_vm3, %v3661_v18  ;;  %7203 = vmatpush3.msk.msra.mxu1 %vm441_vm3, %v3663_v55  ;;  %v9016_v55 = vld [vmem:[%s10252_s2] sm:$0xff] }
0x10ef   : > { %v3630_v10 = vpop.permute.xlu0 %3629  ;;  %v3628_v34 = vpop.permute.xlu1 %3627 }
0x10f0   : > { %v3633_v39 = vsel %vm407_vm4, %v3626_v20, %v3628_v34  ;;  %v3634_v60 = vsel %vm407_vm4, %v3628_v34, %v3630_v10 }
0x10f3   : > { %v3600_v37 = vpop.permute.xlu0 %3599  ;;  %v3640_v53 = vpop.permute.xlu1 %3639 }
0x10f4   : > { %v3605_v38 = vsel %vm377_vm7, %v3598_v62, %v3600_v37 }
0x10f7   : > { %v3572_v26 = vpop.permute.xlu0 %3571  ;;  %v3602_v24 = vpop.permute.xlu1 %3601 }
0x10f8   : > { %v3606_v63 = vsel %vm377_vm7, %v3600_v37, %v3602_v24  ;;  %v3577_v27 = vsel %vm347_vm9, %v3570_v16, %v3572_v26  ;;  %v9028_v37 = vld [vmem:[%s10252_s2 + $0x8] sm:$0xff] }
0x10fb   : > { %v3556_v43 = vpop.permute.xlu0 %3555  ;;  %v3612_v48 = vpop.permute.xlu1 %3611 }
0x10ff   : > { %v3644_v22 = vpop.permute.xlu0 %3643  ;;  %v8984_v35 = vpop.permute.xlu1 %3573 }
0x1100   : > { %v3578_v52 = vsel %vm347_vm9, %v3572_v26, %v8984_v35 }
0x1103   : > { %v3614_v1 = vpop.permute.xlu0 %3613  ;;  %v3584_v58 = vpop.permute.xlu1 %3583 }
0x1104   : > { %v3619_v25 = vsel %vm392_vm6, %v3612_v48, %v3614_v1 }
0x1105   : > { %v3670_v19 = vsel %vm441_vm3, %v3605_v38, %v3619_v25 }
0x1107   : > { %v3586_v12 = vpop.permute.xlu0 %3585  ;;  %v3642_v56 = vpop.permute.xlu1 %3641 }
0x1108   : > { %v3647_v31 = vsel %vm422_vm5, %v3640_v53, %v3642_v56  ;;  %v3648_v61 = vsel %vm422_vm5, %v3642_v56, %v3644_v22  ;;  %v3591_v47 = vsel %vm362_vm8, %v3584_v58, %v3586_v12 }
0x1109   : > { %v3674_v2 = vsel %vm441_vm3, %v3634_v60, %v3648_v61  ;;  %v3673_v29 = vsel %vm441_vm3, %v3633_v39, %v3647_v31  ;;  %v3667_v8 = vsel %vm441_vm3, %v3577_v27, %v3591_v47 }
0x110a   : > { %3706 = vmatprep.subr.mxu0 %v3674_v2 }
0x110b   : > { %v3558_v14 = vpop.permute.xlu0 %3557  ;;  %3707 = vmatpush1.msra.mxu0 %v3673_v29  ;;  %v3616_v32 = vpop.permute.xlu1 %3615 }
0x110c   : > { %v3620_v54 = vsel %vm392_vm6, %v3614_v1, %v3616_v32  ;;  %v3563_v21 = vsel %vm332_vm10, %v3556_v43, %v3558_v14  ;;  %v9041_v1 = vld [vmem:[%s10252_s2 + $0x10] sm:$0xff] }
0x110d   : > { %v3671_v0 = vsel %vm441_vm3, %v3606_v63, %v3620_v54  ;;  %v3664_v7 = vsel %vm441_vm3, %v8921_v5, %v3563_v21 }
0x110e   : > { %3708 = vmatprep.subr.mxu0 %v3671_v0 }
0x110f   : > { %v3632_v40 = vpop.permute.xlu0 %3631  ;;  %3709 = vmatpush1.msra.mxu0 %v3670_v19  ;;  %v3588_v3 = vpop.permute.xlu1 %3587 }
0x1110   : > { %v3592_v4 = vsel %vm362_vm8, %v3586_v12, %v3588_v3  ;;  %v3635_v18 = vsel %vm407_vm4, %v3630_v10, %v3632_v40  ;;  %v9052_v12 = vld [vmem:[%s10252_s2 + $0x18] sm:$0xff] }
0x1111   : > { %v3668_v28 = vsel %vm441_vm3, %v3578_v52, %v3592_v4 }
0x1112   : > { %3710 = vmatprep.subr.mxu0 %v3668_v28 }
0x1113   : > { %v3604_v20 = vpop.permute.xlu0 %3603  ;;  %3711 = vmatpush1.msra.mxu0 %v3667_v8  ;;  %v3560_v62 = vpop.permute.xlu1 %3559 }
0x1114   : > { %v3564_v11 = vsel %vm332_vm10, %v3558_v14, %v3560_v62  ;;  %v3607_v10 = vsel %vm377_vm7, %v3602_v24, %v3604_v20 }
0x1115   : > { %v3665_v30 = vsel %vm441_vm3, %v8934_v44, %v3564_v11 }
0x1116   : > { %3712 = vmatprep.subr.mxu0 %v3665_v30 }
0x1117   : > { %v3576_v16 = vpop.permute.xlu0 %3575  ;;  %3713 = vmatpush1.msra.mxu0 %v3664_v7  ;;  %v3646_v33 = vpop.permute.xlu1 %3645 }
0x1118   : > { %v3649_v9 = vsel %vm422_vm5, %v3644_v22, %v3646_v33  ;;  %6818 = vmatmul.mubr.msk.f32.vlgmr.msra.gmra.mxu0 %vm474_vm1, %v9016_v55  ;;  %7218 = vmatprep.subr.mxu0 %v7428_v13  ;;  %v3579_v24 = vsel %vm347_vm9, %v8984_v35, %v3576_v16 }
0x1119   : > { %v3675_v44 = vsel %vm441_vm3, %v3635_v18, %v3649_v9  ;;  %3752 = vmatprep.mubr.f32.mxu0 %v7428_v13 }
0x111a   : > { %7204 = vmatprep.subr.mxu1 %v3675_v44 }
0x111b   : > { %7205 = vmatpush3.msra.mxu1 %v3675_v44  ;;  %v3618_v5 = vpop.permute.xlu1 %3617  ;;  %v3562_v53 = vpop.permute.xlu0 %3561 }
0x111c   : > { %v3621_v34 = vsel %vm392_vm6, %v3616_v32, %v3618_v5  ;;  %6819 = vmatmul.mubr.msk.f32.gmra.mxu0 %vm474_vm1, %v9028_v37  ;;  %v3565_v48 = vsel %vm332_vm10, %v3560_v62, %v3562_v53 }
0x111d   : > { %v3672_v26 = vsel %vm441_vm3, %v3607_v10, %v3621_v34  ;;  %3758 = vmatprep.mubr.f32.mxu0 %v7428_v13  ;;  %v3666_v35 = vsel %vm441_vm3, %v8937_v23, %v3565_v48 }
0x111e   : > { %7206 = vmatprep.subr.mxu1 %v3672_v26 }
0x111f   : > { %7207 = vmatpush3.msra.mxu1 %v3672_v26  ;;  %v3590_v43 = vpop.permute.xlu1 %3589 }
0x1120   : > { %v3593_v22 = vsel %vm362_vm8, %v3588_v3, %v3590_v43  ;;  %6820 = vmatmul.mubr.msk.f32.gmra.mxu0 %vm474_vm1, %v9041_v1 }
0x1121   : > { %v3669_v58 = vsel %vm441_vm3, %v3579_v24, %v3593_v22  ;;  %3764 = vmatprep.mubr.f32.mxu0 %v7428_v13 }
0x1122   : > { %7208 = vmatprep.subr.mxu1 %v3669_v58 }
0x1123   : > { %7209 = vmatpush3.msra.mxu1 %v3669_v58 }
0x1124   : > { %6821 = vmatmul.mubr.msk.f32.gmra.mxu0 %vm474_vm1, %v9052_v12  ;;  %7210 = vmatprep.subr.mxu1 %v3666_v35 }
0x1125   : > { %7211 = vmatpush3.msra.mxu1 %v3666_v35  ;;  %7226 = vmatprep.mubr.msk.f32.mxu0 %vm7430_vm11, %v7428_v13 }
0x1126   : > { %7213 = vmatmul.mubr.msk.f32.vlgmr.msra.gmra.mxu1 %vm474_vm1, %v9028_v37 }
0x1127   : > { %7215 = vmatprep.mubr.msk.f32.mxu1 %vm474_vm1, %v9041_v1 }
0x112a   : > { %7216 = vmatmul.mubr.msk.f32.gmra.mxu1 %vm474_vm1, %v9052_v12 }
0x112b   : > { %3944 = vmatprep.mubr.f32.mxu1 %v7428_v13 }
0x11d8   : > { %v3748_v23 = vpop.f32.mrf.mxu0 }
0x11d9   : > { %v3749_v4 = vadd.f32 %v3748_v23, %v7698_v59 }
0x11da   : > { %v3750_v56 = vpop.f32.mrf.mxu0 }
0x11db   : > { %v3751_v0 = vadd.f32 %v3750_v56, %v7698_v59  ;;  %v3856_v5 = vmax.f32 %v3749_v4, 0.0 }
0x11dc   : > { %v3754_v39 = vpop.f32.mrf.mxu0 }
0x11dd   : > { %v3755_v19 = vadd.f32 %v3754_v39, %v7674_v42  ;;  %v3857_v11 = vmax.f32 %v3751_v0, 0.0  ;;  %v3868_v35 = vmul.f32 %v3856_v5, %v7689_v51  ;;  %v9094_v39 = vld [vmem:[%s10254_s4] sm:$0xff] }
0x11de   : > { %v3756_v60 = vpop.f32.mrf.mxu0 }
0x11df   : > { %v3757_v54 = vadd.f32 %v3756_v60, %v7674_v42  ;;  %v3859_v30 = vmax.f32 %v3755_v19, 0.0  ;;  %v3869_v48 = vmul.f32 %v3857_v11, %v7696_v57  ;;  %v9107_v60 = vld [vmem:[%s10254_s4 + $0x8] sm:$0xff] }
0x11e0   : > { %v3760_v31 = vpop.f32.mrf.mxu0 }
0x11e1   : > { %v3761_v14 = vadd.f32 %v3760_v31, %v7672_v41  ;;  %v3860_v8 = vmax.f32 %v3757_v54, 0.0  ;;  %v3871_v24 = vmul.f32 %v3859_v30, %v7689_v51  ;;  %v9119_v31 = vld [vmem:[%s10254_s4 + $0x10] sm:$0xff] }
0x11e2   : > { %v3762_v61 = vpop.f32.mrf.mxu0 }
0x11e3   : > { %v3763_v29 = vadd.f32 %v3762_v61, %v7672_v41  ;;  %v3862_v27 = vmax.f32 %v3761_v14, 0.0  ;;  %v3872_v34 = vmul.f32 %v3860_v8, %v7696_v57  ;;  %v9131_v61 = vld [vmem:[%s10254_s4 + $0x18] sm:$0xff] }
0x11e4   : > { %v3766_v2 = vpop.f32.mrf.mxu0 }
0x11e5   : > { %v3767_v25 = vadd.f32 %v3766_v2, %v7668_v36  ;;  %v3863_v3 = vmax.f32 %v3763_v29, 0.0  ;;  %v3874_v10 = vmul.f32 %v3862_v27, %v7689_v51  ;;  %v9143_v2 = vld [vmem:[%s10254_s4 + $0x20] sm:$0xf] }
0x11e6   : > { %v3768_v32 = vpop.f32.mrf.mxu0  ;;  %v7214_v63 = vpop.f32.mrf.mxu1 }
0x11e7   : > { %v3769_v38 = vadd.f32 %v3768_v32, %v7668_v36  ;;  %v3865_v47 = vmax.f32 %v3767_v25, 0.0  ;;  %v3843_v20 = vadd.f32 %v7214_v63, %v7674_v42  ;;  %v3875_v33 = vmul.f32 %v3863_v3, %v7696_v57 }
0x11e8   : > { %v3837_v40 = vpop.f32.mrf.mxu1 }
0x11e9   : > { %v3866_v52 = vmax.f32 %v3769_v38, 0.0  ;;  %v3877_v7 = vmul.f32 %v3865_v47, %v7689_v51  ;;  %v3838_v18 = vadd.f32 %v3837_v40, %v7698_v59  ;;  %v3861_v53 = vmax.f32 %v3843_v20, 0.0 }
0x11ea   : > { %v7217_v28 = vpop.f32.mrf.mxu1 }
0x11eb   : > { %v3878_v21 = vmul.f32 %v3866_v52, %v7696_v57  ;;  %v3853_v62 = vadd.f32 %v7217_v28, %v7668_v36  ;;  %v3858_v22 = vmax.f32 %v3838_v18, 0.0  ;;  %v3873_v23 = vmul.f32 %v3861_v53, %v7712_v17 }
0x11ec   : > { %v3847_v16 = vpop.f32.mrf.mxu1 }
0x11ed   : > { %v3867_v9 = vmax.f32 %v3853_v62, 0.0  ;;  %v3848_v44 = vadd.f32 %v3847_v16, %v7672_v41  ;;  %3904 = vmatprep.subr.mxu1 %v3878_v21  ;;  %v3870_v56 = vmul.f32 %v3858_v22, %v7712_v17 }
0x11ee   : > { %3905 = vmatpush1.msra.mxu1 %v3877_v7 }
0x11ef   : > { %v3879_v26 = vmul.f32 %v3867_v9, %v7712_v17  ;;  %v3864_v43 = vmax.f32 %v3848_v44, 0.0  ;;  %3906 = vmatprep.subr.mxu1 %v3875_v33 }
0x11f0   : > { %3907 = vmatpush1.msra.mxu1 %v3874_v10 }
0x11f1   : > { %v3876_v58 = vmul.f32 %v3864_v43, %v7712_v17  ;;  %3908 = vmatprep.subr.mxu1 %v3872_v34  ;;  %7219 = vmatpush3.msra.mxu0 %v3879_v26 }
0x11f2   : > { %3909 = vmatpush1.msra.mxu1 %v3871_v24  ;;  %7220 = vmatprep.subr.mxu0 %v7428_v13 }
0x11f3   : > { %3910 = vmatprep.subr.mxu1 %v3869_v48  ;;  %7221 = vmatpush3.msra.mxu0 %v3876_v58 }
0x11f4   : > { %3911 = vmatpush1.msra.mxu1 %v3868_v35  ;;  %7222 = vmatprep.subr.mxu0 %v7428_v13 }
0x11f5   : > { %7223 = vmatpush3.msra.mxu0 %v3873_v23  ;;  %6827 = vmatmul.mubr.msk.f32.vlgmr.msra.gmra.mxu1 %vm707_vm12, %v9094_v39 }
0x11f6   : > { %7224 = vmatprep.subr.mxu0 %v7428_v13  ;;  %3950 = vmatprep.mubr.f32.mxu1 %v7428_v13 }
0x11f7   : > { %7225 = vmatpush3.msra.mxu0 %v3870_v56 }
0x11f8   : > { %7227 = vmatmul.mubr.msk.f32.vlgmr.msra.gmra.mxu0 %vm707_vm12, %v9094_v39 }
0x11f9   : > { %7229 = vmatprep.mubr.msk.f32.mxu0 %vm7430_vm11, %v7428_v13  ;;  %6828 = vmatmul.mubr.msk.f32.gmra.mxu1 %vm707_vm12, %v9107_v60 }
0x11fa   : > { %3956 = vmatprep.mubr.f32.mxu1 %v7428_v13 }
0x11fc   : > { %7230 = vmatmul.mubr.msk.f32.gmra.mxu0 %vm707_vm12, %v9107_v60 }
0x11fd   : > { %7232 = vmatprep.mubr.msk.f32.mxu0 %vm7430_vm11, %v7428_v13  ;;  %6829 = vmatmul.mubr.msk.f32.gmra.mxu1 %vm707_vm12, %v9119_v31 }
0x11fe   : > { %3962 = vmatprep.mubr.f32.mxu1 %v7428_v13 }
0x1200   : > { %7233 = vmatmul.mubr.msk.f32.gmra.mxu0 %vm707_vm12, %v9119_v31 }
0x1201   : > { %7235 = vmatprep.mubr.msk.f32.mxu0 %vm7430_vm11, %v7428_v13  ;;  %6830 = vmatmul.mubr.msk.f32.gmra.mxu1 %vm707_vm12, %v9131_v61 }
0x1202   : > { %3968 = vmatprep.mubr.f32.mxu1 %v7428_v13 }
0x1204   : > { %7236 = vmatmul.mubr.msk.f32.gmra.mxu0 %vm707_vm12, %v9131_v61 }
0x1205   : > { %7238 = vmatprep.mubr.msk.f32.mxu0 %vm7430_vm11, %v7428_v13  ;;  %6831 = vmatmul.mubr.msk.f32.gmra.mxu1 %vm707_vm12, %v9143_v2 }
0x1206   : > { %4530 = vmatprep.mubr.f32.mxu1 %v7428_v13 }
0x1208   : > { %7239 = vmatmul.mubr.msk.f32.gmra.mxu0 %vm707_vm12, %v9143_v2 }
0x1209   : > { %7251 = vmatprep.mubr.msk.f32.mxu0 %vm474_vm1, %v9016_v55 }
0x12b5   : > { %v3946_v29 = vpop.f32.mrf.mxu1 }
0x12b7   : > { %v3948_v14 = vpop.f32.mrf.mxu1 }
0x12b8   : > { %v4041_v25 = vpop.f32.mrf.mxu0 }
0x12b9   : > { %4084 = vrot.lane.b32.xlu1 %v4041_v25, %s7419_s8  ;;  %v3952_v63 = vpop.f32.mrf.mxu1 }
0x12ba   : > { %v7228_v32 = vpop.f32.mrf.mxu0 }
0x12bb   : > { %v3954_v0 = vpop.f32.mrf.mxu1 }
0x12bc   : > { %v4046_v54 = vpop.f32.mrf.mxu0 }
0x12bd   : > { %4090 = vrot.lane.b32.xlu0 %v4046_v54, %s7419_s8  ;;  %v3958_v40 = vpop.f32.mrf.mxu1 }
0x12be   : > { %v7231_v38 = vpop.f32.mrf.mxu0 }
0x12bf   : > { %v3960_v4 = vpop.f32.mrf.mxu1 }
0x12c0   : > { %v4051_v19 = vpop.f32.mrf.mxu0 }
0x12c1   : > { %4096 = vrot.lane.b32.xlu1 %v4051_v19, %s7419_s8  ;;  %v3964_v8 = vpop.f32.mrf.mxu1 }
0x12c2   : > { %v7234_v47 = vpop.f32.mrf.mxu0 }
0x12c3   : > { %v3966_v21 = vpop.f32.mrf.mxu1 }
0x12c4   : > { %v4056_v3 = vpop.f32.mrf.mxu0 }
0x12c5   : > { %4080 = vrot.lane.b32.xlu1 %v3946_v29, %s7419_s8  ;;  %4102 = vrot.lane.b32.xlu0 %v4056_v3, %s7419_s8  ;;  %v3970_v20 = vpop.f32.mrf.mxu1 }
0x12c6   : > { %v7237_v52 = vpop.f32.mrf.mxu0 }
0x12c7   : > { %v3972_v62 = vpop.f32.mrf.mxu1 }
0x12c8   : > { %v4061_v27 = vpop.f32.mrf.mxu0 }
0x12c9   : > { %4082 = vrot.lane.b32.xlu0 %v3948_v14, %s7419_s8  ;;  %4108 = vrot.lane.b32.xlu1 %v4061_v27, %s7419_s8 }
0x12ca   : > { %v7240_v28 = vpop.f32.mrf.mxu0 }
0x12cd   : > { %4086 = vrot.lane.b32.xlu0 %v3952_v63, %s7419_s8  ;;  %4088 = vrot.lane.b32.xlu1 %v3954_v0, %s7419_s8 }
0x12d1   : > { %4094 = vrot.lane.b32.xlu0 %v3960_v4, %s7419_s8  ;;  %4092 = vrot.lane.b32.xlu1 %v3958_v40, %s7419_s8 }
0x12d5   : > { %4098 = vrot.lane.b32.xlu0 %v3964_v8, %s7419_s8  ;;  %4100 = vrot.lane.b32.xlu1 %v3966_v21, %s7419_s8 }
0x12d9   : > { %4106 = vrot.lane.b32.xlu0 %v3972_v62, %s7419_s8  ;;  %4104 = vrot.lane.b32.xlu1 %v3970_v20, %s7419_s8 }
0x132b   : > { %v4085_v11 = vpop.permute.xlu1 %4084 }
0x132c   : > { %v4137_v30 = vsel %vm309_vm0, %v4085_v11, 0.0 }
0x132d   : > { %v4147_v7 = vrot.slane %v4137_v30, 4 }
0x132f   : > { %v4091_v16 = vpop.permute.xlu0 %4090  ;;  %4154 = vrot.lane.b32.xlu0 %v4147_v7, %s7426_s15 }
0x1330   : > { %v4138_v33 = vsel %vm309_vm0, %v4091_v16, 0.0 }
0x1331   : > { %v4187_v9 = vrot.slane %v4138_v33, 4 }
0x1333   : > { %v4097_v18 = vpop.permute.xlu1 %4096  ;;  %4173 = vrot.lane.b32.xlu0 %v4138_v33, %s7423_s12 }
0x1334   : > { %v4139_v10 = vsel %vm309_vm0, %v4097_v18, 0.0 }
0x1335   : > { %v4227_v26 = vrot.slane %v4139_v10, 4 }
0x1337   : > { %v4081_v44 = vpop.permute.xlu1 %4080  ;;  %4194 = vrot.lane.b32.xlu0 %v4187_v9, %s7427_s16  ;;  %v4103_v5 = vpop.permute.xlu0 %4102 }
0x1338   : > { %v9184_v58 = vsel %vm309_vm0, 0.0, %v4081_v44  ;;  %v4140_v35 = vsel %vm309_vm0, %v4103_v5, 0.0 }
0x1339   : > { %v4144_v56 = vrot.slane %v9184_v58, 4  ;;  %v4267_v33 = vrot.slane %v4140_v35, 4 }
0x133b   : > { %4213 = vrot.lane.b32.xlu0 %v4139_v10, %s7422_s11  ;;  %v4083_v34 = vpop.permute.xlu0 %4082  ;;  %v9178_v24 = vpop.permute.xlu1 %4108 }
0x133c   : > { %v9175_v53 = vsel %vm309_vm0, %v4081_v44, %v4083_v34  ;;  %v9191_v29 = vsel %vm309_vm0, %v4083_v34, %v4085_v11  ;;  %v4141_v10 = vsel %vm309_vm0, %v9178_v24, 0.0 }
0x133d   : > { %v4145_v43 = vrot.slane %v9175_v53, 4  ;;  %v4146_v14 = vrot.slane %v9191_v29, 4 }
0x133f   : > { %4234 = vrot.lane.b32.xlu0 %v4227_v26, %s7425_s14  ;;  %v4087_v48 = vpop.permute.xlu0 %4086  ;;  %4150 = vrot.lane.b32.xlu1 %v4145_v43, %s7426_s15  ;;  %v4089_v23 = vpop.permute.xlu1 %4088 }
0x1340   : > { %v4133_v22 = vsel %vm309_vm0, 0.0, %v4087_v48  ;;  %v4113_v25 = vsel %vm309_vm0, %v4089_v23, %v4091_v16  ;;  %v4112_v54 = vsel %vm309_vm0, %v4087_v48, %v4089_v23 }
0x1341   : > { %v4184_v32 = vrot.slane %v4133_v22, 4  ;;  %v4186_v63 = vrot.slane %v4113_v25, 4  ;;  %v4185_v19 = vrot.slane %v4112_v54, 4 }
0x1343   : > { %4253 = vrot.lane.b32.xlu0 %v4140_v35, %s7421_s10  ;;  %4167 = vrot.lane.b32.xlu1 %v4133_v22, %s7423_s12  ;;  %v4093_v38 = vpop.permute.xlu1 %4092  ;;  %v4095_v47 = vpop.permute.xlu0 %4094 }
0x1344   : > { %v4134_v0 = vsel %vm309_vm0, 0.0, %v4093_v38  ;;  %v4115_v40 = vsel %vm309_vm0, %v4095_v47, %v4097_v18  ;;  %v4114_v3 = vsel %vm309_vm0, %v4093_v38, %v4095_v47 }
0x1345   : > { %v4224_v52 = vrot.slane %v4134_v0, 4  ;;  %v4225_v4 = vrot.slane %v4114_v3, 4  ;;  %v4226_v21 = vrot.slane %v4115_v40, 4 }
0x1347   : > { %4148 = vrot.lane.b32.xlu0 %v4144_v56, %s7426_s15  ;;  %4171 = vrot.lane.b32.xlu1 %v4113_v25, %s7423_s12  ;;  %v4099_v27 = vpop.permute.xlu0 %4098  ;;  %v4101_v28 = vpop.permute.xlu1 %4100 }
0x1348   : > { %v4116_v8 = vsel %vm309_vm0, %v4099_v27, %v4101_v28  ;;  %v4135_v62 = vsel %vm309_vm0, 0.0, %v4099_v27  ;;  %v4117_v16 = vsel %vm309_vm0, %v4101_v28, %v4103_v5 }
0x1349   : > { %v4265_v20 = vrot.slane %v4116_v8, 4  ;;  %v4264_v18 = vrot.slane %v4135_v62, 4  ;;  %v4266_v9 = vrot.slane %v4117_v16, 4 }
0x134b   : > { %4152 = vrot.lane.b32.xlu0 %v4146_v14, %s7426_s15  ;;  %4188 = vrot.lane.b32.xlu1 %v4184_v32, %s7427_s16  ;;  %v4105_v11 = vpop.permute.xlu1 %4104  ;;  %v4107_v30 = vpop.permute.xlu0 %4106 }
0x134c   : > { %v4118_v7 = vsel %vm309_vm0, %v4105_v11, %v4107_v30  ;;  %v4136_v44 = vsel %vm309_vm0, 0.0, %v4105_v11  ;;  %v4119_v5 = vsel %vm309_vm0, %v4107_v30, %v9178_v24 }
0x134f   : > { %4192 = vrot.lane.b32.xlu1 %v4186_v63, %s7427_s16  ;;  %4169 = vrot.lane.b32.xlu0 %v4112_v54, %s7423_s12 }
0x1353   : > { %4190 = vrot.lane.b32.xlu0 %v4185_v19, %s7427_s16  ;;  %4207 = vrot.lane.b32.xlu1 %v4134_v0, %s7422_s11 }
0x1357   : > { %4211 = vrot.lane.b32.xlu1 %v4115_v40, %s7422_s11  ;;  %4209 = vrot.lane.b32.xlu0 %v4114_v3, %s7422_s11 }
0x135b   : > { %4228 = vrot.lane.b32.xlu1 %v4224_v52, %s7425_s14  ;;  %4230 = vrot.lane.b32.xlu0 %v4225_v4, %s7425_s14 }
0x135f   : > { %4232 = vrot.lane.b32.xlu1 %v4226_v21, %s7425_s14  ;;  %4249 = vrot.lane.b32.xlu0 %v4116_v8, %s7421_s10 }
0x1363   : > { %4247 = vrot.lane.b32.xlu1 %v4135_v62, %s7421_s10  ;;  %4270 = vrot.lane.b32.xlu0 %v4265_v20, %s7424_s13 }
0x1367   : > { %4251 = vrot.lane.b32.xlu1 %v4117_v16, %s7421_s10  ;;  %4289 = vrot.lane.b32.xlu0 %v4118_v7, %s7420_s9 }
0x136b   : > { %4268 = vrot.lane.b32.xlu1 %v4264_v18, %s7424_s13  ;;  %4274 = vrot.lane.b32.xlu0 %v4267_v33, %s7424_s13 }
0x136f   : > { %4272 = vrot.lane.b32.xlu1 %v4266_v9, %s7424_s13 }
0x1373   : > { %4287 = vrot.lane.b32.xlu1 %v4136_v44, %s7420_s9 }
0x1377   : > { %4291 = vrot.lane.b32.xlu1 %v4119_v5, %s7420_s9 }
0x137b   : > { %4293 = vrot.lane.b32.xlu1 %v4141_v10, %s7420_s9 }
0x13a1   : > { %v4155_v34 = vpop.permute.xlu0 %4154 }
0x13a5   : > { %v4174_v26 = vpop.permute.xlu0 %4173 }
0x13a9   : > { %v4195_v43 = vpop.permute.xlu0 %4194 }
0x13ad   : > { %v4214_v48 = vpop.permute.xlu0 %4213 }
0x13b1   : > { %v4235_v22 = vpop.permute.xlu0 %4234  ;;  %v4151_v35 = vpop.permute.xlu1 %4150 }
0x13b5   : > { %v4254_v23 = vpop.permute.xlu0 %4253  ;;  %v4168_v56 = vpop.permute.xlu1 %4167 }
0x13b9   : > { %v4149_v25 = vpop.permute.xlu0 %4148  ;;  %v4172_v14 = vpop.permute.xlu1 %4171 }
0x13ba   : > { %v4156_v27 = vsel %vm332_vm10, %v4149_v25, %v4151_v35  ;;  %v4177_v25 = vsel %vm347_vm9, %v4172_v14, %v4174_v26 }
0x13bb   : > { %v4162_v21 = vadd.f32 %v4156_v27, %v9184_v58 }
0x13bd   : > { %v4153_v32 = vpop.permute.xlu0 %4152  ;;  %v4189_v63 = vpop.permute.xlu1 %4188 }
0x13be   : > { %v4157_v62 = vsel %vm332_vm10, %v4151_v35, %v4153_v32  ;;  %v4158_v11 = vsel %vm332_vm10, %v4153_v32, %v4155_v34 }
0x13bf   : > { %v4163_v18 = vadd.f32 %v4157_v62, %v9175_v53  ;;  %v4164_v9 = vadd.f32 %v4158_v11, %v9191_v29 }
0x13c1   : > { %v4170_v54 = vpop.permute.xlu0 %4169  ;;  %v4193_v38 = vpop.permute.xlu1 %4192 }
0x13c2   : > { %v4175_v8 = vsel %vm347_vm9, %v4168_v56, %v4170_v54  ;;  %v4176_v16 = vsel %vm347_vm9, %v4170_v54, %v4172_v14  ;;  %v4183_v54 = vadd.f32 %v4177_v25, %v4164_v9  ;;  %v4198_v29 = vsel %vm362_vm8, %v4193_v38, %v4195_v43 }
0x13c3   : > { %v4181_v7 = vadd.f32 %v4175_v8, %v4162_v21  ;;  %v4182_v56 = vadd.f32 %v4176_v16, %v4163_v18 }
0x13c4   : > { %v4204_v14 = vadd.f32 %v4198_v29, %v4183_v54 }
0x13c5   : > { %v4191_v0 = vpop.permute.xlu0 %4190  ;;  %v4208_v19 = vpop.permute.xlu1 %4207 }
0x13c6   : > { %v4196_v30 = vsel %vm362_vm8, %v4189_v63, %v4191_v0  ;;  %v4197_v58 = vsel %vm362_vm8, %v4191_v0, %v4193_v38 }
0x13c7   : > { %v4202_v44 = vadd.f32 %v4196_v30, %v4181_v7 }
0x13c9   : > { %v4212_v47 = vpop.permute.xlu1 %4211  ;;  %v4210_v24 = vpop.permute.xlu0 %4209 }
0x13ca   : > { %v4215_v33 = vsel %vm377_vm7, %v4208_v19, %v4210_v24  ;;  %v4216_v32 = vsel %vm377_vm7, %v4210_v24, %v4212_v47  ;;  %v4203_v19 = vadd.f32 %v4197_v58, %v4182_v56  ;;  %v4217_v11 = vsel %vm377_vm7, %v4212_v47, %v4214_v48 }
0x13cb   : > { %v4221_v34 = vadd.f32 %v4215_v33, %v4202_v44  ;;  %v4223_v38 = vadd.f32 %v4217_v11, %v4204_v14 }
0x13cc   : > { %v4222_v21 = vadd.f32 %v4216_v32, %v4203_v19 }
0x13cd   : > { %v4229_v40 = vpop.permute.xlu1 %4228  ;;  %v4231_v3 = vpop.permute.xlu0 %4230 }
0x13ce   : > { %v4236_v35 = vsel %vm392_vm6, %v4229_v40, %v4231_v3 }
0x13cf   : > { %v4242_v53 = vadd.f32 %v4236_v35, %v4221_v34 }
0x13d1   : > { %v4233_v52 = vpop.permute.xlu1 %4232  ;;  %v4250_v28 = vpop.permute.xlu0 %4249 }
0x13d2   : > { %v4237_v8 = vsel %vm392_vm6, %v4231_v3, %v4233_v52  ;;  %v4238_v7 = vsel %vm392_vm6, %v4233_v52, %v4235_v22 }
0x13d3   : > { %v4243_v24 = vadd.f32 %v4237_v8, %v4222_v21  ;;  %v4244_v9 = vadd.f32 %v4238_v7, %v4223_v38 }
0x13d5   : > { %v4248_v4 = vpop.permute.xlu1 %4247  ;;  %v4271_v5 = vpop.permute.xlu0 %4270 }
0x13d6   : > { %v4255_v63 = vsel %vm407_vm4, %v4248_v4, %v4250_v28 }
0x13d7   : > { %v4261_v40 = vadd.f32 %v4255_v63, %v4242_v53 }
0x13d9   : > { %v4252_v20 = vpop.permute.xlu1 %4251  ;;  %v4290_v62 = vpop.permute.xlu0 %4289 }
0x13da   : > { %v4256_v26 = vsel %vm407_vm4, %v4250_v28, %v4252_v20  ;;  %v4257_v18 = vsel %vm407_vm4, %v4252_v20, %v4254_v23 }
0x13db   : > { %v4262_v3 = vadd.f32 %v4256_v26, %v4243_v24  ;;  %v4263_v58 = vadd.f32 %v4257_v18, %v4244_v9 }
0x13dd   : > { %v4269_v10 = vpop.permute.xlu1 %4268  ;;  %v4275_v44 = vpop.permute.xlu0 %4274 }
0x13de   : > { %v4276_v0 = vsel %vm422_vm5, %v4269_v10, %v4271_v5 }
0x13df   : > { %v4282_v4 = vadd.f32 %v4276_v0, %v4261_v40 }
0x13e1   : > { %v4273_v27 = vpop.permute.xlu1 %4272 }
0x13e2   : > { %v4277_v16 = vsel %vm422_vm5, %v4271_v5, %v4273_v27  ;;  %v4278_v28 = vsel %vm422_vm5, %v4273_v27, %v4275_v44 }
0x13e3   : > { %v4283_v48 = vadd.f32 %v4277_v16, %v4262_v3  ;;  %v4284_v5 = vadd.f32 %v4278_v28, %v4263_v58 }
0x13e5   : > { %v4288_v30 = vpop.permute.xlu1 %4287 }
0x13e6   : > { %v4295_v43 = vsel %vm437_vm2, %v4288_v30, %v4290_v62 }
0x13e7   : > { %v4301_v33 = vadd.f32 %v4295_v43, %v4282_v4 }
0x13e9   : > { %v4292_v47 = vpop.permute.xlu1 %4291  ;;  %v4304_v22 = vadd.f32 %v4301_v33, %v7803_v15 }
0x13ea   : > { %v4296_v10 = vsel %vm437_vm2, %v4290_v62, %v4292_v47 }
0x13eb   : > { %v4302_v52 = vadd.f32 %v4296_v10, %v4283_v48  ;;  %v4307_v23 = vmul.f32 %v4304_v22, %v7904_v45 }
0x13ed   : > { %v4305_v35 = vadd.f32 %v4302_v52, %v7803_v15  ;;  %v4294_v56 = vpop.permute.xlu1 %4293 }
0x13ee   : > { %v4297_v34 = vsel %vm437_vm2, %v4292_v47, %v4294_v56 }
0x13ef   : > { %v4308_v20 = vmul.f32 %v4305_v35, %v7908_v50  ;;  %v4303_v25 = vadd.f32 %v4297_v34, %v4284_v5 }
0x13f1   : > { %v4306_v32 = vadd.f32 %v4303_v25, %v7803_v15  ;;  %v4312_v63 = vcombine.low %v4307_v23, %v4308_v20 }
0x13f3   : > { %v4309_v54 = vmul.f32 %v4306_v32, %v7918_v46  ;;  %v9266_v19 = vadd.f32 %v4312_v63, %v8908_v6 }
0x13f5   : > { %4319 = vrot.lane.b32.xlu0 %v9266_v19, %s7419_s8  ;;  %v4318_v53 = vcombine.high %v9266_v19, %v9266_v19  ;;  %v9274_v27 = vadd.f32 %v4309_v54, %v8916_v49 }
0x13f7   : > { %4321 = vrot.lane.b32.xlu1 %v4318_v53, %s7419_s8 }
0x13f9   : > { %4323 = vrot.lane.b32.xlu0 %v9274_v27, %s7419_s8 }
0x1467   : > { %v4320_v29 = vpop.permute.xlu0 %4319 }
0x1468   : > { %v9279_v8 = vsel %vm309_vm0, 0.0, %v4320_v29 }
0x1469   : > { %4409 = vrot.lane.b32.xlu0 %v9279_v8, %s7421_s10  ;;  %v4322_v49 = vpop.permute.xlu1 %4321  ;;  %v4335_v62 = vrot.slane %v9279_v8, 4 }
0x146a   : > { %v9292_v21 = vsel %vm309_vm0, %v4320_v29, %v4322_v49 }
0x146b   : > { %v4324_v6 = vpop.permute.xlu0 %4323  ;;  %v4336_v26 = vrot.slane %v9292_v21, 4 }
0x146c   : > { %v4332_v0 = vsel %vm309_vm0, %v4324_v6, 0.0  ;;  %v9295_v40 = vsel %vm309_vm0, %v4322_v49, %v4324_v6 }
0x146d   : > { %4381 = vrot.lane.b32.xlu0 %v9279_v8, %s7422_s11  ;;  %4443 = vrot.lane.b32.xlu1 %v4332_v0, %s7420_s9  ;;  %v4337_v11 = vrot.slane %v9295_v40, 4  ;;  %v4338_v14 = vrot.slane %v4332_v0, 4 }
0x1471   : > { %4353 = vrot.lane.b32.xlu0 %v9279_v8, %s7423_s12  ;;  %4437 = vrot.lane.b32.xlu1 %v9279_v8, %s7420_s9 }
0x1475   : > { %4441 = vrot.lane.b32.xlu0 %v9295_v40, %s7420_s9  ;;  %4439 = vrot.lane.b32.xlu1 %v9292_v21, %s7420_s9 }
0x1479   : > { %4413 = vrot.lane.b32.xlu0 %v9295_v40, %s7421_s10  ;;  %4411 = vrot.lane.b32.xlu1 %v9292_v21, %s7421_s10 }
0x147d   : > { %4383 = vrot.lane.b32.xlu0 %v9292_v21, %s7422_s11  ;;  %4423 = vrot.lane.b32.xlu1 %v4335_v62, %s7424_s13 }
0x1481   : > { %4355 = vrot.lane.b32.xlu0 %v9292_v21, %s7423_s12  ;;  %4385 = vrot.lane.b32.xlu1 %v9295_v40, %s7422_s11 }
0x1485   : > { %4339 = vrot.lane.b32.xlu0 %v4335_v62, %s7426_s15  ;;  %4395 = vrot.lane.b32.xlu1 %v4335_v62, %s7425_s14 }
0x1489   : > { %4427 = vrot.lane.b32.xlu0 %v4337_v11, %s7424_s13  ;;  %4357 = vrot.lane.b32.xlu1 %v9295_v40, %s7423_s12 }
0x148d   : > { %4367 = vrot.lane.b32.xlu1 %v4335_v62, %s7427_s16  ;;  %4397 = vrot.lane.b32.xlu0 %v4336_v26, %s7425_s14 }
0x1491   : > { %4369 = vrot.lane.b32.xlu0 %v4336_v26, %s7427_s16  ;;  %4425 = vrot.lane.b32.xlu1 %v4336_v26, %s7424_s13 }
0x1495   : > { %4341 = vrot.lane.b32.xlu0 %v4336_v26, %s7426_s15  ;;  %4399 = vrot.lane.b32.xlu1 %v4337_v11, %s7425_s14 }
0x1499   : > { %4415 = vrot.lane.b32.xlu0 %v4332_v0, %s7421_s10  ;;  %4371 = vrot.lane.b32.xlu1 %v4337_v11, %s7427_s16 }
0x149d   : > { %4387 = vrot.lane.b32.xlu0 %v4332_v0, %s7422_s11  ;;  %4343 = vrot.lane.b32.xlu1 %v4337_v11, %s7426_s15 }
0x14a1   : > { %4359 = vrot.lane.b32.xlu0 %v4332_v0, %s7423_s12  ;;  %4429 = vrot.lane.b32.xlu1 %v4338_v14, %s7424_s13 }
0x14a5   : > { %4345 = vrot.lane.b32.xlu0 %v4338_v14, %s7426_s15  ;;  %4401 = vrot.lane.b32.xlu1 %v4338_v14, %s7425_s14 }
0x14a9   : > { %4373 = vrot.lane.b32.xlu1 %v4338_v14, %s7427_s16 }
0x14db   : > { %v4410_v24 = vpop.permute.xlu0 %4409 }
0x14df   : > { %v4382_v4 = vpop.permute.xlu0 %4381  ;;  %v4444_v30 = vpop.permute.xlu1 %4443 }
0x14e3   : > { %v4354_v7 = vpop.permute.xlu0 %4353  ;;  %v4438_v16 = vpop.permute.xlu1 %4437 }
0x14e7   : > { %v4442_v43 = vpop.permute.xlu0 %4441  ;;  %v4440_v38 = vpop.permute.xlu1 %4439 }
0x14e8   : > { %v4445_v3 = vsel %vm437_vm2, %v4438_v16, %v4440_v38  ;;  %v4446_v33 = vsel %vm437_vm2, %v4440_v38, %v4442_v43  ;;  %v4447_v18 = vsel %vm437_vm2, %v4442_v43, %v4444_v30 }
0x14e9   : > { %6837 = vmatprep.subr.msk.mxu1 %vm441_vm3, %v4446_v33  ;;  %7241 = vmatprep.subr.msk.mxu0 %vm441_vm3, %v4447_v18 }
0x14ea   : > { %6838 = vmatpush1.msk.msra.mxu1 %vm441_vm3, %v4445_v3  ;;  %7242 = vmatpush3.msk.msra.mxu0 %vm441_vm3, %v4447_v18 }
0x14eb   : > { %v4414_v9 = vpop.permute.xlu0 %4413  ;;  %v4412_v44 = vpop.permute.xlu1 %4411 }
0x14ec   : > { %v4417_v20 = vsel %vm407_vm4, %v4410_v24, %v4412_v44  ;;  %v4418_v25 = vsel %vm407_vm4, %v4412_v44, %v4414_v9 }
0x14ef   : > { %v4384_v48 = vpop.permute.xlu0 %4383  ;;  %v4424_v47 = vpop.permute.xlu1 %4423 }
0x14f0   : > { %v4389_v11 = vsel %vm377_vm7, %v4382_v4, %v4384_v48 }
0x14f3   : > { %v4356_v28 = vpop.permute.xlu0 %4355  ;;  %v4386_v10 = vpop.permute.xlu1 %4385 }
0x14f4   : > { %v4390_v49 = vsel %vm377_vm7, %v4384_v48, %v4386_v10  ;;  %v4361_v3 = vsel %vm347_vm9, %v4354_v7, %v4356_v28 }
0x14f7   : > { %v4340_v58 = vpop.permute.xlu0 %4339  ;;  %v4396_v22 = vpop.permute.xlu1 %4395 }
0x14fb   : > { %v4428_v52 = vpop.permute.xlu0 %4427  ;;  %v4358_v5 = vpop.permute.xlu1 %4357 }
0x14fc   : > { %v4362_v43 = vsel %vm347_vm9, %v4356_v28, %v4358_v5 }
0x14ff   : > { %v4398_v35 = vpop.permute.xlu0 %4397  ;;  %v4368_v56 = vpop.permute.xlu1 %4367 }
0x1500   : > { %v4403_v29 = vsel %vm392_vm6, %v4396_v22, %v4398_v35 }
0x1501   : > { %v4454_v14 = vsel %vm441_vm3, %v4389_v11, %v4403_v29 }
0x1503   : > { %v4370_v34 = vpop.permute.xlu0 %4369  ;;  %v4426_v23 = vpop.permute.xlu1 %4425 }
0x1504   : > { %v4431_v32 = vsel %vm422_vm5, %v4424_v47, %v4426_v23  ;;  %v4432_v63 = vsel %vm422_vm5, %v4426_v23, %v4428_v52  ;;  %v4375_v24 = vsel %vm362_vm8, %v4368_v56, %v4370_v34 }
0x1505   : > { %v4458_v54 = vsel %vm441_vm3, %v4418_v25, %v4432_v63  ;;  %v4457_v53 = vsel %vm441_vm3, %v4417_v20, %v4431_v32  ;;  %v4451_v4 = vsel %vm441_vm3, %v4361_v3, %v4375_v24 }
0x1506   : > { %4490 = vmatprep.subr.mxu1 %v4458_v54 }
0x1507   : > { %v4342_v6 = vpop.permute.xlu0 %4341  ;;  %4491 = vmatpush1.msra.mxu1 %v4457_v53  ;;  %v4400_v0 = vpop.permute.xlu1 %4399 }
0x1508   : > { %v4404_v62 = vsel %vm392_vm6, %v4398_v35, %v4400_v0  ;;  %v4347_v18 = vsel %vm332_vm10, %v4340_v58, %v4342_v6 }
0x1509   : > { %v4455_v26 = vsel %vm441_vm3, %v4390_v49, %v4404_v62  ;;  %v4448_v35 = vsel %vm441_vm3, %v9279_v8, %v4347_v18 }
0x150a   : > { %4492 = vmatprep.subr.mxu1 %v4455_v26 }
0x150b   : > { %v4416_v30 = vpop.permute.xlu0 %4415  ;;  %4493 = vmatpush1.msra.mxu1 %v4454_v14  ;;  %v4372_v16 = vpop.permute.xlu1 %4371 }
0x150c   : > { %v4376_v38 = vsel %vm362_vm8, %v4370_v34, %v4372_v16  ;;  %v4419_v56 = vsel %vm407_vm4, %v4414_v9, %v4416_v30 }
0x150d   : > { %v4452_v33 = vsel %vm441_vm3, %v4362_v43, %v4376_v38 }
0x150e   : > { %4494 = vmatprep.subr.mxu1 %v4452_v33 }
0x150f   : > { %v4388_v44 = vpop.permute.xlu0 %4387  ;;  %4495 = vmatpush1.msra.mxu1 %v4451_v4  ;;  %v4344_v48 = vpop.permute.xlu1 %4343 }
0x1510   : > { %v4348_v47 = vsel %vm332_vm10, %v4342_v6, %v4344_v48  ;;  %v4391_v8 = vsel %vm377_vm7, %v4386_v10, %v4388_v44 }
0x1511   : > { %v4449_v22 = vsel %vm441_vm3, %v9292_v21, %v4348_v47 }
0x1512   : > { %4496 = vmatprep.subr.mxu1 %v4449_v22 }
0x1513   : > { %v4360_v7 = vpop.permute.xlu0 %4359  ;;  %4497 = vmatpush1.msra.mxu1 %v4448_v35  ;;  %v4430_v28 = vpop.permute.xlu1 %4429 }
0x1514   : > { %v4433_v34 = vsel %vm422_vm5, %v4428_v52, %v4430_v28  ;;  %6839 = vmatmul.mubr.msk.f32.vlgmr.msra.gmra.mxu1 %vm474_vm1, %v9016_v55  ;;  %7257 = vmatprep.subr.mxu1 %v7428_v13  ;;  %v4363_v20 = vsel %vm347_vm9, %v4358_v5, %v4360_v7 }
0x1515   : > { %v4459_v58 = vsel %vm441_vm3, %v4419_v56, %v4433_v34  ;;  %4536 = vmatprep.mubr.f32.mxu1 %v7428_v13 }
0x1516   : > { %7243 = vmatprep.subr.mxu0 %v4459_v58 }
0x1517   : > { %7244 = vmatpush3.msra.mxu0 %v4459_v58  ;;  %v4402_v21 = vpop.permute.xlu1 %4401  ;;  %v4346_v9 = vpop.permute.xlu0 %4345 }
0x1518   : > { %v4405_v23 = vsel %vm392_vm6, %v4400_v0, %v4402_v21  ;;  %6840 = vmatmul.mubr.msk.f32.gmra.mxu1 %vm474_vm1, %v9028_v37  ;;  %v4349_v25 = vsel %vm332_vm10, %v4344_v48, %v4346_v9 }
0x1519   : > { %v4456_v52 = vsel %vm441_vm3, %v4391_v8, %v4405_v23  ;;  %4542 = vmatprep.mubr.f32.mxu1 %v7428_v13  ;;  %v4450_v63 = vsel %vm441_vm3, %v9295_v40, %v4349_v25 }
0x151a   : > { %7245 = vmatprep.subr.mxu0 %v4456_v52 }
0x151b   : > { %7246 = vmatpush3.msra.mxu0 %v4456_v52  ;;  %v4374_v55 = vpop.permute.xlu1 %4373 }
0x151c   : > { %v4377_v32 = vsel %vm362_vm8, %v4372_v16, %v4374_v55  ;;  %6841 = vmatmul.mubr.msk.f32.gmra.mxu1 %vm474_vm1, %v9041_v1 }
0x151d   : > { %v4453_v10 = vsel %vm441_vm3, %v4363_v20, %v4377_v32  ;;  %4548 = vmatprep.mubr.f32.mxu1 %v7428_v13 }
0x151e   : > { %7247 = vmatprep.subr.mxu0 %v4453_v10 }
0x151f   : > { %7248 = vmatpush3.msra.mxu0 %v4453_v10 }
0x1520   : > { %6842 = vmatmul.mubr.msk.f32.gmra.mxu1 %vm474_vm1, %v9052_v12  ;;  %7249 = vmatprep.subr.mxu0 %v4450_v63 }
0x1521   : > { %7250 = vmatpush3.msra.mxu0 %v4450_v63  ;;  %7265 = vmatprep.mubr.msk.f32.mxu1 %vm7430_vm11, %v7428_v13 }
0x1522   : > { %7252 = vmatmul.mubr.msk.f32.vlgmr.msra.gmra.mxu0 %vm474_vm1, %v9028_v37 }
0x1523   : > { %7254 = vmatprep.mubr.msk.f32.mxu0 %vm474_vm1, %v9041_v1 }
0x1526   : > { %7255 = vmatmul.mubr.msk.f32.gmra.mxu0 %vm474_vm1, %v9052_v12 }
0x1527   : > { %4728 = vmatprep.mubr.f32.mxu0 %v7428_v13 }
0x15d4   : > { %v4532_v40 = vpop.f32.mrf.mxu1 }
0x15d5   : > { %v4533_v3 = vadd.f32 %v4532_v40, %v7698_v59 }
0x15d6   : > { %v4534_v5 = vpop.f32.mrf.mxu1 }
0x15d7   : > { %v4535_v14 = vadd.f32 %v4534_v5, %v7698_v59  ;;  %v4640_v8 = vmax.f32 %v4533_v3, 0.0 }
0x15d8   : > { %v4538_v54 = vpop.f32.mrf.mxu1 }
0x15d9   : > { %v4539_v24 = vadd.f32 %v4538_v54, %v7674_v42  ;;  %v4641_v22 = vmax.f32 %v4535_v14, 0.0  ;;  %v4652_v40 = vmul.f32 %v4640_v8, %v7689_v51 }
0x15da   : > { %v4540_v53 = vpop.f32.mrf.mxu1 }
0x15db   : > { %v4541_v26 = vadd.f32 %v4540_v53, %v7674_v42  ;;  %v4643_v35 = vmax.f32 %v4539_v24, 0.0  ;;  %v4653_v32 = vmul.f32 %v4641_v22, %v7696_v57 }
0x15dc   : > { %v4544_v29 = vpop.f32.mrf.mxu1 }
0x15dd   : > { %v4545_v37 = vadd.f32 %v4544_v29, %v7672_v41  ;;  %v4644_v18 = vmax.f32 %v4541_v26, 0.0  ;;  %v4655_v25 = vmul.f32 %v4643_v35, %v7689_v51 }
0x15de   : > { %v4546_v6 = vpop.f32.mrf.mxu1 }
0x15df   : > { %v4547_v49 = vadd.f32 %v4546_v6, %v7672_v41  ;;  %v4646_v33 = vmax.f32 %v4545_v37, 0.0  ;;  %v4656_v9 = vmul.f32 %v4644_v18, %v7696_v57 }
0x15e0   : > { %v4550_v0 = vpop.f32.mrf.mxu1 }
0x15e1   : > { %v4551_v62 = vadd.f32 %v4550_v0, %v7668_v36  ;;  %v4647_v43 = vmax.f32 %v4547_v49, 0.0  ;;  %v4658_v23 = vmul.f32 %v4646_v33, %v7689_v51 }
0x15e2   : > { %v4552_v11 = vpop.f32.mrf.mxu1  ;;  %v7253_v1 = vpop.f32.mrf.mxu0 }
0x15e3   : > { %v4553_v12 = vadd.f32 %v4552_v11, %v7668_v36  ;;  %v4649_v30 = vmax.f32 %v4551_v62, 0.0  ;;  %v4627_v48 = vadd.f32 %v7253_v1, %v7674_v42  ;;  %v4659_v56 = vmul.f32 %v4647_v43, %v7696_v57 }
0x15e4   : > { %v4621_v16 = vpop.f32.mrf.mxu0 }
0x15e5   : > { %v4650_v38 = vmax.f32 %v4553_v12, 0.0  ;;  %v4661_v7 = vmul.f32 %v4649_v30, %v7689_v51  ;;  %v4622_v34 = vadd.f32 %v4621_v16, %v7698_v59  ;;  %v4645_v52 = vmax.f32 %v4627_v48, 0.0 }
0x15e6   : > { %v7256_v4 = vpop.f32.mrf.mxu0 }
0x15e7   : > { %v4662_v44 = vmul.f32 %v4650_v38, %v7696_v57  ;;  %v4637_v47 = vadd.f32 %v7256_v4, %v7668_v36  ;;  %v4642_v10 = vmax.f32 %v4622_v34, 0.0  ;;  %v4657_v5 = vmul.f32 %v4645_v52, %v7712_v17 }
0x15e8   : > { %v4631_v28 = vpop.f32.mrf.mxu0 }
0x15e9   : > { %v4651_v58 = vmax.f32 %v4637_v47, 0.0  ;;  %v4632_v21 = vadd.f32 %v4631_v28, %v7672_v41  ;;  %4688 = vmatprep.subr.mxu0 %v4662_v44  ;;  %v4654_v54 = vmul.f32 %v4642_v10, %v7712_v17 }
0x15ea   : > { %4689 = vmatpush1.msra.mxu0 %v4661_v7 }
0x15eb   : > { %v4663_v55 = vmul.f32 %v4651_v58, %v7712_v17  ;;  %v4648_v20 = vmax.f32 %v4632_v21, 0.0  ;;  %4690 = vmatprep.subr.mxu0 %v4659_v56 }
0x15ec   : > { %4691 = vmatpush1.msra.mxu0 %v4658_v23 }
0x15ed   : > { %v4660_v63 = vmul.f32 %v4648_v20, %v7712_v17  ;;  %4692 = vmatprep.subr.mxu0 %v4656_v9  ;;  %7258 = vmatpush3.msra.mxu1 %v4663_v55 }
0x15ee   : > { %4693 = vmatpush1.msra.mxu0 %v4655_v25  ;;  %7259 = vmatprep.subr.mxu1 %v7428_v13 }
0x15ef   : > { %4694 = vmatprep.subr.mxu0 %v4653_v32  ;;  %7260 = vmatpush3.msra.mxu1 %v4660_v63 }
0x15f0   : > { %4695 = vmatpush1.msra.mxu0 %v4652_v40  ;;  %7261 = vmatprep.subr.mxu1 %v7428_v13 }
0x15f1   : > { %7262 = vmatpush3.msra.mxu1 %v4657_v5  ;;  %6848 = vmatmul.mubr.msk.f32.vlgmr.msra.gmra.mxu0 %vm707_vm12, %v9094_v39 }
0x15f2   : > { %7263 = vmatprep.subr.mxu1 %v7428_v13  ;;  %4734 = vmatprep.mubr.f32.mxu0 %v7428_v13 }
0x15f3   : > { %7264 = vmatpush3.msra.mxu1 %v4654_v54 }
0x15f4   : > { %7266 = vmatmul.mubr.msk.f32.vlgmr.msra.gmra.mxu1 %vm707_vm12, %v9094_v39  ;;  %v9462_v39 = vld [vmem:[%s10252_s2] sm:$0xff] }
0x15f5   : > { %7268 = vmatprep.mubr.msk.f32.mxu1 %vm7430_vm11, %v7428_v13  ;;  %6849 = vmatmul.mubr.msk.f32.gmra.mxu0 %vm707_vm12, %v9107_v60 }
0x15f6   : > { %4740 = vmatprep.mubr.f32.mxu0 %v7428_v13 }
0x15f8   : > { %7269 = vmatmul.mubr.msk.f32.gmra.mxu1 %vm707_vm12, %v9107_v60 }
0x15f9   : > { %7271 = vmatprep.mubr.msk.f32.mxu1 %vm7430_vm11, %v7428_v13  ;;  %6850 = vmatmul.mubr.msk.f32.gmra.mxu0 %vm707_vm12, %v9119_v31 }
0x15fa   : > { %4746 = vmatprep.mubr.f32.mxu0 %v7428_v13 }
0x15fc   : > { %7272 = vmatmul.mubr.msk.f32.gmra.mxu1 %vm707_vm12, %v9119_v31 }
0x15fd   : > { %7274 = vmatprep.mubr.msk.f32.mxu1 %vm7430_vm11, %v7428_v13  ;;  %6851 = vmatmul.mubr.msk.f32.gmra.mxu0 %vm707_vm12, %v9131_v61 }
0x15fe   : > { %4752 = vmatprep.mubr.f32.mxu0 %v7428_v13 }
0x1600   : > { %7275 = vmatmul.mubr.msk.f32.gmra.mxu1 %vm707_vm12, %v9131_v61 }
0x1601   : > { %7277 = vmatprep.mubr.msk.f32.mxu1 %vm7430_vm11, %v7428_v13  ;;  %6852 = vmatmul.mubr.msk.f32.gmra.mxu0 %vm707_vm12, %v9143_v2 }
0x1602   : > { %5314 = vmatprep.mubr.f32.mxu0 %v7428_v13 }
0x1604   : > { %7278 = vmatmul.mubr.msk.f32.gmra.mxu1 %vm707_vm12, %v9143_v2 }
0x1605   : > { %7290 = vmatprep.mubr.msk.f32.mxu1 %vm474_vm1, %v9462_v39 }
0x16b1   : > { %v4730_v60 = vpop.f32.mrf.mxu0 }
0x16b3   : > { %v4732_v61 = vpop.f32.mrf.mxu0 }
0x16b4   : > { %v4825_v31 = vpop.f32.mrf.mxu1 }
0x16b5   : > { %4868 = vrot.lane.b32.xlu1 %v4825_v31, %s7419_s8  ;;  %v4736_v29 = vpop.f32.mrf.mxu0 }
0x16b6   : > { %v7267_v53 = vpop.f32.mrf.mxu1 }
0x16b7   : > { %v4738_v2 = vpop.f32.mrf.mxu0 }
0x16b8   : > { %v4830_v6 = vpop.f32.mrf.mxu1 }
0x16b9   : > { %4874 = vrot.lane.b32.xlu0 %v4830_v6, %s7419_s8  ;;  %v4742_v37 = vpop.f32.mrf.mxu0 }
0x16ba   : > { %v7270_v0 = vpop.f32.mrf.mxu1 }
0x16bb   : > { %v4744_v26 = vpop.f32.mrf.mxu0 }
0x16bc   : > { %v4835_v49 = vpop.f32.mrf.mxu1 }
0x16bd   : > { %4880 = vrot.lane.b32.xlu1 %v4835_v49, %s7419_s8  ;;  %v4748_v24 = vpop.f32.mrf.mxu0 }
0x16be   : > { %v7273_v62 = vpop.f32.mrf.mxu1 }
0x16bf   : > { %v4750_v30 = vpop.f32.mrf.mxu0 }
0x16c0   : > { %v4840_v11 = vpop.f32.mrf.mxu1 }
0x16c1   : > { %4864 = vrot.lane.b32.xlu1 %v4730_v60, %s7419_s8  ;;  %4886 = vrot.lane.b32.xlu0 %v4840_v11, %s7419_s8  ;;  %v4754_v16 = vpop.f32.mrf.mxu0 }
0x16c2   : > { %v7276_v1 = vpop.f32.mrf.mxu1 }
0x16c3   : > { %v4756_v43 = vpop.f32.mrf.mxu0 }
0x16c4   : > { %v4845_v12 = vpop.f32.mrf.mxu1 }
0x16c5   : > { %4866 = vrot.lane.b32.xlu0 %v4732_v61, %s7419_s8  ;;  %4892 = vrot.lane.b32.xlu1 %v4845_v12, %s7419_s8 }
0x16c6   : > { %v7279_v14 = vpop.f32.mrf.mxu1 }
0x16c9   : > { %4870 = vrot.lane.b32.xlu0 %v4736_v29, %s7419_s8  ;;  %4872 = vrot.lane.b32.xlu1 %v4738_v2, %s7419_s8 }
0x16cd   : > { %4878 = vrot.lane.b32.xlu0 %v4744_v26, %s7419_s8  ;;  %4876 = vrot.lane.b32.xlu1 %v4742_v37, %s7419_s8 }
0x16d1   : > { %4882 = vrot.lane.b32.xlu0 %v4748_v24, %s7419_s8  ;;  %4884 = vrot.lane.b32.xlu1 %v4750_v30, %s7419_s8 }
0x16d5   : > { %4890 = vrot.lane.b32.xlu0 %v4756_v43, %s7419_s8  ;;  %4888 = vrot.lane.b32.xlu1 %v4754_v16, %s7419_s8 }
0x1727   : > { %v4869_v38 = vpop.permute.xlu1 %4868 }
0x1728   : > { %v4921_v3 = vsel %vm309_vm0, %v4869_v38, 0.0 }
0x1729   : > { %v4931_v33 = vrot.slane %v4921_v3, 4 }
0x172b   : > { %v4875_v4 = vpop.permute.xlu0 %4874  ;;  %4938 = vrot.lane.b32.xlu0 %v4931_v33, %s7426_s15 }
0x172c   : > { %v4922_v18 = vsel %vm309_vm0, %v4875_v4, 0.0 }
0x172d   : > { %v4971_v48 = vrot.slane %v4922_v18, 4 }
0x172f   : > { %v4881_v44 = vpop.permute.xlu1 %4880  ;;  %4957 = vrot.lane.b32.xlu0 %v4922_v18, %s7423_s12 }
0x1730   : > { %v4923_v35 = vsel %vm309_vm0, %v4881_v44, 0.0 }
0x1731   : > { %v5011_v56 = vrot.slane %v4923_v35, 4 }
0x1733   : > { %v4865_v47 = vpop.permute.xlu1 %4864  ;;  %4978 = vrot.lane.b32.xlu0 %v4971_v48, %s7427_s16  ;;  %v4887_v22 = vpop.permute.xlu0 %4886 }
0x1734   : > { %v9498_v23 = vsel %vm309_vm0, 0.0, %v4865_v47  ;;  %v4924_v9 = vsel %vm309_vm0, %v4887_v22, 0.0 }
0x1735   : > { %v4928_v55 = vrot.slane %v9498_v23, 4  ;;  %v5051_v24 = vrot.slane %v4924_v9, 4 }
0x1737   : > { %4997 = vrot.lane.b32.xlu0 %v4923_v35, %s7422_s11  ;;  %v4867_v7 = vpop.permute.xlu0 %4866  ;;  %v9492_v58 = vpop.permute.xlu1 %4892 }
0x1738   : > { %v9489_v28 = vsel %vm309_vm0, %v4865_v47, %v4867_v7  ;;  %v9505_v20 = vsel %vm309_vm0, %v4867_v7, %v4869_v38  ;;  %v4925_v3 = vsel %vm309_vm0, %v9492_v58, 0.0 }
0x1739   : > { %v4929_v34 = vrot.slane %v9489_v28, 4  ;;  %v4930_v32 = vrot.slane %v9505_v20, 4 }
0x173b   : > { %5018 = vrot.lane.b32.xlu0 %v5011_v56, %s7425_s14  ;;  %v4871_v21 = vpop.permute.xlu0 %4870  ;;  %4934 = vrot.lane.b32.xlu1 %v4929_v34, %s7426_s15  ;;  %v4873_v52 = vpop.permute.xlu1 %4872 }
0x173c   : > { %v4917_v8 = vsel %vm309_vm0, 0.0, %v4871_v21  ;;  %v4897_v25 = vsel %vm309_vm0, %v4873_v52, %v4875_v4  ;;  %v4896_v40 = vsel %vm309_vm0, %v4871_v21, %v4873_v52 }
0x173d   : > { %v4968_v10 = vrot.slane %v4917_v8, 4  ;;  %v4970_v63 = vrot.slane %v4897_v25, 4  ;;  %v4969_v60 = vrot.slane %v4896_v40, 4 }
0x173f   : > { %5037 = vrot.lane.b32.xlu0 %v4924_v9, %s7421_s10  ;;  %4951 = vrot.lane.b32.xlu1 %v4917_v8, %s7423_s12  ;;  %v4877_v5 = vpop.permute.xlu1 %4876  ;;  %v4879_v31 = vpop.permute.xlu0 %4878 }
0x1740   : > { %v4918_v54 = vsel %vm309_vm0, 0.0, %v4877_v5  ;;  %v4899_v61 = vsel %vm309_vm0, %v4879_v31, %v4881_v44  ;;  %v4898_v53 = vsel %vm309_vm0, %v4877_v5, %v4879_v31 }
0x1741   : > { %v5008_v29 = vrot.slane %v4918_v54, 4  ;;  %v5009_v6 = vrot.slane %v4898_v53, 4  ;;  %v5010_v62 = vrot.slane %v4899_v61, 4 }
0x1743   : > { %4932 = vrot.lane.b32.xlu0 %v4928_v55, %s7426_s15  ;;  %4955 = vrot.lane.b32.xlu1 %v4897_v25, %s7423_s12  ;;  %v4883_v0 = vpop.permute.xlu0 %4882  ;;  %v4885_v2 = vpop.permute.xlu1 %4884 }
0x1744   : > { %v4900_v49 = vsel %vm309_vm0, %v4883_v0, %v4885_v2  ;;  %v4919_v11 = vsel %vm309_vm0, 0.0, %v4883_v0  ;;  %v4901_v14 = vsel %vm309_vm0, %v4885_v2, %v4887_v22 }
0x1745   : > { %v5049_v37 = vrot.slane %v4900_v49, 4  ;;  %v5048_v30 = vrot.slane %v4919_v11, 4  ;;  %v5050_v16 = vrot.slane %v4901_v14, 4 }
0x1747   : > { %4936 = vrot.lane.b32.xlu0 %v4930_v32, %s7426_s15  ;;  %4972 = vrot.lane.b32.xlu1 %v4968_v10, %s7427_s16  ;;  %v4889_v1 = vpop.permute.xlu1 %4888  ;;  %v4891_v26 = vpop.permute.xlu0 %4890 }
0x1748   : > { %v4902_v12 = vsel %vm309_vm0, %v4889_v1, %v4891_v26  ;;  %v4920_v43 = vsel %vm309_vm0, 0.0, %v4889_v1  ;;  %v4903_v38 = vsel %vm309_vm0, %v4891_v26, %v9492_v58 }
0x174b   : > { %4976 = vrot.lane.b32.xlu1 %v4970_v63, %s7427_s16  ;;  %4953 = vrot.lane.b32.xlu0 %v4896_v40, %s7423_s12 }
0x174f   : > { %4974 = vrot.lane.b32.xlu0 %v4969_v60, %s7427_s16  ;;  %4991 = vrot.lane.b32.xlu1 %v4918_v54, %s7422_s11 }
0x1753   : > { %4995 = vrot.lane.b32.xlu1 %v4899_v61, %s7422_s11  ;;  %4993 = vrot.lane.b32.xlu0 %v4898_v53, %s7422_s11 }
0x1757   : > { %5012 = vrot.lane.b32.xlu1 %v5008_v29, %s7425_s14  ;;  %5014 = vrot.lane.b32.xlu0 %v5009_v6, %s7425_s14 }
0x175b   : > { %5016 = vrot.lane.b32.xlu1 %v5010_v62, %s7425_s14  ;;  %5033 = vrot.lane.b32.xlu0 %v4900_v49, %s7421_s10 }
0x175f   : > { %5031 = vrot.lane.b32.xlu1 %v4919_v11, %s7421_s10  ;;  %5054 = vrot.lane.b32.xlu0 %v5049_v37, %s7424_s13 }
0x1763   : > { %5035 = vrot.lane.b32.xlu1 %v4901_v14, %s7421_s10  ;;  %5073 = vrot.lane.b32.xlu0 %v4902_v12, %s7420_s9 }
0x1767   : > { %5052 = vrot.lane.b32.xlu1 %v5048_v30, %s7424_s13  ;;  %5058 = vrot.lane.b32.xlu0 %v5051_v24, %s7424_s13 }
0x176b   : > { %5056 = vrot.lane.b32.xlu1 %v5050_v16, %s7424_s13 }
0x176f   : > { %5071 = vrot.lane.b32.xlu1 %v4920_v43, %s7420_s9 }
0x1773   : > { %5075 = vrot.lane.b32.xlu1 %v4903_v38, %s7420_s9 }
0x1777   : > { %5077 = vrot.lane.b32.xlu1 %v4925_v3, %s7420_s9 }
0x179d   : > { %v4939_v33 = vpop.permute.xlu0 %4938 }
0x17a1   : > { %v4958_v4 = vpop.permute.xlu0 %4957 }
0x17a5   : > { %v4979_v18 = vpop.permute.xlu0 %4978 }
0x17a9   : > { %v4998_v44 = vpop.permute.xlu0 %4997 }
0x17ad   : > { %v5019_v48 = vpop.permute.xlu0 %5018  ;;  %v4935_v47 = vpop.permute.xlu1 %4934 }
0x17b1   : > { %v5038_v22 = vpop.permute.xlu0 %5037  ;;  %v4952_v35 = vpop.permute.xlu1 %4951 }
0x17b5   : > { %v4933_v7 = vpop.permute.xlu0 %4932  ;;  %v4956_v56 = vpop.permute.xlu1 %4955 }
0x17b6   : > { %v4940_v5 = vsel %vm332_vm10, %v4933_v7, %v4935_v47  ;;  %v4961_v30 = vsel %vm347_vm9, %v4956_v56, %v4958_v4 }
0x17b7   : > { %v4946_v31 = vadd.f32 %v4940_v5, %v9498_v23 }
0x17b9   : > { %v4937_v34 = vpop.permute.xlu0 %4936  ;;  %v4973_v21 = vpop.permute.xlu1 %4972 }
0x17ba   : > { %v4941_v53 = vsel %vm332_vm10, %v4935_v47, %v4937_v34  ;;  %v4942_v29 = vsel %vm332_vm10, %v4937_v34, %v4939_v33 }
0x17bb   : > { %v4947_v62 = vadd.f32 %v4941_v53, %v9489_v28  ;;  %v4948_v37 = vadd.f32 %v4942_v29, %v9505_v20 }
0x17bd   : > { %v4954_v8 = vpop.permute.xlu0 %4953  ;;  %v4977_v9 = vpop.permute.xlu1 %4976  ;;  %v4967_v38 = vadd.f32 %v4961_v30, %v4948_v37 }
0x17be   : > { %v4959_v60 = vsel %vm347_vm9, %v4952_v35, %v4954_v8  ;;  %v4960_v2 = vsel %vm347_vm9, %v4954_v8, %v4956_v56  ;;  %v4982_v20 = vsel %vm362_vm8, %v4977_v9, %v4979_v18 }
0x17bf   : > { %v4965_v0 = vadd.f32 %v4959_v60, %v4946_v31  ;;  %v4966_v14 = vadd.f32 %v4960_v2, %v4947_v62  ;;  %v4988_v56 = vadd.f32 %v4982_v20, %v4967_v38 }
0x17c1   : > { %v4975_v52 = vpop.permute.xlu0 %4974  ;;  %v4992_v55 = vpop.permute.xlu1 %4991 }
0x17c2   : > { %v4980_v6 = vsel %vm362_vm8, %v4973_v21, %v4975_v52  ;;  %v4981_v23 = vsel %vm362_vm8, %v4975_v52, %v4977_v9 }
0x17c3   : > { %v4986_v11 = vadd.f32 %v4980_v6, %v4965_v0  ;;  %v4987_v3 = vadd.f32 %v4981_v23, %v4966_v14 }
0x17c5   : > { %v4996_v25 = vpop.permute.xlu1 %4995  ;;  %v4994_v58 = vpop.permute.xlu0 %4993 }
0x17c6   : > { %v4999_v49 = vsel %vm377_vm7, %v4992_v55, %v4994_v58  ;;  %v5000_v16 = vsel %vm377_vm7, %v4994_v58, %v4996_v25  ;;  %v5001_v8 = vsel %vm377_vm7, %v4996_v25, %v4998_v44 }
0x17c7   : > { %v5005_v24 = vadd.f32 %v4999_v49, %v4986_v11  ;;  %v5006_v7 = vadd.f32 %v5000_v16, %v4987_v3  ;;  %v5007_v9 = vadd.f32 %v5001_v8, %v4988_v56 }
0x17c9   : > { %v5013_v32 = vpop.permute.xlu1 %5012  ;;  %v5015_v10 = vpop.permute.xlu0 %5014 }
0x17ca   : > { %v5020_v12 = vsel %vm392_vm6, %v5013_v32, %v5015_v10 }
0x17cb   : > { %v5026_v28 = vadd.f32 %v5020_v12, %v5005_v24 }
0x17cd   : > { %v5017_v63 = vpop.permute.xlu1 %5016  ;;  %v5034_v54 = vpop.permute.xlu0 %5033 }
0x17ce   : > { %v5021_v47 = vsel %vm392_vm6, %v5015_v10, %v5017_v63  ;;  %v5022_v32 = vsel %vm392_vm6, %v5017_v63, %v5019_v48 }
0x17cf   : > { %v5027_v52 = vadd.f32 %v5021_v47, %v5006_v7  ;;  %v5028_v31 = vadd.f32 %v5022_v32, %v5007_v9 }
0x17d1   : > { %v5032_v40 = vpop.permute.xlu1 %5031  ;;  %v5055_v1 = vpop.permute.xlu0 %5054 }
0x17d2   : > { %v5039_v43 = vsel %vm407_vm4, %v5032_v40, %v5034_v54 }
0x17d3   : > { %v5045_v34 = vadd.f32 %v5039_v43, %v5026_v28 }
0x17d5   : > { %v5036_v61 = vpop.permute.xlu1 %5035  ;;  %v5074_v21 = vpop.permute.xlu0 %5073 }
0x17d6   : > { %v5040_v4 = vsel %vm407_vm4, %v5034_v54, %v5036_v61  ;;  %v5041_v60 = vsel %vm407_vm4, %v5036_v61, %v5038_v22 }
0x17d7   : > { %v5046_v10 = vadd.f32 %v5040_v4, %v5027_v52  ;;  %v5047_v6 = vadd.f32 %v5041_v60, %v5028_v31 }
0x17d9   : > { %v5053_v26 = vpop.permute.xlu1 %5052  ;;  %v5059_v53 = vpop.permute.xlu0 %5058 }
0x17da   : > { %v5060_v35 = vsel %vm422_vm5, %v5053_v26, %v5055_v1 }
0x17db   : > { %v5066_v55 = vadd.f32 %v5060_v35, %v5045_v34 }
0x17dd   : > { %v5057_v33 = vpop.permute.xlu1 %5056 }
0x17de   : > { %v5061_v40 = vsel %vm422_vm5, %v5055_v1, %v5057_v33  ;;  %v5062_v54 = vsel %vm422_vm5, %v5057_v33, %v5059_v53 }
0x17df   : > { %v5067_v44 = vadd.f32 %v5061_v40, %v5046_v10  ;;  %v5068_v0 = vadd.f32 %v5062_v54, %v5047_v6 }
0x17e1   : > { %v5072_v58 = vpop.permute.xlu1 %5071 }
0x17e2   : > { %v5079_v18 = vsel %vm437_vm2, %v5072_v58, %v5074_v21 }
0x17e3   : > { %v5085_v5 = vadd.f32 %v5079_v18, %v5066_v55 }
0x17e5   : > { %v5076_v25 = vpop.permute.xlu1 %5075  ;;  %v5088_v48 = vadd.f32 %v5085_v5, %v7803_v15 }
0x17e6   : > { %v5080_v29 = vsel %vm437_vm2, %v5074_v21, %v5076_v25 }
0x17e7   : > { %v5086_v63 = vadd.f32 %v5080_v29, %v5067_v44  ;;  %v5091_v22 = vmul.f32 %v5088_v48, %v7904_v45 }
0x17e9   : > { %v5089_v2 = vadd.f32 %v5086_v63, %v7803_v15  ;;  %v5078_v49 = vpop.permute.xlu1 %5077 }
0x17ea   : > { %v5081_v62 = vsel %vm437_vm2, %v5076_v25, %v5078_v49 }
0x17eb   : > { %v5092_v61 = vmul.f32 %v5089_v2, %v7908_v50  ;;  %v5087_v37 = vadd.f32 %v5081_v62, %v5068_v0 }
0x17ed   : > { %v5090_v11 = vadd.f32 %v5087_v37, %v7803_v15  ;;  %v5096_v1 = vcombine.low %v5091_v22, %v5092_v61 }
0x17ef   : > { %v5093_v26 = vmul.f32 %v5090_v11, %v7918_v46  ;;  %v9580_v23 = vadd.f32 %v5096_v1, %v9266_v19 }
0x17f1   : > { %5103 = vrot.lane.b32.xlu0 %v9580_v23, %s7419_s8  ;;  %v5102_v12 = vcombine.high %v9580_v23, %v9580_v23  ;;  %v9588_v14 = vadd.f32 %v5093_v26, %v9274_v27 }
0x17f3   : > { %5105 = vrot.lane.b32.xlu1 %v5102_v12, %s7419_s8 }
0x17f5   : > { %5107 = vrot.lane.b32.xlu0 %v9588_v14, %s7419_s8 }
0x1863   : > { %v5104_v24 = vpop.permute.xlu0 %5103 }
0x1864   : > { %v9593_v30 = vsel %vm309_vm0, 0.0, %v5104_v24 }
0x1865   : > { %5193 = vrot.lane.b32.xlu0 %v9593_v30, %s7421_s10  ;;  %v5106_v27 = vpop.permute.xlu1 %5105  ;;  %v5119_v3 = vrot.slane %v9593_v30, 4 }
0x1866   : > { %v9606_v43 = vsel %vm309_vm0, %v5104_v24, %v5106_v27 }
0x1867   : > { %v5108_v19 = vpop.permute.xlu0 %5107  ;;  %v5120_v33 = vrot.slane %v9606_v43, 4 }
0x1868   : > { %v5116_v16 = vsel %vm309_vm0, %v5108_v19, 0.0  ;;  %v9609_v38 = vsel %vm309_vm0, %v5106_v27, %v5108_v19 }
0x1869   : > { %5165 = vrot.lane.b32.xlu0 %v9593_v30, %s7422_s11  ;;  %5227 = vrot.lane.b32.xlu1 %v5116_v16, %s7420_s9  ;;  %v5121_v28 = vrot.slane %v9609_v38, 4  ;;  %v5122_v20 = vrot.slane %v5116_v16, 4 }
0x186d   : > { %5137 = vrot.lane.b32.xlu0 %v9593_v30, %s7423_s12  ;;  %5221 = vrot.lane.b32.xlu1 %v9593_v30, %s7420_s9 }
0x1871   : > { %5225 = vrot.lane.b32.xlu0 %v9609_v38, %s7420_s9  ;;  %5223 = vrot.lane.b32.xlu1 %v9606_v43, %s7420_s9 }
0x1875   : > { %5197 = vrot.lane.b32.xlu0 %v9609_v38, %s7421_s10  ;;  %5195 = vrot.lane.b32.xlu1 %v9606_v43, %s7421_s10 }
0x1879   : > { %5167 = vrot.lane.b32.xlu0 %v9606_v43, %s7422_s11  ;;  %5207 = vrot.lane.b32.xlu1 %v5119_v3, %s7424_s13 }
0x187d   : > { %5139 = vrot.lane.b32.xlu0 %v9606_v43, %s7423_s12  ;;  %5169 = vrot.lane.b32.xlu1 %v9609_v38, %s7422_s11 }
0x1881   : > { %5123 = vrot.lane.b32.xlu0 %v5119_v3, %s7426_s15  ;;  %5179 = vrot.lane.b32.xlu1 %v5119_v3, %s7425_s14 }
0x1885   : > { %5211 = vrot.lane.b32.xlu0 %v5121_v28, %s7424_s13  ;;  %5141 = vrot.lane.b32.xlu1 %v9609_v38, %s7423_s12 }
0x1889   : > { %5151 = vrot.lane.b32.xlu1 %v5119_v3, %s7427_s16  ;;  %5181 = vrot.lane.b32.xlu0 %v5120_v33, %s7425_s14 }
0x188d   : > { %5153 = vrot.lane.b32.xlu0 %v5120_v33, %s7427_s16  ;;  %5209 = vrot.lane.b32.xlu1 %v5120_v33, %s7424_s13 }
0x1891   : > { %5125 = vrot.lane.b32.xlu0 %v5120_v33, %s7426_s15  ;;  %5183 = vrot.lane.b32.xlu1 %v5121_v28, %s7425_s14 }
0x1895   : > { %5199 = vrot.lane.b32.xlu0 %v5116_v16, %s7421_s10  ;;  %5155 = vrot.lane.b32.xlu1 %v5121_v28, %s7427_s16 }
0x1899   : > { %5171 = vrot.lane.b32.xlu0 %v5116_v16, %s7422_s11  ;;  %5127 = vrot.lane.b32.xlu1 %v5121_v28, %s7426_s15 }
0x189d   : > { %5143 = vrot.lane.b32.xlu0 %v5116_v16, %s7423_s12  ;;  %5213 = vrot.lane.b32.xlu1 %v5122_v20, %s7424_s13 }
0x18a1   : > { %5129 = vrot.lane.b32.xlu0 %v5122_v20, %s7426_s15  ;;  %5185 = vrot.lane.b32.xlu1 %v5122_v20, %s7425_s14 }
0x18a5   : > { %5157 = vrot.lane.b32.xlu1 %v5122_v20, %s7427_s16 }
0x18d7   : > { %v5194_v47 = vpop.permute.xlu0 %5193 }
0x18db   : > { %v5166_v35 = vpop.permute.xlu0 %5165  ;;  %v5228_v7 = vpop.permute.xlu1 %5227 }
0x18df   : > { %v5138_v34 = vpop.permute.xlu0 %5137  ;;  %v5222_v21 = vpop.permute.xlu1 %5221 }
0x18e3   : > { %v5226_v8 = vpop.permute.xlu0 %5225  ;;  %v5224_v4 = vpop.permute.xlu1 %5223 }
0x18e4   : > { %v5229_v56 = vsel %vm437_vm2, %v5222_v21, %v5224_v4  ;;  %v5230_v52 = vsel %vm437_vm2, %v5224_v4, %v5226_v8  ;;  %v5231_v55 = vsel %vm437_vm2, %v5226_v8, %v5228_v7 }
0x18e5   : > { %6858 = vmatprep.subr.msk.mxu0 %vm441_vm3, %v5230_v52  ;;  %7280 = vmatprep.subr.msk.mxu1 %vm441_vm3, %v5231_v55 }
0x18e6   : > { %6859 = vmatpush1.msk.msra.mxu0 %vm441_vm3, %v5229_v56  ;;  %7281 = vmatpush3.msk.msra.mxu1 %vm441_vm3, %v5231_v55 }
0x18e7   : > { %v5198_v58 = vpop.permute.xlu0 %5197  ;;  %v5196_v32 = vpop.permute.xlu1 %5195 }
0x18e8   : > { %v5201_v6 = vsel %vm407_vm4, %v5194_v47, %v5196_v32  ;;  %v5202_v48 = vsel %vm407_vm4, %v5196_v32, %v5198_v58 }
0x18eb   : > { %v5168_v40 = vpop.permute.xlu0 %5167  ;;  %v5208_v18 = vpop.permute.xlu1 %5207 }
0x18ec   : > { %v5173_v1 = vsel %vm377_vm7, %v5166_v35, %v5168_v40 }
0x18ef   : > { %v5140_v9 = vpop.permute.xlu0 %5139  ;;  %v5170_v10 = vpop.permute.xlu1 %5169 }
0x18f0   : > { %v5174_v37 = vsel %vm377_vm7, %v5168_v40, %v5170_v10  ;;  %v5145_v28 = vsel %vm347_vm9, %v5138_v34, %v5140_v9 }
0x18f3   : > { %v5124_v5 = vpop.permute.xlu0 %5123  ;;  %v5180_v60 = vpop.permute.xlu1 %5179 }
0x18f7   : > { %v5212_v31 = vpop.permute.xlu0 %5211  ;;  %v9656_v53 = vpop.permute.xlu1 %5141 }
0x18f8   : > { %v5146_v27 = vsel %vm347_vm9, %v5140_v9, %v9656_v53 }
0x18fb   : > { %v5182_v44 = vpop.permute.xlu0 %5181  ;;  %v5152_v25 = vpop.permute.xlu1 %5151 }
0x18fc   : > { %v5187_v62 = vsel %vm392_vm6, %v5180_v60, %v5182_v44 }
0x18fd   : > { %v5238_v12 = vsel %vm441_vm3, %v5173_v1, %v5187_v62 }
0x18ff   : > { %v5154_v54 = vpop.permute.xlu0 %5153  ;;  %v5210_v29 = vpop.permute.xlu1 %5209 }
0x1900   : > { %v5215_v63 = vsel %vm422_vm5, %v5208_v18, %v5210_v29  ;;  %v5216_v0 = vsel %vm422_vm5, %v5210_v29, %v5212_v31  ;;  %v5159_v24 = vsel %vm362_vm8, %v5152_v25, %v5154_v54 }
0x1901   : > { %v5242_v2 = vsel %vm441_vm3, %v5202_v48, %v5216_v0  ;;  %v5241_v49 = vsel %vm441_vm3, %v5201_v6, %v5215_v63  ;;  %v5235_v20 = vsel %vm441_vm3, %v5145_v28, %v5159_v24 }
0x1902   : > { %5274 = vmatprep.subr.mxu0 %v5242_v2 }
0x1903   : > { %v5126_v22 = vpop.permute.xlu0 %5125  ;;  %5275 = vmatpush1.msra.mxu0 %v5241_v49  ;;  %v5184_v61 = vpop.permute.xlu1 %5183 }
0x1904   : > { %v5188_v11 = vsel %vm392_vm6, %v5182_v44, %v5184_v61  ;;  %v5131_v47 = vsel %vm332_vm10, %v5124_v5, %v5126_v22  ;;  %v9708_v44 = vld [vmem:[%s10252_s2 + $0x10] sm:$0xff] }
0x1905   : > { %v5239_v26 = vsel %vm441_vm3, %v5174_v37, %v5188_v11  ;;  %v5232_v4 = vsel %vm441_vm3, %v9593_v30, %v5131_v47 }
0x1906   : > { %5276 = vmatprep.subr.mxu0 %v5239_v26 }
0x1907   : > { %v5200_v19 = vpop.permute.xlu0 %5199  ;;  %5277 = vmatpush1.msra.mxu0 %v5238_v12  ;;  %v5156_v16 = vpop.permute.xlu1 %5155 }
0x1908   : > { %v5160_v3 = vsel %vm362_vm8, %v5154_v54, %v5156_v16  ;;  %v5203_v52 = vsel %vm407_vm4, %v5198_v58, %v5200_v19  ;;  %v9695_v58 = vld [vmem:[%s10252_s2 + $0x8] sm:$0xff]  ;;  %v9719_v54 = vld [vmem:[%s10252_s2 + $0x18] sm:$0xff] }
0x1909   : > { %v5236_v33 = vsel %vm441_vm3, %v5146_v27, %v5160_v3 }
0x190a   : > { %5278 = vmatprep.subr.mxu0 %v5236_v33 }
0x190b   : > { %v5172_v35 = vpop.permute.xlu0 %5171  ;;  %5279 = vmatpush1.msra.mxu0 %v5235_v20  ;;  %v5128_v7 = vpop.permute.xlu1 %5127 }
0x190c   : > { %v5132_v21 = vsel %vm332_vm10, %v5126_v22, %v5128_v7  ;;  %v5175_v30 = vsel %vm377_vm7, %v5170_v10, %v5172_v35 }
0x190d   : > { %v5233_v8 = vsel %vm441_vm3, %v9606_v43, %v5132_v21 }
0x190e   : > { %5280 = vmatprep.subr.mxu0 %v5233_v8 }
0x190f   : > { %v5144_v34 = vpop.permute.xlu0 %5143  ;;  %5281 = vmatpush1.msra.mxu0 %v5232_v4  ;;  %v5214_v56 = vpop.permute.xlu1 %5213 }
0x1910   : > { %v5217_v55 = vsel %vm422_vm5, %v5212_v31, %v5214_v56  ;;  %6860 = vmatmul.mubr.msk.f32.vlgmr.msra.gmra.mxu0 %vm474_vm1, %v9462_v39  ;;  %7296 = vmatprep.subr.mxu0 %v7428_v13  ;;  %v5147_v10 = vsel %vm347_vm9, %v9656_v53, %v5144_v34 }
0x1911   : > { %v5243_v32 = vsel %vm441_vm3, %v5203_v52, %v5217_v55  ;;  %5320 = vmatprep.mubr.f32.mxu0 %v7428_v13 }
0x1912   : > { %7282 = vmatprep.subr.mxu1 %v5243_v32 }
0x1913   : > { %7283 = vmatpush3.msra.mxu1 %v5243_v32  ;;  %v5186_v43 = vpop.permute.xlu1 %5185  ;;  %v5130_v18 = vpop.permute.xlu0 %5129 }
0x1914   : > { %v5189_v40 = vsel %vm392_vm6, %v5184_v61, %v5186_v43  ;;  %6861 = vmatmul.mubr.msk.f32.gmra.mxu0 %vm474_vm1, %v9695_v58  ;;  %v5133_v60 = vsel %vm332_vm10, %v5128_v7, %v5130_v18 }
0x1915   : > { %v5240_v9 = vsel %vm441_vm3, %v5175_v30, %v5189_v40  ;;  %5326 = vmatprep.mubr.f32.mxu0 %v7428_v13  ;;  %v5234_v53 = vsel %vm441_vm3, %v9609_v38, %v5133_v60 }
0x1916   : > { %7284 = vmatprep.subr.mxu1 %v5240_v9 }
0x1917   : > { %7285 = vmatpush3.msra.mxu1 %v5240_v9  ;;  %v5158_v5 = vpop.permute.xlu1 %5157 }
0x1918   : > { %v5161_v31 = vsel %vm362_vm8, %v5156_v16, %v5158_v5  ;;  %6862 = vmatmul.mubr.msk.f32.gmra.mxu0 %vm474_vm1, %v9708_v44 }
0x1919   : > { %v5237_v25 = vsel %vm441_vm3, %v5147_v10, %v5161_v31  ;;  %5332 = vmatprep.mubr.f32.mxu0 %v7428_v13 }
0x191a   : > { %7286 = vmatprep.subr.mxu1 %v5237_v25 }
0x191b   : > { %7287 = vmatpush3.msra.mxu1 %v5237_v25 }
0x191c   : > { %6863 = vmatmul.mubr.msk.f32.gmra.mxu0 %vm474_vm1, %v9719_v54  ;;  %7288 = vmatprep.subr.mxu1 %v5234_v53 }
0x191d   : > { %7289 = vmatpush3.msra.mxu1 %v5234_v53  ;;  %7304 = vmatprep.mubr.msk.f32.mxu0 %vm7430_vm11, %v7428_v13 }
0x191e   : > { %7291 = vmatmul.mubr.msk.f32.vlgmr.msra.gmra.mxu1 %vm474_vm1, %v9695_v58 }
0x191f   : > { %7293 = vmatprep.mubr.msk.f32.mxu1 %vm474_vm1, %v9708_v44 }
0x1922   : > { %7294 = vmatmul.mubr.msk.f32.gmra.mxu1 %vm474_vm1, %v9719_v54 }
0x1923   : > { %5512 = vmatprep.mubr.f32.mxu1 %v7428_v13 }
0x19d0   : > { %v5316_v38 = vpop.f32.mrf.mxu0 }
0x19d1   : > { %v5317_v3 = vadd.f32 %v5316_v38, %v7698_v59 }
0x19d2   : > { %v5318_v29 = vpop.f32.mrf.mxu0 }
0x19d3   : > { %v5319_v26 = vadd.f32 %v5318_v29, %v7698_v59  ;;  %v5424_v43 = vmax.f32 %v5317_v3, 0.0 }
0x19d4   : > { %v5322_v6 = vpop.f32.mrf.mxu0 }
0x19d5   : > { %v5323_v12 = vadd.f32 %v5322_v6, %v7674_v42  ;;  %v5425_v21 = vmax.f32 %v5319_v26, 0.0  ;;  %v5436_v53 = vmul.f32 %v5424_v43, %v7689_v51  ;;  %v9761_v6 = vld [vmem:[%s10254_s4] sm:$0xff] }
0x19d6   : > { %v5324_v48 = vpop.f32.mrf.mxu0 }
0x19d7   : > { %v5325_v11 = vadd.f32 %v5324_v48, %v7674_v42  ;;  %v5427_v8 = vmax.f32 %v5323_v12, 0.0  ;;  %v5437_v60 = vmul.f32 %v5425_v21, %v7696_v57  ;;  %v9774_v48 = vld [vmem:[%s10254_s4 + $0x8] sm:$0xff] }
0x19d8   : > { %v5328_v63 = vpop.f32.mrf.mxu0 }
0x19d9   : > { %v5329_v22 = vadd.f32 %v5328_v63, %v7672_v41  ;;  %v5428_v20 = vmax.f32 %v5325_v11, 0.0  ;;  %v5439_v10 = vmul.f32 %v5427_v8, %v7689_v51  ;;  %v9786_v63 = vld [vmem:[%s10254_s4 + $0x10] sm:$0xff] }
0x19da   : > { %v5330_v0 = vpop.f32.mrf.mxu0 }
0x19db   : > { %v5331_v49 = vadd.f32 %v5330_v0, %v7672_v41  ;;  %v5430_v28 = vmax.f32 %v5329_v22, 0.0  ;;  %v5440_v40 = vmul.f32 %v5428_v20, %v7696_v57  ;;  %v9798_v0 = vld [vmem:[%s10254_s4 + $0x18] sm:$0xff] }
0x19dc   : > { %v5334_v2 = vpop.f32.mrf.mxu0 }
0x19dd   : > { %v5335_v62 = vadd.f32 %v5334_v2, %v7668_v36  ;;  %v5431_v16 = vmax.f32 %v5331_v49, 0.0  ;;  %v5442_v30 = vmul.f32 %v5430_v28, %v7689_v51  ;;  %v9810_v2 = vld [vmem:[%s10254_s4 + $0x20] sm:$0xf] }
0x19de   : > { %v5336_v61 = vpop.f32.mrf.mxu0  ;;  %v7292_v37 = vpop.f32.mrf.mxu1 }
0x19df   : > { %v5337_v1 = vadd.f32 %v5336_v61, %v7668_v36  ;;  %v5433_v24 = vmax.f32 %v5335_v62, 0.0  ;;  %v5411_v35 = vadd.f32 %v7292_v37, %v7674_v42  ;;  %v5443_v56 = vmul.f32 %v5431_v16, %v7696_v57 }
0x19e0   : > { %v5405_v19 = vpop.f32.mrf.mxu1 }
0x19e1   : > { %v5434_v27 = vmax.f32 %v5337_v1, 0.0  ;;  %v5445_v4 = vmul.f32 %v5433_v24, %v7689_v51  ;;  %v5406_v52 = vadd.f32 %v5405_v19, %v7698_v59  ;;  %v5429_v18 = vmax.f32 %v5411_v35, 0.0 }
0x19e2   : > { %v7295_v33 = vpop.f32.mrf.mxu1 }
0x19e3   : > { %v5446_v47 = vmul.f32 %v5434_v27, %v7696_v57  ;;  %v5421_v7 = vadd.f32 %v7295_v33, %v7668_v36  ;;  %v5426_v31 = vmax.f32 %v5406_v52, 0.0  ;;  %v5441_v38 = vmul.f32 %v5429_v18, %v7712_v17 }
0x19e4   : > { %v5415_v34 = vpop.f32.mrf.mxu1 }
0x19e5   : > { %v5435_v55 = vmax.f32 %v5421_v7, 0.0  ;;  %v5416_v32 = vadd.f32 %v5415_v34, %v7672_v41  ;;  %5472 = vmatprep.subr.mxu1 %v5446_v47  ;;  %v5438_v29 = vmul.f32 %v5426_v31, %v7712_v17 }
0x19e6   : > { %5473 = vmatpush1.msra.mxu1 %v5445_v4 }
0x19e7   : > { %v5447_v9 = vmul.f32 %v5435_v55, %v7712_v17  ;;  %v5432_v5 = vmax.f32 %v5416_v32, 0.0  ;;  %5474 = vmatprep.subr.mxu1 %v5443_v56 }
0x19e8   : > { %5475 = vmatpush1.msra.mxu1 %v5442_v30 }
0x19e9   : > { %v5444_v25 = vmul.f32 %v5432_v5, %v7712_v17  ;;  %5476 = vmatprep.subr.mxu1 %v5440_v40  ;;  %7297 = vmatpush3.msra.mxu0 %v5447_v9 }
0x19ea   : > { %5477 = vmatpush1.msra.mxu1 %v5439_v10  ;;  %7298 = vmatprep.subr.mxu0 %v7428_v13 }
0x19eb   : > { %5478 = vmatprep.subr.mxu1 %v5437_v60  ;;  %7299 = vmatpush3.msra.mxu0 %v5444_v25 }
0x19ec   : > { %5479 = vmatpush1.msra.mxu1 %v5436_v53  ;;  %7300 = vmatprep.subr.mxu0 %v7428_v13 }
0x19ed   : > { %7301 = vmatpush3.msra.mxu0 %v5441_v38  ;;  %6869 = vmatmul.mubr.msk.f32.vlgmr.msra.gmra.mxu1 %vm707_vm12, %v9761_v6 }
0x19ee   : > { %7302 = vmatprep.subr.mxu0 %v7428_v13  ;;  %5518 = vmatprep.mubr.f32.mxu1 %v7428_v13 }
0x19ef   : > { %7303 = vmatpush3.msra.mxu0 %v5438_v29 }
0x19f0   : > { %7305 = vmatmul.mubr.msk.f32.vlgmr.msra.gmra.mxu0 %vm707_vm12, %v9761_v6 }
0x19f1   : > { %7307 = vmatprep.mubr.msk.f32.mxu0 %vm7430_vm11, %v7428_v13  ;;  %6870 = vmatmul.mubr.msk.f32.gmra.mxu1 %vm707_vm12, %v9774_v48 }
0x19f2   : > { %5524 = vmatprep.mubr.f32.mxu1 %v7428_v13 }
0x19f4   : > { %7308 = vmatmul.mubr.msk.f32.gmra.mxu0 %vm707_vm12, %v9774_v48 }
0x19f5   : > { %7310 = vmatprep.mubr.msk.f32.mxu0 %vm7430_vm11, %v7428_v13  ;;  %6871 = vmatmul.mubr.msk.f32.gmra.mxu1 %vm707_vm12, %v9786_v63 }
0x19f6   : > { %5530 = vmatprep.mubr.f32.mxu1 %v7428_v13 }
0x19f8   : > { %7311 = vmatmul.mubr.msk.f32.gmra.mxu0 %vm707_vm12, %v9786_v63 }
0x19f9   : > { %7313 = vmatprep.mubr.msk.f32.mxu0 %vm7430_vm11, %v7428_v13  ;;  %6872 = vmatmul.mubr.msk.f32.gmra.mxu1 %vm707_vm12, %v9798_v0 }
0x19fa   : > { %5536 = vmatprep.mubr.f32.mxu1 %v7428_v13 }
0x19fc   : > { %7314 = vmatmul.mubr.msk.f32.gmra.mxu0 %vm707_vm12, %v9798_v0 }
0x19fd   : > { %7316 = vmatprep.mubr.msk.f32.mxu0 %vm7430_vm11, %v7428_v13  ;;  %6873 = vmatmul.mubr.msk.f32.gmra.mxu1 %vm707_vm12, %v9810_v2 }
0x19fe   : > { %6098 = vmatprep.mubr.f32.mxu1 %v7428_v13 }
0x1a00   : > { %7317 = vmatmul.mubr.msk.f32.gmra.mxu0 %vm707_vm12, %v9810_v2 }
0x1a01   : > { %7329 = vmatprep.mubr.msk.f32.mxu0 %vm474_vm1, %v9462_v39 }
0x1aad   : > { %v5514_v49 = vpop.f32.mrf.mxu1 }
0x1aaf   : > { %v5516_v22 = vpop.f32.mrf.mxu1 }
0x1ab0   : > { %v5609_v62 = vpop.f32.mrf.mxu0 }
0x1ab1   : > { %5652 = vrot.lane.b32.xlu1 %v5609_v62, %s7419_s8  ;;  %v5520_v37 = vpop.f32.mrf.mxu1 }
0x1ab2   : > { %v7306_v61 = vpop.f32.mrf.mxu0 }
0x1ab3   : > { %v5522_v26 = vpop.f32.mrf.mxu1 }
0x1ab4   : > { %v5614_v11 = vpop.f32.mrf.mxu0 }
0x1ab5   : > { %5658 = vrot.lane.b32.xlu0 %v5614_v11, %s7419_s8  ;;  %v5526_v19 = vpop.f32.mrf.mxu1 }
0x1ab6   : > { %v7309_v1 = vpop.f32.mrf.mxu0 }
0x1ab7   : > { %v5528_v27 = vpop.f32.mrf.mxu1 }
0x1ab8   : > { %v5619_v12 = vpop.f32.mrf.mxu0 }
0x1ab9   : > { %5664 = vrot.lane.b32.xlu1 %v5619_v12, %s7419_s8  ;;  %v5532_v33 = vpop.f32.mrf.mxu1 }
0x1aba   : > { %v7312_v24 = vpop.f32.mrf.mxu0 }
0x1abb   : > { %v5534_v20 = vpop.f32.mrf.mxu1 }
0x1abc   : > { %v5624_v16 = vpop.f32.mrf.mxu0 }
0x1abd   : > { %5648 = vrot.lane.b32.xlu1 %v5514_v49, %s7419_s8  ;;  %5670 = vrot.lane.b32.xlu0 %v5624_v16, %s7419_s8  ;;  %v5538_v47 = vpop.f32.mrf.mxu1 }
0x1abe   : > { %v7315_v39 = vpop.f32.mrf.mxu0 }
0x1abf   : > { %v5540_v35 = vpop.f32.mrf.mxu1 }
0x1ac0   : > { %v5629_v3 = vpop.f32.mrf.mxu0 }
0x1ac1   : > { %5650 = vrot.lane.b32.xlu0 %v5516_v22, %s7419_s8  ;;  %5676 = vrot.lane.b32.xlu1 %v5629_v3, %s7419_s8 }
0x1ac2   : > { %v7318_v28 = vpop.f32.mrf.mxu0 }
0x1ac5   : > { %5654 = vrot.lane.b32.xlu0 %v5520_v37, %s7419_s8  ;;  %5656 = vrot.lane.b32.xlu1 %v5522_v26, %s7419_s8 }
0x1ac9   : > { %5662 = vrot.lane.b32.xlu0 %v5528_v27, %s7419_s8  ;;  %5660 = vrot.lane.b32.xlu1 %v5526_v19, %s7419_s8 }
0x1acd   : > { %5666 = vrot.lane.b32.xlu0 %v5532_v33, %s7419_s8  ;;  %5668 = vrot.lane.b32.xlu1 %v5534_v20, %s7419_s8 }
0x1ad1   : > { %5674 = vrot.lane.b32.xlu0 %v5540_v35, %s7419_s8  ;;  %5672 = vrot.lane.b32.xlu1 %v5538_v47, %s7419_s8 }
0x1b23   : > { %v5653_v7 = vpop.permute.xlu1 %5652 }
0x1b24   : > { %v5705_v21 = vsel %vm309_vm0, %v5653_v7, 0.0 }
0x1b25   : > { %v5715_v8 = vrot.slane %v5705_v21, 4 }
0x1b27   : > { %v5659_v4 = vpop.permute.xlu0 %5658  ;;  %5722 = vrot.lane.b32.xlu0 %v5715_v8, %s7426_s15 }
0x1b28   : > { %v5706_v34 = vsel %vm309_vm0, %v5659_v4, 0.0 }
0x1b29   : > { %v5755_v52 = vrot.slane %v5706_v34, 4 }
0x1b2b   : > { %v5665_v56 = vpop.permute.xlu1 %5664  ;;  %5741 = vrot.lane.b32.xlu0 %v5706_v34, %s7423_s12 }
0x1b2c   : > { %v5707_v43 = vsel %vm309_vm0, %v5665_v56, 0.0 }
0x1b2d   : > { %v5795_v18 = vrot.slane %v5707_v43, 4 }
0x1b2f   : > { %v5649_v55 = vpop.permute.xlu1 %5648  ;;  %5762 = vrot.lane.b32.xlu0 %v5755_v52, %s7427_s16  ;;  %v5671_v32 = vpop.permute.xlu0 %5670 }
0x1b30   : > { %v9851_v31 = vsel %vm309_vm0, 0.0, %v5649_v55  ;;  %v5708_v25 = vsel %vm309_vm0, %v5671_v32, 0.0 }
0x1b31   : > { %v5712_v38 = vrot.slane %v9851_v31, 4 }
0x1b33   : > { %5781 = vrot.lane.b32.xlu0 %v5707_v43, %s7422_s11  ;;  %v5651_v30 = vpop.permute.xlu0 %5650  ;;  %v9845_v5 = vpop.permute.xlu1 %5676 }
0x1b34   : > { %v9842_v40 = vsel %vm309_vm0, %v5649_v55, %v5651_v30  ;;  %v9858_v29 = vsel %vm309_vm0, %v5651_v30, %v5653_v7 }
0x1b35   : > { %v5713_v9 = vrot.slane %v9842_v40, 4  ;;  %v5714_v62 = vrot.slane %v9858_v29, 4 }
0x1b37   : > { %5802 = vrot.lane.b32.xlu0 %v5795_v18, %s7425_s14  ;;  %v5655_v10 = vpop.permute.xlu0 %5654  ;;  %5718 = vrot.lane.b32.xlu1 %v5713_v9, %s7426_s15  ;;  %v5657_v53 = vpop.permute.xlu1 %5656 }
0x1b38   : > { %v5701_v60 = vsel %vm309_vm0, 0.0, %v5655_v10  ;;  %v5681_v49 = vsel %vm309_vm0, %v5657_v53, %v5659_v4  ;;  %v5680_v37 = vsel %vm309_vm0, %v5655_v10, %v5657_v53  ;;  %v5835_v4 = vrot.slane %v5708_v25, 4 }
0x1b39   : > { %v5752_v22 = vrot.slane %v5701_v60, 4  ;;  %v5754_v61 = vrot.slane %v5681_v49, 4  ;;  %v5753_v26 = vrot.slane %v5680_v37, 4 }
0x1b3b   : > { %5821 = vrot.lane.b32.xlu0 %v5708_v25, %s7421_s10  ;;  %5735 = vrot.lane.b32.xlu1 %v5701_v60, %s7423_s12  ;;  %v5661_v11 = vpop.permute.xlu1 %5660  ;;  %v5663_v12 = vpop.permute.xlu0 %5662 }
0x1b3c   : > { %v5702_v1 = vsel %vm309_vm0, 0.0, %v5661_v11  ;;  %v5683_v24 = vsel %vm309_vm0, %v5663_v12, %v5665_v56  ;;  %v5682_v19 = vsel %vm309_vm0, %v5661_v11, %v5663_v12 }
0x1b3d   : > { %v5792_v16 = vrot.slane %v5702_v1, 4  ;;  %v5793_v39 = vrot.slane %v5682_v19, 4  ;;  %v5794_v33 = vrot.slane %v5683_v24, 4 }
0x1b3f   : > { %5716 = vrot.lane.b32.xlu0 %v5712_v38, %s7426_s15  ;;  %5739 = vrot.lane.b32.xlu1 %v5681_v49, %s7423_s12  ;;  %v5667_v27 = vpop.permute.xlu0 %5666  ;;  %v5669_v3 = vpop.permute.xlu1 %5668 }
0x1b40   : > { %v5684_v28 = vsel %vm309_vm0, %v5667_v27, %v5669_v3  ;;  %v5703_v47 = vsel %vm309_vm0, 0.0, %v5667_v27  ;;  %v5685_v8 = vsel %vm309_vm0, %v5669_v3, %v5671_v32  ;;  %v5709_v32 = vsel %vm309_vm0, %v9845_v5, 0.0 }
0x1b41   : > { %v5833_v20 = vrot.slane %v5684_v28, 4  ;;  %v5832_v34 = vrot.slane %v5703_v47, 4  ;;  %v5834_v56 = vrot.slane %v5685_v8, 4 }
0x1b43   : > { %5720 = vrot.lane.b32.xlu0 %v5714_v62, %s7426_s15  ;;  %5756 = vrot.lane.b32.xlu1 %v5752_v22, %s7427_s16  ;;  %v5673_v35 = vpop.permute.xlu1 %5672  ;;  %v5675_v7 = vpop.permute.xlu0 %5674 }
0x1b44   : > { %v5686_v21 = vsel %vm309_vm0, %v5673_v35, %v5675_v7  ;;  %v5704_v52 = vsel %vm309_vm0, 0.0, %v5673_v35  ;;  %v5687_v55 = vsel %vm309_vm0, %v5675_v7, %v9845_v5 }
0x1b47   : > { %5760 = vrot.lane.b32.xlu1 %v5754_v61, %s7427_s16  ;;  %5737 = vrot.lane.b32.xlu0 %v5680_v37, %s7423_s12 }
0x1b4b   : > { %5758 = vrot.lane.b32.xlu0 %v5753_v26, %s7427_s16  ;;  %5775 = vrot.lane.b32.xlu1 %v5702_v1, %s7422_s11 }
0x1b4f   : > { %5779 = vrot.lane.b32.xlu1 %v5683_v24, %s7422_s11  ;;  %5777 = vrot.lane.b32.xlu0 %v5682_v19, %s7422_s11 }
0x1b53   : > { %5796 = vrot.lane.b32.xlu1 %v5792_v16, %s7425_s14  ;;  %5798 = vrot.lane.b32.xlu0 %v5793_v39, %s7425_s14 }
0x1b57   : > { %5800 = vrot.lane.b32.xlu1 %v5794_v33, %s7425_s14  ;;  %5817 = vrot.lane.b32.xlu0 %v5684_v28, %s7421_s10 }
0x1b5b   : > { %5815 = vrot.lane.b32.xlu1 %v5703_v47, %s7421_s10  ;;  %5838 = vrot.lane.b32.xlu0 %v5833_v20, %s7424_s13 }
0x1b5f   : > { %5819 = vrot.lane.b32.xlu1 %v5685_v8, %s7421_s10  ;;  %5857 = vrot.lane.b32.xlu0 %v5686_v21, %s7420_s9 }
0x1b63   : > { %5836 = vrot.lane.b32.xlu1 %v5832_v34, %s7424_s13  ;;  %5842 = vrot.lane.b32.xlu0 %v5835_v4, %s7424_s13 }
0x1b67   : > { %5840 = vrot.lane.b32.xlu1 %v5834_v56, %s7424_s13 }
0x1b6b   : > { %5855 = vrot.lane.b32.xlu1 %v5704_v52, %s7420_s9 }
0x1b6f   : > { %5859 = vrot.lane.b32.xlu1 %v5687_v55, %s7420_s9 }
0x1b73   : > { %5861 = vrot.lane.b32.xlu1 %v5709_v32, %s7420_s9 }
0x1b99   : > { %v5723_v43 = vpop.permute.xlu0 %5722 }
0x1b9d   : > { %v5742_v30 = vpop.permute.xlu0 %5741 }
0x1ba1   : > { %v5763_v18 = vpop.permute.xlu0 %5762 }
0x1ba5   : > { %v5782_v9 = vpop.permute.xlu0 %5781 }
0x1ba9   : > { %v5803_v10 = vpop.permute.xlu0 %5802  ;;  %v5719_v60 = vpop.permute.xlu1 %5718 }
0x1bad   : > { %v5822_v25 = vpop.permute.xlu0 %5821  ;;  %v5736_v53 = vpop.permute.xlu1 %5735 }
0x1bb1   : > { %v5717_v38 = vpop.permute.xlu0 %5716  ;;  %v5740_v49 = vpop.permute.xlu1 %5739 }
0x1bb2   : > { %v5724_v39 = vsel %vm332_vm10, %v5717_v38, %v5719_v60 }
0x1bb3   : > { %v5730_v28 = vadd.f32 %v5724_v39, %v9851_v31 }
0x1bb5   : > { %v5721_v62 = vpop.permute.xlu0 %5720  ;;  %v5757_v22 = vpop.permute.xlu1 %5756 }
0x1bb6   : > { %v5725_v20 = vsel %vm332_vm10, %v5719_v60, %v5721_v62  ;;  %v5726_v47 = vsel %vm332_vm10, %v5721_v62, %v5723_v43 }
0x1bb7   : > { %v5731_v4 = vadd.f32 %v5725_v20, %v9842_v40  ;;  %v5732_v34 = vadd.f32 %v5726_v47, %v9858_v29 }
0x1bb9   : > { %v5738_v61 = vpop.permute.xlu0 %5737  ;;  %v5761_v37 = vpop.permute.xlu1 %5760 }
0x1bba   : > { %v5743_v3 = vsel %vm347_vm9, %v5736_v53, %v5738_v61  ;;  %v5744_v21 = vsel %vm347_vm9, %v5738_v61, %v5740_v49  ;;  %v5745_v53 = vsel %vm347_vm9, %v5740_v49, %v5742_v30  ;;  %v5766_v29 = vsel %vm362_vm8, %v5761_v37, %v5763_v18 }
0x1bbb   : > { %v5749_v7 = vadd.f32 %v5743_v3, %v5730_v28  ;;  %v5750_v60 = vadd.f32 %v5744_v21, %v5731_v4 }
0x1bbd   : > { %v5759_v11 = vpop.permute.xlu0 %5758  ;;  %v5776_v1 = vpop.permute.xlu1 %5775 }
0x1bbe   : > { %v5764_v35 = vsel %vm362_vm8, %v5757_v22, %v5759_v11  ;;  %v5765_v31 = vsel %vm362_vm8, %v5759_v11, %v5761_v37  ;;  %v5751_v22 = vadd.f32 %v5745_v53, %v5732_v34 }
0x1bbf   : > { %v5770_v56 = vadd.f32 %v5764_v35, %v5749_v7  ;;  %v5771_v61 = vadd.f32 %v5765_v31, %v5750_v60 }
0x1bc0   : > { %v5772_v49 = vadd.f32 %v5766_v29, %v5751_v22 }
0x1bc1   : > { %v5780_v26 = vpop.permute.xlu1 %5779  ;;  %v5778_v5 = vpop.permute.xlu0 %5777 }
0x1bc2   : > { %v5783_v8 = vsel %vm377_vm7, %v5776_v1, %v5778_v5  ;;  %v5784_v38 = vsel %vm377_vm7, %v5778_v5, %v5780_v26  ;;  %v5785_v20 = vsel %vm377_vm7, %v5780_v26, %v5782_v9 }
0x1bc3   : > { %v5789_v43 = vadd.f32 %v5783_v8, %v5770_v56  ;;  %v5790_v3 = vadd.f32 %v5784_v38, %v5771_v61  ;;  %v5791_v37 = vadd.f32 %v5785_v20, %v5772_v49 }
0x1bc5   : > { %v5797_v12 = vpop.permute.xlu1 %5796  ;;  %v5799_v24 = vpop.permute.xlu0 %5798 }
0x1bc6   : > { %v5804_v32 = vsel %vm392_vm6, %v5797_v12, %v5799_v24 }
0x1bc7   : > { %v5810_v40 = vadd.f32 %v5804_v32, %v5789_v43 }
0x1bc9   : > { %v5801_v19 = vpop.permute.xlu1 %5800  ;;  %v5818_v27 = vpop.permute.xlu0 %5817 }
0x1bca   : > { %v5805_v39 = vsel %vm392_vm6, %v5799_v24, %v5801_v19  ;;  %v5806_v35 = vsel %vm392_vm6, %v5801_v19, %v5803_v10 }
0x1bcb   : > { %v5811_v5 = vadd.f32 %v5805_v39, %v5790_v3  ;;  %v5812_v4 = vadd.f32 %v5806_v35, %v5791_v37 }
0x1bcd   : > { %v5816_v16 = vpop.permute.xlu1 %5815  ;;  %v5839_v52 = vpop.permute.xlu0 %5838 }
0x1bce   : > { %v5823_v62 = vsel %vm407_vm4, %v5816_v16, %v5818_v27 }
0x1bcf   : > { %v5829_v12 = vadd.f32 %v5823_v62, %v5810_v40 }
0x1bd1   : > { %v5820_v33 = vpop.permute.xlu1 %5819  ;;  %v5858_v28 = vpop.permute.xlu0 %5857 }
0x1bd2   : > { %v5824_v30 = vsel %vm407_vm4, %v5818_v27, %v5820_v33  ;;  %v5825_v8 = vsel %vm407_vm4, %v5820_v33, %v5822_v25 }
0x1bd3   : > { %v5830_v24 = vadd.f32 %v5824_v30, %v5811_v5 }
0x1bd5   : > { %v5837_v55 = vpop.permute.xlu1 %5836  ;;  %v5843_v34 = vpop.permute.xlu0 %5842 }
0x1bd6   : > { %v5844_v11 = vsel %vm422_vm5, %v5837_v55, %v5839_v52  ;;  %v5831_v55 = vadd.f32 %v5825_v8, %v5812_v4 }
0x1bd7   : > { %v5850_v16 = vadd.f32 %v5844_v11, %v5829_v12 }
0x1bd9   : > { %v5841_v1 = vpop.permute.xlu1 %5840 }
0x1bda   : > { %v5845_v7 = vsel %vm422_vm5, %v5839_v52, %v5841_v1  ;;  %v5846_v27 = vsel %vm422_vm5, %v5841_v1, %v5843_v34 }
0x1bdb   : > { %v5851_v9 = vadd.f32 %v5845_v7, %v5830_v24  ;;  %v5852_v52 = vadd.f32 %v5846_v27, %v5831_v55 }
0x1bdd   : > { %v5856_v47 = vpop.permute.xlu1 %5855 }
0x1bde   : > { %v5863_v18 = vsel %vm437_vm2, %v5856_v47, %v5858_v28 }
0x1bdf   : > { %v5869_v21 = vadd.f32 %v5863_v18, %v5850_v16 }
0x1be1   : > { %v5860_v26 = vpop.permute.xlu1 %5859  ;;  %v5872_v10 = vadd.f32 %v5869_v21, %v7803_v15 }
0x1be2   : > { %v5864_v56 = vsel %vm437_vm2, %v5858_v28, %v5860_v26 }
0x1be3   : > { %v5870_v19 = vadd.f32 %v5864_v56, %v5851_v9  ;;  %v5875_v25 = vmul.f32 %v5872_v10, %v7904_v45 }
0x1be5   : > { %v5873_v31 = vadd.f32 %v5870_v19, %v7803_v15  ;;  %v5862_v32 = vpop.permute.xlu1 %5861 }
0x1be6   : > { %v5865_v60 = vsel %vm437_vm2, %v5860_v26, %v5862_v32 }
0x1be7   : > { %v5876_v33 = vmul.f32 %v5873_v31, %v7908_v50  ;;  %v5871_v43 = vadd.f32 %v5865_v60, %v5852_v52 }
0x1be9   : > { %v5880_v53 = vcombine.low %v5875_v25, %v5876_v33  ;;  %v5874_v38 = vadd.f32 %v5871_v43, %v7803_v15 }
0x1beb   : > { %v5877_v62 = vmul.f32 %v5874_v38, %v7918_v46  ;;  %v9933_v22 = vadd.f32 %v5880_v53, %v9580_v23 }
0x1bed   : > { %5887 = vrot.lane.b32.xlu0 %v9933_v22, %s7419_s8  ;;  %v5886_v61 = vcombine.high %v9933_v22, %v9933_v22  ;;  %v9941_v40 = vadd.f32 %v5877_v62, %v9588_v14 }
0x1bef   : > { %5889 = vrot.lane.b32.xlu1 %v5886_v61, %s7419_s8 }
0x1bf1   : > { %5891 = vrot.lane.b32.xlu0 %v9941_v40, %s7419_s8 }
0x1c5f   : > { %v5888_v1 = vpop.permute.xlu0 %5887 }
0x1c60   : > { %v9946_v29 = vsel %vm309_vm0, 0.0, %v5888_v1 }
0x1c61   : > { %5977 = vrot.lane.b32.xlu0 %v9946_v29, %s7421_s10  ;;  %v5890_v14 = vpop.permute.xlu1 %5889  ;;  %v5903_v12 = vrot.slane %v9946_v29, 4 }
0x1c62   : > { %v9959_v11 = vsel %vm309_vm0, %v5888_v1, %v5890_v14 }
0x1c63   : > { %v5892_v23 = vpop.permute.xlu0 %5891  ;;  %v5904_v20 = vrot.slane %v9959_v11, 4 }
0x1c64   : > { %v5900_v39 = vsel %vm309_vm0, %v5892_v23, 0.0  ;;  %v9962_v3 = vsel %vm309_vm0, %v5890_v14, %v5892_v23 }
0x1c65   : > { %5949 = vrot.lane.b32.xlu0 %v9946_v29, %s7422_s11  ;;  %6011 = vrot.lane.b32.xlu1 %v5900_v39, %s7420_s9  ;;  %v5905_v28 = vrot.slane %v9962_v3, 4  ;;  %v5906_v30 = vrot.slane %v5900_v39, 4 }
0x1c69   : > { %5921 = vrot.lane.b32.xlu0 %v9946_v29, %s7423_s12  ;;  %6005 = vrot.lane.b32.xlu1 %v9946_v29, %s7420_s9 }
0x1c6d   : > { %6009 = vrot.lane.b32.xlu0 %v9962_v3, %s7420_s9  ;;  %6007 = vrot.lane.b32.xlu1 %v9959_v11, %s7420_s9 }
0x1c71   : > { %5981 = vrot.lane.b32.xlu0 %v9962_v3, %s7421_s10  ;;  %5979 = vrot.lane.b32.xlu1 %v9959_v11, %s7421_s10 }
0x1c75   : > { %5951 = vrot.lane.b32.xlu0 %v9959_v11, %s7422_s11  ;;  %5991 = vrot.lane.b32.xlu1 %v5903_v12, %s7424_s13 }
0x1c79   : > { %5923 = vrot.lane.b32.xlu0 %v9959_v11, %s7423_s12  ;;  %5953 = vrot.lane.b32.xlu1 %v9962_v3, %s7422_s11 }
0x1c7d   : > { %5907 = vrot.lane.b32.xlu0 %v5903_v12, %s7426_s15  ;;  %5963 = vrot.lane.b32.xlu1 %v5903_v12, %s7425_s14 }
0x1c81   : > { %5995 = vrot.lane.b32.xlu0 %v5905_v28, %s7424_s13  ;;  %5925 = vrot.lane.b32.xlu1 %v9962_v3, %s7423_s12 }
0x1c85   : > { %5935 = vrot.lane.b32.xlu1 %v5903_v12, %s7427_s16  ;;  %5965 = vrot.lane.b32.xlu0 %v5904_v20, %s7425_s14 }
0x1c89   : > { %5937 = vrot.lane.b32.xlu0 %v5904_v20, %s7427_s16  ;;  %5993 = vrot.lane.b32.xlu1 %v5904_v20, %s7424_s13 }
0x1c8d   : > { %5909 = vrot.lane.b32.xlu0 %v5904_v20, %s7426_s15  ;;  %5967 = vrot.lane.b32.xlu1 %v5905_v28, %s7425_s14 }
0x1c91   : > { %5983 = vrot.lane.b32.xlu0 %v5900_v39, %s7421_s10  ;;  %5939 = vrot.lane.b32.xlu1 %v5905_v28, %s7427_s16 }
0x1c95   : > { %5955 = vrot.lane.b32.xlu0 %v5900_v39, %s7422_s11  ;;  %5911 = vrot.lane.b32.xlu1 %v5905_v28, %s7426_s15 }
0x1c99   : > { %5927 = vrot.lane.b32.xlu0 %v5900_v39, %s7423_s12  ;;  %5997 = vrot.lane.b32.xlu1 %v5906_v30, %s7424_s13 }
0x1c9d   : > { %5913 = vrot.lane.b32.xlu0 %v5906_v30, %s7426_s15  ;;  %5969 = vrot.lane.b32.xlu1 %v5906_v30, %s7425_s14 }
0x1ca1   : > { %5941 = vrot.lane.b32.xlu1 %v5906_v30, %s7427_s16 }
0x1cd3   : > { %v5978_v49 = vpop.permute.xlu0 %5977 }
0x1cd7   : > { %v5950_v5 = vpop.permute.xlu0 %5949  ;;  %v6012_v16 = vpop.permute.xlu1 %6011 }
0x1cdb   : > { %v5922_v47 = vpop.permute.xlu0 %5921  ;;  %v6006_v35 = vpop.permute.xlu1 %6005 }
0x1cdf   : > { %v6010_v7 = vpop.permute.xlu0 %6009  ;;  %v6008_v18 = vpop.permute.xlu1 %6007 }
0x1ce0   : > { %v6015_v37 = vsel %vm437_vm2, %v6010_v7, %v6012_v16  ;;  %v6013_v24 = vsel %vm437_vm2, %v6006_v35, %v6008_v18  ;;  %v6014_v21 = vsel %vm437_vm2, %v6008_v18, %v6010_v7 }
0x1ce1   : > { %6879 = vmatprep.subr.msk.mxu1 %vm441_vm3, %v6014_v21  ;;  %7319 = vmatprep.subr.msk.mxu0 %vm441_vm3, %v6015_v37 }
0x1ce2   : > { %6880 = vmatpush1.msk.msra.mxu1 %vm441_vm3, %v6013_v24  ;;  %7320 = vmatpush3.msk.msra.mxu0 %vm441_vm3, %v6015_v37 }
0x1ce3   : > { %v5982_v8 = vpop.permute.xlu0 %5981  ;;  %v5980_v4 = vpop.permute.xlu1 %5979 }
0x1ce4   : > { %v5985_v25 = vsel %vm407_vm4, %v5978_v49, %v5980_v4  ;;  %v5986_v33 = vsel %vm407_vm4, %v5980_v4, %v5982_v8 }
0x1ce7   : > { %v5952_v34 = vpop.permute.xlu0 %5951  ;;  %v5992_v9 = vpop.permute.xlu1 %5991 }
0x1ce8   : > { %v5957_v12 = vsel %vm377_vm7, %v5950_v5, %v5952_v34 }
0x1ceb   : > { %v5924_v26 = vpop.permute.xlu0 %5923  ;;  %v5954_v27 = vpop.permute.xlu1 %5953 }
0x1cec   : > { %v5958_v39 = vsel %vm377_vm7, %v5952_v34, %v5954_v27  ;;  %v5929_v18 = vsel %vm347_vm9, %v5922_v47, %v5924_v26 }
0x1cef   : > { %v5908_v56 = vpop.permute.xlu0 %5907  ;;  %v5964_v55 = vpop.permute.xlu1 %5963 }
0x1cf3   : > { %v5996_v10 = vpop.permute.xlu0 %5995  ;;  %v10009_v19 = vpop.permute.xlu1 %5925 }
0x1cf4   : > { %v5930_v35 = vsel %vm347_vm9, %v5924_v26, %v10009_v19 }
0x1cf7   : > { %v5966_v52 = vpop.permute.xlu0 %5965  ;;  %v5936_v31 = vpop.permute.xlu1 %5935 }
0x1cf8   : > { %v5971_v61 = vsel %vm392_vm6, %v5964_v55, %v5966_v52 }
0x1cf9   : > { %v6022_v20 = vsel %vm441_vm3, %v5957_v12, %v5971_v61 }
0x1cfb   : > { %v5938_v32 = vpop.permute.xlu0 %5937  ;;  %v5994_v60 = vpop.permute.xlu1 %5993 }
0x1cfc   : > { %v5999_v43 = vsel %vm422_vm5, %v5992_v9, %v5994_v60  ;;  %v6000_v53 = vsel %vm422_vm5, %v5994_v60, %v5996_v10  ;;  %v5943_v30 = vsel %vm362_vm8, %v5936_v31, %v5938_v32 }
0x1cfd   : > { %v6026_v38 = vsel %vm441_vm3, %v5986_v33, %v6000_v53  ;;  %v6025_v62 = vsel %vm441_vm3, %v5985_v25, %v5999_v43  ;;  %v6019_v5 = vsel %vm441_vm3, %v5929_v18, %v5943_v30 }
0x1cfe   : > { %6058 = vmatprep.subr.mxu1 %v6026_v38 }
0x1cff   : > { %v5910_v1 = vpop.permute.xlu0 %5909  ;;  %6059 = vmatpush1.msra.mxu1 %v6025_v62  ;;  %v5968_v23 = vpop.permute.xlu1 %5967 }
0x1d00   : > { %v5972_v14 = vsel %vm392_vm6, %v5966_v52, %v5968_v23  ;;  %v5915_v24 = vsel %vm332_vm10, %v5908_v56, %v5910_v1  ;;  %v7410_v56 = vld [vmem:[%s10252_s2] sm:$0xff] }
0x1d01   : > { %v6023_v28 = vsel %vm441_vm3, %v5958_v39, %v5972_v14  ;;  %v6016_v55 = vsel %vm441_vm3, %v9946_v29, %v5915_v24 }
0x1d02   : > { %6060 = vmatprep.subr.mxu1 %v6023_v28 }
0x1d03   : > { %v5984_v49 = vpop.permute.xlu0 %5983  ;;  %6061 = vmatpush1.msra.mxu1 %v6022_v20  ;;  %v5940_v16 = vpop.permute.xlu1 %5939 }
0x1d04   : > { %v5944_v7 = vsel %vm362_vm8, %v5938_v32, %v5940_v16  ;;  %v5987_v52 = vsel %vm407_vm4, %v5982_v8, %v5984_v49 }
0x1d05   : > { %v6020_v37 = vsel %vm441_vm3, %v5930_v35, %v5944_v7 }
0x1d06   : > { %6062 = vmatprep.subr.mxu1 %v6020_v37 }
0x1d07   : > { %v5956_v21 = vpop.permute.xlu0 %5955  ;;  %6063 = vmatpush1.msra.mxu1 %v6019_v5  ;;  %v5912_v4 = vpop.permute.xlu1 %5911 }
0x1d08   : > { %v5916_v34 = vsel %vm332_vm10, %v5910_v1, %v5912_v4  ;;  %v5959_v32 = vsel %vm377_vm7, %v5954_v27, %v5956_v21 }
0x1d09   : > { %v6017_v9 = vsel %vm441_vm3, %v9959_v11, %v5916_v34 }
0x1d0a   : > { %6064 = vmatprep.subr.mxu1 %v6017_v9 }
0x1d0b   : > { %v5928_v47 = vpop.permute.xlu0 %5927  ;;  %6065 = vmatpush1.msra.mxu1 %v6016_v55  ;;  %v5998_v26 = vpop.permute.xlu1 %5997 }
0x1d0c   : > { %v6001_v31 = vsel %vm422_vm5, %v5996_v10, %v5998_v26  ;;  %6881 = vmatmul.mubr.msk.f32.vlgmr.msra.gmra.mxu1 %vm474_vm1, %v7410_v56  ;;  %7335 = vmatprep.subr.mxu1 %v7428_v13  ;;  %v5931_v33 = vsel %vm347_vm9, %v10009_v19, %v5928_v47 }
0x1d0d   : > { %v6027_v11 = vsel %vm441_vm3, %v5987_v52, %v6001_v31  ;;  %6104 = vmatprep.mubr.f32.mxu1 %v7428_v13 }
0x1d0e   : > { %7321 = vmatprep.subr.mxu0 %v6027_v11 }
0x1d0f   : > { %7322 = vmatpush3.msra.mxu0 %v6027_v11  ;;  %v5970_v29 = vpop.permute.xlu1 %5969  ;;  %v5914_v10 = vpop.permute.xlu0 %5913 }
0x1d10   : > { %v5973_v8 = vsel %vm392_vm6, %v5968_v23, %v5970_v29  ;;  %6882 = vmatmul.mubr.msk.f32.gmra.mxu1 %vm474_vm1, %v9695_v58  ;;  %v5917_v43 = vsel %vm332_vm10, %v5912_v4, %v5914_v10 }
0x1d11   : > { %v6024_v60 = vsel %vm441_vm3, %v5959_v32, %v5973_v8  ;;  %6110 = vmatprep.mubr.f32.mxu1 %v7428_v13  ;;  %v6018_v38 = vsel %vm441_vm3, %v9962_v3, %v5917_v43 }
0x1d12   : > { %7323 = vmatprep.subr.mxu0 %v6024_v60 }
0x1d13   : > { %7324 = vmatpush3.msra.mxu0 %v6024_v60  ;;  %v5942_v25 = vpop.permute.xlu1 %5941 }
0x1d14   : > { %v5945_v27 = vsel %vm362_vm8, %v5940_v16, %v5942_v25  ;;  %6883 = vmatmul.mubr.msk.f32.gmra.mxu1 %vm474_vm1, %v9708_v44 }
0x1d15   : > { %v6021_v53 = vsel %vm441_vm3, %v5931_v33, %v5945_v27  ;;  %6116 = vmatprep.mubr.f32.mxu1 %v7428_v13 }
0x1d16   : > { %7325 = vmatprep.subr.mxu0 %v6021_v53 }
0x1d17   : > { %7326 = vmatpush3.msra.mxu0 %v6021_v53 }
0x1d18   : > { %6884 = vmatmul.mubr.msk.f32.gmra.mxu1 %vm474_vm1, %v9719_v54  ;;  %7327 = vmatprep.subr.mxu0 %v6018_v38 }
0x1d19   : > { %7328 = vmatpush3.msra.mxu0 %v6018_v38  ;;  %7343 = vmatprep.mubr.msk.f32.mxu1 %vm7430_vm11, %v7428_v13 }
0x1d1a   : > { %7330 = vmatmul.mubr.msk.f32.vlgmr.msra.gmra.mxu0 %vm474_vm1, %v9695_v58 }
0x1d1b   : > { %7332 = vmatprep.mubr.msk.f32.mxu0 %vm474_vm1, %v9708_v44 }
0x1d1e   : > { %7333 = vmatmul.mubr.msk.f32.gmra.mxu0 %vm474_vm1, %v9719_v54 }
0x1d1f   : > { %6296 = vmatprep.mubr.f32.mxu0 %v7428_v13 }
0x1dcc   : > { %v6100_v3 = vpop.f32.mrf.mxu1 }
0x1dcd   : > { %v6101_v37 = vadd.f32 %v6100_v3, %v7698_v59 }
0x1dce   : > { %v6102_v19 = vpop.f32.mrf.mxu1 }
0x1dcf   : > { %v6103_v30 = vadd.f32 %v6102_v19, %v7698_v59  ;;  %v6208_v32 = vmax.f32 %v6101_v37, 0.0 }
0x1dd0   : > { %v6106_v62 = vpop.f32.mrf.mxu1 }
0x1dd1   : > { %v6107_v49 = vadd.f32 %v6106_v62, %v7674_v42  ;;  %v6209_v55 = vmax.f32 %v6103_v30, 0.0  ;;  %v6220_v43 = vmul.f32 %v6208_v32, %v7689_v51 }
0x1dd2   : > { %v6108_v61 = vpop.f32.mrf.mxu1 }
0x1dd3   : > { %v6109_v20 = vadd.f32 %v6108_v61, %v7674_v42  ;;  %v6211_v47 = vmax.f32 %v6107_v49, 0.0 }
0x1dd4   : > { %v6112_v1 = vpop.f32.mrf.mxu1 }
0x1dd5   : > { %v6113_v58 = vadd.f32 %v6112_v1, %v7672_v41  ;;  %v6212_v21 = vmax.f32 %v6109_v20, 0.0  ;;  %v6223_v25 = vmul.f32 %v6211_v47, %v7689_v51 }
0x1dd6   : > { %v6114_v23 = vpop.f32.mrf.mxu1 }
0x1dd7   : > { %v6115_v14 = vadd.f32 %v6114_v23, %v7672_v41  ;;  %v6214_v5 = vmax.f32 %v6113_v58, 0.0 }
0x1dd8   : > { %v6118_v39 = vpop.f32.mrf.mxu1 }
0x1dd9   : > { %v6119_v12 = vadd.f32 %v6118_v39, %v7668_v36  ;;  %v6215_v7 = vmax.f32 %v6115_v14, 0.0  ;;  %v6226_v8 = vmul.f32 %v6214_v5, %v7689_v51 }
0x1dda   : > { %v6120_v28 = vpop.f32.mrf.mxu1  ;;  %v7331_v44 = vpop.f32.mrf.mxu0 }
0x1ddb   : > { %v6121_v54 = vadd.f32 %v6120_v28, %v7668_v36  ;;  %v6217_v16 = vmax.f32 %v6119_v12, 0.0  ;;  %v6195_v34 = vadd.f32 %v7331_v44, %v7674_v42  ;;  %v6227_v31 = vmul.f32 %v6215_v7, %v7696_v57 }
0x1ddc   : > { %v6189_v35 = vpop.f32.mrf.mxu0  ;;  %v6224_v42 = vmul.f32 %v6212_v21, %v7696_v57 }
0x1ddd   : > { %v6218_v18 = vmax.f32 %v6121_v54, 0.0  ;;  %v6229_v26 = vmul.f32 %v6217_v16, %v7689_v51  ;;  %v6190_v56 = vadd.f32 %v6189_v35, %v7698_v59  ;;  %v6221_v59 = vmul.f32 %v6209_v55, %v7696_v57 }
0x1dde   : > { %v7334_v24 = vpop.f32.mrf.mxu0 }
0x1ddf   : > { %v6230_v4 = vmul.f32 %v6218_v18, %v7696_v57  ;;  %v6205_v9 = vadd.f32 %v7334_v24, %v7668_v36  ;;  %v6213_v36 = vmax.f32 %v6195_v34, 0.0  ;;  %v6210_v33 = vmax.f32 %v6190_v56, 0.0 }
0x1de0   : > { %v6199_v52 = vpop.f32.mrf.mxu0 }
0x1de1   : > { %v6219_v11 = vmax.f32 %v6205_v9, 0.0  ;;  %v6200_v29 = vadd.f32 %v6199_v52, %v7672_v41  ;;  %6256 = vmatprep.subr.mxu0 %v6230_v4  ;;  %v6225_v27 = vmul.f32 %v6213_v36, %v7712_v17  ;;  %v6222_v53 = vmul.f32 %v6210_v33, %v7712_v17 }
0x1de2   : > { %6257 = vmatpush1.msra.mxu0 %v6229_v26 }
0x1de3   : > { %v6231_v10 = vmul.f32 %v6219_v11, %v7712_v17  ;;  %v6216_v60 = vmax.f32 %v6200_v29, 0.0  ;;  %6258 = vmatprep.subr.mxu0 %v6227_v31 }
0x1de4   : > { %6259 = vmatpush1.msra.mxu0 %v6226_v8 }
0x1de5   : > { %v6228_v41 = vmul.f32 %v6216_v60, %v7712_v17  ;;  %6260 = vmatprep.subr.mxu0 %v6224_v42  ;;  %7336 = vmatpush3.msra.mxu1 %v6231_v10 }
0x1de6   : > { %6261 = vmatpush1.msra.mxu0 %v6223_v25  ;;  %7337 = vmatprep.subr.mxu1 %v7428_v13 }
0x1de7   : > { %6262 = vmatprep.subr.mxu0 %v6221_v59  ;;  %7338 = vmatpush3.msra.mxu1 %v6228_v41 }
0x1de8   : > { %6263 = vmatpush1.msra.mxu0 %v6220_v43  ;;  %7339 = vmatprep.subr.mxu1 %v7428_v13 }
0x1de9   : > { %7340 = vmatpush3.msra.mxu1 %v6225_v27  ;;  %6890 = vmatmul.mubr.msk.f32.vlgmr.msra.gmra.mxu0 %vm707_vm12, %v9761_v6 }
0x1dea   : > { %7341 = vmatprep.subr.mxu1 %v7428_v13  ;;  %6302 = vmatprep.mubr.f32.mxu0 %v7428_v13 }
0x1deb   : > { %7342 = vmatpush3.msra.mxu1 %v6222_v53 }
0x1dec   : > { %7344 = vmatmul.mubr.msk.f32.vlgmr.msra.gmra.mxu1 %vm707_vm12, %v9761_v6 }
0x1ded   : > { %7346 = vmatprep.mubr.msk.f32.mxu1 %vm7430_vm11, %v7428_v13  ;;  %6891 = vmatmul.mubr.msk.f32.gmra.mxu0 %vm707_vm12, %v9774_v48 }
0x1dee   : > { %6308 = vmatprep.mubr.f32.mxu0 %v7428_v13 }
0x1df0   : > { %7347 = vmatmul.mubr.msk.f32.gmra.mxu1 %vm707_vm12, %v9774_v48 }
0x1df1   : > { %7349 = vmatprep.mubr.msk.f32.mxu1 %vm7430_vm11, %v7428_v13  ;;  %6892 = vmatmul.mubr.msk.f32.gmra.mxu0 %vm707_vm12, %v9786_v63 }
0x1df2   : > { %6314 = vmatprep.mubr.f32.mxu0 %v7428_v13 }
0x1df4   : > { %7350 = vmatmul.mubr.msk.f32.gmra.mxu1 %vm707_vm12, %v9786_v63 }
0x1df5   : > { %7352 = vmatprep.mubr.msk.f32.mxu1 %vm7430_vm11, %v7428_v13  ;;  %6893 = vmatmul.mubr.msk.f32.gmra.mxu0 %vm707_vm12, %v9798_v0 }
0x1df6   : > { %6320 = vmatprep.mubr.f32.mxu0 %v7428_v13 }
0x1df8   : > { %7353 = vmatmul.mubr.msk.f32.gmra.mxu1 %vm707_vm12, %v9798_v0 }
0x1df9   : > { %7355 = vmatprep.mubr.msk.f32.mxu1 %vm7430_vm11, %v7428_v13  ;;  %6894 = vmatmul.mubr.msk.f32.gmra.mxu0 %vm707_vm12, %v9810_v2 }
0x1dfc   : > { %7356 = vmatmul.mubr.msk.f32.gmra.mxu1 %vm707_vm12, %v9810_v2 }
0x1ea9   : > { %v6298_v51 = vpop.f32.mrf.mxu0 }
0x1eab   : > { %v6300_v17 = vpop.f32.mrf.mxu0 }
0x1eac   : > { %v6393_v57 = vpop.f32.mrf.mxu1 }
0x1ead   : > { %6436 = vrot.lane.b32.xlu1 %v6393_v57, %s7419_s8  ;;  %v6304_v48 = vpop.f32.mrf.mxu0 }
0x1eae   : > { %v7345_v6 = vpop.f32.mrf.mxu1 }
0x1eaf   : > { %v6306_v38 = vpop.f32.mrf.mxu0 }
0x1eb0   : > { %v6398_v63 = vpop.f32.mrf.mxu1 }
0x1eb1   : > { %6442 = vrot.lane.b32.xlu0 %v6398_v63, %s7419_s8  ;;  %v6310_v19 = vpop.f32.mrf.mxu0 }
0x1eb2   : > { %v7348_v0 = vpop.f32.mrf.mxu1 }
0x1eb3   : > { %v6312_v61 = vpop.f32.mrf.mxu0 }
0x1eb4   : > { %v6403_v3 = vpop.f32.mrf.mxu1 }
0x1eb5   : > { %6448 = vrot.lane.b32.xlu1 %v6403_v3, %s7419_s8  ;;  %v6316_v23 = vpop.f32.mrf.mxu0 }
0x1eb6   : > { %v7351_v13 = vpop.f32.mrf.mxu1 }
0x1eb7   : > { %v6318_v14 = vpop.f32.mrf.mxu0 }
0x1eb8   : > { %v6408_v62 = vpop.f32.mrf.mxu1 }
0x1eb9   : > { %6432 = vrot.lane.b32.xlu1 %v6298_v51, %s7419_s8  ;;  %6454 = vrot.lane.b32.xlu0 %v6408_v62, %s7419_s8  ;;  %v6322_v12 = vpop.f32.mrf.mxu0 }
0x1eba   : > { %v7354_v2 = vpop.f32.mrf.mxu1 }
0x1ebb   : > { %v6324_v58 = vpop.f32.mrf.mxu0 }
0x1ebc   : > { %v6413_v1 = vpop.f32.mrf.mxu1 }
0x1ebd   : > { %6434 = vrot.lane.b32.xlu0 %v6300_v17, %s7419_s8  ;;  %6460 = vrot.lane.b32.xlu1 %v6413_v1, %s7419_s8 }
0x1ebe   : > { %v7357_v39 = vpop.f32.mrf.mxu1 }
0x1ec1   : > { %6438 = vrot.lane.b32.xlu0 %v6304_v48, %s7419_s8  ;;  %6440 = vrot.lane.b32.xlu1 %v6306_v38, %s7419_s8 }
0x1ec5   : > { %6446 = vrot.lane.b32.xlu0 %v6312_v61, %s7419_s8  ;;  %6444 = vrot.lane.b32.xlu1 %v6310_v19, %s7419_s8 }
0x1ec9   : > { %6450 = vrot.lane.b32.xlu0 %v6316_v23, %s7419_s8  ;;  %6452 = vrot.lane.b32.xlu1 %v6318_v14, %s7419_s8 }
0x1ecd   : > { %6458 = vrot.lane.b32.xlu0 %v6324_v58, %s7419_s8  ;;  %6456 = vrot.lane.b32.xlu1 %v6322_v12, %s7419_s8 }
0x1f1f   : > { %v6437_v28 = vpop.permute.xlu1 %6436 }
0x1f20   : > { %v6489_v44 = vsel %vm309_vm0, %v6437_v28, 0.0 }
0x1f21   : > { %v6499_v20 = vrot.slane %v6489_v44, 4 }
0x1f23   : > { %6506 = vrot.lane.b32.xlu1 %v6499_v20, %s7426_s15  ;;  %v6443_v54 = vpop.permute.xlu0 %6442 }
0x1f24   : > { %v6490_v30 = vsel %vm309_vm0, %v6443_v54, 0.0 }
0x1f25   : > { %v6539_v16 = vrot.slane %v6490_v30, 4 }
0x1f27   : > { %v6449_v49 = vpop.permute.xlu1 %6448  ;;  %6525 = vrot.lane.b32.xlu1 %v6490_v30, %s7423_s12 }
0x1f28   : > { %v6491_v5 = vsel %vm309_vm0, %v6449_v49, 0.0 }
0x1f29   : > { %v6579_v4 = vrot.slane %v6491_v5, 4 }
0x1f2b   : > { %v6433_v35 = vpop.permute.xlu1 %6432  ;;  %v6455_v7 = vpop.permute.xlu0 %6454  ;;  %6546 = vrot.lane.b32.xlu1 %v6539_v16, %s7427_s16 }
0x1f2c   : > { %v10152_v18 = vsel %vm309_vm0, 0.0, %v6433_v35  ;;  %v6492_v26 = vsel %vm309_vm0, %v6455_v7, 0.0 }
0x1f2d   : > { %v6496_v37 = vrot.slane %v10152_v18, 4  ;;  %v6619_v31 = vrot.slane %v6492_v26, 4 }
0x1f2f   : > { %6500 = vrot.lane.b32.xlu0 %v6496_v37, %s7426_s15  ;;  %v6435_v24 = vpop.permute.xlu0 %6434  ;;  %6565 = vrot.lane.b32.xlu1 %v6491_v5, %s7422_s11  ;;  %v6461_v9 = vpop.permute.xlu1 %6460 }
0x1f30   : > { %v10159_v21 = vsel %vm309_vm0, %v6435_v24, %v6437_v28  ;;  %v10169_v56 = vsel %vm309_vm0, %v6433_v35, %v6435_v24  ;;  %v6493_v13 = vsel %vm309_vm0, %v6461_v9, 0.0 }
0x1f31   : > { %v6498_v34 = vrot.slane %v10159_v21, 4  ;;  %v6497_v29 = vrot.slane %v10169_v56, 4 }
0x1f33   : > { %6504 = vrot.lane.b32.xlu0 %v6498_v34, %s7426_s15  ;;  %v6439_v55 = vpop.permute.xlu0 %6438  ;;  %6586 = vrot.lane.b32.xlu1 %v6579_v4, %s7425_s14  ;;  %v6441_v52 = vpop.permute.xlu1 %6440 }
0x1f34   : > { %v6485_v47 = vsel %vm309_vm0, 0.0, %v6439_v55  ;;  %v6465_v11 = vsel %vm309_vm0, %v6441_v52, %v6443_v54  ;;  %v6464_v42 = vsel %vm309_vm0, %v6439_v55, %v6441_v52 }
0x1f35   : > { %v6536_v32 = vrot.slane %v6485_v47, 4  ;;  %v6538_v8 = vrot.slane %v6465_v11, 4  ;;  %v6537_v60 = vrot.slane %v6464_v42, 4 }
0x1f37   : > { %6519 = vrot.lane.b32.xlu0 %v6485_v47, %s7423_s12  ;;  %6605 = vrot.lane.b32.xlu1 %v6492_v26, %s7421_s10  ;;  %v6445_v36 = vpop.permute.xlu1 %6444  ;;  %v6447_v25 = vpop.permute.xlu0 %6446 }
0x1f38   : > { %v6486_v10 = vsel %vm309_vm0, 0.0, %v6445_v36  ;;  %v6467_v59 = vsel %vm309_vm0, %v6447_v25, %v6449_v49  ;;  %v6466_v33 = vsel %vm309_vm0, %v6445_v36, %v6447_v25 }
0x1f39   : > { %v6576_v41 = vrot.slane %v6486_v10, 4  ;;  %v6577_v43 = vrot.slane %v6466_v33, 4  ;;  %v6578_v57 = vrot.slane %v6467_v59, 4 }
0x1f3b   : > { %6626 = vrot.lane.b32.xlu1 %v6619_v31, %s7424_s13  ;;  %6523 = vrot.lane.b32.xlu0 %v6465_v11, %s7423_s12  ;;  %v6451_v27 = vpop.permute.xlu0 %6450  ;;  %v6453_v53 = vpop.permute.xlu1 %6452 }
0x1f3c   : > { %v6468_v51 = vsel %vm309_vm0, %v6451_v27, %v6453_v53  ;;  %v6487_v6 = vsel %vm309_vm0, 0.0, %v6451_v27  ;;  %v6469_v38 = vsel %vm309_vm0, %v6453_v53, %v6455_v7 }
0x1f3d   : > { %v6617_v17 = vrot.slane %v6468_v51, 4  ;;  %v6616_v3 = vrot.slane %v6487_v6, 4  ;;  %v6618_v19 = vrot.slane %v6469_v38, 4 }
0x1f3f   : > { %6502 = vrot.lane.b32.xlu1 %v6497_v29, %s7426_s15  ;;  %6540 = vrot.lane.b32.xlu0 %v6536_v32, %s7427_s16  ;;  %v6457_v48 = vpop.permute.xlu1 %6456  ;;  %v6459_v63 = vpop.permute.xlu0 %6458 }
0x1f40   : > { %v6470_v0 = vsel %vm309_vm0, %v6457_v48, %v6459_v63  ;;  %v6488_v62 = vsel %vm309_vm0, 0.0, %v6457_v48  ;;  %v6471_v2 = vsel %vm309_vm0, %v6459_v63, %v6461_v9 }
0x1f43   : > { %6544 = vrot.lane.b32.xlu0 %v6538_v8, %s7427_s16  ;;  %6521 = vrot.lane.b32.xlu1 %v6464_v42, %s7423_s12 }
0x1f47   : > { %6542 = vrot.lane.b32.xlu1 %v6537_v60, %s7427_s16  ;;  %6559 = vrot.lane.b32.xlu0 %v6486_v10, %s7422_s11 }
0x1f4b   : > { %6563 = vrot.lane.b32.xlu0 %v6467_v59, %s7422_s11  ;;  %6561 = vrot.lane.b32.xlu1 %v6466_v33, %s7422_s11 }
0x1f4f   : > { %6580 = vrot.lane.b32.xlu0 %v6576_v41, %s7425_s14  ;;  %6582 = vrot.lane.b32.xlu1 %v6577_v43, %s7425_s14 }
0x1f53   : > { %6584 = vrot.lane.b32.xlu0 %v6578_v57, %s7425_s14  ;;  %6601 = vrot.lane.b32.xlu1 %v6468_v51, %s7421_s10 }
0x1f57   : > { %6599 = vrot.lane.b32.xlu0 %v6487_v6, %s7421_s10  ;;  %6622 = vrot.lane.b32.xlu1 %v6617_v17, %s7424_s13 }
0x1f5b   : > { %6603 = vrot.lane.b32.xlu0 %v6469_v38, %s7421_s10  ;;  %6641 = vrot.lane.b32.xlu1 %v6470_v0, %s7420_s9  ;;  %s279_s10 = scalar_lea.vmem %s10257_s7, %s7358_s0 }
0x1f5f   : > { %6620 = vrot.lane.b32.xlu0 %v6616_v3, %s7424_s13  ;;  %6645 = vrot.lane.b32.xlu1 %v6493_v13, %s7420_s9 }
0x1f63   : > { %6624 = vrot.lane.b32.xlu0 %v6618_v19, %s7424_s13 }
0x1f67   : > { %6639 = vrot.lane.b32.xlu0 %v6488_v62, %s7420_s9 }
0x1f6b   : > { %6643 = vrot.lane.b32.xlu0 %v6471_v2, %s7420_s9 }
0x1f95   : > { %v6507_v61 = vpop.permute.xlu1 %6506 }
0x1f99   : > { %v6526_v1 = vpop.permute.xlu1 %6525 }
0x1f9d   : > { %v6547_v23 = vpop.permute.xlu1 %6546 }
0x1fa1   : > { %v6501_v39 = vpop.permute.xlu0 %6500  ;;  %v6566_v14 = vpop.permute.xlu1 %6565 }
0x1fa5   : > { %v6505_v12 = vpop.permute.xlu0 %6504  ;;  %v6587_v58 = vpop.permute.xlu1 %6586 }
0x1fa6   : > { %v6510_v29 = vsel %vm332_vm10, %v6505_v12, %v6507_v61 }
0x1fa7   : > { %v6516_v25 = vadd.f32 %v6510_v29, %v10159_v21 }
0x1fa9   : > { %v6520_v28 = vpop.permute.xlu0 %6519  ;;  %v6606_v44 = vpop.permute.xlu1 %6605 }
0x1fad   : > { %v6524_v20 = vpop.permute.xlu0 %6523  ;;  %v6627_v54 = vpop.permute.xlu1 %6626 }
0x1fae   : > { %v6529_v36 = vsel %vm347_vm9, %v6524_v20, %v6526_v1 }
0x1faf   : > { %v6535_v51 = vadd.f32 %v6529_v36, %v6516_v25 }
0x1fb1   : > { %v6541_v30 = vpop.permute.xlu0 %6540  ;;  %v6503_v49 = vpop.permute.xlu1 %6502 }
0x1fb2   : > { %v6508_v47 = vsel %vm332_vm10, %v6501_v39, %v6503_v49  ;;  %v6509_v32 = vsel %vm332_vm10, %v6503_v49, %v6505_v12 }
0x1fb3   : > { %v6514_v31 = vadd.f32 %v6508_v47, %v10152_v18  ;;  %v6515_v59 = vadd.f32 %v6509_v32, %v10169_v56 }
0x1fb5   : > { %v6545_v16 = vpop.permute.xlu0 %6544  ;;  %v6522_v35 = vpop.permute.xlu1 %6521 }
0x1fb6   : > { %v6527_v52 = vsel %vm347_vm9, %v6520_v28, %v6522_v35  ;;  %v6528_v10 = vsel %vm347_vm9, %v6522_v35, %v6524_v20  ;;  %v6550_v43 = vsel %vm362_vm8, %v6545_v16, %v6547_v23 }
0x1fb7   : > { %v6533_v42 = vadd.f32 %v6527_v52, %v6514_v31  ;;  %v6534_v57 = vadd.f32 %v6528_v10, %v6515_v59  ;;  %v6556_v63 = vadd.f32 %v6550_v43, %v6535_v51 }
0x1fb9   : > { %v6560_v7 = vpop.permute.xlu0 %6559  ;;  %v6543_v37 = vpop.permute.xlu1 %6542 }
0x1fba   : > { %v6548_v8 = vsel %vm362_vm8, %v6541_v30, %v6543_v37  ;;  %v6549_v27 = vsel %vm362_vm8, %v6543_v37, %v6545_v16 }
0x1fbb   : > { %v6554_v33 = vadd.f32 %v6548_v8, %v6533_v42  ;;  %v6555_v56 = vadd.f32 %v6549_v27, %v6534_v57 }
0x1fbd   : > { %v6564_v5 = vpop.permute.xlu0 %6563  ;;  %v6562_v24 = vpop.permute.xlu1 %6561 }
0x1fbe   : > { %v6567_v60 = vsel %vm377_vm7, %v6560_v7, %v6562_v24  ;;  %v6569_v6 = vsel %vm377_vm7, %v6564_v5, %v6566_v14  ;;  %v6568_v48 = vsel %vm377_vm7, %v6562_v24, %v6564_v5 }
0x1fbf   : > { %v6573_v17 = vadd.f32 %v6567_v60, %v6554_v33  ;;  %v6575_v62 = vadd.f32 %v6569_v6, %v6556_v63  ;;  %v6574_v2 = vadd.f32 %v6568_v48, %v6555_v56 }
0x1fc1   : > { %v6581_v4 = vpop.permute.xlu0 %6580  ;;  %v6583_v34 = vpop.permute.xlu1 %6582 }
0x1fc2   : > { %v6588_v53 = vsel %vm392_vm6, %v6581_v4, %v6583_v34 }
0x1fc3   : > { %v6594_v0 = vadd.f32 %v6588_v53, %v6573_v17 }
0x1fc5   : > { %v6585_v9 = vpop.permute.xlu0 %6584  ;;  %v6602_v26 = vpop.permute.xlu1 %6601 }
0x1fc6   : > { %v6589_v3 = vsel %vm392_vm6, %v6583_v34, %v6585_v9  ;;  %v6590_v13 = vsel %vm392_vm6, %v6585_v9, %v6587_v58 }
0x1fc7   : > { %v6595_v14 = vadd.f32 %v6589_v3, %v6574_v2  ;;  %v6596_v12 = vadd.f32 %v6590_v13, %v6575_v62 }
0x1fc9   : > { %v6600_v55 = vpop.permute.xlu0 %6599  ;;  %v6623_v18 = vpop.permute.xlu1 %6622 }
0x1fca   : > { %v6607_v21 = vsel %vm407_vm4, %v6600_v55, %v6602_v26 }
0x1fcb   : > { %v6613_v61 = vadd.f32 %v6607_v21, %v6594_v0 }
0x1fcd   : > { %v6604_v11 = vpop.permute.xlu0 %6603  ;;  %v6642_v1 = vpop.permute.xlu1 %6641 }
0x1fce   : > { %v6608_v23 = vsel %vm407_vm4, %v6602_v26, %v6604_v11  ;;  %v6609_v39 = vsel %vm407_vm4, %v6604_v11, %v6606_v44 }
0x1fcf   : > { %v6614_v16 = vadd.f32 %v6608_v23, %v6595_v14  ;;  %v6615_v35 = vadd.f32 %v6609_v39, %v6596_v12 }
0x1fd1   : > { %v6621_v41 = vpop.permute.xlu0 %6620  ;;  %v6646_v37 = vpop.permute.xlu1 %6645 }
0x1fd2   : > { %v6628_v19 = vsel %vm422_vm5, %v6621_v41, %v6623_v18 }
0x1fd3   : > { %v6634_v28 = vadd.f32 %v6628_v19, %v6613_v61 }
0x1fd5   : > { %v6625_v38 = vpop.permute.xlu0 %6624 }
0x1fd6   : > { %v6629_v30 = vsel %vm422_vm5, %v6623_v18, %v6625_v38  ;;  %v6630_v49 = vsel %vm422_vm5, %v6625_v38, %v6627_v54 }
0x1fd7   : > { %v6635_v5 = vadd.f32 %v6629_v30, %v6614_v16  ;;  %v6636_v24 = vadd.f32 %v6630_v49, %v6615_v35 }
0x1fd9   : > { %v6640_v20 = vpop.permute.xlu0 %6639 }
0x1fda   : > { %v6647_v58 = vsel %vm437_vm2, %v6640_v20, %v6642_v1 }
0x1fdb   : > { %v6653_v7 = vadd.f32 %v6647_v58, %v6634_v28 }
0x1fdd   : > { %v6644_v4 = vpop.permute.xlu0 %6643  ;;  %v6656_v9 = vadd.f32 %v6653_v7, %v7803_v15 }
0x1fde   : > { %v6648_v44 = vsel %vm437_vm2, %v6642_v1, %v6644_v4  ;;  %v6649_v34 = vsel %vm437_vm2, %v6644_v4, %v6646_v37 }
0x1fdf   : > { %v6654_v55 = vadd.f32 %v6648_v44, %v6635_v5  ;;  %v6655_v47 = vadd.f32 %v6649_v34, %v6636_v24  ;;  %v6659_v52 = vmul.f32 %v6656_v9, %v7904_v45 }
0x1fe1   : > { %v6657_v54 = vadd.f32 %v6654_v55, %v7803_v15  ;;  %v6658_v26 = vadd.f32 %v6655_v47, %v7803_v15 }
0x1fe3   : > { %v6660_v31 = vmul.f32 %v6657_v54, %v7908_v50  ;;  %v6661_v11 = vmul.f32 %v6658_v26, %v7918_v46 }
0x1fe5   : > { %v6664_v29 = vcombine.low %v6659_v52, %v6660_v31  ;;  %v6667_v32 = vadd.f32 %v6661_v11, %v9941_v40 }
0x1fe7   : > { %v6666_v8 = vadd.f32 %v6664_v29, %v9933_v22  ;;  %6669 = vst [vmem:[%s279_s10 + $0x8] sm:$0xf] %v6667_v32 }
0x1fe9   : > { %6668 = vst [vmem:[%s279_s10] sm:$0xff] %v6666_v8 }
0x1fea PF: > { %s18_s26 = sadd.s32 1, %s7417_s26  }
0x1feb   : > { %p15_p4 = scmp.ge.s32.totalorder %s18_s26, 4  }
0x1fed   :  { %17 = sbr.rel (!%p15_p4) target bundleno = 2 (0x2), region = 78 }

</bundles_post_ra>
